<compile_context>
chip_gen: v7x
topology: tpu7x:2x2x1
jax: 0.10.0
libtpu: 0.0.40
codegen_flags: <defaults>
</compile_context>

<pallas_src>
import functools
import math

import jax
import jax.numpy as jnp
from jax.experimental import pallas as pl
from jax.experimental.pallas import tpu as pltpu  # noqa: F401  (kept for parity; no scratch needed at toy dims)

# ------------------------------ configuration ------------------------------
MODE = "cocondenser"        # {'cotbert','condenser','cocondenser','cotmae','cocomae'}
B, S = 4, 8                 # batch (even, for contrastive pairs), sequence length
H = 32                      # hidden size
NH = 2                      # attention heads
HD = H // NH                # head dim
INTER = 128                 # FFN intermediate size
V = 128                     # vocab size
MAX_POS = 16
N_ENC_LAYERS = 3
N_DEC_LAYERS = 2
SKIP_FROM = 2
LN_EPS = 1e-12
MASK_MIN = float(jnp.finfo(jnp.float32).min)   # matches torch get_extended_attention_mask
IGNORE_INDEX = -100
GELU_C = 0.7978845608028654                    # sqrt(2/pi)
ATT_SCALE = 1.0 / math.sqrt(HD)
MXU_DTYPE = jnp.bfloat16                       # MXU operands; accumulation stays f32

LAYER_KEYS = ("wq", "bq", "wkT", "bk", "wv", "bv", "woh", "bo",
              "ln1_g", "ln1_b", "wi", "bi", "wo2", "bo2", "ln2_g", "ln2_b")
HEAD_KEYS = ("t_w", "t_b", "t_ln_g", "t_ln_b", "dec_w", "dec_b")
N_LAYER_TENSORS = len(LAYER_KEYS)
N_HEAD_TENSORS = len(HEAD_KEYS)


# ------------------------------ in-kernel helpers ------------------------------
def _mxu(a, b):
    # Cast only at the MXU inputs; accumulate in f32.
    return jnp.dot(a.astype(MXU_DTYPE), b.astype(MXU_DTYPE),
                   preferred_element_type=jnp.float32)


def _gelu(x):
    return 0.5 * x * (1.0 + jnp.tanh(GELU_C * (x + 0.044715 * x * x * x)))


def _ln(x, g, b):
    mu = jnp.mean(x, axis=-1, keepdims=True)
    xc = x - mu
    var = jnp.mean(xc * xc, axis=-1, keepdims=True)
    return xc * jax.lax.rsqrt(var + LN_EPS) * g + b


def _softmax_lastdim(s):
    m = jnp.max(s, axis=-1, keepdims=True)
    p = jnp.exp(s - m)
    # approx reciprocal runs on the EUP (separate slot); probs sum to ~1 (synthetic OK).
    return p * pl.reciprocal(jnp.sum(p, axis=-1, keepdims=True), approx=True)


def _xent_mean(logits, labels):
    # logits: (N, C) f32, labels: (N, 1) int32; mean CE over rows with label != -100.
    col = jax.lax.broadcasted_iota(jnp.int32, logits.shape, 1)
    gold = jnp.sum(jnp.where(col == labels, logits, 0.0), axis=-1, keepdims=True)
    m = jnp.max(logits, axis=-1, keepdims=True)
    lse = m + jnp.log(jnp.sum(jnp.exp(logits - m), axis=-1, keepdims=True))
    per_row = lse - gold
    valid = (labels != IGNORE_INDEX).astype(jnp.float32)
    total = jnp.sum(per_row * valid, axis=0, keepdims=True)            # (1, 1)
    count = jnp.maximum(jnp.sum(valid, axis=0, keepdims=True), 1.0)    # guard 0/0
    return total / count


def _bert_layers(h, bias, lrefs, *, num_layers, skip_after):
    """Runs `num_layers` BERT layers on a (B*S, H) f32 slab, all in VMEM/registers.

    Attention per head over the whole batch: scores = q @ kT with a block-diagonal
    additive bias (cross-batch keys masked to MASK_MIN), ctx = p @ v, and the
    output projection folded into the head loop.  No scratch, no masked stores.
    """
    (wq, bq, wkT, bk, wv, bv, woh, bo,
     g1, b1, wi, bi, wo2, bo2, g2, b2) = lrefs
    skip = h                                   # hidden_states[0] (post-embedding-LN)
    for l in range(num_layers):                # TODO(synk): fori_loop / grid axis past ~4 layers
        hT = h.T                               # one transpose per layer feeds the K^T path
        attn = None
        for n in range(NH):
            i = l * NH + n
            q = _mxu(h, wq[i]) + bq[i]                    # (B*S, HD)
            kT = _mxu(wkT[i], hT) + bk[i]                 # (HD, B*S)  native orientation
            v = _mxu(h, wv[i]) + bv[i]                    # (B*S, HD)
            s = _mxu(q, kT) * ATT_SCALE + bias            # (B*S, B*S) batch-wide scores
            p = _softmax_lastdim(s)
            head_out = _mxu(_mxu(p, v), woh[i])           # ctx_n @ Wo[rows of head n] -> (B*S, H)
            attn = head_out if attn is None else attn + head_out
        attn = attn + bo[l]
        h1 = _ln(attn + h, g1[l], b1[l])
        inter = _gelu(_mxu(h1, wi[l]) + bi[l])
        ffn = _mxu(inter, wo2[l]) + bo2[l]
        h = _ln(ffn + h1, g2[l], b2[l])
        if l + 1 == skip_after:
            skip = h
    return h, skip


def _mlm_head_xent(h, hrefs, labels):
    # BertLMPredictionHead (dense -> gelu -> LN -> vocab proj) fused with masked CE.
    t_w, t_b, t_g, t_bb, d_w, d_b = hrefs
    t = _gelu(_mxu(h, t_w[...]) + t_b[...])
    t = _ln(t, t_g[...], t_bb[...])
    logits = _mxu(t, d_w[...]) + d_b[...]                 # (B*S, V) lane-dense
    return logits, _xent_mean(logits, labels)


# ------------------------------ Pallas kernels ------------------------------
def _encoder_kernel(*refs, num_layers, skip_after):
    x_ref, bias_ref, lab_ref, eg_ref, eb_ref = refs[:5]
    lrefs = refs[5:5 + N_LAYER_TENSORS]
    hrefs = refs[5 + N_LAYER_TENSORS:5 + N_LAYER_TENSORS + N_HEAD_TENSORS]
    out_ref, skip_ref, preds_ref, loss_ref = refs[5 + N_LAYER_TENSORS + N_HEAD_TENSORS:]

    h = _ln(x_ref[...], eg_ref[...], eb_ref[...])         # embedding LN fused as prologue
    bias = bias_ref[...]                                  # hoisted once for all layers/heads
    h, skip = _bert_layers(h, bias, lrefs, num_layers=num_layers, skip_after=skip_after)
    out_ref[...] = h
    skip_ref[...] = skip
    logits, loss = _mlm_head_xent(h, hrefs, lab_ref[...])  # MLM head + CE fused as epilogue
    preds_ref[...] = logits
    loss_ref[...] = loss


def _decoder_kernel(*refs, num_layers):
    x_ref, bias_ref, lab_ref = refs[:3]
    lrefs = refs[3:3 + N_LAYER_TENSORS]
    hrefs = refs[3 + N_LAYER_TENSORS:3 + N_LAYER_TENSORS + N_HEAD_TENSORS]
    preds_ref, loss_ref = refs[3 + N_LAYER_TENSORS + N_HEAD_TENSORS:]

    h, _ = _bert_layers(x_ref[...], bias_ref[...], lrefs,
                        num_layers=num_layers, skip_after=-1)
    logits, loss = _mlm_head_xent(h, hrefs, lab_ref[...])
    preds_ref[...] = logits
    loss_ref[...] = loss


def _cls_contrastive_kernel(e_ref, lab_ref, scores_ref, loss_ref):
    e = e_ref[...]                                         # (B, H)
    s = jax.lax.dot_general(e, e, (((1,), (1,)), ((), ())),
                            preferred_element_type=jnp.float32)   # (B, B), tiny -> kept f32
    n = s.shape[0]
    ri = jax.lax.broadcasted_iota(jnp.int32, (n, n), 0)
    ci = jax.lax.broadcasted_iota(jnp.int32, (n, n), 1)
    s = jnp.where(ri == ci, -jnp.inf, s)                   # fill_diagonal_(-inf)
    scores_ref[...] = s
    loss_ref[...] = _xent_mean(s, lab_ref[...])


# ------------------------------ wrappers ------------------------------
def encoder_stack_mlm(x_flat, bias_full, labels_col, emb_g, emb_b, layer_p, head_p):
    num_layers = layer_p["wi"].shape[0]
    ops = ([x_flat, bias_full, labels_col, emb_g, emb_b]
           + [layer_p[k] for k in LAYER_KEYS]
           + [head_p[k] for k in HEAD_KEYS])
    return pl.pallas_call(
        functools.partial(_encoder_kernel, num_layers=num_layers, skip_after=SKIP_FROM),
        out_shape=(jax.ShapeDtypeStruct((B * S, H), jnp.float32),   # final hidden
                   jax.ShapeDtypeStruct((B * S, H), jnp.float32),   # hidden_states[SKIP_FROM]
                   jax.ShapeDtypeStruct((B * S, V), jnp.float32),   # MLM logits
                   jax.ShapeDtypeStruct((1, 1), jnp.float32)),      # enc MLM loss
    )(*ops)


def decoder_stack_mlm(x_flat, bias_full, labels_col, layer_p, head_p):
    num_layers = layer_p["wi"].shape[0]
    ops = ([x_flat, bias_full, labels_col]
           + [layer_p[k] for k in LAYER_KEYS]
           + [head_p[k] for k in HEAD_KEYS])
    return pl.pallas_call(
        functools.partial(_decoder_kernel, num_layers=num_layers),
        out_shape=(jax.ShapeDtypeStruct((B * S, V), jnp.float32),   # dec MLM logits
                   jax.ShapeDtypeStruct((1, 1), jnp.float32)),      # dec MLM loss
    )(*ops)


def cls_contrastive(cls_emb, cls_labels_col):
    scores, loss = pl.pallas_call(
        _cls_contrastive_kernel,
        out_shape=(jax.ShapeDtypeStruct((B, B), jnp.float32),
                   jax.ShapeDtypeStruct((1, 1), jnp.float32)),
    )(cls_emb, cls_labels_col)
    return scores, loss[0, 0]


# ------------------------------ model glue ------------------------------
def _block_diag_attn_bias(attention_mask):
    # torch get_extended_attention_mask: additive (1 - mask) * finfo(f32).min per key.
    # Expanded once (wrapper side) to a (B*S, B*S) block-diagonal bias so each head's
    # attention runs over the whole batch in one matmul; MASK_MIN on cross-batch
    # entries makes their softmax weight exactly 0 (identical to per-batch softmax).
    tok_batch = jnp.repeat(jnp.arange(B), S)                  # (B*S,)
    same_batch = tok_batch[:, None] == tok_batch[None, :]
    key_ok = attention_mask.reshape(-1) != 0                   # (B*S,)
    allowed = same_batch & key_ok[None, :]
    return jnp.where(allowed, 0.0, MASK_MIN).astype(jnp.float32)


def condenser_forward(params, input_ids, token_type_ids, attention_mask, labels):
    pos_ids = jnp.arange(S)
    emb = (params["word_emb"][input_ids]
           + params["pos_emb"][pos_ids][None, :, :]
           + params["type_emb"][token_type_ids])              # (B, S, H)
    x_flat = emb.reshape(B * S, H)
    bias_full = _block_diag_attn_bias(attention_mask)          # shared by enc + dec stacks
    labels_col = labels.reshape(-1, 1).astype(jnp.int32)

    # Launch 1: embedding LN + encoder stack + MLM head + masked CE.
    enc_final, enc_skip, enc_preds_flat, enc_mlm_loss = encoder_stack_mlm(
        x_flat, bias_full, labels_col, params["emb_ln_g"], params["emb_ln_b"],
        params["enc_layers"], params["mlm_head"])
    enc_output_preds = enc_preds_flat.reshape(B, S, V)
    enc_mlm_loss = enc_mlm_loss[0, 0]

    last = enc_final.reshape(B, S, H)
    skip = enc_skip.reshape(B, S, H)
    cls_hiddens = last[:, :1]               # (B, 1, H)
    skip_hiddens = skip[:, 1:]              # (B, S-1, H)

    if MODE in ("cotmae", "cocomae"):
        cls_hiddens = cls_hiddens.reshape(-1, 2, H)[:, ::-1].reshape(-1, 1, H)

    if MODE != "cotbert":
        hiddens = jnp.concatenate([cls_hiddens, skip_hiddens], axis=1)   # (B, S, H)
        # Launch 2: decoder stack + shared MLM head + masked CE.
        dec_preds_flat, dec_mlm_loss = decoder_stack_mlm(
            hiddens.reshape(B * S, H), bias_full, labels_col,
            params["dec_layers"], params["mlm_head"])
        dec_output_preds = dec_preds_flat.reshape(B, S, V)
        dec_mlm_loss = dec_mlm_loss[0, 0]
    else:
        dec_output_preds, dec_mlm_loss = None, None

    if MODE in ("cotbert", "cocondenser", "cocomae"):
        cls_emb = cls_hiddens.reshape(B, H)
        cls_labels = (jnp.arange(B, dtype=jnp.int32)
                      .reshape(-1, 2)[:, ::-1].reshape(-1, 1))
        # Launch 3: contrastive scores + CE.
        cls_scores, enc_ctx_loss = cls_contrastive(cls_emb, cls_labels)
    else:
        cls_emb, cls_scores, enc_ctx_loss = None, None, None

    if MODE in ("cocondenser", "cocomae"):
        loss = enc_mlm_loss + dec_mlm_loss + enc_ctx_loss
    elif MODE in ("condenser", "cotmae"):
        loss = enc_mlm_loss + dec_mlm_loss
    else:  # cotbert
        loss = enc_mlm_loss + enc_ctx_loss

    return {
        "enc_output_preds": enc_output_preds,
        "dec_output_preds": dec_output_preds,
        "cls_emb": cls_emb,
        "cls_scores": cls_scores,
        "loss": loss,
    }


# ------------------------------ parameter init ------------------------------
def init_params(key):
    keys = iter(jax.random.split(key, 64))

    def nrm(shape):
        return jax.random.normal(next(keys), shape, jnp.float32) * 0.02

    def stacked_layer_params(L):
        # Standard BERT (H, H) projection matrices, then re-laid-out per head in the
        # WRAPPER so the kernel only does free leading-axis indexing:
        #   wq/wv : (L*NH, H, HD)   column slices by head (output dim split)
        #   wkT   : (L*NH, HD, H)   K stored pre-transposed -> native score matmul
        #   woh   : (L*NH, HD, H)   row slices of Wo by head (attn = sum_n ctx_n @ woh[n])
        wq = nrm((L, H, H)); wk = nrm((L, H, H)); wv = nrm((L, H, H)); wo = nrm((L, H, H))
        p = dict(
            wq=wq.reshape(L, H, NH, HD).transpose(0, 2, 1, 3).reshape(L * NH, H, HD),
            bq=jnp.zeros((L * NH, 1, HD)),
            wkT=wk.reshape(L, H, NH, HD).transpose(0, 2, 3, 1).reshape(L * NH, HD, H),
            bk=jnp.zeros((L * NH, HD, 1)),
            wv=wv.reshape(L, H, NH, HD).transpose(0, 2, 1, 3).reshape(L * NH, H, HD),
            bv=jnp.zeros((L * NH, 1, HD)),
            woh=wo.reshape(L * NH, HD, H),
            bo=jnp.zeros((L, 1, H)),
            ln1_g=jnp.ones((L, 1, H)), ln1_b=jnp.zeros((L, 1, H)),
            wi=nrm((L, H, INTER)), bi=jnp.zeros((L, 1, INTER)),
            wo2=nrm((L, INTER, H)), bo2=jnp.zeros((L, 1, H)),
            ln2_g=jnp.ones((L, 1, H)), ln2_b=jnp.zeros((L, 1, H)),
        )
        # MXU operands stored in bf16 (halves weight DMA/VMEM); biases/LN stay f32.
        for k in ("wq", "wkT", "wv", "woh", "wi", "wo2"):
            p[k] = p[k].astype(MXU_DTYPE)
        return p

    word_emb = nrm((V, H))
    params = dict(
        word_emb=word_emb,
        pos_emb=nrm((MAX_POS, H)),
        type_emb=nrm((2, H)),
        emb_ln_g=jnp.ones((1, H)), emb_ln_b=jnp.zeros((1, H)),
        enc_layers=stacked_layer_params(N_ENC_LAYERS),
        dec_layers=stacked_layer_params(N_DEC_LAYERS),
        # dec_pretrain_head is weight-copied from enc.cls in the torch module,
        # so encoder and decoder share one MLM head (decoder weight tied to emb).
        mlm_head=dict(
            t_w=nrm((H, H)).astype(MXU_DTYPE), t_b=jnp.zeros((1, H)),
            t_ln_g=jnp.ones((1, H)), t_ln_b=jnp.zeros((1, H)),
            dec_w=word_emb.T.astype(MXU_DTYPE), dec_b=jnp.zeros((1, V)),
        ),
    )
    return params


# ------------------------------ main ------------------------------
if __name__ == "__main__":
    root = jax.random.PRNGKey(0)
    pkey, k_ids, k_lbl = jax.random.split(root, 3)

    params = init_params(pkey)
    input_ids = jax.random.randint(k_ids, (B, S), 0, V, dtype=jnp.int32)
    token_type_ids = jnp.zeros((B, S), jnp.int32)
    attention_mask = jnp.ones((B, S), jnp.int32).at[3, -1].set(0)
    labels = jax.random.randint(k_lbl, (B, S), 0, V, dtype=jnp.int32).at[:, 0].set(IGNORE_INDEX)

    fwd = jax.jit(condenser_forward)
    out = fwd(params, input_ids, token_type_ids, attention_mask, labels)
    out = jax.block_until_ready(out)

    assert out["enc_output_preds"].shape == (B, S, V)
    assert out["dec_output_preds"].shape == (B, S, V)
    assert out["cls_emb"].shape == (B, H)
    assert out["cls_scores"].shape == (B, B)
    assert bool(jnp.isfinite(out["loss"]))
    print("KERNEL_OK")
</pallas_src>

<mosaic_0001>
module attributes {stable_mosaic.version = 11 : i64} {
  func.func @_encoder_kernel(%arg0: memref<32x32xf32, #tpu.memory_space<vmem>>, %arg1: memref<32x32xf32, #tpu.memory_space<vmem>>, %arg2: memref<32x1xi32, #tpu.memory_space<vmem>>, %arg3: memref<1x32xf32, #tpu.memory_space<vmem>>, %arg4: memref<1x32xf32, #tpu.memory_space<vmem>>, %arg5: memref<6x32x16xbf16, #tpu.memory_space<vmem>>, %arg6: memref<6x1x16xf32, #tpu.memory_space<vmem>>, %arg7: memref<6x16x32xbf16, #tpu.memory_space<vmem>>, %arg8: memref<6x16x1xf32, #tpu.memory_space<vmem>>, %arg9: memref<6x32x16xbf16, #tpu.memory_space<vmem>>, %arg10: memref<6x1x16xf32, #tpu.memory_space<vmem>>, %arg11: memref<6x16x32xbf16, #tpu.memory_space<vmem>>, %arg12: memref<3x1x32xf32, #tpu.memory_space<vmem>>, %arg13: memref<3x1x32xf32, #tpu.memory_space<vmem>>, %arg14: memref<3x1x32xf32, #tpu.memory_space<vmem>>, %arg15: memref<3x32x128xbf16, #tpu.memory_space<vmem>>, %arg16: memref<3x1x128xf32, #tpu.memory_space<vmem>>, %arg17: memref<3x128x32xbf16, #tpu.memory_space<vmem>>, %arg18: memref<3x1x32xf32, #tpu.memory_space<vmem>>, %arg19: memref<3x1x32xf32, #tpu.memory_space<vmem>>, %arg20: memref<3x1x32xf32, #tpu.memory_space<vmem>>, %arg21: memref<32x32xbf16, #tpu.memory_space<vmem>>, %arg22: memref<1x32xf32, #tpu.memory_space<vmem>>, %arg23: memref<1x32xf32, #tpu.memory_space<vmem>>, %arg24: memref<1x32xf32, #tpu.memory_space<vmem>>, %arg25: memref<32x128xbf16, #tpu.memory_space<vmem>>, %arg26: memref<1x128xf32, #tpu.memory_space<vmem>>, %arg27: memref<32x32xf32, #tpu.memory_space<vmem>>, %arg28: memref<32x32xf32, #tpu.memory_space<vmem>>, %arg29: memref<32x128xf32, #tpu.memory_space<vmem>>, %arg30: memref<1x1xf32, #tpu.memory_space<vmem>>) attributes {dimension_semantics = [], scalar_prefetch = 0 : i64, scratch_operands = 0 : i64, tpu.core_type = #tpu.core_type<tc>} {
    %c0 = arith.constant 0 : index
    %c0_0 = arith.constant 0 : index
    %0 = vector.load %arg0[%c0, %c0_0] : memref<32x32xf32, #tpu.memory_space<vmem>>, vector<32x32xf32>
    %c0_1 = arith.constant 0 : index
    %c0_2 = arith.constant 0 : index
    %1 = vector.load %arg3[%c0_1, %c0_2] : memref<1x32xf32, #tpu.memory_space<vmem>>, vector<1x32xf32>
    %c0_3 = arith.constant 0 : index
    %c0_4 = arith.constant 0 : index
    %2 = vector.load %arg4[%c0_3, %c0_4] : memref<1x32xf32, #tpu.memory_space<vmem>>, vector<1x32xf32>
    %cst = arith.constant dense<0.000000e+00> : vector<32xf32>
    %3 = vector.multi_reduction <add>, %0, %cst [1] : vector<32x32xf32> to vector<32xf32>
    %4 = vector.shape_cast %3 : vector<32xf32> to vector<32x1xf32>
    %cst_5 = arith.constant 3.200000e+01 : f32
    %5 = vector.broadcast %cst_5 : f32 to vector<32x1xf32>
    %6 = arith.divf %4, %5 : vector<32x1xf32>
    %7 = vector.broadcast %6 : vector<32x1xf32> to vector<32x32xf32>
    %8 = arith.subf %0, %7 : vector<32x32xf32>
    %9 = arith.mulf %8, %8 : vector<32x32xf32>
    %cst_6 = arith.constant dense<0.000000e+00> : vector<32xf32>
    %10 = vector.multi_reduction <add>, %9, %cst_6 [1] : vector<32x32xf32> to vector<32xf32>
    %11 = vector.shape_cast %10 : vector<32xf32> to vector<32x1xf32>
    %cst_7 = arith.constant 3.200000e+01 : f32
    %12 = vector.broadcast %cst_7 : f32 to vector<32x1xf32>
    %13 = arith.divf %11, %12 : vector<32x1xf32>
    %cst_8 = arith.constant 9.99999996E-13 : f32
    %14 = vector.broadcast %cst_8 : f32 to vector<32x1xf32>
    %15 = arith.addf %13, %14 : vector<32x1xf32>
    %16 = math.rsqrt %15 : vector<32x1xf32>
    %17 = vector.broadcast %16 : vector<32x1xf32> to vector<32x32xf32>
    %18 = arith.mulf %8, %17 : vector<32x32xf32>
    %19 = vector.broadcast %1 : vector<1x32xf32> to vector<32x32xf32>
    %20 = arith.mulf %18, %19 : vector<32x32xf32>
    %21 = vector.broadcast %2 : vector<1x32xf32> to vector<32x32xf32>
    %22 = arith.addf %20, %21 : vector<32x32xf32>
    %c0_9 = arith.constant 0 : index
    %c0_10 = arith.constant 0 : index
    %23 = vector.load %arg1[%c0_9, %c0_10] : memref<32x32xf32, #tpu.memory_space<vmem>>, vector<32x32xf32>
    %24 = tpu.transpose %22, [1, 0] : vector<32x32xf32> -> vector<32x32xf32>
    %c0_11 = arith.constant 0 : index
    %c0_12 = arith.constant 0 : index
    %c0_13 = arith.constant 0 : index
    %25 = vector.load %arg5[%c0_11, %c0_12, %c0_13] : memref<6x32x16xbf16, #tpu.memory_space<vmem>>, vector<1x32x16xbf16>
    %26 = vector.shape_cast %25 : vector<1x32x16xbf16> to vector<32x16xbf16>
    %27 = arith.truncf %22 : vector<32x32xf32> to vector<32x32xbf16>
    %cst_14 = arith.constant dense<0.000000e+00> : vector<32x16xf32>
    %28 = tpu.matmul %27, %26, %cst_14 {dimension_numbers = #tpu.dot_dimension_numbers<[1], [0], [0], [1], [0, 0, 1, 1], [], []>} : vector<32x32xbf16>, vector<32x16xbf16>, vector<32x16xf32> -> vector<32x16xf32>
    %c0_15 = arith.constant 0 : index
    %c0_16 = arith.constant 0 : index
    %c0_17 = arith.constant 0 : index
    %29 = vector.load %arg6[%c0_15, %c0_16, %c0_17] : memref<6x1x16xf32, #tpu.memory_space<vmem>>, vector<1x1x16xf32>
    %30 = vector.shape_cast %29 : vector<1x1x16xf32> to vector<1x16xf32>
    %31 = vector.broadcast %30 : vector<1x16xf32> to vector<32x16xf32>
    %32 = arith.addf %28, %31 : vector<32x16xf32>
    %c0_18 = arith.constant 0 : index
    %c0_19 = arith.constant 0 : index
    %c0_20 = arith.constant 0 : index
    %33 = vector.load %arg7[%c0_18, %c0_19, %c0_20] : memref<6x16x32xbf16, #tpu.memory_space<vmem>>, vector<1x16x32xbf16>
    %34 = vector.shape_cast %33 : vector<1x16x32xbf16> to vector<16x32xbf16>
    %35 = arith.truncf %24 : vector<32x32xf32> to vector<32x32xbf16>
    %cst_21 = arith.constant dense<0.000000e+00> : vector<16x32xf32>
    %36 = tpu.matmul %34, %35, %cst_21 {dimension_numbers = #tpu.dot_dimension_numbers<[1], [0], [0], [1], [0, 0, 1, 1], [], []>} : vector<16x32xbf16>, vector<32x32xbf16>, vector<16x32xf32> -> vector<16x32xf32>
    %c0_22 = arith.constant 0 : index
    %c0_23 = arith.constant 0 : index
    %c0_24 = arith.constant 0 : index
    %37 = vector.load %arg8[%c0_22, %c0_23, %c0_24] : memref<6x16x1xf32, #tpu.memory_space<vmem>>, vector<1x16x1xf32>
    %38 = vector.shape_cast %37 : vector<1x16x1xf32> to vector<16x1xf32>
    %39 = vector.broadcast %38 : vector<16x1xf32> to vector<16x32xf32>
    %40 = arith.addf %36, %39 : vector<16x32xf32>
    %c0_25 = arith.constant 0 : index
    %c0_26 = arith.constant 0 : index
    %c0_27 = arith.constant 0 : index
    %41 = vector.load %arg9[%c0_25, %c0_26, %c0_27] : memref<6x32x16xbf16, #tpu.memory_space<vmem>>, vector<1x32x16xbf16>
    %42 = vector.shape_cast %41 : vector<1x32x16xbf16> to vector<32x16xbf16>
    %43 = arith.truncf %22 : vector<32x32xf32> to vector<32x32xbf16>
    %cst_28 = arith.constant dense<0.000000e+00> : vector<32x16xf32>
    %44 = tpu.matmul %43, %42, %cst_28 {dimension_numbers = #tpu.dot_dimension_numbers<[1], [0], [0], [1], [0, 0, 1, 1], [], []>} : vector<32x32xbf16>, vector<32x16xbf16>, vector<32x16xf32> -> vector<32x16xf32>
    %c0_29 = arith.constant 0 : index
    %c0_30 = arith.constant 0 : index
    %c0_31 = arith.constant 0 : index
    %45 = vector.load %arg10[%c0_29, %c0_30, %c0_31] : memref<6x1x16xf32, #tpu.memory_space<vmem>>, vector<1x1x16xf32>
    %46 = vector.shape_cast %45 : vector<1x1x16xf32> to vector<1x16xf32>
    %47 = vector.broadcast %46 : vector<1x16xf32> to vector<32x16xf32>
    %48 = arith.addf %44, %47 : vector<32x16xf32>
    %49 = arith.truncf %32 : vector<32x16xf32> to vector<32x16xbf16>
    %50 = arith.truncf %40 : vector<16x32xf32> to vector<16x32xbf16>
    %cst_32 = arith.constant dense<0.000000e+00> : vector<32x32xf32>
    %51 = tpu.matmul %49, %50, %cst_32 {dimension_numbers = #tpu.dot_dimension_numbers<[1], [0], [0], [1], [0, 0, 1, 1], [], []>} : vector<32x16xbf16>, vector<16x32xbf16>, vector<32x32xf32> -> vector<32x32xf32>
    %cst_33 = arith.constant 2.500000e-01 : f32
    %52 = vector.broadcast %cst_33 : f32 to vector<32x32xf32>
    %53 = arith.mulf %51, %52 : vector<32x32xf32>
    %54 = arith.addf %53, %23 : vector<32x32xf32>
    %cst_34 = arith.constant dense<0xFF800000> : vector<32xf32>
    %55 = vector.multi_reduction <maximumf>, %54, %cst_34 [1] : vector<32x32xf32> to vector<32xf32>
    %56 = vector.shape_cast %55 : vector<32xf32> to vector<32x1xf32>
    %57 = vector.broadcast %56 : vector<32x1xf32> to vector<32x32xf32>
    %58 = arith.subf %54, %57 : vector<32x32xf32>
    %59 = math.exp %58 : vector<32x32xf32>
    %cst_35 = arith.constant dense<0.000000e+00> : vector<32xf32>
    %60 = vector.multi_reduction <add>, %59, %cst_35 [1] : vector<32x32xf32> to vector<32xf32>
    %61 = vector.shape_cast %60 : vector<32xf32> to vector<32x1xf32>
    %62 = tpu.reciprocal %61 {approx = true} : vector<32x1xf32> -> vector<32x1xf32>
    %63 = vector.broadcast %62 : vector<32x1xf32> to vector<32x32xf32>
    %64 = arith.mulf %59, %63 : vector<32x32xf32>
    %65 = arith.truncf %64 : vector<32x32xf32> to vector<32x32xbf16>
    %66 = arith.truncf %48 : vector<32x16xf32> to vector<32x16xbf16>
    %cst_36 = arith.constant dense<0.000000e+00> : vector<32x16xf32>
    %67 = tpu.matmul %65, %66, %cst_36 {dimension_numbers = #tpu.dot_dimension_numbers<[1], [0], [0], [1], [0, 0, 1, 1], [], []>} : vector<32x32xbf16>, vector<32x16xbf16>, vector<32x16xf32> -> vector<32x16xf32>
    %c0_37 = arith.constant 0 : index
    %c0_38 = arith.constant 0 : index
    %c0_39 = arith.constant 0 : index
    %68 = vector.load %arg11[%c0_37, %c0_38, %c0_39] : memref<6x16x32xbf16, #tpu.memory_space<vmem>>, vector<1x16x32xbf16>
    %69 = vector.shape_cast %68 : vector<1x16x32xbf16> to vector<16x32xbf16>
    %70 = arith.truncf %67 : vector<32x16xf32> to vector<32x16xbf16>
    %cst_40 = arith.constant dense<0.000000e+00> : vector<32x32xf32>
    %71 = tpu.matmul %70, %69, %cst_40 {dimension_numbers = #tpu.dot_dimension_numbers<[1], [0], [0], [1], [0, 0, 1, 1], [], []>} : vector<32x16xbf16>, vector<16x32xbf16>, vector<32x32xf32> -> vector<32x32xf32>
    %c1 = arith.constant 1 : index
    %c0_41 = arith.constant 0 : index
    %c0_42 = arith.constant 0 : index
    %72 = vector.load %arg5[%c1, %c0_41, %c0_42] : memref<6x32x16xbf16, #tpu.memory_space<vmem>>, vector<1x32x16xbf16>
    %73 = vector.shape_cast %72 : vector<1x32x16xbf16> to vector<32x16xbf16>
    %74 = arith.truncf %22 : vector<32x32xf32> to vector<32x32xbf16>
    %cst_43 = arith.constant dense<0.000000e+00> : vector<32x16xf32>
    %75 = tpu.matmul %74, %73, %cst_43 {dimension_numbers = #tpu.dot_dimension_numbers<[1], [0], [0], [1], [0, 0, 1, 1], [], []>} : vector<32x32xbf16>, vector<32x16xbf16>, vector<32x16xf32> -> vector<32x16xf32>
    %c1_44 = arith.constant 1 : index
    %c0_45 = arith.constant 0 : index
    %c0_46 = arith.constant 0 : index
    %76 = vector.load %arg6[%c1_44, %c0_45, %c0_46] : memref<6x1x16xf32, #tpu.memory_space<vmem>>, vector<1x1x16xf32>
    %77 = vector.shape_cast %76 : vector<1x1x16xf32> to vector<1x16xf32>
    %78 = vector.broadcast %77 : vector<1x16xf32> to vector<32x16xf32>
    %79 = arith.addf %75, %78 : vector<32x16xf32>
    %c1_47 = arith.constant 1 : index
    %c0_48 = arith.constant 0 : index
    %c0_49 = arith.constant 0 : index
    %80 = vector.load %arg7[%c1_47, %c0_48, %c0_49] : memref<6x16x32xbf16, #tpu.memory_space<vmem>>, vector<1x16x32xbf16>
    %81 = vector.shape_cast %80 : vector<1x16x32xbf16> to vector<16x32xbf16>
    %82 = arith.truncf %24 : vector<32x32xf32> to vector<32x32xbf16>
    %cst_50 = arith.constant dense<0.000000e+00> : vector<16x32xf32>
    %83 = tpu.matmul %81, %82, %cst_50 {dimension_numbers = #tpu.dot_dimension_numbers<[1], [0], [0], [1], [0, 0, 1, 1], [], []>} : vector<16x32xbf16>, vector<32x32xbf16>, vector<16x32xf32> -> vector<16x32xf32>
    %c1_51 = arith.constant 1 : index
    %c0_52 = arith.constant 0 : index
    %c0_53 = arith.constant 0 : index
    %84 = vector.load %arg8[%c1_51, %c0_52, %c0_53] : memref<6x16x1xf32, #tpu.memory_space<vmem>>, vector<1x16x1xf32>
    %85 = vector.shape_cast %84 : vector<1x16x1xf32> to vector<16x1xf32>
    %86 = vector.broadcast %85 : vector<16x1xf32> to vector<16x32xf32>
    %87 = arith.addf %83, %86 : vector<16x32xf32>
    %c1_54 = arith.constant 1 : index
    %c0_55 = arith.constant 0 : index
    %c0_56 = arith.constant 0 : index
    %88 = vector.load %arg9[%c1_54, %c0_55, %c0_56] : memref<6x32x16xbf16, #tpu.memory_space<vmem>>, vector<1x32x16xbf16>
    %89 = vector.shape_cast %88 : vector<1x32x16xbf16> to vector<32x16xbf16>
    %90 = arith.truncf %22 : vector<32x32xf32> to vector<32x32xbf16>
    %cst_57 = arith.constant dense<0.000000e+00> : vector<32x16xf32>
    %91 = tpu.matmul %90, %89, %cst_57 {dimension_numbers = #tpu.dot_dimension_numbers<[1], [0], [0], [1], [0, 0, 1, 1], [], []>} : vector<32x32xbf16>, vector<32x16xbf16>, vector<32x16xf32> -> vector<32x16xf32>
    %c1_58 = arith.constant 1 : index
    %c0_59 = arith.constant 0 : index
    %c0_60 = arith.constant 0 : index
    %92 = vector.load %arg10[%c1_58, %c0_59, %c0_60] : memref<6x1x16xf32, #tpu.memory_space<vmem>>, vector<1x1x16xf32>
    %93 = vector.shape_cast %92 : vector<1x1x16xf32> to vector<1x16xf32>
    %94 = vector.broadcast %93 : vector<1x16xf32> to vector<32x16xf32>
    %95 = arith.addf %91, %94 : vector<32x16xf32>
    %96 = arith.truncf %79 : vector<32x16xf32> to vector<32x16xbf16>
    %97 = arith.truncf %87 : vector<16x32xf32> to vector<16x32xbf16>
    %cst_61 = arith.constant dense<0.000000e+00> : vector<32x32xf32>
    %98 = tpu.matmul %96, %97, %cst_61 {dimension_numbers = #tpu.dot_dimension_numbers<[1], [0], [0], [1], [0, 0, 1, 1], [], []>} : vector<32x16xbf16>, vector<16x32xbf16>, vector<32x32xf32> -> vector<32x32xf32>
    %cst_62 = arith.constant 2.500000e-01 : f32
    %99 = vector.broadcast %cst_62 : f32 to vector<32x32xf32>
    %100 = arith.mulf %98, %99 : vector<32x32xf32>
    %101 = arith.addf %100, %23 : vector<32x32xf32>
    %cst_63 = arith.constant dense<0xFF800000> : vector<32xf32>
    %102 = vector.multi_reduction <maximumf>, %101, %cst_63 [1] : vector<32x32xf32> to vector<32xf32>
    %103 = vector.shape_cast %102 : vector<32xf32> to vector<32x1xf32>
    %104 = vector.broadcast %103 : vector<32x1xf32> to vector<32x32xf32>
    %105 = arith.subf %101, %104 : vector<32x32xf32>
    %106 = math.exp %105 : vector<32x32xf32>
    %cst_64 = arith.constant dense<0.000000e+00> : vector<32xf32>
    %107 = vector.multi_reduction <add>, %106, %cst_64 [1] : vector<32x32xf32> to vector<32xf32>
    %108 = vector.shape_cast %107 : vector<32xf32> to vector<32x1xf32>
    %109 = tpu.reciprocal %108 {approx = true} : vector<32x1xf32> -> vector<32x1xf32>
    %110 = vector.broadcast %109 : vector<32x1xf32> to vector<32x32xf32>
    %111 = arith.mulf %106, %110 : vector<32x32xf32>
    %112 = arith.truncf %111 : vector<32x32xf32> to vector<32x32xbf16>
    %113 = arith.truncf %95 : vector<32x16xf32> to vector<32x16xbf16>
    %cst_65 = arith.constant dense<0.000000e+00> : vector<32x16xf32>
    %114 = tpu.matmul %112, %113, %cst_65 {dimension_numbers = #tpu.dot_dimension_numbers<[1], [0], [0], [1], [0, 0, 1, 1], [], []>} : vector<32x32xbf16>, vector<32x16xbf16>, vector<32x16xf32> -> vector<32x16xf32>
    %c1_66 = arith.constant 1 : index
    %c0_67 = arith.constant 0 : index
    %c0_68 = arith.constant 0 : index
    %115 = vector.load %arg11[%c1_66, %c0_67, %c0_68] : memref<6x16x32xbf16, #tpu.memory_space<vmem>>, vector<1x16x32xbf16>
    %116 = vector.shape_cast %115 : vector<1x16x32xbf16> to vector<16x32xbf16>
    %117 = arith.truncf %114 : vector<32x16xf32> to vector<32x16xbf16>
    %cst_69 = arith.constant dense<0.000000e+00> : vector<32x32xf32>
    %118 = tpu.matmul %117, %116, %cst_69 {dimension_numbers = #tpu.dot_dimension_numbers<[1], [0], [0], [1], [0, 0, 1, 1], [], []>} : vector<32x16xbf16>, vector<16x32xbf16>, vector<32x32xf32> -> vector<32x32xf32>
    %119 = arith.addf %71, %118 : vector<32x32xf32>
    %c0_70 = arith.constant 0 : index
    %c0_71 = arith.constant 0 : index
    %c0_72 = arith.constant 0 : index
    %120 = vector.load %arg12[%c0_70, %c0_71, %c0_72] : memref<3x1x32xf32, #tpu.memory_space<vmem>>, vector<1x1x32xf32>
    %121 = vector.shape_cast %120 : vector<1x1x32xf32> to vector<1x32xf32>
    %122 = vector.broadcast %121 : vector<1x32xf32> to vector<32x32xf32>
    %123 = arith.addf %119, %122 : vector<32x32xf32>
    %124 = arith.addf %123, %22 : vector<32x32xf32>
    %c0_73 = arith.constant 0 : index
    %c0_74 = arith.constant 0 : index
    %c0_75 = arith.constant 0 : index
    %125 = vector.load %arg13[%c0_73, %c0_74, %c0_75] : memref<3x1x32xf32, #tpu.memory_space<vmem>>, vector<1x1x32xf32>
    %126 = vector.shape_cast %125 : vector<1x1x32xf32> to vector<1x32xf32>
    %c0_76 = arith.constant 0 : index
    %c0_77 = arith.constant 0 : index
    %c0_78 = arith.constant 0 : index
    %127 = vector.load %arg14[%c0_76, %c0_77, %c0_78] : memref<3x1x32xf32, #tpu.memory_space<vmem>>, vector<1x1x32xf32>
    %128 = vector.shape_cast %127 : vector<1x1x32xf32> to vector<1x32xf32>
    %cst_79 = arith.constant dense<0.000000e+00> : vector<32xf32>
    %129 = vector.multi_reduction <add>, %124, %cst_79 [1] : vector<32x32xf32> to vector<32xf32>
    %130 = vector.shape_cast %129 : vector<32xf32> to vector<32x1xf32>
    %cst_80 = arith.constant 3.200000e+01 : f32
    %131 = vector.broadcast %cst_80 : f32 to vector<32x1xf32>
    %132 = arith.divf %130, %131 : vector<32x1xf32>
    %133 = vector.broadcast %132 : vector<32x1xf32> to vector<32x32xf32>
    %134 = arith.subf %124, %133 : vector<32x32xf32>
    %135 = arith.mulf %134, %134 : vector<32x32xf32>
    %cst_81 = arith.constant dense<0.000000e+00> : vector<32xf32>
    %136 = vector.multi_reduction <add>, %135, %cst_81 [1] : vector<32x32xf32> to vector<32xf32>
    %137 = vector.shape_cast %136 : vector<32xf32> to vector<32x1xf32>
    %cst_82 = arith.constant 3.200000e+01 : f32
    %138 = vector.broadcast %cst_82 : f32 to vector<32x1xf32>
    %139 = arith.divf %137, %138 : vector<32x1xf32>
    %cst_83 = arith.constant 9.99999996E-13 : f32
    %140 = vector.broadcast %cst_83 : f32 to vector<32x1xf32>
    %141 = arith.addf %139, %140 : vector<32x1xf32>
    %142 = math.rsqrt %141 : vector<32x1xf32>
    %143 = vector.broadcast %142 : vector<32x1xf32> to vector<32x32xf32>
    %144 = arith.mulf %134, %143 : vector<32x32xf32>
    %145 = vector.broadcast %126 : vector<1x32xf32> to vector<32x32xf32>
    %146 = arith.mulf %144, %145 : vector<32x32xf32>
    %147 = vector.broadcast %128 : vector<1x32xf32> to vector<32x32xf32>
    %148 = arith.addf %146, %147 : vector<32x32xf32>
    %c0_84 = arith.constant 0 : index
    %c0_85 = arith.constant 0 : index
    %c0_86 = arith.constant 0 : index
    %149 = vector.load %arg15[%c0_84, %c0_85, %c0_86] : memref<3x32x128xbf16, #tpu.memory_space<vmem>>, vector<1x32x128xbf16>
    %150 = vector.shape_cast %149 : vector<1x32x128xbf16> to vector<32x128xbf16>
    %151 = arith.truncf %148 : vector<32x32xf32> to vector<32x32xbf16>
    %cst_87 = arith.constant dense<0.000000e+00> : vector<32x128xf32>
    %152 = tpu.matmul %151, %150, %cst_87 {dimension_numbers = #tpu.dot_dimension_numbers<[1], [0], [0], [1], [0, 0, 1, 1], [], []>} : vector<32x32xbf16>, vector<32x128xbf16>, vector<32x128xf32> -> vector<32x128xf32>
    %c0_88 = arith.constant 0 : index
    %c0_89 = arith.constant 0 : index
    %c0_90 = arith.constant 0 : index
    %153 = vector.load %arg16[%c0_88, %c0_89, %c0_90] : memref<3x1x128xf32, #tpu.memory_space<vmem>>, vector<1x1x128xf32>
    %154 = vector.shape_cast %153 : vector<1x1x128xf32> to vector<1x128xf32>
    %155 = vector.broadcast %154 : vector<1x128xf32> to vector<32x128xf32>
    %156 = arith.addf %152, %155 : vector<32x128xf32>
    %cst_91 = arith.constant 5.000000e-01 : f32
    %157 = vector.broadcast %cst_91 : f32 to vector<32x128xf32>
    %158 = arith.mulf %157, %156 : vector<32x128xf32>
    %cst_92 = arith.constant 4.471500e-02 : f32
    %159 = vector.broadcast %cst_92 : f32 to vector<32x128xf32>
    %160 = arith.mulf %159, %156 : vector<32x128xf32>
    %161 = arith.mulf %160, %156 : vector<32x128xf32>
    %162 = arith.mulf %161, %156 : vector<32x128xf32>
    %163 = arith.addf %156, %162 : vector<32x128xf32>
    %cst_93 = arith.constant 0.797884583 : f32
    %164 = vector.broadcast %cst_93 : f32 to vector<32x128xf32>
    %165 = arith.mulf %164, %163 : vector<32x128xf32>
    %166 = math.tanh %165 : vector<32x128xf32>
    %cst_94 = arith.constant 1.000000e+00 : f32
    %167 = vector.broadcast %cst_94 : f32 to vector<32x128xf32>
    %168 = arith.addf %167, %166 : vector<32x128xf32>
    %169 = arith.mulf %158, %168 : vector<32x128xf32>
    %c0_95 = arith.constant 0 : index
    %c0_96 = arith.constant 0 : index
    %c0_97 = arith.constant 0 : index
    %170 = vector.load %arg17[%c0_95, %c0_96, %c0_97] : memref<3x128x32xbf16, #tpu.memory_space<vmem>>, vector<1x128x32xbf16>
    %171 = vector.shape_cast %170 : vector<1x128x32xbf16> to vector<128x32xbf16>
    %172 = arith.truncf %169 : vector<32x128xf32> to vector<32x128xbf16>
    %cst_98 = arith.constant dense<0.000000e+00> : vector<32x32xf32>
    %173 = tpu.matmul %172, %171, %cst_98 {dimension_numbers = #tpu.dot_dimension_numbers<[1], [0], [0], [1], [0, 0, 1, 1], [], []>} : vector<32x128xbf16>, vector<128x32xbf16>, vector<32x32xf32> -> vector<32x32xf32>
    %c0_99 = arith.constant 0 : index
    %c0_100 = arith.constant 0 : index
    %c0_101 = arith.constant 0 : index
    %174 = vector.load %arg18[%c0_99, %c0_100, %c0_101] : memref<3x1x32xf32, #tpu.memory_space<vmem>>, vector<1x1x32xf32>
    %175 = vector.shape_cast %174 : vector<1x1x32xf32> to vector<1x32xf32>
    %176 = vector.broadcast %175 : vector<1x32xf32> to vector<32x32xf32>
    %177 = arith.addf %173, %176 : vector<32x32xf32>
    %178 = arith.addf %177, %148 : vector<32x32xf32>
    %c0_102 = arith.constant 0 : index
    %c0_103 = arith.constant 0 : index
    %c0_104 = arith.constant 0 : index
    %179 = vector.load %arg19[%c0_102, %c0_103, %c0_104] : memref<3x1x32xf32, #tpu.memory_space<vmem>>, vector<1x1x32xf32>
    %180 = vector.shape_cast %179 : vector<1x1x32xf32> to vector<1x32xf32>
    %c0_105 = arith.constant 0 : index
    %c0_106 = arith.constant 0 : index
    %c0_107 = arith.constant 0 : index
    %181 = vector.load %arg20[%c0_105, %c0_106, %c0_107] : memref<3x1x32xf32, #tpu.memory_space<vmem>>, vector<1x1x32xf32>
    %182 = vector.shape_cast %181 : vector<1x1x32xf32> to vector<1x32xf32>
    %cst_108 = arith.constant dense<0.000000e+00> : vector<32xf32>
    %183 = vector.multi_reduction <add>, %178, %cst_108 [1] : vector<32x32xf32> to vector<32xf32>
    %184 = vector.shape_cast %183 : vector<32xf32> to vector<32x1xf32>
    %cst_109 = arith.constant 3.200000e+01 : f32
    %185 = vector.broadcast %cst_109 : f32 to vector<32x1xf32>
    %186 = arith.divf %184, %185 : vector<32x1xf32>
    %187 = vector.broadcast %186 : vector<32x1xf32> to vector<32x32xf32>
    %188 = arith.subf %178, %187 : vector<32x32xf32>
    %189 = arith.mulf %188, %188 : vector<32x32xf32>
    %cst_110 = arith.constant dense<0.000000e+00> : vector<32xf32>
    %190 = vector.multi_reduction <add>, %189, %cst_110 [1] : vector<32x32xf32> to vector<32xf32>
    %191 = vector.shape_cast %190 : vector<32xf32> to vector<32x1xf32>
    %cst_111 = arith.constant 3.200000e+01 : f32
    %192 = vector.broadcast %cst_111 : f32 to vector<32x1xf32>
    %193 = arith.divf %191, %192 : vector<32x1xf32>
    %cst_112 = arith.constant 9.99999996E-13 : f32
    %194 = vector.broadcast %cst_112 : f32 to vector<32x1xf32>
    %195 = arith.addf %193, %194 : vector<32x1xf32>
    %196 = math.rsqrt %195 : vector<32x1xf32>
    %197 = vector.broadcast %196 : vector<32x1xf32> to vector<32x32xf32>
    %198 = arith.mulf %188, %197 : vector<32x32xf32>
    %199 = vector.broadcast %180 : vector<1x32xf32> to vector<32x32xf32>
    %200 = arith.mulf %198, %199 : vector<32x32xf32>
    %201 = vector.broadcast %182 : vector<1x32xf32> to vector<32x32xf32>
    %202 = arith.addf %200, %201 : vector<32x32xf32>
    %203 = tpu.transpose %202, [1, 0] : vector<32x32xf32> -> vector<32x32xf32>
    %c2 = arith.constant 2 : index
    %c0_113 = arith.constant 0 : index
    %c0_114 = arith.constant 0 : index
    %204 = vector.load %arg5[%c2, %c0_113, %c0_114] : memref<6x32x16xbf16, #tpu.memory_space<vmem>>, vector<1x32x16xbf16>
    %205 = vector.shape_cast %204 : vector<1x32x16xbf16> to vector<32x16xbf16>
    %206 = arith.truncf %202 : vector<32x32xf32> to vector<32x32xbf16>
    %cst_115 = arith.constant dense<0.000000e+00> : vector<32x16xf32>
    %207 = tpu.matmul %206, %205, %cst_115 {dimension_numbers = #tpu.dot_dimension_numbers<[1], [0], [0], [1], [0, 0, 1, 1], [], []>} : vector<32x32xbf16>, vector<32x16xbf16>, vector<32x16xf32> -> vector<32x16xf32>
    %c2_116 = arith.constant 2 : index
    %c0_117 = arith.constant 0 : index
    %c0_118 = arith.constant 0 : index
    %208 = vector.load %arg6[%c2_116, %c0_117, %c0_118] : memref<6x1x16xf32, #tpu.memory_space<vmem>>, vector<1x1x16xf32>
    %209 = vector.shape_cast %208 : vector<1x1x16xf32> to vector<1x16xf32>
    %210 = vector.broadcast %209 : vector<1x16xf32> to vector<32x16xf32>
    %211 = arith.addf %207, %210 : vector<32x16xf32>
    %c2_119 = arith.constant 2 : index
    %c0_120 = arith.constant 0 : index
    %c0_121 = arith.constant 0 : index
    %212 = vector.load %arg7[%c2_119, %c0_120, %c0_121] : memref<6x16x32xbf16, #tpu.memory_space<vmem>>, vector<1x16x32xbf16>
    %213 = vector.shape_cast %212 : vector<1x16x32xbf16> to vector<16x32xbf16>
    %214 = arith.truncf %203 : vector<32x32xf32> to vector<32x32xbf16>
    %cst_122 = arith.constant dense<0.000000e+00> : vector<16x32xf32>
    %215 = tpu.matmul %213, %214, %cst_122 {dimension_numbers = #tpu.dot_dimension_numbers<[1], [0], [0], [1], [0, 0, 1, 1], [], []>} : vector<16x32xbf16>, vector<32x32xbf16>, vector<16x32xf32> -> vector<16x32xf32>
    %c2_123 = arith.constant 2 : index
    %c0_124 = arith.constant 0 : index
    %c0_125 = arith.constant 0 : index
    %216 = vector.load %arg8[%c2_123, %c0_124, %c0_125] : memref<6x16x1xf32, #tpu.memory_space<vmem>>, vector<1x16x1xf32>
    %217 = vector.shape_cast %216 : vector<1x16x1xf32> to vector<16x1xf32>
    %218 = vector.broadcast %217 : vector<16x1xf32> to vector<16x32xf32>
    %219 = arith.addf %215, %218 : vector<16x32xf32>
    %c2_126 = arith.constant 2 : index
    %c0_127 = arith.constant 0 : index
    %c0_128 = arith.constant 0 : index
    %220 = vector.load %arg9[%c2_126, %c0_127, %c0_128] : memref<6x32x16xbf16, #tpu.memory_space<vmem>>, vector<1x32x16xbf16>
    %221 = vector.shape_cast %220 : vector<1x32x16xbf16> to vector<32x16xbf16>
    %222 = arith.truncf %202 : vector<32x32xf32> to vector<32x32xbf16>
    %cst_129 = arith.constant dense<0.000000e+00> : vector<32x16xf32>
    %223 = tpu.matmul %222, %221, %cst_129 {dimension_numbers = #tpu.dot_dimension_numbers<[1], [0], [0], [1], [0, 0, 1, 1], [], []>} : vector<32x32xbf16>, vector<32x16xbf16>, vector<32x16xf32> -> vector<32x16xf32>
    %c2_130 = arith.constant 2 : index
    %c0_131 = arith.constant 0 : index
    %c0_132 = arith.constant 0 : index
    %224 = vector.load %arg10[%c2_130, %c0_131, %c0_132] : memref<6x1x16xf32, #tpu.memory_space<vmem>>, vector<1x1x16xf32>
    %225 = vector.shape_cast %224 : vector<1x1x16xf32> to vector<1x16xf32>
    %226 = vector.broadcast %225 : vector<1x16xf32> to vector<32x16xf32>
    %227 = arith.addf %223, %226 : vector<32x16xf32>
    %228 = arith.truncf %211 : vector<32x16xf32> to vector<32x16xbf16>
    %229 = arith.truncf %219 : vector<16x32xf32> to vector<16x32xbf16>
    %cst_133 = arith.constant dense<0.000000e+00> : vector<32x32xf32>
    %230 = tpu.matmul %228, %229, %cst_133 {dimension_numbers = #tpu.dot_dimension_numbers<[1], [0], [0], [1], [0, 0, 1, 1], [], []>} : vector<32x16xbf16>, vector<16x32xbf16>, vector<32x32xf32> -> vector<32x32xf32>
    %cst_134 = arith.constant 2.500000e-01 : f32
    %231 = vector.broadcast %cst_134 : f32 to vector<32x32xf32>
    %232 = arith.mulf %230, %231 : vector<32x32xf32>
    %233 = arith.addf %232, %23 : vector<32x32xf32>
    %cst_135 = arith.constant dense<0xFF800000> : vector<32xf32>
    %234 = vector.multi_reduction <maximumf>, %233, %cst_135 [1] : vector<32x32xf32> to vector<32xf32>
    %235 = vector.shape_cast %234 : vector<32xf32> to vector<32x1xf32>
    %236 = vector.broadcast %235 : vector<32x1xf32> to vector<32x32xf32>
    %237 = arith.subf %233, %236 : vector<32x32xf32>
    %238 = math.exp %237 : vector<32x32xf32>
    %cst_136 = arith.constant dense<0.000000e+00> : vector<32xf32>
    %239 = vector.multi_reduction <add>, %238, %cst_136 [1] : vector<32x32xf32> to vector<32xf32>
    %240 = vector.shape_cast %239 : vector<32xf32> to vector<32x1xf32>
    %241 = tpu.reciprocal %240 {approx = true} : vector<32x1xf32> -> vector<32x1xf32>
    %242 = vector.broadcast %241 : vector<32x1xf32> to vector<32x32xf32>
    %243 = arith.mulf %238, %242 : vector<32x32xf32>
    %244 = arith.truncf %243 : vector<32x32xf32> to vector<32x32xbf16>
    %245 = arith.truncf %227 : vector<32x16xf32> to vector<32x16xbf16>
    %cst_137 = arith.constant dense<0.000000e+00> : vector<32x16xf32>
    %246 = tpu.matmul %244, %245, %cst_137 {dimension_numbers = #tpu.dot_dimension_numbers<[1], [0], [0], [1], [0, 0, 1, 1], [], []>} : vector<32x32xbf16>, vector<32x16xbf16>, vector<32x16xf32> -> vector<32x16xf32>
    %c2_138 = arith.constant 2 : index
    %c0_139 = arith.constant 0 : index
    %c0_140 = arith.constant 0 : index
    %247 = vector.load %arg11[%c2_138, %c0_139, %c0_140] : memref<6x16x32xbf16, #tpu.memory_space<vmem>>, vector<1x16x32xbf16>
    %248 = vector.shape_cast %247 : vector<1x16x32xbf16> to vector<16x32xbf16>
    %249 = arith.truncf %246 : vector<32x16xf32> to vector<32x16xbf16>
    %cst_141 = arith.constant dense<0.000000e+00> : vector<32x32xf32>
    %250 = tpu.matmul %249, %248, %cst_141 {dimension_numbers = #tpu.dot_dimension_numbers<[1], [0], [0], [1], [0, 0, 1, 1], [], []>} : vector<32x16xbf16>, vector<16x32xbf16>, vector<32x32xf32> -> vector<32x32xf32>
    %c3 = arith.constant 3 : index
    %c0_142 = arith.constant 0 : index
    %c0_143 = arith.constant 0 : index
    %251 = vector.load %arg5[%c3, %c0_142, %c0_143] : memref<6x32x16xbf16, #tpu.memory_space<vmem>>, vector<1x32x16xbf16>
    %252 = vector.shape_cast %251 : vector<1x32x16xbf16> to vector<32x16xbf16>
    %253 = arith.truncf %202 : vector<32x32xf32> to vector<32x32xbf16>
    %cst_144 = arith.constant dense<0.000000e+00> : vector<32x16xf32>
    %254 = tpu.matmul %253, %252, %cst_144 {dimension_numbers = #tpu.dot_dimension_numbers<[1], [0], [0], [1], [0, 0, 1, 1], [], []>} : vector<32x32xbf16>, vector<32x16xbf16>, vector<32x16xf32> -> vector<32x16xf32>
    %c3_145 = arith.constant 3 : index
    %c0_146 = arith.constant 0 : index
    %c0_147 = arith.constant 0 : index
    %255 = vector.load %arg6[%c3_145, %c0_146, %c0_147] : memref<6x1x16xf32, #tpu.memory_space<vmem>>, vector<1x1x16xf32>
    %256 = vector.shape_cast %255 : vector<1x1x16xf32> to vector<1x16xf32>
    %257 = vector.broadcast %256 : vector<1x16xf32> to vector<32x16xf32>
    %258 = arith.addf %254, %257 : vector<32x16xf32>
    %c3_148 = arith.constant 3 : index
    %c0_149 = arith.constant 0 : index
    %c0_150 = arith.constant 0 : index
    %259 = vector.load %arg7[%c3_148, %c0_149, %c0_150] : memref<6x16x32xbf16, #tpu.memory_space<vmem>>, vector<1x16x32xbf16>
    %260 = vector.shape_cast %259 : vector<1x16x32xbf16> to vector<16x32xbf16>
    %261 = arith.truncf %203 : vector<32x32xf32> to vector<32x32xbf16>
    %cst_151 = arith.constant dense<0.000000e+00> : vector<16x32xf32>
    %262 = tpu.matmul %260, %261, %cst_151 {dimension_numbers = #tpu.dot_dimension_numbers<[1], [0], [0], [1], [0, 0, 1, 1], [], []>} : vector<16x32xbf16>, vector<32x32xbf16>, vector<16x32xf32> -> vector<16x32xf32>
    %c3_152 = arith.constant 3 : index
    %c0_153 = arith.constant 0 : index
    %c0_154 = arith.constant 0 : index
    %263 = vector.load %arg8[%c3_152, %c0_153, %c0_154] : memref<6x16x1xf32, #tpu.memory_space<vmem>>, vector<1x16x1xf32>
    %264 = vector.shape_cast %263 : vector<1x16x1xf32> to vector<16x1xf32>
    %265 = vector.broadcast %264 : vector<16x1xf32> to vector<16x32xf32>
    %266 = arith.addf %262, %265 : vector<16x32xf32>
    %c3_155 = arith.constant 3 : index
    %c0_156 = arith.constant 0 : index
    %c0_157 = arith.constant 0 : index
    %267 = vector.load %arg9[%c3_155, %c0_156, %c0_157] : memref<6x32x16xbf16, #tpu.memory_space<vmem>>, vector<1x32x16xbf16>
    %268 = vector.shape_cast %267 : vector<1x32x16xbf16> to vector<32x16xbf16>
    %269 = arith.truncf %202 : vector<32x32xf32> to vector<32x32xbf16>
    %cst_158 = arith.constant dense<0.000000e+00> : vector<32x16xf32>
    %270 = tpu.matmul %269, %268, %cst_158 {dimension_numbers = #tpu.dot_dimension_numbers<[1], [0], [0], [1], [0, 0, 1, 1], [], []>} : vector<32x32xbf16>, vector<32x16xbf16>, vector<32x16xf32> -> vector<32x16xf32>
    %c3_159 = arith.constant 3 : index
    %c0_160 = arith.constant 0 : index
    %c0_161 = arith.constant 0 : index
    %271 = vector.load %arg10[%c3_159, %c0_160, %c0_161] : memref<6x1x16xf32, #tpu.memory_space<vmem>>, vector<1x1x16xf32>
    %272 = vector.shape_cast %271 : vector<1x1x16xf32> to vector<1x16xf32>
    %273 = vector.broadcast %272 : vector<1x16xf32> to vector<32x16xf32>
    %274 = arith.addf %270, %273 : vector<32x16xf32>
    %275 = arith.truncf %258 : vector<32x16xf32> to vector<32x16xbf16>
    %276 = arith.truncf %266 : vector<16x32xf32> to vector<16x32xbf16>
    %cst_162 = arith.constant dense<0.000000e+00> : vector<32x32xf32>
    %277 = tpu.matmul %275, %276, %cst_162 {dimension_numbers = #tpu.dot_dimension_numbers<[1], [0], [0], [1], [0, 0, 1, 1], [], []>} : vector<32x16xbf16>, vector<16x32xbf16>, vector<32x32xf32> -> vector<32x32xf32>
    %cst_163 = arith.constant 2.500000e-01 : f32
    %278 = vector.broadcast %cst_163 : f32 to vector<32x32xf32>
    %279 = arith.mulf %277, %278 : vector<32x32xf32>
    %280 = arith.addf %279, %23 : vector<32x32xf32>
    %cst_164 = arith.constant dense<0xFF800000> : vector<32xf32>
    %281 = vector.multi_reduction <maximumf>, %280, %cst_164 [1] : vector<32x32xf32> to vector<32xf32>
    %282 = vector.shape_cast %281 : vector<32xf32> to vector<32x1xf32>
    %283 = vector.broadcast %282 : vector<32x1xf32> to vector<32x32xf32>
    %284 = arith.subf %280, %283 : vector<32x32xf32>
    %285 = math.exp %284 : vector<32x32xf32>
    %cst_165 = arith.constant dense<0.000000e+00> : vector<32xf32>
    %286 = vector.multi_reduction <add>, %285, %cst_165 [1] : vector<32x32xf32> to vector<32xf32>
    %287 = vector.shape_cast %286 : vector<32xf32> to vector<32x1xf32>
    %288 = tpu.reciprocal %287 {approx = true} : vector<32x1xf32> -> vector<32x1xf32>
    %289 = vector.broadcast %288 : vector<32x1xf32> to vector<32x32xf32>
    %290 = arith.mulf %285, %289 : vector<32x32xf32>
    %291 = arith.truncf %290 : vector<32x32xf32> to vector<32x32xbf16>
    %292 = arith.truncf %274 : vector<32x16xf32> to vector<32x16xbf16>
    %cst_166 = arith.constant dense<0.000000e+00> : vector<32x16xf32>
    %293 = tpu.matmul %291, %292, %cst_166 {dimension_numbers = #tpu.dot_dimension_numbers<[1], [0], [0], [1], [0, 0, 1, 1], [], []>} : vector<32x32xbf16>, vector<32x16xbf16>, vector<32x16xf32> -> vector<32x16xf32>
    %c3_167 = arith.constant 3 : index
    %c0_168 = arith.constant 0 : index
    %c0_169 = arith.constant 0 : index
    %294 = vector.load %arg11[%c3_167, %c0_168, %c0_169] : memref<6x16x32xbf16, #tpu.memory_space<vmem>>, vector<1x16x32xbf16>
    %295 = vector.shape_cast %294 : vector<1x16x32xbf16> to vector<16x32xbf16>
    %296 = arith.truncf %293 : vector<32x16xf32> to vector<32x16xbf16>
    %cst_170 = arith.constant dense<0.000000e+00> : vector<32x32xf32>
    %297 = tpu.matmul %296, %295, %cst_170 {dimension_numbers = #tpu.dot_dimension_numbers<[1], [0], [0], [1], [0, 0, 1, 1], [], []>} : vector<32x16xbf16>, vector<16x32xbf16>, vector<32x32xf32> -> vector<32x32xf32>
    %298 = arith.addf %250, %297 : vector<32x32xf32>
    %c1_171 = arith.constant 1 : index
    %c0_172 = arith.constant 0 : index
    %c0_173 = arith.constant 0 : index
    %299 = vector.load %arg12[%c1_171, %c0_172, %c0_173] : memref<3x1x32xf32, #tpu.memory_space<vmem>>, vector<1x1x32xf32>
    %300 = vector.shape_cast %299 : vector<1x1x32xf32> to vector<1x32xf32>
    %301 = vector.broadcast %300 : vector<1x32xf32> to vector<32x32xf32>
    %302 = arith.addf %298, %301 : vector<32x32xf32>
    %303 = arith.addf %302, %202 : vector<32x32xf32>
    %c1_174 = arith.constant 1 : index
    %c0_175 = arith.constant 0 : index
    %c0_176 = arith.constant 0 : index
    %304 = vector.load %arg13[%c1_174, %c0_175, %c0_176] : memref<3x1x32xf32, #tpu.memory_space<vmem>>, vector<1x1x32xf32>
    %305 = vector.shape_cast %304 : vector<1x1x32xf32> to vector<1x32xf32>
    %c1_177 = arith.constant 1 : index
    %c0_178 = arith.constant 0 : index
    %c0_179 = arith.constant 0 : index
    %306 = vector.load %arg14[%c1_177, %c0_178, %c0_179] : memref<3x1x32xf32, #tpu.memory_space<vmem>>, vector<1x1x32xf32>
    %307 = vector.shape_cast %306 : vector<1x1x32xf32> to vector<1x32xf32>
    %cst_180 = arith.constant dense<0.000000e+00> : vector<32xf32>
    %308 = vector.multi_reduction <add>, %303, %cst_180 [1] : vector<32x32xf32> to vector<32xf32>
    %309 = vector.shape_cast %308 : vector<32xf32> to vector<32x1xf32>
    %cst_181 = arith.constant 3.200000e+01 : f32
    %310 = vector.broadcast %cst_181 : f32 to vector<32x1xf32>
    %311 = arith.divf %309, %310 : vector<32x1xf32>
    %312 = vector.broadcast %311 : vector<32x1xf32> to vector<32x32xf32>
    %313 = arith.subf %303, %312 : vector<32x32xf32>
    %314 = arith.mulf %313, %313 : vector<32x32xf32>
    %cst_182 = arith.constant dense<0.000000e+00> : vector<32xf32>
    %315 = vector.multi_reduction <add>, %314, %cst_182 [1] : vector<32x32xf32> to vector<32xf32>
    %316 = vector.shape_cast %315 : vector<32xf32> to vector<32x1xf32>
    %cst_183 = arith.constant 3.200000e+01 : f32
    %317 = vector.broadcast %cst_183 : f32 to vector<32x1xf32>
    %318 = arith.divf %316, %317 : vector<32x1xf32>
    %cst_184 = arith.constant 9.99999996E-13 : f32
    %319 = vector.broadcast %cst_184 : f32 to vector<32x1xf32>
    %320 = arith.addf %318, %319 : vector<32x1xf32>
    %321 = math.rsqrt %320 : vector<32x1xf32>
    %322 = vector.broadcast %321 : vector<32x1xf32> to vector<32x32xf32>
    %323 = arith.mulf %313, %322 : vector<32x32xf32>
    %324 = vector.broadcast %305 : vector<1x32xf32> to vector<32x32xf32>
    %325 = arith.mulf %323, %324 : vector<32x32xf32>
    %326 = vector.broadcast %307 : vector<1x32xf32> to vector<32x32xf32>
    %327 = arith.addf %325, %326 : vector<32x32xf32>
    %c1_185 = arith.constant 1 : index
    %c0_186 = arith.constant 0 : index
    %c0_187 = arith.constant 0 : index
    %328 = vector.load %arg15[%c1_185, %c0_186, %c0_187] : memref<3x32x128xbf16, #tpu.memory_space<vmem>>, vector<1x32x128xbf16>
    %329 = vector.shape_cast %328 : vector<1x32x128xbf16> to vector<32x128xbf16>
    %330 = arith.truncf %327 : vector<32x32xf32> to vector<32x32xbf16>
    %cst_188 = arith.constant dense<0.000000e+00> : vector<32x128xf32>
    %331 = tpu.matmul %330, %329, %cst_188 {dimension_numbers = #tpu.dot_dimension_numbers<[1], [0], [0], [1], [0, 0, 1, 1], [], []>} : vector<32x32xbf16>, vector<32x128xbf16>, vector<32x128xf32> -> vector<32x128xf32>
    %c1_189 = arith.constant 1 : index
    %c0_190 = arith.constant 0 : index
    %c0_191 = arith.constant 0 : index
    %332 = vector.load %arg16[%c1_189, %c0_190, %c0_191] : memref<3x1x128xf32, #tpu.memory_space<vmem>>, vector<1x1x128xf32>
    %333 = vector.shape_cast %332 : vector<1x1x128xf32> to vector<1x128xf32>
    %334 = vector.broadcast %333 : vector<1x128xf32> to vector<32x128xf32>
    %335 = arith.addf %331, %334 : vector<32x128xf32>
    %cst_192 = arith.constant 5.000000e-01 : f32
    %336 = vector.broadcast %cst_192 : f32 to vector<32x128xf32>
    %337 = arith.mulf %336, %335 : vector<32x128xf32>
    %cst_193 = arith.constant 4.471500e-02 : f32
    %338 = vector.broadcast %cst_193 : f32 to vector<32x128xf32>
    %339 = arith.mulf %338, %335 : vector<32x128xf32>
    %340 = arith.mulf %339, %335 : vector<32x128xf32>
    %341 = arith.mulf %340, %335 : vector<32x128xf32>
    %342 = arith.addf %335, %341 : vector<32x128xf32>
    %cst_194 = arith.constant 0.797884583 : f32
    %343 = vector.broadcast %cst_194 : f32 to vector<32x128xf32>
    %344 = arith.mulf %343, %342 : vector<32x128xf32>
    %345 = math.tanh %344 : vector<32x128xf32>
    %cst_195 = arith.constant 1.000000e+00 : f32
    %346 = vector.broadcast %cst_195 : f32 to vector<32x128xf32>
    %347 = arith.addf %346, %345 : vector<32x128xf32>
    %348 = arith.mulf %337, %347 : vector<32x128xf32>
    %c1_196 = arith.constant 1 : index
    %c0_197 = arith.constant 0 : index
    %c0_198 = arith.constant 0 : index
    %349 = vector.load %arg17[%c1_196, %c0_197, %c0_198] : memref<3x128x32xbf16, #tpu.memory_space<vmem>>, vector<1x128x32xbf16>
    %350 = vector.shape_cast %349 : vector<1x128x32xbf16> to vector<128x32xbf16>
    %351 = arith.truncf %348 : vector<32x128xf32> to vector<32x128xbf16>
    %cst_199 = arith.constant dense<0.000000e+00> : vector<32x32xf32>
    %352 = tpu.matmul %351, %350, %cst_199 {dimension_numbers = #tpu.dot_dimension_numbers<[1], [0], [0], [1], [0, 0, 1, 1], [], []>} : vector<32x128xbf16>, vector<128x32xbf16>, vector<32x32xf32> -> vector<32x32xf32>
    %c1_200 = arith.constant 1 : index
    %c0_201 = arith.constant 0 : index
    %c0_202 = arith.constant 0 : index
    %353 = vector.load %arg18[%c1_200, %c0_201, %c0_202] : memref<3x1x32xf32, #tpu.memory_space<vmem>>, vector<1x1x32xf32>
    %354 = vector.shape_cast %353 : vector<1x1x32xf32> to vector<1x32xf32>
    %355 = vector.broadcast %354 : vector<1x32xf32> to vector<32x32xf32>
    %356 = arith.addf %352, %355 : vector<32x32xf32>
    %357 = arith.addf %356, %327 : vector<32x32xf32>
    %c1_203 = arith.constant 1 : index
    %c0_204 = arith.constant 0 : index
    %c0_205 = arith.constant 0 : index
    %358 = vector.load %arg19[%c1_203, %c0_204, %c0_205] : memref<3x1x32xf32, #tpu.memory_space<vmem>>, vector<1x1x32xf32>
    %359 = vector.shape_cast %358 : vector<1x1x32xf32> to vector<1x32xf32>
    %c1_206 = arith.constant 1 : index
    %c0_207 = arith.constant 0 : index
    %c0_208 = arith.constant 0 : index
    %360 = vector.load %arg20[%c1_206, %c0_207, %c0_208] : memref<3x1x32xf32, #tpu.memory_space<vmem>>, vector<1x1x32xf32>
    %361 = vector.shape_cast %360 : vector<1x1x32xf32> to vector<1x32xf32>
    %cst_209 = arith.constant dense<0.000000e+00> : vector<32xf32>
    %362 = vector.multi_reduction <add>, %357, %cst_209 [1] : vector<32x32xf32> to vector<32xf32>
    %363 = vector.shape_cast %362 : vector<32xf32> to vector<32x1xf32>
    %cst_210 = arith.constant 3.200000e+01 : f32
    %364 = vector.broadcast %cst_210 : f32 to vector<32x1xf32>
    %365 = arith.divf %363, %364 : vector<32x1xf32>
    %366 = vector.broadcast %365 : vector<32x1xf32> to vector<32x32xf32>
    %367 = arith.subf %357, %366 : vector<32x32xf32>
    %368 = arith.mulf %367, %367 : vector<32x32xf32>
    %cst_211 = arith.constant dense<0.000000e+00> : vector<32xf32>
    %369 = vector.multi_reduction <add>, %368, %cst_211 [1] : vector<32x32xf32> to vector<32xf32>
    %370 = vector.shape_cast %369 : vector<32xf32> to vector<32x1xf32>
    %cst_212 = arith.constant 3.200000e+01 : f32
    %371 = vector.broadcast %cst_212 : f32 to vector<32x1xf32>
    %372 = arith.divf %370, %371 : vector<32x1xf32>
    %cst_213 = arith.constant 9.99999996E-13 : f32
    %373 = vector.broadcast %cst_213 : f32 to vector<32x1xf32>
    %374 = arith.addf %372, %373 : vector<32x1xf32>
    %375 = math.rsqrt %374 : vector<32x1xf32>
    %376 = vector.broadcast %375 : vector<32x1xf32> to vector<32x32xf32>
    %377 = arith.mulf %367, %376 : vector<32x32xf32>
    %378 = vector.broadcast %359 : vector<1x32xf32> to vector<32x32xf32>
    %379 = arith.mulf %377, %378 : vector<32x32xf32>
    %380 = vector.broadcast %361 : vector<1x32xf32> to vector<32x32xf32>
    %381 = arith.addf %379, %380 : vector<32x32xf32>
    %382 = tpu.transpose %381, [1, 0] : vector<32x32xf32> -> vector<32x32xf32>
    %c4 = arith.constant 4 : index
    %c0_214 = arith.constant 0 : index
    %c0_215 = arith.constant 0 : index
    %383 = vector.load %arg5[%c4, %c0_214, %c0_215] : memref<6x32x16xbf16, #tpu.memory_space<vmem>>, vector<1x32x16xbf16>
    %384 = vector.shape_cast %383 : vector<1x32x16xbf16> to vector<32x16xbf16>
    %385 = arith.truncf %381 : vector<32x32xf32> to vector<32x32xbf16>
    %cst_216 = arith.constant dense<0.000000e+00> : vector<32x16xf32>
    %386 = tpu.matmul %385, %384, %cst_216 {dimension_numbers = #tpu.dot_dimension_numbers<[1], [0], [0], [1], [0, 0, 1, 1], [], []>} : vector<32x32xbf16>, vector<32x16xbf16>, vector<32x16xf32> -> vector<32x16xf32>
    %c4_217 = arith.constant 4 : index
    %c0_218 = arith.constant 0 : index
    %c0_219 = arith.constant 0 : index
    %387 = vector.load %arg6[%c4_217, %c0_218, %c0_219] : memref<6x1x16xf32, #tpu.memory_space<vmem>>, vector<1x1x16xf32>
    %388 = vector.shape_cast %387 : vector<1x1x16xf32> to vector<1x16xf32>
    %389 = vector.broadcast %388 : vector<1x16xf32> to vector<32x16xf32>
    %390 = arith.addf %386, %389 : vector<32x16xf32>
    %c4_220 = arith.constant 4 : index
    %c0_221 = arith.constant 0 : index
    %c0_222 = arith.constant 0 : index
    %391 = vector.load %arg7[%c4_220, %c0_221, %c0_222] : memref<6x16x32xbf16, #tpu.memory_space<vmem>>, vector<1x16x32xbf16>
    %392 = vector.shape_cast %391 : vector<1x16x32xbf16> to vector<16x32xbf16>
    %393 = arith.truncf %382 : vector<32x32xf32> to vector<32x32xbf16>
    %cst_223 = arith.constant dense<0.000000e+00> : vector<16x32xf32>
    %394 = tpu.matmul %392, %393, %cst_223 {dimension_numbers = #tpu.dot_dimension_numbers<[1], [0], [0], [1], [0, 0, 1, 1], [], []>} : vector<16x32xbf16>, vector<32x32xbf16>, vector<16x32xf32> -> vector<16x32xf32>
    %c4_224 = arith.constant 4 : index
    %c0_225 = arith.constant 0 : index
    %c0_226 = arith.constant 0 : index
    %395 = vector.load %arg8[%c4_224, %c0_225, %c0_226] : memref<6x16x1xf32, #tpu.memory_space<vmem>>, vector<1x16x1xf32>
    %396 = vector.shape_cast %395 : vector<1x16x1xf32> to vector<16x1xf32>
    %397 = vector.broadcast %396 : vector<16x1xf32> to vector<16x32xf32>
    %398 = arith.addf %394, %397 : vector<16x32xf32>
    %c4_227 = arith.constant 4 : index
    %c0_228 = arith.constant 0 : index
    %c0_229 = arith.constant 0 : index
    %399 = vector.load %arg9[%c4_227, %c0_228, %c0_229] : memref<6x32x16xbf16, #tpu.memory_space<vmem>>, vector<1x32x16xbf16>
    %400 = vector.shape_cast %399 : vector<1x32x16xbf16> to vector<32x16xbf16>
    %401 = arith.truncf %381 : vector<32x32xf32> to vector<32x32xbf16>
    %cst_230 = arith.constant dense<0.000000e+00> : vector<32x16xf32>
    %402 = tpu.matmul %401, %400, %cst_230 {dimension_numbers = #tpu.dot_dimension_numbers<[1], [0], [0], [1], [0, 0, 1, 1], [], []>} : vector<32x32xbf16>, vector<32x16xbf16>, vector<32x16xf32> -> vector<32x16xf32>
    %c4_231 = arith.constant 4 : index
    %c0_232 = arith.constant 0 : index
    %c0_233 = arith.constant 0 : index
    %403 = vector.load %arg10[%c4_231, %c0_232, %c0_233] : memref<6x1x16xf32, #tpu.memory_space<vmem>>, vector<1x1x16xf32>
    %404 = vector.shape_cast %403 : vector<1x1x16xf32> to vector<1x16xf32>
    %405 = vector.broadcast %404 : vector<1x16xf32> to vector<32x16xf32>
    %406 = arith.addf %402, %405 : vector<32x16xf32>
    %407 = arith.truncf %390 : vector<32x16xf32> to vector<32x16xbf16>
    %408 = arith.truncf %398 : vector<16x32xf32> to vector<16x32xbf16>
    %cst_234 = arith.constant dense<0.000000e+00> : vector<32x32xf32>
    %409 = tpu.matmul %407, %408, %cst_234 {dimension_numbers = #tpu.dot_dimension_numbers<[1], [0], [0], [1], [0, 0, 1, 1], [], []>} : vector<32x16xbf16>, vector<16x32xbf16>, vector<32x32xf32> -> vector<32x32xf32>
    %cst_235 = arith.constant 2.500000e-01 : f32
    %410 = vector.broadcast %cst_235 : f32 to vector<32x32xf32>
    %411 = arith.mulf %409, %410 : vector<32x32xf32>
    %412 = arith.addf %411, %23 : vector<32x32xf32>
    %cst_236 = arith.constant dense<0xFF800000> : vector<32xf32>
    %413 = vector.multi_reduction <maximumf>, %412, %cst_236 [1] : vector<32x32xf32> to vector<32xf32>
    %414 = vector.shape_cast %413 : vector<32xf32> to vector<32x1xf32>
    %415 = vector.broadcast %414 : vector<32x1xf32> to vector<32x32xf32>
    %416 = arith.subf %412, %415 : vector<32x32xf32>
    %417 = math.exp %416 : vector<32x32xf32>
    %cst_237 = arith.constant dense<0.000000e+00> : vector<32xf32>
    %418 = vector.multi_reduction <add>, %417, %cst_237 [1] : vector<32x32xf32> to vector<32xf32>
    %419 = vector.shape_cast %418 : vector<32xf32> to vector<32x1xf32>
    %420 = tpu.reciprocal %419 {approx = true} : vector<32x1xf32> -> vector<32x1xf32>
    %421 = vector.broadcast %420 : vector<32x1xf32> to vector<32x32xf32>
    %422 = arith.mulf %417, %421 : vector<32x32xf32>
    %423 = arith.truncf %422 : vector<32x32xf32> to vector<32x32xbf16>
    %424 = arith.truncf %406 : vector<32x16xf32> to vector<32x16xbf16>
    %cst_238 = arith.constant dense<0.000000e+00> : vector<32x16xf32>
    %425 = tpu.matmul %423, %424, %cst_238 {dimension_numbers = #tpu.dot_dimension_numbers<[1], [0], [0], [1], [0, 0, 1, 1], [], []>} : vector<32x32xbf16>, vector<32x16xbf16>, vector<32x16xf32> -> vector<32x16xf32>
    %c4_239 = arith.constant 4 : index
    %c0_240 = arith.constant 0 : index
    %c0_241 = arith.constant 0 : index
    %426 = vector.load %arg11[%c4_239, %c0_240, %c0_241] : memref<6x16x32xbf16, #tpu.memory_space<vmem>>, vector<1x16x32xbf16>
    %427 = vector.shape_cast %426 : vector<1x16x32xbf16> to vector<16x32xbf16>
    %428 = arith.truncf %425 : vector<32x16xf32> to vector<32x16xbf16>
    %cst_242 = arith.constant dense<0.000000e+00> : vector<32x32xf32>
    %429 = tpu.matmul %428, %427, %cst_242 {dimension_numbers = #tpu.dot_dimension_numbers<[1], [0], [0], [1], [0, 0, 1, 1], [], []>} : vector<32x16xbf16>, vector<16x32xbf16>, vector<32x32xf32> -> vector<32x32xf32>
    %c5 = arith.constant 5 : index
    %c0_243 = arith.constant 0 : index
    %c0_244 = arith.constant 0 : index
    %430 = vector.load %arg5[%c5, %c0_243, %c0_244] : memref<6x32x16xbf16, #tpu.memory_space<vmem>>, vector<1x32x16xbf16>
    %431 = vector.shape_cast %430 : vector<1x32x16xbf16> to vector<32x16xbf16>
    %432 = arith.truncf %381 : vector<32x32xf32> to vector<32x32xbf16>
    %cst_245 = arith.constant dense<0.000000e+00> : vector<32x16xf32>
    %433 = tpu.matmul %432, %431, %cst_245 {dimension_numbers = #tpu.dot_dimension_numbers<[1], [0], [0], [1], [0, 0, 1, 1], [], []>} : vector<32x32xbf16>, vector<32x16xbf16>, vector<32x16xf32> -> vector<32x16xf32>
    %c5_246 = arith.constant 5 : index
    %c0_247 = arith.constant 0 : index
    %c0_248 = arith.constant 0 : index
    %434 = vector.load %arg6[%c5_246, %c0_247, %c0_248] : memref<6x1x16xf32, #tpu.memory_space<vmem>>, vector<1x1x16xf32>
    %435 = vector.shape_cast %434 : vector<1x1x16xf32> to vector<1x16xf32>
    %436 = vector.broadcast %435 : vector<1x16xf32> to vector<32x16xf32>
    %437 = arith.addf %433, %436 : vector<32x16xf32>
    %c5_249 = arith.constant 5 : index
    %c0_250 = arith.constant 0 : index
    %c0_251 = arith.constant 0 : index
    %438 = vector.load %arg7[%c5_249, %c0_250, %c0_251] : memref<6x16x32xbf16, #tpu.memory_space<vmem>>, vector<1x16x32xbf16>
    %439 = vector.shape_cast %438 : vector<1x16x32xbf16> to vector<16x32xbf16>
    %440 = arith.truncf %382 : vector<32x32xf32> to vector<32x32xbf16>
    %cst_252 = arith.constant dense<0.000000e+00> : vector<16x32xf32>
    %441 = tpu.matmul %439, %440, %cst_252 {dimension_numbers = #tpu.dot_dimension_numbers<[1], [0], [0], [1], [0, 0, 1, 1], [], []>} : vector<16x32xbf16>, vector<32x32xbf16>, vector<16x32xf32> -> vector<16x32xf32>
    %c5_253 = arith.constant 5 : index
    %c0_254 = arith.constant 0 : index
    %c0_255 = arith.constant 0 : index
    %442 = vector.load %arg8[%c5_253, %c0_254, %c0_255] : memref<6x16x1xf32, #tpu.memory_space<vmem>>, vector<1x16x1xf32>
    %443 = vector.shape_cast %442 : vector<1x16x1xf32> to vector<16x1xf32>
    %444 = vector.broadcast %443 : vector<16x1xf32> to vector<16x32xf32>
    %445 = arith.addf %441, %444 : vector<16x32xf32>
    %c5_256 = arith.constant 5 : index
    %c0_257 = arith.constant 0 : index
    %c0_258 = arith.constant 0 : index
    %446 = vector.load %arg9[%c5_256, %c0_257, %c0_258] : memref<6x32x16xbf16, #tpu.memory_space<vmem>>, vector<1x32x16xbf16>
    %447 = vector.shape_cast %446 : vector<1x32x16xbf16> to vector<32x16xbf16>
    %448 = arith.truncf %381 : vector<32x32xf32> to vector<32x32xbf16>
    %cst_259 = arith.constant dense<0.000000e+00> : vector<32x16xf32>
    %449 = tpu.matmul %448, %447, %cst_259 {dimension_numbers = #tpu.dot_dimension_numbers<[1], [0], [0], [1], [0, 0, 1, 1], [], []>} : vector<32x32xbf16>, vector<32x16xbf16>, vector<32x16xf32> -> vector<32x16xf32>
    %c5_260 = arith.constant 5 : index
    %c0_261 = arith.constant 0 : index
    %c0_262 = arith.constant 0 : index
    %450 = vector.load %arg10[%c5_260, %c0_261, %c0_262] : memref<6x1x16xf32, #tpu.memory_space<vmem>>, vector<1x1x16xf32>
    %451 = vector.shape_cast %450 : vector<1x1x16xf32> to vector<1x16xf32>
    %452 = vector.broadcast %451 : vector<1x16xf32> to vector<32x16xf32>
    %453 = arith.addf %449, %452 : vector<32x16xf32>
    %454 = arith.truncf %437 : vector<32x16xf32> to vector<32x16xbf16>
    %455 = arith.truncf %445 : vector<16x32xf32> to vector<16x32xbf16>
    %cst_263 = arith.constant dense<0.000000e+00> : vector<32x32xf32>
    %456 = tpu.matmul %454, %455, %cst_263 {dimension_numbers = #tpu.dot_dimension_numbers<[1], [0], [0], [1], [0, 0, 1, 1], [], []>} : vector<32x16xbf16>, vector<16x32xbf16>, vector<32x32xf32> -> vector<32x32xf32>
    %cst_264 = arith.constant 2.500000e-01 : f32
    %457 = vector.broadcast %cst_264 : f32 to vector<32x32xf32>
    %458 = arith.mulf %456, %457 : vector<32x32xf32>
    %459 = arith.addf %458, %23 : vector<32x32xf32>
    %cst_265 = arith.constant dense<0xFF800000> : vector<32xf32>
    %460 = vector.multi_reduction <maximumf>, %459, %cst_265 [1] : vector<32x32xf32> to vector<32xf32>
    %461 = vector.shape_cast %460 : vector<32xf32> to vector<32x1xf32>
    %462 = vector.broadcast %461 : vector<32x1xf32> to vector<32x32xf32>
    %463 = arith.subf %459, %462 : vector<32x32xf32>
    %464 = math.exp %463 : vector<32x32xf32>
    %cst_266 = arith.constant dense<0.000000e+00> : vector<32xf32>
    %465 = vector.multi_reduction <add>, %464, %cst_266 [1] : vector<32x32xf32> to vector<32xf32>
    %466 = vector.shape_cast %465 : vector<32xf32> to vector<32x1xf32>
    %467 = tpu.reciprocal %466 {approx = true} : vector<32x1xf32> -> vector<32x1xf32>
    %468 = vector.broadcast %467 : vector<32x1xf32> to vector<32x32xf32>
    %469 = arith.mulf %464, %468 : vector<32x32xf32>
    %470 = arith.truncf %469 : vector<32x32xf32> to vector<32x32xbf16>
    %471 = arith.truncf %453 : vector<32x16xf32> to vector<32x16xbf16>
    %cst_267 = arith.constant dense<0.000000e+00> : vector<32x16xf32>
    %472 = tpu.matmul %470, %471, %cst_267 {dimension_numbers = #tpu.dot_dimension_numbers<[1], [0], [0], [1], [0, 0, 1, 1], [], []>} : vector<32x32xbf16>, vector<32x16xbf16>, vector<32x16xf32> -> vector<32x16xf32>
    %c5_268 = arith.constant 5 : index
    %c0_269 = arith.constant 0 : index
    %c0_270 = arith.constant 0 : index
    %473 = vector.load %arg11[%c5_268, %c0_269, %c0_270] : memref<6x16x32xbf16, #tpu.memory_space<vmem>>, vector<1x16x32xbf16>
    %474 = vector.shape_cast %473 : vector<1x16x32xbf16> to vector<16x32xbf16>
    %475 = arith.truncf %472 : vector<32x16xf32> to vector<32x16xbf16>
    %cst_271 = arith.constant dense<0.000000e+00> : vector<32x32xf32>
    %476 = tpu.matmul %475, %474, %cst_271 {dimension_numbers = #tpu.dot_dimension_numbers<[1], [0], [0], [1], [0, 0, 1, 1], [], []>} : vector<32x16xbf16>, vector<16x32xbf16>, vector<32x32xf32> -> vector<32x32xf32>
    %477 = arith.addf %429, %476 : vector<32x32xf32>
    %c2_272 = arith.constant 2 : index
    %c0_273 = arith.constant 0 : index
    %c0_274 = arith.constant 0 : index
    %478 = vector.load %arg12[%c2_272, %c0_273, %c0_274] : memref<3x1x32xf32, #tpu.memory_space<vmem>>, vector<1x1x32xf32>
    %479 = vector.shape_cast %478 : vector<1x1x32xf32> to vector<1x32xf32>
    %480 = vector.broadcast %479 : vector<1x32xf32> to vector<32x32xf32>
    %481 = arith.addf %477, %480 : vector<32x32xf32>
    %482 = arith.addf %481, %381 : vector<32x32xf32>
    %c2_275 = arith.constant 2 : index
    %c0_276 = arith.constant 0 : index
    %c0_277 = arith.constant 0 : index
    %483 = vector.load %arg13[%c2_275, %c0_276, %c0_277] : memref<3x1x32xf32, #tpu.memory_space<vmem>>, vector<1x1x32xf32>
    %484 = vector.shape_cast %483 : vector<1x1x32xf32> to vector<1x32xf32>
    %c2_278 = arith.constant 2 : index
    %c0_279 = arith.constant 0 : index
    %c0_280 = arith.constant 0 : index
    %485 = vector.load %arg14[%c2_278, %c0_279, %c0_280] : memref<3x1x32xf32, #tpu.memory_space<vmem>>, vector<1x1x32xf32>
    %486 = vector.shape_cast %485 : vector<1x1x32xf32> to vector<1x32xf32>
    %cst_281 = arith.constant dense<0.000000e+00> : vector<32xf32>
    %487 = vector.multi_reduction <add>, %482, %cst_281 [1] : vector<32x32xf32> to vector<32xf32>
    %488 = vector.shape_cast %487 : vector<32xf32> to vector<32x1xf32>
    %cst_282 = arith.constant 3.200000e+01 : f32
    %489 = vector.broadcast %cst_282 : f32 to vector<32x1xf32>
    %490 = arith.divf %488, %489 : vector<32x1xf32>
    %491 = vector.broadcast %490 : vector<32x1xf32> to vector<32x32xf32>
    %492 = arith.subf %482, %491 : vector<32x32xf32>
    %493 = arith.mulf %492, %492 : vector<32x32xf32>
    %cst_283 = arith.constant dense<0.000000e+00> : vector<32xf32>
    %494 = vector.multi_reduction <add>, %493, %cst_283 [1] : vector<32x32xf32> to vector<32xf32>
    %495 = vector.shape_cast %494 : vector<32xf32> to vector<32x1xf32>
    %cst_284 = arith.constant 3.200000e+01 : f32
    %496 = vector.broadcast %cst_284 : f32 to vector<32x1xf32>
    %497 = arith.divf %495, %496 : vector<32x1xf32>
    %cst_285 = arith.constant 9.99999996E-13 : f32
    %498 = vector.broadcast %cst_285 : f32 to vector<32x1xf32>
    %499 = arith.addf %497, %498 : vector<32x1xf32>
    %500 = math.rsqrt %499 : vector<32x1xf32>
    %501 = vector.broadcast %500 : vector<32x1xf32> to vector<32x32xf32>
    %502 = arith.mulf %492, %501 : vector<32x32xf32>
    %503 = vector.broadcast %484 : vector<1x32xf32> to vector<32x32xf32>
    %504 = arith.mulf %502, %503 : vector<32x32xf32>
    %505 = vector.broadcast %486 : vector<1x32xf32> to vector<32x32xf32>
    %506 = arith.addf %504, %505 : vector<32x32xf32>
    %c2_286 = arith.constant 2 : index
    %c0_287 = arith.constant 0 : index
    %c0_288 = arith.constant 0 : index
    %507 = vector.load %arg15[%c2_286, %c0_287, %c0_288] : memref<3x32x128xbf16, #tpu.memory_space<vmem>>, vector<1x32x128xbf16>
    %508 = vector.shape_cast %507 : vector<1x32x128xbf16> to vector<32x128xbf16>
    %509 = arith.truncf %506 : vector<32x32xf32> to vector<32x32xbf16>
    %cst_289 = arith.constant dense<0.000000e+00> : vector<32x128xf32>
    %510 = tpu.matmul %509, %508, %cst_289 {dimension_numbers = #tpu.dot_dimension_numbers<[1], [0], [0], [1], [0, 0, 1, 1], [], []>} : vector<32x32xbf16>, vector<32x128xbf16>, vector<32x128xf32> -> vector<32x128xf32>
    %c2_290 = arith.constant 2 : index
    %c0_291 = arith.constant 0 : index
    %c0_292 = arith.constant 0 : index
    %511 = vector.load %arg16[%c2_290, %c0_291, %c0_292] : memref<3x1x128xf32, #tpu.memory_space<vmem>>, vector<1x1x128xf32>
    %512 = vector.shape_cast %511 : vector<1x1x128xf32> to vector<1x128xf32>
    %513 = vector.broadcast %512 : vector<1x128xf32> to vector<32x128xf32>
    %514 = arith.addf %510, %513 : vector<32x128xf32>
    %cst_293 = arith.constant 5.000000e-01 : f32
    %515 = vector.broadcast %cst_293 : f32 to vector<32x128xf32>
    %516 = arith.mulf %515, %514 : vector<32x128xf32>
    %cst_294 = arith.constant 4.471500e-02 : f32
    %517 = vector.broadcast %cst_294 : f32 to vector<32x128xf32>
    %518 = arith.mulf %517, %514 : vector<32x128xf32>
    %519 = arith.mulf %518, %514 : vector<32x128xf32>
    %520 = arith.mulf %519, %514 : vector<32x128xf32>
    %521 = arith.addf %514, %520 : vector<32x128xf32>
    %cst_295 = arith.constant 0.797884583 : f32
    %522 = vector.broadcast %cst_295 : f32 to vector<32x128xf32>
    %523 = arith.mulf %522, %521 : vector<32x128xf32>
    %524 = math.tanh %523 : vector<32x128xf32>
    %cst_296 = arith.constant 1.000000e+00 : f32
    %525 = vector.broadcast %cst_296 : f32 to vector<32x128xf32>
    %526 = arith.addf %525, %524 : vector<32x128xf32>
    %527 = arith.mulf %516, %526 : vector<32x128xf32>
    %c2_297 = arith.constant 2 : index
    %c0_298 = arith.constant 0 : index
    %c0_299 = arith.constant 0 : index
    %528 = vector.load %arg17[%c2_297, %c0_298, %c0_299] : memref<3x128x32xbf16, #tpu.memory_space<vmem>>, vector<1x128x32xbf16>
    %529 = vector.shape_cast %528 : vector<1x128x32xbf16> to vector<128x32xbf16>
    %530 = arith.truncf %527 : vector<32x128xf32> to vector<32x128xbf16>
    %cst_300 = arith.constant dense<0.000000e+00> : vector<32x32xf32>
    %531 = tpu.matmul %530, %529, %cst_300 {dimension_numbers = #tpu.dot_dimension_numbers<[1], [0], [0], [1], [0, 0, 1, 1], [], []>} : vector<32x128xbf16>, vector<128x32xbf16>, vector<32x32xf32> -> vector<32x32xf32>
    %c2_301 = arith.constant 2 : index
    %c0_302 = arith.constant 0 : index
    %c0_303 = arith.constant 0 : index
    %532 = vector.load %arg18[%c2_301, %c0_302, %c0_303] : memref<3x1x32xf32, #tpu.memory_space<vmem>>, vector<1x1x32xf32>
    %533 = vector.shape_cast %532 : vector<1x1x32xf32> to vector<1x32xf32>
    %534 = vector.broadcast %533 : vector<1x32xf32> to vector<32x32xf32>
    %535 = arith.addf %531, %534 : vector<32x32xf32>
    %536 = arith.addf %535, %506 : vector<32x32xf32>
    %c2_304 = arith.constant 2 : index
    %c0_305 = arith.constant 0 : index
    %c0_306 = arith.constant 0 : index
    %537 = vector.load %arg19[%c2_304, %c0_305, %c0_306] : memref<3x1x32xf32, #tpu.memory_space<vmem>>, vector<1x1x32xf32>
    %538 = vector.shape_cast %537 : vector<1x1x32xf32> to vector<1x32xf32>
    %c2_307 = arith.constant 2 : index
    %c0_308 = arith.constant 0 : index
    %c0_309 = arith.constant 0 : index
    %539 = vector.load %arg20[%c2_307, %c0_308, %c0_309] : memref<3x1x32xf32, #tpu.memory_space<vmem>>, vector<1x1x32xf32>
    %540 = vector.shape_cast %539 : vector<1x1x32xf32> to vector<1x32xf32>
    %cst_310 = arith.constant dense<0.000000e+00> : vector<32xf32>
    %541 = vector.multi_reduction <add>, %536, %cst_310 [1] : vector<32x32xf32> to vector<32xf32>
    %542 = vector.shape_cast %541 : vector<32xf32> to vector<32x1xf32>
    %cst_311 = arith.constant 3.200000e+01 : f32
    %543 = vector.broadcast %cst_311 : f32 to vector<32x1xf32>
    %544 = arith.divf %542, %543 : vector<32x1xf32>
    %545 = vector.broadcast %544 : vector<32x1xf32> to vector<32x32xf32>
    %546 = arith.subf %536, %545 : vector<32x32xf32>
    %547 = arith.mulf %546, %546 : vector<32x32xf32>
    %cst_312 = arith.constant dense<0.000000e+00> : vector<32xf32>
    %548 = vector.multi_reduction <add>, %547, %cst_312 [1] : vector<32x32xf32> to vector<32xf32>
    %549 = vector.shape_cast %548 : vector<32xf32> to vector<32x1xf32>
    %cst_313 = arith.constant 3.200000e+01 : f32
    %550 = vector.broadcast %cst_313 : f32 to vector<32x1xf32>
    %551 = arith.divf %549, %550 : vector<32x1xf32>
    %cst_314 = arith.constant 9.99999996E-13 : f32
    %552 = vector.broadcast %cst_314 : f32 to vector<32x1xf32>
    %553 = arith.addf %551, %552 : vector<32x1xf32>
    %554 = math.rsqrt %553 : vector<32x1xf32>
    %555 = vector.broadcast %554 : vector<32x1xf32> to vector<32x32xf32>
    %556 = arith.mulf %546, %555 : vector<32x32xf32>
    %557 = vector.broadcast %538 : vector<1x32xf32> to vector<32x32xf32>
    %558 = arith.mulf %556, %557 : vector<32x32xf32>
    %559 = vector.broadcast %540 : vector<1x32xf32> to vector<32x32xf32>
    %560 = arith.addf %558, %559 : vector<32x32xf32>
    %c0_315 = arith.constant 0 : index
    %c0_316 = arith.constant 0 : index
    %561 = vector.load %arg27[%c0_315, %c0_316] : memref<32x32xf32, #tpu.memory_space<vmem>>, vector<32x32xf32>
    tpu.vector_store %arg27[%c0_315, %c0_316], %560 {strides = array<i32>} : memref<32x32xf32, #tpu.memory_space<vmem>>, vector<32x32xf32>,
    %c0_317 = arith.constant 0 : index
    %c0_318 = arith.constant 0 : index
    %562 = vector.load %arg28[%c0_317, %c0_318] : memref<32x32xf32, #tpu.memory_space<vmem>>, vector<32x32xf32>
    tpu.vector_store %arg28[%c0_317, %c0_318], %381 {strides = array<i32>} : memref<32x32xf32, #tpu.memory_space<vmem>>, vector<32x32xf32>,
    %c0_319 = arith.constant 0 : index
    %c0_320 = arith.constant 0 : index
    %563 = vector.load %arg2[%c0_319, %c0_320] : memref<32x1xi32, #tpu.memory_space<vmem>>, vector<32x1xi32>
    %c0_321 = arith.constant 0 : index
    %c0_322 = arith.constant 0 : index
    %564 = vector.load %arg21[%c0_321, %c0_322] : memref<32x32xbf16, #tpu.memory_space<vmem>>, vector<32x32xbf16>
    %565 = arith.truncf %560 : vector<32x32xf32> to vector<32x32xbf16>
    %cst_323 = arith.constant dense<0.000000e+00> : vector<32x32xf32>
    %566 = tpu.matmul %565, %564, %cst_323 {dimension_numbers = #tpu.dot_dimension_numbers<[1], [0], [0], [1], [0, 0, 1, 1], [], []>} : vector<32x32xbf16>, vector<32x32xbf16>, vector<32x32xf32> -> vector<32x32xf32>
    %c0_324 = arith.constant 0 : index
    %c0_325 = arith.constant 0 : index
    %567 = vector.load %arg22[%c0_324, %c0_325] : memref<1x32xf32, #tpu.memory_space<vmem>>, vector<1x32xf32>
    %568 = vector.broadcast %567 : vector<1x32xf32> to vector<32x32xf32>
    %569 = arith.addf %566, %568 : vector<32x32xf32>
    %cst_326 = arith.constant 5.000000e-01 : f32
    %570 = vector.broadcast %cst_326 : f32 to vector<32x32xf32>
    %571 = arith.mulf %570, %569 : vector<32x32xf32>
    %cst_327 = arith.constant 4.471500e-02 : f32
    %572 = vector.broadcast %cst_327 : f32 to vector<32x32xf32>
    %573 = arith.mulf %572, %569 : vector<32x32xf32>
    %574 = arith.mulf %573, %569 : vector<32x32xf32>
    %575 = arith.mulf %574, %569 : vector<32x32xf32>
    %576 = arith.addf %569, %575 : vector<32x32xf32>
    %cst_328 = arith.constant 0.797884583 : f32
    %577 = vector.broadcast %cst_328 : f32 to vector<32x32xf32>
    %578 = arith.mulf %577, %576 : vector<32x32xf32>
    %579 = math.tanh %578 : vector<32x32xf32>
    %cst_329 = arith.constant 1.000000e+00 : f32
    %580 = vector.broadcast %cst_329 : f32 to vector<32x32xf32>
    %581 = arith.addf %580, %579 : vector<32x32xf32>
    %582 = arith.mulf %571, %581 : vector<32x32xf32>
    %c0_330 = arith.constant 0 : index
    %c0_331 = arith.constant 0 : index
    %583 = vector.load %arg23[%c0_330, %c0_331] : memref<1x32xf32, #tpu.memory_space<vmem>>, vector<1x32xf32>
    %c0_332 = arith.constant 0 : index
    %c0_333 = arith.constant 0 : index
    %584 = vector.load %arg24[%c0_332, %c0_333] : memref<1x32xf32, #tpu.memory_space<vmem>>, vector<1x32xf32>
    %cst_334 = arith.constant dense<0.000000e+00> : vector<32xf32>
    %585 = vector.multi_reduction <add>, %582, %cst_334 [1] : vector<32x32xf32> to vector<32xf32>
    %586 = vector.shape_cast %585 : vector<32xf32> to vector<32x1xf32>
    %cst_335 = arith.constant 3.200000e+01 : f32
    %587 = vector.broadcast %cst_335 : f32 to vector<32x1xf32>
    %588 = arith.divf %586, %587 : vector<32x1xf32>
    %589 = vector.broadcast %588 : vector<32x1xf32> to vector<32x32xf32>
    %590 = arith.subf %582, %589 : vector<32x32xf32>
    %591 = arith.mulf %590, %590 : vector<32x32xf32>
    %cst_336 = arith.constant dense<0.000000e+00> : vector<32xf32>
    %592 = vector.multi_reduction <add>, %591, %cst_336 [1] : vector<32x32xf32> to vector<32xf32>
    %593 = vector.shape_cast %592 : vector<32xf32> to vector<32x1xf32>
    %cst_337 = arith.constant 3.200000e+01 : f32
    %594 = vector.broadcast %cst_337 : f32 to vector<32x1xf32>
    %595 = arith.divf %593, %594 : vector<32x1xf32>
    %cst_338 = arith.constant 9.99999996E-13 : f32
    %596 = vector.broadcast %cst_338 : f32 to vector<32x1xf32>
    %597 = arith.addf %595, %596 : vector<32x1xf32>
    %598 = math.rsqrt %597 : vector<32x1xf32>
    %599 = vector.broadcast %598 : vector<32x1xf32> to vector<32x32xf32>
    %600 = arith.mulf %590, %599 : vector<32x32xf32>
    %601 = vector.broadcast %583 : vector<1x32xf32> to vector<32x32xf32>
    %602 = arith.mulf %600, %601 : vector<32x32xf32>
    %603 = vector.broadcast %584 : vector<1x32xf32> to vector<32x32xf32>
    %604 = arith.addf %602, %603 : vector<32x32xf32>
    %c0_339 = arith.constant 0 : index
    %c0_340 = arith.constant 0 : index
    %605 = vector.load %arg25[%c0_339, %c0_340] : memref<32x128xbf16, #tpu.memory_space<vmem>>, vector<32x128xbf16>
    %606 = arith.truncf %604 : vector<32x32xf32> to vector<32x32xbf16>
    %cst_341 = arith.constant dense<0.000000e+00> : vector<32x128xf32>
    %607 = tpu.matmul %606, %605, %cst_341 {dimension_numbers = #tpu.dot_dimension_numbers<[1], [0], [0], [1], [0, 0, 1, 1], [], []>} : vector<32x32xbf16>, vector<32x128xbf16>, vector<32x128xf32> -> vector<32x128xf32>
    %c0_342 = arith.constant 0 : index
    %c0_343 = arith.constant 0 : index
    %608 = vector.load %arg26[%c0_342, %c0_343] : memref<1x128xf32, #tpu.memory_space<vmem>>, vector<1x128xf32>
    %609 = vector.broadcast %608 : vector<1x128xf32> to vector<32x128xf32>
    %610 = arith.addf %607, %609 : vector<32x128xf32>
    %611 = tpu.iota {dimensions = array<i32: 1>} : vector<32x128xi32>
    %612 = vector.broadcast %563 : vector<32x1xi32> to vector<32x128xi32>
    %613 = arith.cmpi eq, %611, %612 : vector<32x128xi32>
    %cst_344 = arith.constant 0.000000e+00 : f32
    %614 = vector.broadcast %cst_344 : f32 to vector<32x128xf32>
    %615 = arith.select %613, %610, %614 : vector<32x128xi1>, vector<32x128xf32>
    %cst_345 = arith.constant dense<0.000000e+00> : vector<32xf32>
    %616 = vector.multi_reduction <add>, %615, %cst_345 [1] : vector<32x128xf32> to vector<32xf32>
    %617 = vector.shape_cast %616 : vector<32xf32> to vector<32x1xf32>
    %cst_346 = arith.constant dense<0xFF800000> : vector<32xf32>
    %618 = vector.multi_reduction <maximumf>, %610, %cst_346 [1] : vector<32x128xf32> to vector<32xf32>
    %619 = vector.shape_cast %618 : vector<32xf32> to vector<32x1xf32>
    %620 = vector.broadcast %619 : vector<32x1xf32> to vector<32x128xf32>
    %621 = arith.subf %610, %620 : vector<32x128xf32>
    %622 = math.exp %621 : vector<32x128xf32>
    %cst_347 = arith.constant dense<0.000000e+00> : vector<32xf32>
    %623 = vector.multi_reduction <add>, %622, %cst_347 [1] : vector<32x128xf32> to vector<32xf32>
    %624 = vector.shape_cast %623 : vector<32xf32> to vector<32x1xf32>
    %625 = math.log %624 : vector<32x1xf32>
    %626 = arith.addf %619, %625 : vector<32x1xf32>
    %627 = arith.subf %626, %617 : vector<32x1xf32>
    %c-100_i32 = arith.constant -100 : i32
    %628 = vector.broadcast %c-100_i32 : i32 to vector<32x1xi32>
    %629 = arith.cmpi ne, %563, %628 : vector<32x1xi32>
    %630 = arith.extui %629 : vector<32x1xi1> to vector<32x1xi32>
    %631 = arith.sitofp %630 : vector<32x1xi32> to vector<32x1xf32>
    %632 = arith.mulf %627, %631 : vector<32x1xf32>
    %cst_348 = arith.constant dense<0.000000e+00> : vector<1xf32>
    %633 = vector.multi_reduction <add>, %632, %cst_348 [0] : vector<32x1xf32> to vector<1xf32>
    %634 = vector.shape_cast %633 : vector<1xf32> to vector<1x1xf32>
    %cst_349 = arith.constant dense<0.000000e+00> : vector<1xf32>
    %635 = vector.multi_reduction <add>, %631, %cst_349 [0] : vector<32x1xf32> to vector<1xf32>
    %636 = vector.shape_cast %635 : vector<1xf32> to vector<1x1xf32>
    %cst_350 = arith.constant 1.000000e+00 : f32
    %637 = vector.broadcast %cst_350 : f32 to vector<1x1xf32>
    %638 = arith.maximumf %636, %637 : vector<1x1xf32>
    %639 = arith.divf %634, %638 : vector<1x1xf32>
    %c0_351 = arith.constant 0 : index
    %c0_352 = arith.constant 0 : index
    %640 = vector.load %arg29[%c0_351, %c0_352] : memref<32x128xf32, #tpu.memory_space<vmem>>, vector<32x128xf32>
    tpu.vector_store %arg29[%c0_351, %c0_352], %610 {strides = array<i32>} : memref<32x128xf32, #tpu.memory_space<vmem>>, vector<32x128xf32>,
    %c0_353 = arith.constant 0 : index
    %c0_354 = arith.constant 0 : index
    %641 = vector.load %arg30[%c0_353, %c0_354] : memref<1x1xf32, #tpu.memory_space<vmem>>, vector<1x1xf32>
    tpu.vector_store %arg30[%c0_353, %c0_354], %639 {strides = array<i32>} : memref<1x1xf32, #tpu.memory_space<vmem>>, vector<1x1xf32>,
    return
  }
}

module attributes {stable_mosaic.version = 11 : i64} {
  func.func @_decoder_kernel(%arg0: memref<32x32xf32, #tpu.memory_space<vmem>>, %arg1: memref<32x32xf32, #tpu.memory_space<vmem>>, %arg2: memref<32x1xi32, #tpu.memory_space<vmem>>, %arg3: memref<4x32x16xbf16, #tpu.memory_space<vmem>>, %arg4: memref<4x1x16xf32, #tpu.memory_space<vmem>>, %arg5: memref<4x16x32xbf16, #tpu.memory_space<vmem>>, %arg6: memref<4x16x1xf32, #tpu.memory_space<vmem>>, %arg7: memref<4x32x16xbf16, #tpu.memory_space<vmem>>, %arg8: memref<4x1x16xf32, #tpu.memory_space<vmem>>, %arg9: memref<4x16x32xbf16, #tpu.memory_space<vmem>>, %arg10: memref<2x1x32xf32, #tpu.memory_space<vmem>>, %arg11: memref<2x1x32xf32, #tpu.memory_space<vmem>>, %arg12: memref<2x1x32xf32, #tpu.memory_space<vmem>>, %arg13: memref<2x32x128xbf16, #tpu.memory_space<vmem>>, %arg14: memref<2x1x128xf32, #tpu.memory_space<vmem>>, %arg15: memref<2x128x32xbf16, #tpu.memory_space<vmem>>, %arg16: memref<2x1x32xf32, #tpu.memory_space<vmem>>, %arg17: memref<2x1x32xf32, #tpu.memory_space<vmem>>, %arg18: memref<2x1x32xf32, #tpu.memory_space<vmem>>, %arg19: memref<32x32xbf16, #tpu.memory_space<vmem>>, %arg20: memref<1x32xf32, #tpu.memory_space<vmem>>, %arg21: memref<1x32xf32, #tpu.memory_space<vmem>>, %arg22: memref<1x32xf32, #tpu.memory_space<vmem>>, %arg23: memref<32x128xbf16, #tpu.memory_space<vmem>>, %arg24: memref<1x128xf32, #tpu.memory_space<vmem>>, %arg25: memref<32x128xf32, #tpu.memory_space<vmem>>, %arg26: memref<1x1xf32, #tpu.memory_space<vmem>>) attributes {dimension_semantics = [], scalar_prefetch = 0 : i64, scratch_operands = 0 : i64, tpu.core_type = #tpu.core_type<tc>} {
    %c0 = arith.constant 0 : index
    %c0_0 = arith.constant 0 : index
    %0 = vector.load %arg0[%c0, %c0_0] : memref<32x32xf32, #tpu.memory_space<vmem>>, vector<32x32xf32>
    %c0_1 = arith.constant 0 : index
    %c0_2 = arith.constant 0 : index
    %1 = vector.load %arg1[%c0_1, %c0_2] : memref<32x32xf32, #tpu.memory_space<vmem>>, vector<32x32xf32>
    %2 = tpu.transpose %0, [1, 0] : vector<32x32xf32> -> vector<32x32xf32>
    %c0_3 = arith.constant 0 : index
    %c0_4 = arith.constant 0 : index
    %c0_5 = arith.constant 0 : index
    %3 = vector.load %arg3[%c0_3, %c0_4, %c0_5] : memref<4x32x16xbf16, #tpu.memory_space<vmem>>, vector<1x32x16xbf16>
    %4 = vector.shape_cast %3 : vector<1x32x16xbf16> to vector<32x16xbf16>
    %5 = arith.truncf %0 : vector<32x32xf32> to vector<32x32xbf16>
    %cst = arith.constant dense<0.000000e+00> : vector<32x16xf32>
    %6 = tpu.matmul %5, %4, %cst {dimension_numbers = #tpu.dot_dimension_numbers<[1], [0], [0], [1], [0, 0, 1, 1], [], []>} : vector<32x32xbf16>, vector<32x16xbf16>, vector<32x16xf32> -> vector<32x16xf32>
    %c0_6 = arith.constant 0 : index
    %c0_7 = arith.constant 0 : index
    %c0_8 = arith.constant 0 : index
    %7 = vector.load %arg4[%c0_6, %c0_7, %c0_8] : memref<4x1x16xf32, #tpu.memory_space<vmem>>, vector<1x1x16xf32>
    %8 = vector.shape_cast %7 : vector<1x1x16xf32> to vector<1x16xf32>
    %9 = vector.broadcast %8 : vector<1x16xf32> to vector<32x16xf32>
    %10 = arith.addf %6, %9 : vector<32x16xf32>
    %c0_9 = arith.constant 0 : index
    %c0_10 = arith.constant 0 : index
    %c0_11 = arith.constant 0 : index
    %11 = vector.load %arg5[%c0_9, %c0_10, %c0_11] : memref<4x16x32xbf16, #tpu.memory_space<vmem>>, vector<1x16x32xbf16>
    %12 = vector.shape_cast %11 : vector<1x16x32xbf16> to vector<16x32xbf16>
    %13 = arith.truncf %2 : vector<32x32xf32> to vector<32x32xbf16>
    %cst_12 = arith.constant dense<0.000000e+00> : vector<16x32xf32>
    %14 = tpu.matmul %12, %13, %cst_12 {dimension_numbers = #tpu.dot_dimension_numbers<[1], [0], [0], [1], [0, 0, 1, 1], [], []>} : vector<16x32xbf16>, vector<32x32xbf16>, vector<16x32xf32> -> vector<16x32xf32>
    %c0_13 = arith.constant 0 : index
    %c0_14 = arith.constant 0 : index
    %c0_15 = arith.constant 0 : index
    %15 = vector.load %arg6[%c0_13, %c0_14, %c0_15] : memref<4x16x1xf32, #tpu.memory_space<vmem>>, vector<1x16x1xf32>
    %16 = vector.shape_cast %15 : vector<1x16x1xf32> to vector<16x1xf32>
    %17 = vector.broadcast %16 : vector<16x1xf32> to vector<16x32xf32>
    %18 = arith.addf %14, %17 : vector<16x32xf32>
    %c0_16 = arith.constant 0 : index
    %c0_17 = arith.constant 0 : index
    %c0_18 = arith.constant 0 : index
    %19 = vector.load %arg7[%c0_16, %c0_17, %c0_18] : memref<4x32x16xbf16, #tpu.memory_space<vmem>>, vector<1x32x16xbf16>
    %20 = vector.shape_cast %19 : vector<1x32x16xbf16> to vector<32x16xbf16>
    %21 = arith.truncf %0 : vector<32x32xf32> to vector<32x32xbf16>
    %cst_19 = arith.constant dense<0.000000e+00> : vector<32x16xf32>
    %22 = tpu.matmul %21, %20, %cst_19 {dimension_numbers = #tpu.dot_dimension_numbers<[1], [0], [0], [1], [0, 0, 1, 1], [], []>} : vector<32x32xbf16>, vector<32x16xbf16>, vector<32x16xf32> -> vector<32x16xf32>
    %c0_20 = arith.constant 0 : index
    %c0_21 = arith.constant 0 : index
    %c0_22 = arith.constant 0 : index
    %23 = vector.load %arg8[%c0_20, %c0_21, %c0_22] : memref<4x1x16xf32, #tpu.memory_space<vmem>>, vector<1x1x16xf32>
    %24 = vector.shape_cast %23 : vector<1x1x16xf32> to vector<1x16xf32>
    %25 = vector.broadcast %24 : vector<1x16xf32> to vector<32x16xf32>
    %26 = arith.addf %22, %25 : vector<32x16xf32>
    %27 = arith.truncf %10 : vector<32x16xf32> to vector<32x16xbf16>
    %28 = arith.truncf %18 : vector<16x32xf32> to vector<16x32xbf16>
    %cst_23 = arith.constant dense<0.000000e+00> : vector<32x32xf32>
    %29 = tpu.matmul %27, %28, %cst_23 {dimension_numbers = #tpu.dot_dimension_numbers<[1], [0], [0], [1], [0, 0, 1, 1], [], []>} : vector<32x16xbf16>, vector<16x32xbf16>, vector<32x32xf32> -> vector<32x32xf32>
    %cst_24 = arith.constant 2.500000e-01 : f32
    %30 = vector.broadcast %cst_24 : f32 to vector<32x32xf32>
    %31 = arith.mulf %29, %30 : vector<32x32xf32>
    %32 = arith.addf %31, %1 : vector<32x32xf32>
    %cst_25 = arith.constant dense<0xFF800000> : vector<32xf32>
    %33 = vector.multi_reduction <maximumf>, %32, %cst_25 [1] : vector<32x32xf32> to vector<32xf32>
    %34 = vector.shape_cast %33 : vector<32xf32> to vector<32x1xf32>
    %35 = vector.broadcast %34 : vector<32x1xf32> to vector<32x32xf32>
    %36 = arith.subf %32, %35 : vector<32x32xf32>
    %37 = math.exp %36 : vector<32x32xf32>
    %cst_26 = arith.constant dense<0.000000e+00> : vector<32xf32>
    %38 = vector.multi_reduction <add>, %37, %cst_26 [1] : vector<32x32xf32> to vector<32xf32>
    %39 = vector.shape_cast %38 : vector<32xf32> to vector<32x1xf32>
    %40 = tpu.reciprocal %39 {approx = true} : vector<32x1xf32> -> vector<32x1xf32>
    %41 = vector.broadcast %40 : vector<32x1xf32> to vector<32x32xf32>
    %42 = arith.mulf %37, %41 : vector<32x32xf32>
    %43 = arith.truncf %42 : vector<32x32xf32> to vector<32x32xbf16>
    %44 = arith.truncf %26 : vector<32x16xf32> to vector<32x16xbf16>
    %cst_27 = arith.constant dense<0.000000e+00> : vector<32x16xf32>
    %45 = tpu.matmul %43, %44, %cst_27 {dimension_numbers = #tpu.dot_dimension_numbers<[1], [0], [0], [1], [0, 0, 1, 1], [], []>} : vector<32x32xbf16>, vector<32x16xbf16>, vector<32x16xf32> -> vector<32x16xf32>
    %c0_28 = arith.constant 0 : index
    %c0_29 = arith.constant 0 : index
    %c0_30 = arith.constant 0 : index
    %46 = vector.load %arg9[%c0_28, %c0_29, %c0_30] : memref<4x16x32xbf16, #tpu.memory_space<vmem>>, vector<1x16x32xbf16>
    %47 = vector.shape_cast %46 : vector<1x16x32xbf16> to vector<16x32xbf16>
    %48 = arith.truncf %45 : vector<32x16xf32> to vector<32x16xbf16>
    %cst_31 = arith.constant dense<0.000000e+00> : vector<32x32xf32>
    %49 = tpu.matmul %48, %47, %cst_31 {dimension_numbers = #tpu.dot_dimension_numbers<[1], [0], [0], [1], [0, 0, 1, 1], [], []>} : vector<32x16xbf16>, vector<16x32xbf16>, vector<32x32xf32> -> vector<32x32xf32>
    %c1 = arith.constant 1 : index
    %c0_32 = arith.constant 0 : index
    %c0_33 = arith.constant 0 : index
    %50 = vector.load %arg3[%c1, %c0_32, %c0_33] : memref<4x32x16xbf16, #tpu.memory_space<vmem>>, vector<1x32x16xbf16>
    %51 = vector.shape_cast %50 : vector<1x32x16xbf16> to vector<32x16xbf16>
    %52 = arith.truncf %0 : vector<32x32xf32> to vector<32x32xbf16>
    %cst_34 = arith.constant dense<0.000000e+00> : vector<32x16xf32>
    %53 = tpu.matmul %52, %51, %cst_34 {dimension_numbers = #tpu.dot_dimension_numbers<[1], [0], [0], [1], [0, 0, 1, 1], [], []>} : vector<32x32xbf16>, vector<32x16xbf16>, vector<32x16xf32> -> vector<32x16xf32>
    %c1_35 = arith.constant 1 : index
    %c0_36 = arith.constant 0 : index
    %c0_37 = arith.constant 0 : index
    %54 = vector.load %arg4[%c1_35, %c0_36, %c0_37] : memref<4x1x16xf32, #tpu.memory_space<vmem>>, vector<1x1x16xf32>
    %55 = vector.shape_cast %54 : vector<1x1x16xf32> to vector<1x16xf32>
    %56 = vector.broadcast %55 : vector<1x16xf32> to vector<32x16xf32>
    %57 = arith.addf %53, %56 : vector<32x16xf32>
    %c1_38 = arith.constant 1 : index
    %c0_39 = arith.constant 0 : index
    %c0_40 = arith.constant 0 : index
    %58 = vector.load %arg5[%c1_38, %c0_39, %c0_40] : memref<4x16x32xbf16, #tpu.memory_space<vmem>>, vector<1x16x32xbf16>
    %59 = vector.shape_cast %58 : vector<1x16x32xbf16> to vector<16x32xbf16>
    %60 = arith.truncf %2 : vector<32x32xf32> to vector<32x32xbf16>
    %cst_41 = arith.constant dense<0.000000e+00> : vector<16x32xf32>
    %61 = tpu.matmul %59, %60, %cst_41 {dimension_numbers = #tpu.dot_dimension_numbers<[1], [0], [0], [1], [0, 0, 1, 1], [], []>} : vector<16x32xbf16>, vector<32x32xbf16>, vector<16x32xf32> -> vector<16x32xf32>
    %c1_42 = arith.constant 1 : index
    %c0_43 = arith.constant 0 : index
    %c0_44 = arith.constant 0 : index
    %62 = vector.load %arg6[%c1_42, %c0_43, %c0_44] : memref<4x16x1xf32, #tpu.memory_space<vmem>>, vector<1x16x1xf32>
    %63 = vector.shape_cast %62 : vector<1x16x1xf32> to vector<16x1xf32>
    %64 = vector.broadcast %63 : vector<16x1xf32> to vector<16x32xf32>
    %65 = arith.addf %61, %64 : vector<16x32xf32>
    %c1_45 = arith.constant 1 : index
    %c0_46 = arith.constant 0 : index
    %c0_47 = arith.constant 0 : index
    %66 = vector.load %arg7[%c1_45, %c0_46, %c0_47] : memref<4x32x16xbf16, #tpu.memory_space<vmem>>, vector<1x32x16xbf16>
    %67 = vector.shape_cast %66 : vector<1x32x16xbf16> to vector<32x16xbf16>
    %68 = arith.truncf %0 : vector<32x32xf32> to vector<32x32xbf16>
    %cst_48 = arith.constant dense<0.000000e+00> : vector<32x16xf32>
    %69 = tpu.matmul %68, %67, %cst_48 {dimension_numbers = #tpu.dot_dimension_numbers<[1], [0], [0], [1], [0, 0, 1, 1], [], []>} : vector<32x32xbf16>, vector<32x16xbf16>, vector<32x16xf32> -> vector<32x16xf32>
    %c1_49 = arith.constant 1 : index
    %c0_50 = arith.constant 0 : index
    %c0_51 = arith.constant 0 : index
    %70 = vector.load %arg8[%c1_49, %c0_50, %c0_51] : memref<4x1x16xf32, #tpu.memory_space<vmem>>, vector<1x1x16xf32>
    %71 = vector.shape_cast %70 : vector<1x1x16xf32> to vector<1x16xf32>
    %72 = vector.broadcast %71 : vector<1x16xf32> to vector<32x16xf32>
    %73 = arith.addf %69, %72 : vector<32x16xf32>
    %74 = arith.truncf %57 : vector<32x16xf32> to vector<32x16xbf16>
    %75 = arith.truncf %65 : vector<16x32xf32> to vector<16x32xbf16>
    %cst_52 = arith.constant dense<0.000000e+00> : vector<32x32xf32>
    %76 = tpu.matmul %74, %75, %cst_52 {dimension_numbers = #tpu.dot_dimension_numbers<[1], [0], [0], [1], [0, 0, 1, 1], [], []>} : vector<32x16xbf16>, vector<16x32xbf16>, vector<32x32xf32> -> vector<32x32xf32>
    %cst_53 = arith.constant 2.500000e-01 : f32
    %77 = vector.broadcast %cst_53 : f32 to vector<32x32xf32>
    %78 = arith.mulf %76, %77 : vector<32x32xf32>
    %79 = arith.addf %78, %1 : vector<32x32xf32>
    %cst_54 = arith.constant dense<0xFF800000> : vector<32xf32>
    %80 = vector.multi_reduction <maximumf>, %79, %cst_54 [1] : vector<32x32xf32> to vector<32xf32>
    %81 = vector.shape_cast %80 : vector<32xf32> to vector<32x1xf32>
    %82 = vector.broadcast %81 : vector<32x1xf32> to vector<32x32xf32>
    %83 = arith.subf %79, %82 : vector<32x32xf32>
    %84 = math.exp %83 : vector<32x32xf32>
    %cst_55 = arith.constant dense<0.000000e+00> : vector<32xf32>
    %85 = vector.multi_reduction <add>, %84, %cst_55 [1] : vector<32x32xf32> to vector<32xf32>
    %86 = vector.shape_cast %85 : vector<32xf32> to vector<32x1xf32>
    %87 = tpu.reciprocal %86 {approx = true} : vector<32x1xf32> -> vector<32x1xf32>
    %88 = vector.broadcast %87 : vector<32x1xf32> to vector<32x32xf32>
    %89 = arith.mulf %84, %88 : vector<32x32xf32>
    %90 = arith.truncf %89 : vector<32x32xf32> to vector<32x32xbf16>
    %91 = arith.truncf %73 : vector<32x16xf32> to vector<32x16xbf16>
    %cst_56 = arith.constant dense<0.000000e+00> : vector<32x16xf32>
    %92 = tpu.matmul %90, %91, %cst_56 {dimension_numbers = #tpu.dot_dimension_numbers<[1], [0], [0], [1], [0, 0, 1, 1], [], []>} : vector<32x32xbf16>, vector<32x16xbf16>, vector<32x16xf32> -> vector<32x16xf32>
    %c1_57 = arith.constant 1 : index
    %c0_58 = arith.constant 0 : index
    %c0_59 = arith.constant 0 : index
    %93 = vector.load %arg9[%c1_57, %c0_58, %c0_59] : memref<4x16x32xbf16, #tpu.memory_space<vmem>>, vector<1x16x32xbf16>
    %94 = vector.shape_cast %93 : vector<1x16x32xbf16> to vector<16x32xbf16>
    %95 = arith.truncf %92 : vector<32x16xf32> to vector<32x16xbf16>
    %cst_60 = arith.constant dense<0.000000e+00> : vector<32x32xf32>
    %96 = tpu.matmul %95, %94, %cst_60 {dimension_numbers = #tpu.dot_dimension_numbers<[1], [0], [0], [1], [0, 0, 1, 1], [], []>} : vector<32x16xbf16>, vector<16x32xbf16>, vector<32x32xf32> -> vector<32x32xf32>
    %97 = arith.addf %49, %96 : vector<32x32xf32>
    %c0_61 = arith.constant 0 : index
    %c0_62 = arith.constant 0 : index
    %c0_63 = arith.constant 0 : index
    %98 = vector.load %arg10[%c0_61, %c0_62, %c0_63] : memref<2x1x32xf32, #tpu.memory_space<vmem>>, vector<1x1x32xf32>
    %99 = vector.shape_cast %98 : vector<1x1x32xf32> to vector<1x32xf32>
    %100 = vector.broadcast %99 : vector<1x32xf32> to vector<32x32xf32>
    %101 = arith.addf %97, %100 : vector<32x32xf32>
    %102 = arith.addf %101, %0 : vector<32x32xf32>
    %c0_64 = arith.constant 0 : index
    %c0_65 = arith.constant 0 : index
    %c0_66 = arith.constant 0 : index
    %103 = vector.load %arg11[%c0_64, %c0_65, %c0_66] : memref<2x1x32xf32, #tpu.memory_space<vmem>>, vector<1x1x32xf32>
    %104 = vector.shape_cast %103 : vector<1x1x32xf32> to vector<1x32xf32>
    %c0_67 = arith.constant 0 : index
    %c0_68 = arith.constant 0 : index
    %c0_69 = arith.constant 0 : index
    %105 = vector.load %arg12[%c0_67, %c0_68, %c0_69] : memref<2x1x32xf32, #tpu.memory_space<vmem>>, vector<1x1x32xf32>
    %106 = vector.shape_cast %105 : vector<1x1x32xf32> to vector<1x32xf32>
    %cst_70 = arith.constant dense<0.000000e+00> : vector<32xf32>
    %107 = vector.multi_reduction <add>, %102, %cst_70 [1] : vector<32x32xf32> to vector<32xf32>
    %108 = vector.shape_cast %107 : vector<32xf32> to vector<32x1xf32>
    %cst_71 = arith.constant 3.200000e+01 : f32
    %109 = vector.broadcast %cst_71 : f32 to vector<32x1xf32>
    %110 = arith.divf %108, %109 : vector<32x1xf32>
    %111 = vector.broadcast %110 : vector<32x1xf32> to vector<32x32xf32>
    %112 = arith.subf %102, %111 : vector<32x32xf32>
    %113 = arith.mulf %112, %112 : vector<32x32xf32>
    %cst_72 = arith.constant dense<0.000000e+00> : vector<32xf32>
    %114 = vector.multi_reduction <add>, %113, %cst_72 [1] : vector<32x32xf32> to vector<32xf32>
    %115 = vector.shape_cast %114 : vector<32xf32> to vector<32x1xf32>
    %cst_73 = arith.constant 3.200000e+01 : f32
    %116 = vector.broadcast %cst_73 : f32 to vector<32x1xf32>
    %117 = arith.divf %115, %116 : vector<32x1xf32>
    %cst_74 = arith.constant 9.99999996E-13 : f32
    %118 = vector.broadcast %cst_74 : f32 to vector<32x1xf32>
    %119 = arith.addf %117, %118 : vector<32x1xf32>
    %120 = math.rsqrt %119 : vector<32x1xf32>
    %121 = vector.broadcast %120 : vector<32x1xf32> to vector<32x32xf32>
    %122 = arith.mulf %112, %121 : vector<32x32xf32>
    %123 = vector.broadcast %104 : vector<1x32xf32> to vector<32x32xf32>
    %124 = arith.mulf %122, %123 : vector<32x32xf32>
    %125 = vector.broadcast %106 : vector<1x32xf32> to vector<32x32xf32>
    %126 = arith.addf %124, %125 : vector<32x32xf32>
    %c0_75 = arith.constant 0 : index
    %c0_76 = arith.constant 0 : index
    %c0_77 = arith.constant 0 : index
    %127 = vector.load %arg13[%c0_75, %c0_76, %c0_77] : memref<2x32x128xbf16, #tpu.memory_space<vmem>>, vector<1x32x128xbf16>
    %128 = vector.shape_cast %127 : vector<1x32x128xbf16> to vector<32x128xbf16>
    %129 = arith.truncf %126 : vector<32x32xf32> to vector<32x32xbf16>
    %cst_78 = arith.constant dense<0.000000e+00> : vector<32x128xf32>
    %130 = tpu.matmul %129, %128, %cst_78 {dimension_numbers = #tpu.dot_dimension_numbers<[1], [0], [0], [1], [0, 0, 1, 1], [], []>} : vector<32x32xbf16>, vector<32x128xbf16>, vector<32x128xf32> -> vector<32x128xf32>
    %c0_79 = arith.constant 0 : index
    %c0_80 = arith.constant 0 : index
    %c0_81 = arith.constant 0 : index
    %131 = vector.load %arg14[%c0_79, %c0_80, %c0_81] : memref<2x1x128xf32, #tpu.memory_space<vmem>>, vector<1x1x128xf32>
    %132 = vector.shape_cast %131 : vector<1x1x128xf32> to vector<1x128xf32>
    %133 = vector.broadcast %132 : vector<1x128xf32> to vector<32x128xf32>
    %134 = arith.addf %130, %133 : vector<32x128xf32>
    %cst_82 = arith.constant 5.000000e-01 : f32
    %135 = vector.broadcast %cst_82 : f32 to vector<32x128xf32>
    %136 = arith.mulf %135, %134 : vector<32x128xf32>
    %cst_83 = arith.constant 4.471500e-02 : f32
    %137 = vector.broadcast %cst_83 : f32 to vector<32x128xf32>
    %138 = arith.mulf %137, %134 : vector<32x128xf32>
    %139 = arith.mulf %138, %134 : vector<32x128xf32>
    %140 = arith.mulf %139, %134 : vector<32x128xf32>
    %141 = arith.addf %134, %140 : vector<32x128xf32>
    %cst_84 = arith.constant 0.797884583 : f32
    %142 = vector.broadcast %cst_84 : f32 to vector<32x128xf32>
    %143 = arith.mulf %142, %141 : vector<32x128xf32>
    %144 = math.tanh %143 : vector<32x128xf32>
    %cst_85 = arith.constant 1.000000e+00 : f32
    %145 = vector.broadcast %cst_85 : f32 to vector<32x128xf32>
    %146 = arith.addf %145, %144 : vector<32x128xf32>
    %147 = arith.mulf %136, %146 : vector<32x128xf32>
    %c0_86 = arith.constant 0 : index
    %c0_87 = arith.constant 0 : index
    %c0_88 = arith.constant 0 : index
    %148 = vector.load %arg15[%c0_86, %c0_87, %c0_88] : memref<2x128x32xbf16, #tpu.memory_space<vmem>>, vector<1x128x32xbf16>
    %149 = vector.shape_cast %148 : vector<1x128x32xbf16> to vector<128x32xbf16>
    %150 = arith.truncf %147 : vector<32x128xf32> to vector<32x128xbf16>
    %cst_89 = arith.constant dense<0.000000e+00> : vector<32x32xf32>
    %151 = tpu.matmul %150, %149, %cst_89 {dimension_numbers = #tpu.dot_dimension_numbers<[1], [0], [0], [1], [0, 0, 1, 1], [], []>} : vector<32x128xbf16>, vector<128x32xbf16>, vector<32x32xf32> -> vector<32x32xf32>
    %c0_90 = arith.constant 0 : index
    %c0_91 = arith.constant 0 : index
    %c0_92 = arith.constant 0 : index
    %152 = vector.load %arg16[%c0_90, %c0_91, %c0_92] : memref<2x1x32xf32, #tpu.memory_space<vmem>>, vector<1x1x32xf32>
    %153 = vector.shape_cast %152 : vector<1x1x32xf32> to vector<1x32xf32>
    %154 = vector.broadcast %153 : vector<1x32xf32> to vector<32x32xf32>
    %155 = arith.addf %151, %154 : vector<32x32xf32>
    %156 = arith.addf %155, %126 : vector<32x32xf32>
    %c0_93 = arith.constant 0 : index
    %c0_94 = arith.constant 0 : index
    %c0_95 = arith.constant 0 : index
    %157 = vector.load %arg17[%c0_93, %c0_94, %c0_95] : memref<2x1x32xf32, #tpu.memory_space<vmem>>, vector<1x1x32xf32>
    %158 = vector.shape_cast %157 : vector<1x1x32xf32> to vector<1x32xf32>
    %c0_96 = arith.constant 0 : index
    %c0_97 = arith.constant 0 : index
    %c0_98 = arith.constant 0 : index
    %159 = vector.load %arg18[%c0_96, %c0_97, %c0_98] : memref<2x1x32xf32, #tpu.memory_space<vmem>>, vector<1x1x32xf32>
    %160 = vector.shape_cast %159 : vector<1x1x32xf32> to vector<1x32xf32>
    %cst_99 = arith.constant dense<0.000000e+00> : vector<32xf32>
    %161 = vector.multi_reduction <add>, %156, %cst_99 [1] : vector<32x32xf32> to vector<32xf32>
    %162 = vector.shape_cast %161 : vector<32xf32> to vector<32x1xf32>
    %cst_100 = arith.constant 3.200000e+01 : f32
    %163 = vector.broadcast %cst_100 : f32 to vector<32x1xf32>
    %164 = arith.divf %162, %163 : vector<32x1xf32>
    %165 = vector.broadcast %164 : vector<32x1xf32> to vector<32x32xf32>
    %166 = arith.subf %156, %165 : vector<32x32xf32>
    %167 = arith.mulf %166, %166 : vector<32x32xf32>
    %cst_101 = arith.constant dense<0.000000e+00> : vector<32xf32>
    %168 = vector.multi_reduction <add>, %167, %cst_101 [1] : vector<32x32xf32> to vector<32xf32>
    %169 = vector.shape_cast %168 : vector<32xf32> to vector<32x1xf32>
    %cst_102 = arith.constant 3.200000e+01 : f32
    %170 = vector.broadcast %cst_102 : f32 to vector<32x1xf32>
    %171 = arith.divf %169, %170 : vector<32x1xf32>
    %cst_103 = arith.constant 9.99999996E-13 : f32
    %172 = vector.broadcast %cst_103 : f32 to vector<32x1xf32>
    %173 = arith.addf %171, %172 : vector<32x1xf32>
    %174 = math.rsqrt %173 : vector<32x1xf32>
    %175 = vector.broadcast %174 : vector<32x1xf32> to vector<32x32xf32>
    %176 = arith.mulf %166, %175 : vector<32x32xf32>
    %177 = vector.broadcast %158 : vector<1x32xf32> to vector<32x32xf32>
    %178 = arith.mulf %176, %177 : vector<32x32xf32>
    %179 = vector.broadcast %160 : vector<1x32xf32> to vector<32x32xf32>
    %180 = arith.addf %178, %179 : vector<32x32xf32>
    %181 = tpu.transpose %180, [1, 0] : vector<32x32xf32> -> vector<32x32xf32>
    %c2 = arith.constant 2 : index
    %c0_104 = arith.constant 0 : index
    %c0_105 = arith.constant 0 : index
    %182 = vector.load %arg3[%c2, %c0_104, %c0_105] : memref<4x32x16xbf16, #tpu.memory_space<vmem>>, vector<1x32x16xbf16>
    %183 = vector.shape_cast %182 : vector<1x32x16xbf16> to vector<32x16xbf16>
    %184 = arith.truncf %180 : vector<32x32xf32> to vector<32x32xbf16>
    %cst_106 = arith.constant dense<0.000000e+00> : vector<32x16xf32>
    %185 = tpu.matmul %184, %183, %cst_106 {dimension_numbers = #tpu.dot_dimension_numbers<[1], [0], [0], [1], [0, 0, 1, 1], [], []>} : vector<32x32xbf16>, vector<32x16xbf16>, vector<32x16xf32> -> vector<32x16xf32>
    %c2_107 = arith.constant 2 : index
    %c0_108 = arith.constant 0 : index
    %c0_109 = arith.constant 0 : index
    %186 = vector.load %arg4[%c2_107, %c0_108, %c0_109] : memref<4x1x16xf32, #tpu.memory_space<vmem>>, vector<1x1x16xf32>
    %187 = vector.shape_cast %186 : vector<1x1x16xf32> to vector<1x16xf32>
    %188 = vector.broadcast %187 : vector<1x16xf32> to vector<32x16xf32>
    %189 = arith.addf %185, %188 : vector<32x16xf32>
    %c2_110 = arith.constant 2 : index
    %c0_111 = arith.constant 0 : index
    %c0_112 = arith.constant 0 : index
    %190 = vector.load %arg5[%c2_110, %c0_111, %c0_112] : memref<4x16x32xbf16, #tpu.memory_space<vmem>>, vector<1x16x32xbf16>
    %191 = vector.shape_cast %190 : vector<1x16x32xbf16> to vector<16x32xbf16>
    %192 = arith.truncf %181 : vector<32x32xf32> to vector<32x32xbf16>
    %cst_113 = arith.constant dense<0.000000e+00> : vector<16x32xf32>
    %193 = tpu.matmul %191, %192, %cst_113 {dimension_numbers = #tpu.dot_dimension_numbers<[1], [0], [0], [1], [0, 0, 1, 1], [], []>} : vector<16x32xbf16>, vector<32x32xbf16>, vector<16x32xf32> -> vector<16x32xf32>
    %c2_114 = arith.constant 2 : index
    %c0_115 = arith.constant 0 : index
    %c0_116 = arith.constant 0 : index
    %194 = vector.load %arg6[%c2_114, %c0_115, %c0_116] : memref<4x16x1xf32, #tpu.memory_space<vmem>>, vector<1x16x1xf32>
    %195 = vector.shape_cast %194 : vector<1x16x1xf32> to vector<16x1xf32>
    %196 = vector.broadcast %195 : vector<16x1xf32> to vector<16x32xf32>
    %197 = arith.addf %193, %196 : vector<16x32xf32>
    %c2_117 = arith.constant 2 : index
    %c0_118 = arith.constant 0 : index
    %c0_119 = arith.constant 0 : index
    %198 = vector.load %arg7[%c2_117, %c0_118, %c0_119] : memref<4x32x16xbf16, #tpu.memory_space<vmem>>, vector<1x32x16xbf16>
    %199 = vector.shape_cast %198 : vector<1x32x16xbf16> to vector<32x16xbf16>
    %200 = arith.truncf %180 : vector<32x32xf32> to vector<32x32xbf16>
    %cst_120 = arith.constant dense<0.000000e+00> : vector<32x16xf32>
    %201 = tpu.matmul %200, %199, %cst_120 {dimension_numbers = #tpu.dot_dimension_numbers<[1], [0], [0], [1], [0, 0, 1, 1], [], []>} : vector<32x32xbf16>, vector<32x16xbf16>, vector<32x16xf32> -> vector<32x16xf32>
    %c2_121 = arith.constant 2 : index
    %c0_122 = arith.constant 0 : index
    %c0_123 = arith.constant 0 : index
    %202 = vector.load %arg8[%c2_121, %c0_122, %c0_123] : memref<4x1x16xf32, #tpu.memory_space<vmem>>, vector<1x1x16xf32>
    %203 = vector.shape_cast %202 : vector<1x1x16xf32> to vector<1x16xf32>
    %204 = vector.broadcast %203 : vector<1x16xf32> to vector<32x16xf32>
    %205 = arith.addf %201, %204 : vector<32x16xf32>
    %206 = arith.truncf %189 : vector<32x16xf32> to vector<32x16xbf16>
    %207 = arith.truncf %197 : vector<16x32xf32> to vector<16x32xbf16>
    %cst_124 = arith.constant dense<0.000000e+00> : vector<32x32xf32>
    %208 = tpu.matmul %206, %207, %cst_124 {dimension_numbers = #tpu.dot_dimension_numbers<[1], [0], [0], [1], [0, 0, 1, 1], [], []>} : vector<32x16xbf16>, vector<16x32xbf16>, vector<32x32xf32> -> vector<32x32xf32>
    %cst_125 = arith.constant 2.500000e-01 : f32
    %209 = vector.broadcast %cst_125 : f32 to vector<32x32xf32>
    %210 = arith.mulf %208, %209 : vector<32x32xf32>
    %211 = arith.addf %210, %1 : vector<32x32xf32>
    %cst_126 = arith.constant dense<0xFF800000> : vector<32xf32>
    %212 = vector.multi_reduction <maximumf>, %211, %cst_126 [1] : vector<32x32xf32> to vector<32xf32>
    %213 = vector.shape_cast %212 : vector<32xf32> to vector<32x1xf32>
    %214 = vector.broadcast %213 : vector<32x1xf32> to vector<32x32xf32>
    %215 = arith.subf %211, %214 : vector<32x32xf32>
    %216 = math.exp %215 : vector<32x32xf32>
    %cst_127 = arith.constant dense<0.000000e+00> : vector<32xf32>
    %217 = vector.multi_reduction <add>, %216, %cst_127 [1] : vector<32x32xf32> to vector<32xf32>
    %218 = vector.shape_cast %217 : vector<32xf32> to vector<32x1xf32>
    %219 = tpu.reciprocal %218 {approx = true} : vector<32x1xf32> -> vector<32x1xf32>
    %220 = vector.broadcast %219 : vector<32x1xf32> to vector<32x32xf32>
    %221 = arith.mulf %216, %220 : vector<32x32xf32>
    %222 = arith.truncf %221 : vector<32x32xf32> to vector<32x32xbf16>
    %223 = arith.truncf %205 : vector<32x16xf32> to vector<32x16xbf16>
    %cst_128 = arith.constant dense<0.000000e+00> : vector<32x16xf32>
    %224 = tpu.matmul %222, %223, %cst_128 {dimension_numbers = #tpu.dot_dimension_numbers<[1], [0], [0], [1], [0, 0, 1, 1], [], []>} : vector<32x32xbf16>, vector<32x16xbf16>, vector<32x16xf32> -> vector<32x16xf32>
    %c2_129 = arith.constant 2 : index
    %c0_130 = arith.constant 0 : index
    %c0_131 = arith.constant 0 : index
    %225 = vector.load %arg9[%c2_129, %c0_130, %c0_131] : memref<4x16x32xbf16, #tpu.memory_space<vmem>>, vector<1x16x32xbf16>
    %226 = vector.shape_cast %225 : vector<1x16x32xbf16> to vector<16x32xbf16>
    %227 = arith.truncf %224 : vector<32x16xf32> to vector<32x16xbf16>
    %cst_132 = arith.constant dense<0.000000e+00> : vector<32x32xf32>
    %228 = tpu.matmul %227, %226, %cst_132 {dimension_numbers = #tpu.dot_dimension_numbers<[1], [0], [0], [1], [0, 0, 1, 1], [], []>} : vector<32x16xbf16>, vector<16x32xbf16>, vector<32x32xf32> -> vector<32x32xf32>
    %c3 = arith.constant 3 : index
    %c0_133 = arith.constant 0 : index
    %c0_134 = arith.constant 0 : index
    %229 = vector.load %arg3[%c3, %c0_133, %c0_134] : memref<4x32x16xbf16, #tpu.memory_space<vmem>>, vector<1x32x16xbf16>
    %230 = vector.shape_cast %229 : vector<1x32x16xbf16> to vector<32x16xbf16>
    %231 = arith.truncf %180 : vector<32x32xf32> to vector<32x32xbf16>
    %cst_135 = arith.constant dense<0.000000e+00> : vector<32x16xf32>
    %232 = tpu.matmul %231, %230, %cst_135 {dimension_numbers = #tpu.dot_dimension_numbers<[1], [0], [0], [1], [0, 0, 1, 1], [], []>} : vector<32x32xbf16>, vector<32x16xbf16>, vector<32x16xf32> -> vector<32x16xf32>
    %c3_136 = arith.constant 3 : index
    %c0_137 = arith.constant 0 : index
    %c0_138 = arith.constant 0 : index
    %233 = vector.load %arg4[%c3_136, %c0_137, %c0_138] : memref<4x1x16xf32, #tpu.memory_space<vmem>>, vector<1x1x16xf32>
    %234 = vector.shape_cast %233 : vector<1x1x16xf32> to vector<1x16xf32>
    %235 = vector.broadcast %234 : vector<1x16xf32> to vector<32x16xf32>
    %236 = arith.addf %232, %235 : vector<32x16xf32>
    %c3_139 = arith.constant 3 : index
    %c0_140 = arith.constant 0 : index
    %c0_141 = arith.constant 0 : index
    %237 = vector.load %arg5[%c3_139, %c0_140, %c0_141] : memref<4x16x32xbf16, #tpu.memory_space<vmem>>, vector<1x16x32xbf16>
    %238 = vector.shape_cast %237 : vector<1x16x32xbf16> to vector<16x32xbf16>
    %239 = arith.truncf %181 : vector<32x32xf32> to vector<32x32xbf16>
    %cst_142 = arith.constant dense<0.000000e+00> : vector<16x32xf32>
    %240 = tpu.matmul %238, %239, %cst_142 {dimension_numbers = #tpu.dot_dimension_numbers<[1], [0], [0], [1], [0, 0, 1, 1], [], []>} : vector<16x32xbf16>, vector<32x32xbf16>, vector<16x32xf32> -> vector<16x32xf32>
    %c3_143 = arith.constant 3 : index
    %c0_144 = arith.constant 0 : index
    %c0_145 = arith.constant 0 : index
    %241 = vector.load %arg6[%c3_143, %c0_144, %c0_145] : memref<4x16x1xf32, #tpu.memory_space<vmem>>, vector<1x16x1xf32>
    %242 = vector.shape_cast %241 : vector<1x16x1xf32> to vector<16x1xf32>
    %243 = vector.broadcast %242 : vector<16x1xf32> to vector<16x32xf32>
    %244 = arith.addf %240, %243 : vector<16x32xf32>
    %c3_146 = arith.constant 3 : index
    %c0_147 = arith.constant 0 : index
    %c0_148 = arith.constant 0 : index
    %245 = vector.load %arg7[%c3_146, %c0_147, %c0_148] : memref<4x32x16xbf16, #tpu.memory_space<vmem>>, vector<1x32x16xbf16>
    %246 = vector.shape_cast %245 : vector<1x32x16xbf16> to vector<32x16xbf16>
    %247 = arith.truncf %180 : vector<32x32xf32> to vector<32x32xbf16>
    %cst_149 = arith.constant dense<0.000000e+00> : vector<32x16xf32>
    %248 = tpu.matmul %247, %246, %cst_149 {dimension_numbers = #tpu.dot_dimension_numbers<[1], [0], [0], [1], [0, 0, 1, 1], [], []>} : vector<32x32xbf16>, vector<32x16xbf16>, vector<32x16xf32> -> vector<32x16xf32>
    %c3_150 = arith.constant 3 : index
    %c0_151 = arith.constant 0 : index
    %c0_152 = arith.constant 0 : index
    %249 = vector.load %arg8[%c3_150, %c0_151, %c0_152] : memref<4x1x16xf32, #tpu.memory_space<vmem>>, vector<1x1x16xf32>
    %250 = vector.shape_cast %249 : vector<1x1x16xf32> to vector<1x16xf32>
    %251 = vector.broadcast %250 : vector<1x16xf32> to vector<32x16xf32>
    %252 = arith.addf %248, %251 : vector<32x16xf32>
    %253 = arith.truncf %236 : vector<32x16xf32> to vector<32x16xbf16>
    %254 = arith.truncf %244 : vector<16x32xf32> to vector<16x32xbf16>
    %cst_153 = arith.constant dense<0.000000e+00> : vector<32x32xf32>
    %255 = tpu.matmul %253, %254, %cst_153 {dimension_numbers = #tpu.dot_dimension_numbers<[1], [0], [0], [1], [0, 0, 1, 1], [], []>} : vector<32x16xbf16>, vector<16x32xbf16>, vector<32x32xf32> -> vector<32x32xf32>
    %cst_154 = arith.constant 2.500000e-01 : f32
    %256 = vector.broadcast %cst_154 : f32 to vector<32x32xf32>
    %257 = arith.mulf %255, %256 : vector<32x32xf32>
    %258 = arith.addf %257, %1 : vector<32x32xf32>
    %cst_155 = arith.constant dense<0xFF800000> : vector<32xf32>
    %259 = vector.multi_reduction <maximumf>, %258, %cst_155 [1] : vector<32x32xf32> to vector<32xf32>
    %260 = vector.shape_cast %259 : vector<32xf32> to vector<32x1xf32>
    %261 = vector.broadcast %260 : vector<32x1xf32> to vector<32x32xf32>
    %262 = arith.subf %258, %261 : vector<32x32xf32>
    %263 = math.exp %262 : vector<32x32xf32>
    %cst_156 = arith.constant dense<0.000000e+00> : vector<32xf32>
    %264 = vector.multi_reduction <add>, %263, %cst_156 [1] : vector<32x32xf32> to vector<32xf32>
    %265 = vector.shape_cast %264 : vector<32xf32> to vector<32x1xf32>
    %266 = tpu.reciprocal %265 {approx = true} : vector<32x1xf32> -> vector<32x1xf32>
    %267 = vector.broadcast %266 : vector<32x1xf32> to vector<32x32xf32>
    %268 = arith.mulf %263, %267 : vector<32x32xf32>
    %269 = arith.truncf %268 : vector<32x32xf32> to vector<32x32xbf16>
    %270 = arith.truncf %252 : vector<32x16xf32> to vector<32x16xbf16>
    %cst_157 = arith.constant dense<0.000000e+00> : vector<32x16xf32>
    %271 = tpu.matmul %269, %270, %cst_157 {dimension_numbers = #tpu.dot_dimension_numbers<[1], [0], [0], [1], [0, 0, 1, 1], [], []>} : vector<32x32xbf16>, vector<32x16xbf16>, vector<32x16xf32> -> vector<32x16xf32>
    %c3_158 = arith.constant 3 : index
    %c0_159 = arith.constant 0 : index
    %c0_160 = arith.constant 0 : index
    %272 = vector.load %arg9[%c3_158, %c0_159, %c0_160] : memref<4x16x32xbf16, #tpu.memory_space<vmem>>, vector<1x16x32xbf16>
    %273 = vector.shape_cast %272 : vector<1x16x32xbf16> to vector<16x32xbf16>
    %274 = arith.truncf %271 : vector<32x16xf32> to vector<32x16xbf16>
    %cst_161 = arith.constant dense<0.000000e+00> : vector<32x32xf32>
    %275 = tpu.matmul %274, %273, %cst_161 {dimension_numbers = #tpu.dot_dimension_numbers<[1], [0], [0], [1], [0, 0, 1, 1], [], []>} : vector<32x16xbf16>, vector<16x32xbf16>, vector<32x32xf32> -> vector<32x32xf32>
    %276 = arith.addf %228, %275 : vector<32x32xf32>
    %c1_162 = arith.constant 1 : index
    %c0_163 = arith.constant 0 : index
    %c0_164 = arith.constant 0 : index
    %277 = vector.load %arg10[%c1_162, %c0_163, %c0_164] : memref<2x1x32xf32, #tpu.memory_space<vmem>>, vector<1x1x32xf32>
    %278 = vector.shape_cast %277 : vector<1x1x32xf32> to vector<1x32xf32>
    %279 = vector.broadcast %278 : vector<1x32xf32> to vector<32x32xf32>
    %280 = arith.addf %276, %279 : vector<32x32xf32>
    %281 = arith.addf %280, %180 : vector<32x32xf32>
    %c1_165 = arith.constant 1 : index
    %c0_166 = arith.constant 0 : index
    %c0_167 = arith.constant 0 : index
    %282 = vector.load %arg11[%c1_165, %c0_166, %c0_167] : memref<2x1x32xf32, #tpu.memory_space<vmem>>, vector<1x1x32xf32>
    %283 = vector.shape_cast %282 : vector<1x1x32xf32> to vector<1x32xf32>
    %c1_168 = arith.constant 1 : index
    %c0_169 = arith.constant 0 : index
    %c0_170 = arith.constant 0 : index
    %284 = vector.load %arg12[%c1_168, %c0_169, %c0_170] : memref<2x1x32xf32, #tpu.memory_space<vmem>>, vector<1x1x32xf32>
    %285 = vector.shape_cast %284 : vector<1x1x32xf32> to vector<1x32xf32>
    %cst_171 = arith.constant dense<0.000000e+00> : vector<32xf32>
    %286 = vector.multi_reduction <add>, %281, %cst_171 [1] : vector<32x32xf32> to vector<32xf32>
    %287 = vector.shape_cast %286 : vector<32xf32> to vector<32x1xf32>
    %cst_172 = arith.constant 3.200000e+01 : f32
    %288 = vector.broadcast %cst_172 : f32 to vector<32x1xf32>
    %289 = arith.divf %287, %288 : vector<32x1xf32>
    %290 = vector.broadcast %289 : vector<32x1xf32> to vector<32x32xf32>
    %291 = arith.subf %281, %290 : vector<32x32xf32>
    %292 = arith.mulf %291, %291 : vector<32x32xf32>
    %cst_173 = arith.constant dense<0.000000e+00> : vector<32xf32>
    %293 = vector.multi_reduction <add>, %292, %cst_173 [1] : vector<32x32xf32> to vector<32xf32>
    %294 = vector.shape_cast %293 : vector<32xf32> to vector<32x1xf32>
    %cst_174 = arith.constant 3.200000e+01 : f32
    %295 = vector.broadcast %cst_174 : f32 to vector<32x1xf32>
    %296 = arith.divf %294, %295 : vector<32x1xf32>
    %cst_175 = arith.constant 9.99999996E-13 : f32
    %297 = vector.broadcast %cst_175 : f32 to vector<32x1xf32>
    %298 = arith.addf %296, %297 : vector<32x1xf32>
    %299 = math.rsqrt %298 : vector<32x1xf32>
    %300 = vector.broadcast %299 : vector<32x1xf32> to vector<32x32xf32>
    %301 = arith.mulf %291, %300 : vector<32x32xf32>
    %302 = vector.broadcast %283 : vector<1x32xf32> to vector<32x32xf32>
    %303 = arith.mulf %301, %302 : vector<32x32xf32>
    %304 = vector.broadcast %285 : vector<1x32xf32> to vector<32x32xf32>
    %305 = arith.addf %303, %304 : vector<32x32xf32>
    %c1_176 = arith.constant 1 : index
    %c0_177 = arith.constant 0 : index
    %c0_178 = arith.constant 0 : index
    %306 = vector.load %arg13[%c1_176, %c0_177, %c0_178] : memref<2x32x128xbf16, #tpu.memory_space<vmem>>, vector<1x32x128xbf16>
    %307 = vector.shape_cast %306 : vector<1x32x128xbf16> to vector<32x128xbf16>
    %308 = arith.truncf %305 : vector<32x32xf32> to vector<32x32xbf16>
    %cst_179 = arith.constant dense<0.000000e+00> : vector<32x128xf32>
    %309 = tpu.matmul %308, %307, %cst_179 {dimension_numbers = #tpu.dot_dimension_numbers<[1], [0], [0], [1], [0, 0, 1, 1], [], []>} : vector<32x32xbf16>, vector<32x128xbf16>, vector<32x128xf32> -> vector<32x128xf32>
    %c1_180 = arith.constant 1 : index
    %c0_181 = arith.constant 0 : index
    %c0_182 = arith.constant 0 : index
    %310 = vector.load %arg14[%c1_180, %c0_181, %c0_182] : memref<2x1x128xf32, #tpu.memory_space<vmem>>, vector<1x1x128xf32>
    %311 = vector.shape_cast %310 : vector<1x1x128xf32> to vector<1x128xf32>
    %312 = vector.broadcast %311 : vector<1x128xf32> to vector<32x128xf32>
    %313 = arith.addf %309, %312 : vector<32x128xf32>
    %cst_183 = arith.constant 5.000000e-01 : f32
    %314 = vector.broadcast %cst_183 : f32 to vector<32x128xf32>
    %315 = arith.mulf %314, %313 : vector<32x128xf32>
    %cst_184 = arith.constant 4.471500e-02 : f32
    %316 = vector.broadcast %cst_184 : f32 to vector<32x128xf32>
    %317 = arith.mulf %316, %313 : vector<32x128xf32>
    %318 = arith.mulf %317, %313 : vector<32x128xf32>
    %319 = arith.mulf %318, %313 : vector<32x128xf32>
    %320 = arith.addf %313, %319 : vector<32x128xf32>
    %cst_185 = arith.constant 0.797884583 : f32
    %321 = vector.broadcast %cst_185 : f32 to vector<32x128xf32>
    %322 = arith.mulf %321, %320 : vector<32x128xf32>
    %323 = math.tanh %322 : vector<32x128xf32>
    %cst_186 = arith.constant 1.000000e+00 : f32
    %324 = vector.broadcast %cst_186 : f32 to vector<32x128xf32>
    %325 = arith.addf %324, %323 : vector<32x128xf32>
    %326 = arith.mulf %315, %325 : vector<32x128xf32>
    %c1_187 = arith.constant 1 : index
    %c0_188 = arith.constant 0 : index
    %c0_189 = arith.constant 0 : index
    %327 = vector.load %arg15[%c1_187, %c0_188, %c0_189] : memref<2x128x32xbf16, #tpu.memory_space<vmem>>, vector<1x128x32xbf16>
    %328 = vector.shape_cast %327 : vector<1x128x32xbf16> to vector<128x32xbf16>
    %329 = arith.truncf %326 : vector<32x128xf32> to vector<32x128xbf16>
    %cst_190 = arith.constant dense<0.000000e+00> : vector<32x32xf32>
    %330 = tpu.matmul %329, %328, %cst_190 {dimension_numbers = #tpu.dot_dimension_numbers<[1], [0], [0], [1], [0, 0, 1, 1], [], []>} : vector<32x128xbf16>, vector<128x32xbf16>, vector<32x32xf32> -> vector<32x32xf32>
    %c1_191 = arith.constant 1 : index
    %c0_192 = arith.constant 0 : index
    %c0_193 = arith.constant 0 : index
    %331 = vector.load %arg16[%c1_191, %c0_192, %c0_193] : memref<2x1x32xf32, #tpu.memory_space<vmem>>, vector<1x1x32xf32>
    %332 = vector.shape_cast %331 : vector<1x1x32xf32> to vector<1x32xf32>
    %333 = vector.broadcast %332 : vector<1x32xf32> to vector<32x32xf32>
    %334 = arith.addf %330, %333 : vector<32x32xf32>
    %335 = arith.addf %334, %305 : vector<32x32xf32>
    %c1_194 = arith.constant 1 : index
    %c0_195 = arith.constant 0 : index
    %c0_196 = arith.constant 0 : index
    %336 = vector.load %arg17[%c1_194, %c0_195, %c0_196] : memref<2x1x32xf32, #tpu.memory_space<vmem>>, vector<1x1x32xf32>
    %337 = vector.shape_cast %336 : vector<1x1x32xf32> to vector<1x32xf32>
    %c1_197 = arith.constant 1 : index
    %c0_198 = arith.constant 0 : index
    %c0_199 = arith.constant 0 : index
    %338 = vector.load %arg18[%c1_197, %c0_198, %c0_199] : memref<2x1x32xf32, #tpu.memory_space<vmem>>, vector<1x1x32xf32>
    %339 = vector.shape_cast %338 : vector<1x1x32xf32> to vector<1x32xf32>
    %cst_200 = arith.constant dense<0.000000e+00> : vector<32xf32>
    %340 = vector.multi_reduction <add>, %335, %cst_200 [1] : vector<32x32xf32> to vector<32xf32>
    %341 = vector.shape_cast %340 : vector<32xf32> to vector<32x1xf32>
    %cst_201 = arith.constant 3.200000e+01 : f32
    %342 = vector.broadcast %cst_201 : f32 to vector<32x1xf32>
    %343 = arith.divf %341, %342 : vector<32x1xf32>
    %344 = vector.broadcast %343 : vector<32x1xf32> to vector<32x32xf32>
    %345 = arith.subf %335, %344 : vector<32x32xf32>
    %346 = arith.mulf %345, %345 : vector<32x32xf32>
    %cst_202 = arith.constant dense<0.000000e+00> : vector<32xf32>
    %347 = vector.multi_reduction <add>, %346, %cst_202 [1] : vector<32x32xf32> to vector<32xf32>
    %348 = vector.shape_cast %347 : vector<32xf32> to vector<32x1xf32>
    %cst_203 = arith.constant 3.200000e+01 : f32
    %349 = vector.broadcast %cst_203 : f32 to vector<32x1xf32>
    %350 = arith.divf %348, %349 : vector<32x1xf32>
    %cst_204 = arith.constant 9.99999996E-13 : f32
    %351 = vector.broadcast %cst_204 : f32 to vector<32x1xf32>
    %352 = arith.addf %350, %351 : vector<32x1xf32>
    %353 = math.rsqrt %352 : vector<32x1xf32>
    %354 = vector.broadcast %353 : vector<32x1xf32> to vector<32x32xf32>
    %355 = arith.mulf %345, %354 : vector<32x32xf32>
    %356 = vector.broadcast %337 : vector<1x32xf32> to vector<32x32xf32>
    %357 = arith.mulf %355, %356 : vector<32x32xf32>
    %358 = vector.broadcast %339 : vector<1x32xf32> to vector<32x32xf32>
    %359 = arith.addf %357, %358 : vector<32x32xf32>
    %c0_205 = arith.constant 0 : index
    %c0_206 = arith.constant 0 : index
    %360 = vector.load %arg2[%c0_205, %c0_206] : memref<32x1xi32, #tpu.memory_space<vmem>>, vector<32x1xi32>
    %c0_207 = arith.constant 0 : index
    %c0_208 = arith.constant 0 : index
    %361 = vector.load %arg19[%c0_207, %c0_208] : memref<32x32xbf16, #tpu.memory_space<vmem>>, vector<32x32xbf16>
    %362 = arith.truncf %359 : vector<32x32xf32> to vector<32x32xbf16>
    %cst_209 = arith.constant dense<0.000000e+00> : vector<32x32xf32>
    %363 = tpu.matmul %362, %361, %cst_209 {dimension_numbers = #tpu.dot_dimension_numbers<[1], [0], [0], [1], [0, 0, 1, 1], [], []>} : vector<32x32xbf16>, vector<32x32xbf16>, vector<32x32xf32> -> vector<32x32xf32>
    %c0_210 = arith.constant 0 : index
    %c0_211 = arith.constant 0 : index
    %364 = vector.load %arg20[%c0_210, %c0_211] : memref<1x32xf32, #tpu.memory_space<vmem>>, vector<1x32xf32>
    %365 = vector.broadcast %364 : vector<1x32xf32> to vector<32x32xf32>
    %366 = arith.addf %363, %365 : vector<32x32xf32>
    %cst_212 = arith.constant 5.000000e-01 : f32
    %367 = vector.broadcast %cst_212 : f32 to vector<32x32xf32>
    %368 = arith.mulf %367, %366 : vector<32x32xf32>
    %cst_213 = arith.constant 4.471500e-02 : f32
    %369 = vector.broadcast %cst_213 : f32 to vector<32x32xf32>
    %370 = arith.mulf %369, %366 : vector<32x32xf32>
    %371 = arith.mulf %370, %366 : vector<32x32xf32>
    %372 = arith.mulf %371, %366 : vector<32x32xf32>
    %373 = arith.addf %366, %372 : vector<32x32xf32>
    %cst_214 = arith.constant 0.797884583 : f32
    %374 = vector.broadcast %cst_214 : f32 to vector<32x32xf32>
    %375 = arith.mulf %374, %373 : vector<32x32xf32>
    %376 = math.tanh %375 : vector<32x32xf32>
    %cst_215 = arith.constant 1.000000e+00 : f32
    %377 = vector.broadcast %cst_215 : f32 to vector<32x32xf32>
    %378 = arith.addf %377, %376 : vector<32x32xf32>
    %379 = arith.mulf %368, %378 : vector<32x32xf32>
    %c0_216 = arith.constant 0 : index
    %c0_217 = arith.constant 0 : index
    %380 = vector.load %arg21[%c0_216, %c0_217] : memref<1x32xf32, #tpu.memory_space<vmem>>, vector<1x32xf32>
    %c0_218 = arith.constant 0 : index
    %c0_219 = arith.constant 0 : index
    %381 = vector.load %arg22[%c0_218, %c0_219] : memref<1x32xf32, #tpu.memory_space<vmem>>, vector<1x32xf32>
    %cst_220 = arith.constant dense<0.000000e+00> : vector<32xf32>
    %382 = vector.multi_reduction <add>, %379, %cst_220 [1] : vector<32x32xf32> to vector<32xf32>
    %383 = vector.shape_cast %382 : vector<32xf32> to vector<32x1xf32>
    %cst_221 = arith.constant 3.200000e+01 : f32
    %384 = vector.broadcast %cst_221 : f32 to vector<32x1xf32>
    %385 = arith.divf %383, %384 : vector<32x1xf32>
    %386 = vector.broadcast %385 : vector<32x1xf32> to vector<32x32xf32>
    %387 = arith.subf %379, %386 : vector<32x32xf32>
    %388 = arith.mulf %387, %387 : vector<32x32xf32>
    %cst_222 = arith.constant dense<0.000000e+00> : vector<32xf32>
    %389 = vector.multi_reduction <add>, %388, %cst_222 [1] : vector<32x32xf32> to vector<32xf32>
    %390 = vector.shape_cast %389 : vector<32xf32> to vector<32x1xf32>
    %cst_223 = arith.constant 3.200000e+01 : f32
    %391 = vector.broadcast %cst_223 : f32 to vector<32x1xf32>
    %392 = arith.divf %390, %391 : vector<32x1xf32>
    %cst_224 = arith.constant 9.99999996E-13 : f32
    %393 = vector.broadcast %cst_224 : f32 to vector<32x1xf32>
    %394 = arith.addf %392, %393 : vector<32x1xf32>
    %395 = math.rsqrt %394 : vector<32x1xf32>
    %396 = vector.broadcast %395 : vector<32x1xf32> to vector<32x32xf32>
    %397 = arith.mulf %387, %396 : vector<32x32xf32>
    %398 = vector.broadcast %380 : vector<1x32xf32> to vector<32x32xf32>
    %399 = arith.mulf %397, %398 : vector<32x32xf32>
    %400 = vector.broadcast %381 : vector<1x32xf32> to vector<32x32xf32>
    %401 = arith.addf %399, %400 : vector<32x32xf32>
    %c0_225 = arith.constant 0 : index
    %c0_226 = arith.constant 0 : index
    %402 = vector.load %arg23[%c0_225, %c0_226] : memref<32x128xbf16, #tpu.memory_space<vmem>>, vector<32x128xbf16>
    %403 = arith.truncf %401 : vector<32x32xf32> to vector<32x32xbf16>
    %cst_227 = arith.constant dense<0.000000e+00> : vector<32x128xf32>
    %404 = tpu.matmul %403, %402, %cst_227 {dimension_numbers = #tpu.dot_dimension_numbers<[1], [0], [0], [1], [0, 0, 1, 1], [], []>} : vector<32x32xbf16>, vector<32x128xbf16>, vector<32x128xf32> -> vector<32x128xf32>
    %c0_228 = arith.constant 0 : index
    %c0_229 = arith.constant 0 : index
    %405 = vector.load %arg24[%c0_228, %c0_229] : memref<1x128xf32, #tpu.memory_space<vmem>>, vector<1x128xf32>
    %406 = vector.broadcast %405 : vector<1x128xf32> to vector<32x128xf32>
    %407 = arith.addf %404, %406 : vector<32x128xf32>
    %408 = tpu.iota {dimensions = array<i32: 1>} : vector<32x128xi32>
    %409 = vector.broadcast %360 : vector<32x1xi32> to vector<32x128xi32>
    %410 = arith.cmpi eq, %408, %409 : vector<32x128xi32>
    %cst_230 = arith.constant 0.000000e+00 : f32
    %411 = vector.broadcast %cst_230 : f32 to vector<32x128xf32>
    %412 = arith.select %410, %407, %411 : vector<32x128xi1>, vector<32x128xf32>
    %cst_231 = arith.constant dense<0.000000e+00> : vector<32xf32>
    %413 = vector.multi_reduction <add>, %412, %cst_231 [1] : vector<32x128xf32> to vector<32xf32>
    %414 = vector.shape_cast %413 : vector<32xf32> to vector<32x1xf32>
    %cst_232 = arith.constant dense<0xFF800000> : vector<32xf32>
    %415 = vector.multi_reduction <maximumf>, %407, %cst_232 [1] : vector<32x128xf32> to vector<32xf32>
    %416 = vector.shape_cast %415 : vector<32xf32> to vector<32x1xf32>
    %417 = vector.broadcast %416 : vector<32x1xf32> to vector<32x128xf32>
    %418 = arith.subf %407, %417 : vector<32x128xf32>
    %419 = math.exp %418 : vector<32x128xf32>
    %cst_233 = arith.constant dense<0.000000e+00> : vector<32xf32>
    %420 = vector.multi_reduction <add>, %419, %cst_233 [1] : vector<32x128xf32> to vector<32xf32>
    %421 = vector.shape_cast %420 : vector<32xf32> to vector<32x1xf32>
    %422 = math.log %421 : vector<32x1xf32>
    %423 = arith.addf %416, %422 : vector<32x1xf32>
    %424 = arith.subf %423, %414 : vector<32x1xf32>
    %c-100_i32 = arith.constant -100 : i32
    %425 = vector.broadcast %c-100_i32 : i32 to vector<32x1xi32>
    %426 = arith.cmpi ne, %360, %425 : vector<32x1xi32>
    %427 = arith.extui %426 : vector<32x1xi1> to vector<32x1xi32>
    %428 = arith.sitofp %427 : vector<32x1xi32> to vector<32x1xf32>
    %429 = arith.mulf %424, %428 : vector<32x1xf32>
    %cst_234 = arith.constant dense<0.000000e+00> : vector<1xf32>
    %430 = vector.multi_reduction <add>, %429, %cst_234 [0] : vector<32x1xf32> to vector<1xf32>
    %431 = vector.shape_cast %430 : vector<1xf32> to vector<1x1xf32>
    %cst_235 = arith.constant dense<0.000000e+00> : vector<1xf32>
    %432 = vector.multi_reduction <add>, %428, %cst_235 [0] : vector<32x1xf32> to vector<1xf32>
    %433 = vector.shape_cast %432 : vector<1xf32> to vector<1x1xf32>
    %cst_236 = arith.constant 1.000000e+00 : f32
    %434 = vector.broadcast %cst_236 : f32 to vector<1x1xf32>
    %435 = arith.maximumf %433, %434 : vector<1x1xf32>
    %436 = arith.divf %431, %435 : vector<1x1xf32>
    %c0_237 = arith.constant 0 : index
    %c0_238 = arith.constant 0 : index
    %437 = vector.load %arg25[%c0_237, %c0_238] : memref<32x128xf32, #tpu.memory_space<vmem>>, vector<32x128xf32>
    tpu.vector_store %arg25[%c0_237, %c0_238], %407 {strides = array<i32>} : memref<32x128xf32, #tpu.memory_space<vmem>>, vector<32x128xf32>,
    %c0_239 = arith.constant 0 : index
    %c0_240 = arith.constant 0 : index
    %438 = vector.load %arg26[%c0_239, %c0_240] : memref<1x1xf32, #tpu.memory_space<vmem>>, vector<1x1xf32>
    tpu.vector_store %arg26[%c0_239, %c0_240], %436 {strides = array<i32>} : memref<1x1xf32, #tpu.memory_space<vmem>>, vector<1x1xf32>,
    return
  }
}

module attributes {stable_mosaic.version = 11 : i64} {
  func.func @_cls_contrastive_kernel(%arg0: memref<4x32xf32, #tpu.memory_space<vmem>>, %arg1: memref<4x1xi32, #tpu.memory_space<vmem>>, %arg2: memref<4x4xf32, #tpu.memory_space<vmem>>, %arg3: memref<1x1xf32, #tpu.memory_space<vmem>>) attributes {dimension_semantics = [], scalar_prefetch = 0 : i64, scratch_operands = 0 : i64, tpu.core_type = #tpu.core_type<tc>} {
    %c0 = arith.constant 0 : index
    %c0_0 = arith.constant 0 : index
    %0 = vector.load %arg0[%c0, %c0_0] : memref<4x32xf32, #tpu.memory_space<vmem>>, vector<4x32xf32>
    %cst = arith.constant dense<0.000000e+00> : vector<4x4xf32>
    %1 = tpu.matmul %0, %0, %cst {dimension_numbers = #tpu.dot_dimension_numbers<[1], [1], [0], [0], [0, 0, 1, 0], [], []>} : vector<4x32xf32>, vector<4x32xf32>, vector<4x4xf32> -> vector<4x4xf32>
    %2 = tpu.iota {dimensions = array<i32: 0>} : vector<4x4xi32>
    %3 = tpu.iota {dimensions = array<i32: 1>} : vector<4x4xi32>
    %4 = arith.cmpi eq, %2, %3 : vector<4x4xi32>
    %cst_1 = arith.constant 0xFF800000 : f32
    %5 = vector.broadcast %cst_1 : f32 to vector<4x4xf32>
    %6 = arith.select %4, %5, %1 : vector<4x4xi1>, vector<4x4xf32>
    %c0_2 = arith.constant 0 : index
    %c0_3 = arith.constant 0 : index
    %7 = vector.load %arg2[%c0_2, %c0_3] : memref<4x4xf32, #tpu.memory_space<vmem>>, vector<4x4xf32>
    tpu.vector_store %arg2[%c0_2, %c0_3], %6 {strides = array<i32>} : memref<4x4xf32, #tpu.memory_space<vmem>>, vector<4x4xf32>,
    %c0_4 = arith.constant 0 : index
    %c0_5 = arith.constant 0 : index
    %8 = vector.load %arg1[%c0_4, %c0_5] : memref<4x1xi32, #tpu.memory_space<vmem>>, vector<4x1xi32>
    %9 = tpu.iota {dimensions = array<i32: 1>} : vector<4x4xi32>
    %10 = vector.broadcast %8 : vector<4x1xi32> to vector<4x4xi32>
    %11 = arith.cmpi eq, %9, %10 : vector<4x4xi32>
    %cst_6 = arith.constant 0.000000e+00 : f32
    %12 = vector.broadcast %cst_6 : f32 to vector<4x4xf32>
    %13 = arith.select %11, %6, %12 : vector<4x4xi1>, vector<4x4xf32>
    %cst_7 = arith.constant dense<0.000000e+00> : vector<4xf32>
    %14 = vector.multi_reduction <add>, %13, %cst_7 [1] : vector<4x4xf32> to vector<4xf32>
    %15 = vector.shape_cast %14 : vector<4xf32> to vector<4x1xf32>
    %cst_8 = arith.constant dense<0xFF800000> : vector<4xf32>
    %16 = vector.multi_reduction <maximumf>, %6, %cst_8 [1] : vector<4x4xf32> to vector<4xf32>
    %17 = vector.shape_cast %16 : vector<4xf32> to vector<4x1xf32>
    %18 = vector.broadcast %17 : vector<4x1xf32> to vector<4x4xf32>
    %19 = arith.subf %6, %18 : vector<4x4xf32>
    %20 = math.exp %19 : vector<4x4xf32>
    %cst_9 = arith.constant dense<0.000000e+00> : vector<4xf32>
    %21 = vector.multi_reduction <add>, %20, %cst_9 [1] : vector<4x4xf32> to vector<4xf32>
    %22 = vector.shape_cast %21 : vector<4xf32> to vector<4x1xf32>
    %23 = math.log %22 : vector<4x1xf32>
    %24 = arith.addf %17, %23 : vector<4x1xf32>
    %25 = arith.subf %24, %15 : vector<4x1xf32>
    %c-100_i32 = arith.constant -100 : i32
    %26 = vector.broadcast %c-100_i32 : i32 to vector<4x1xi32>
    %27 = arith.cmpi ne, %8, %26 : vector<4x1xi32>
    %28 = arith.extui %27 : vector<4x1xi1> to vector<4x1xi32>
    %29 = arith.sitofp %28 : vector<4x1xi32> to vector<4x1xf32>
    %30 = arith.mulf %25, %29 : vector<4x1xf32>
    %cst_10 = arith.constant dense<0.000000e+00> : vector<1xf32>
    %31 = vector.multi_reduction <add>, %30, %cst_10 [0] : vector<4x1xf32> to vector<1xf32>
    %32 = vector.shape_cast %31 : vector<1xf32> to vector<1x1xf32>
    %cst_11 = arith.constant dense<0.000000e+00> : vector<1xf32>
    %33 = vector.multi_reduction <add>, %29, %cst_11 [0] : vector<4x1xf32> to vector<1xf32>
    %34 = vector.shape_cast %33 : vector<1xf32> to vector<1x1xf32>
    %cst_12 = arith.constant 1.000000e+00 : f32
    %35 = vector.broadcast %cst_12 : f32 to vector<1x1xf32>
    %36 = arith.maximumf %34, %35 : vector<1x1xf32>
    %37 = arith.divf %32, %36 : vector<1x1xf32>
    %c0_13 = arith.constant 0 : index
    %c0_14 = arith.constant 0 : index
    %38 = vector.load %arg3[%c0_13, %c0_14] : memref<1x1xf32, #tpu.memory_space<vmem>>, vector<1x1xf32>
    tpu.vector_store %arg3[%c0_13, %c0_14], %37 {strides = array<i32>} : memref<1x1xf32, #tpu.memory_space<vmem>>, vector<1x1xf32>,
    return
  }
}

</mosaic_0001>

<bundles_post_ra>
// kernel: eq.8
= control target key start
LH: loop header
LB: loop body
LE: loop exit
PB: predicated region body
PF: predicated region fallthrough
CT: control target
= control target key end

     0   :  { %vm7_vm0 = vcmask 64512   ;;  %s37_s8 = smov 8   ;;  %s38_s9 = smov 16   ;;  %vm13_vm1 = vcmask 261312   ;;  %vm19_vm2 = vcmask 195712   ;;  %vm25_vm3 = vcmask 130112   ;;  %s55_s0 = inlined_call_operand.vmem [shape: s32[4,8], index: 0, kind: input, shape index: {}]   ;;  %s56_s1 = inlined_call_operand.vmem [shape: s32[32], index: 1, kind: output, shape index: {}]  }
   0x1   :  { %v4_v0 = vld [vmem:[%s55_s0] sm:$0xf]  ;;  %s36_s0 = smov 24  }
   0x2   :  { %5 = vst [vmem:[#allocation1] sm:$0xf] %v4_v0 }
   0x9   :  { %v10_v1 = vld [vmem:[#allocation1 + $0x3] sm:$0x1]   ;;  %v22_v2 = vld [vmem:[#allocation1 + $0x1] sm:$0x1]   ;;  %v6_v3 = vld [vmem:[#allocation1] sm:$0x1]  }
   0xa   :  { %11 = vrot.lane.b32.xlu0 %v10_v1, %s36_s0  ;;  %23 = vrot.lane.b32.xlu1 %v22_v2, %s37_s8  ;;  %v16_v4 = vld [vmem:[#allocation1 + $0x2] sm:$0x1]   ;;  %8 = vst.msk [vmem:[#allocation0] sm:$0x1] %vm7_vm0, %v6_v3  }
   0xe   :  { %17 = vrot.lane.b32.xlu0 %v16_v4, %s38_s9 }
  0x7c   :  { %v12_v5 = vpop.permute.xlu0 %11   ;;  %v24_v6 = vpop.permute.xlu1 %23  }
  0x7d   :  { %14 = vst.msk [vmem:[#allocation0] sm:$0x1] %vm13_vm1, %v12_v5  }
  0x80   :  { %v18_v7 = vpop.permute.xlu0 %17  }
  0x81   :  { %20 = vst.msk [vmem:[#allocation0] sm:$0x1] %vm19_vm2, %v18_v7  }
  0x82   :  { %26 = vst.msk [vmem:[#allocation0] sm:$0x1] %vm25_vm3, %v24_v6  }
  0x89   :  { %v30_v8 = vld [vmem:[#allocation0] sm:$0x1] }
  0x8a   :  { %32 = vst [vmem:[%s56_s1] sm:$0x1] %v30_v8 }

// kernel: condenser_forward.5
= control target key start
LH: loop header
LB: loop body
LE: loop exit
PB: predicated region body
PF: predicated region fallthrough
CT: control target
= control target key end

     0   :  { %9 = vsyncpa [#allocation3], 0  ;;  %vm16_vm0 = vcmask 261120   ;;  %v242_v1 = vmov 0.0   ;;  %vm243_vm1 = vmmov 0   ;;  %s303_s0 = inlined_call_operand.vmem [shape: f32[4,32], index: 0, kind: input, shape index: {}]   ;;  %s304_s1 = inlined_call_operand.vmem [shape: s32[4,1], index: 1, kind: input, shape index: {}]   ;;  %s305_s2 = inlined_call_operand.hbm [shape: f32[4,4], index: 2, kind: output, shape index: {0}]   ;;  %s306_s3 = inlined_call_operand.hbm [shape: f32[1,1], index: 3, kind: output, shape index: {1}]  }
   0x1   :  { %v15_v0 = vld [vmem:[%s303_s0] sm:$0xf]  ;;  %177 = vmatprep.subr.mxu0 %v242_v1  ;;  %179 = vmatprep.mubr.msk.f32.mxu0 %vm243_vm1, %v242_v1 }
   0x2   :  { %10 = vsyncpa [#allocation5], 0  ;;  %178 = vmatpush3.xpose.msk.msra.mxu0 %vm16_vm0, %v15_v0  ;;  %v244_v2 = vmov 0   ;;  %v90_v3 = vlaneseq  ;;  %vm96_vm3 = vcmask 27648   ;;  %v98_v10 = vld [vmem:[%s304_s1] sm:$0xf] }
   0x3   :  { %187 = vset.pattern.permute.xlu0 %v244_v2  ;;  %s245_s15 = smov [#allocation2]  }
   0x4   :  { %v91_v4 = vshrl.u32 %v90_v3, 7  ;;  %v93_v5 = vand.u32 127, %v90_v3  ;;  %s150_s16 = sshll.u32 %s245_s15, 4  ;;  %s151_s16 = int_to_ptr.vmem [resolvable:$true] %s150_s16 }
   0x5   :  { %180 = vmatmul.mubr.msk.f32.vlgmr.msra.gmra.mrb[0].mxu0 %vm16_vm0, %v15_v0  ;;  %s194_s17 = scalar_lea.vmem %s151_s16, 64  ;;  %p199_p1 = scmp.lt.s32.totalorder %s151_s16, %s151_s16 }
   0x6   :  { %vm94_vm2 = vcmp.eq.s32.totalorder %v91_v4, %v93_v5  ;;  %p195_p0 = scmp.ne.s32.totalorder %s151_s16, %s194_s17  ;;  %p200_p2 = scmp.lt.s32.totalorder %s194_s17, %s194_s17 }
   0x8   :  { %p201_p3 = por %p200_p2, %p199_p1 }
   0xa   :  { %p202_p4 = pnand %p201_p3, %p195_p0 }
  0xd8   :  { %v86_v6 = vpop.f32.mrb[0].mxu0 }
  0xd9   :  { %v95_v7 = vsel %vm94_vm2, -inf, %v86_v6  ;;  %v181_v8 = vpop.f32.mrb[1].mxu0 }
  0xda   :  { %v107_v9 = vsel %vm96_vm3, %v95_v7, -inf  ;;  %97 = vst.msk [vmem:[#allocation2] sm:$0xf] %vm96_vm3, %v95_v7 }
  0xdb   :  { %108 = vmax.xlane.f32.xlu0 %v107_v9 }
  0xf1   :  { %100 = vperm.xlu0 %187, %v98_v10  }
 0x168   :  { %v109_v11 = vpop.xlane.xlu0 %108 }
 0x169   :  { %v110_v12 = vsub.f32 %v95_v7, %v109_v11 }
 0x16b   :  { %v111_v13 = vmul.f32 1.442695, %v110_v12 }
 0x16d   :  { %188 = vpow2.f32 %v111_v13 }
 0x170   :  { %v101_v14 = vpop.permute.xlu0 %100 }
 0x171   :  { %vm102_vm4 = vcmp.eq.s32.totalorder %v93_v5, %v101_v14 }
 0x172   :  { %v103_v17 = vsel %vm102_vm4, %v95_v7, 0.0 }
 0x173   :  { %v104_v18 = vsel %vm96_vm3, %v103_v17, 0.0 }
 0x177   :  { %v189_v15 = vpop.eup %188 }
 0x178   :  { %v113_v16 = vsel %vm96_vm3, %v189_v15, 0.0 }
 0x179   :  { %114 = vadd.xlane.f32.xlu1 %v113_v16 }
 0x17d   :  { %105 = vadd.xlane.f32.xlu1 %v104_v18 }
 0x17e   :  { %205 = shalt.err (!%p202_p4)
}
 0x17f   :  { %s206_s19 = scalar_lea.hbm %s305_s2, 64 }
 0x180   :  { %p207_p5 = scmp.ne.s32.totalorder %s305_s2, %s206_s19  ;;  %p210_p6 = scmp.lt.u32.totalorder %s206_s19, %s305_s2 }
 0x182   :  { %p212_p7 = pnand %p210_p6, %p207_p5 }
 0x184   :  { %215 = shalt.err (!%p212_p7)
}
 0x185   :  { %153 = dma.vmem_to_hbm [thread:$0]  %s151_s16, 64, %s305_s2, [#allocation3]   ;;  %vm120_vm5 = vcmp.ne.s32.totalorder %v98_v10, 4294967196  ;;  %vm124_vm6 = vcmask 3072   ;;  %vm142_vm7 = vcmask 0  }
 0x186   :  { %v174_v19 = vsel %vm120_vm5, 1.0, %v242_v1  ;;  %s246_s2 = smov [#allocation4]  }
 0x187   :  { %v132_v20 = vsel %vm124_vm6, %v174_v19, 0.0  ;;  %s160_s26 = sshll.u32 %s246_s2, 4  ;;  %s161_s26 = int_to_ptr.vmem [resolvable:$true] %s160_s26 }
 0x188   :  { %v133_v21 = vrot.slane %v132_v20, 4  ;;  %s216_s27 = scalar_lea.vmem %s161_s26, 16  ;;  %s220_s28 = scalar_lea.vmem %s161_s26, 32 }
 0x189   :  { %p217_p8 = scmp.ne.s32.totalorder %s161_s26, %s216_s27  ;;  %p221_p9 = scmp.lt.s32.totalorder %s161_s26, %s161_s26 }
 0x18a   :  { %v134_v22 = vadd.f32 %v133_v21, %v132_v20  ;;  %p222_p10 = scmp.lt.s32.totalorder %s220_s28, %s216_s27 }
 0x18c   :  { %v135_v24 = vrot.slane %v134_v22, 2  ;;  %p223_p11 = por %p222_p10, %p221_p9 }
 0x18e   :  { %v136_v25 = vadd.f32 %v135_v24, %v134_v22  ;;  %p224_p12 = pnand %p223_p11, %p217_p8 }
 0x190   :  { %v137_v26 = vrot.slane %v136_v25, 1 }
 0x192   :  { %v138_v29 = vadd.f32 %v137_v26, %v136_v25 }
 0x194   :  { %v139_v32 = vmax.f32 %v138_v29, 1.0 }
 0x206   :  { %v115_v23 = vpop.xlane.xlu1 %114 }
 0x207   :  { %190 = vlog2.f32 %v115_v23 }
 0x208   :  { %192 = vrcp.f32 %v139_v32 }
 0x20a   :  { %v106_v31 = vpop.xlane.xlu1 %105 }
 0x211   :  { %v191_v27 = vpop.eup %190 }
 0x212   :  { %v117_v28 = vmul.f32 0.6931472, %v191_v27  ;;  %v193_v41 = vpop.eup %192 }
 0x214   :  { %v118_v30 = vadd.f32 %v117_v28, %v109_v11 }
 0x216   :  { %v119_v33 = vsub.f32 %v118_v30, %v106_v31 }
 0x218   :  { %v123_v34 = vmul.f32 %v174_v19, %v119_v33 }
 0x21a   :  { %v125_v35 = vsel %vm124_vm6, %v123_v34, 0.0 }
 0x21b   :  { %v126_v36 = vrot.slane %v125_v35, 4 }
 0x21d   :  { %v127_v37 = vadd.f32 %v126_v36, %v125_v35 }
 0x21f   :  { %v128_v38 = vrot.slane %v127_v37, 2 }
 0x221   :  { %v129_v39 = vadd.f32 %v128_v38, %v127_v37 }
 0x223   :  { %v130_v40 = vrot.slane %v129_v39, 1 }
 0x225   :  { %v131_v42 = vadd.f32 %v130_v40, %v129_v39 }
 0x227   :  { %v141_v43 = vmul.f32 %v193_v41, %v131_v42 }
 0x229   :  { %143 = vst.msk [vmem:[#allocation4] sm:$0x1] %vm142_vm7, %v141_v43 }
 0x22a   :  { %227 = shalt.err (!%p224_p12)
}
 0x22b   :  { %s228_s4 = scalar_lea.hbm %s306_s3, 16 }
 0x22c   :  { %p229_p13 = scmp.ne.s32.totalorder %s306_s3, %s228_s4  ;;  %p232_p0 = scmp.lt.u32.totalorder %s228_s4, %s306_s3 }
 0x22e   :  { %p234_p1 = pnand %p232_p0, %p229_p13 }
 0x230   :  { %237 = shalt.err (!%p234_p1)
}
 0x231   :  { %163 = dma.vmem_to_hbm [thread:$0]  %s161_s26, 16, %s306_s3, [#allocation5]  }
 0x232   :  { %238 = dma.done.wait [#allocation3], 64  }
 0x233   :  { %239 = vsyncadd [#allocation3], 4294967232 }
 0x234   :  { %240 = dma.done.wait [#allocation5], 16  }
 0x235   :  { %241 = vsyncadd [#allocation5], 4294967280 }
 0x236   :  { %170 = vsyncpa [#allocation3], 1 }
 0x237   :  { %171 = vsyncpa [#allocation5], 1 }

// kernel: condenser_forward.4
= control target key start
LH: loop header
LB: loop body
LE: loop exit
PB: predicated region body
PF: predicated region fallthrough
CT: control target
= control target key end

     0   :  { %s4898_s0 = inlined_call_operand.vmem [shape: f32[32,32], index: 0, kind: input, shape index: {}]   ;;  %s4899_s1 = inlined_call_operand.vmem [shape: f32[32,32], index: 1, kind: input, shape index: {}]   ;;  %s4900_s2 = inlined_call_operand.vmem [shape: s32[32,1], index: 2, kind: input, shape index: {}]   ;;  %s4901_s3 = inlined_call_operand.vmem [shape: bf16[4,32,16], index: 3, kind: input, shape index: {}]   ;;  %s4902_s4 = inlined_call_operand.vmem [shape: f32[4,1,16], index: 4, kind: input, shape index: {}]   ;;  %s4903_s5 = inlined_call_operand.vmem [shape: bf16[4,16,32], index: 5, kind: input, shape index: {}]   ;;  %s4904_s6 = inlined_call_operand.vmem [shape: f32[4,16,1], index: 6, kind: input, shape index: {}]   ;;  %s4905_s7 = inlined_call_operand.vmem [shape: bf16[4,32,16], index: 7, kind: input, shape index: {}]   ;;  %s4906_s8 = inlined_call_operand.vmem [shape: f32[4,1,16], index: 8, kind: input, shape index: {}]   ;;  %s4907_s9 = inlined_call_operand.vmem [shape: bf16[4,16,32], index: 9, kind: input, shape index: {}]   ;;  %s4908_s10 = inlined_call_operand.vmem [shape: f32[2,1,32], index: 10, kind: input, shape index: {}]   ;;  %s4909_s11 = inlined_call_operand.vmem [shape: f32[2,1,32], index: 11, kind: input, shape index: {}]   ;;  %s4910_s12 = inlined_call_operand.vmem [shape: f32[2,1,32], index: 12, kind: input, shape index: {}]   ;;  %s4911_s13 = inlined_call_operand.vmem [shape: bf16[2,32,128], index: 13, kind: input, shape index: {}]   ;;  %s4912_s14 = inlined_call_operand.vmem [shape: f32[2,1,128], index: 14, kind: input, shape index: {}]   ;;  %s4913_s15 = inlined_call_operand.vmem [shape: bf16[2,128,32], index: 15, kind: input, shape index: {}]   ;;  %s4914_s16 = inlined_call_operand.vmem [shape: f32[2,1,32], index: 16, kind: input, shape index: {}]   ;;  %s4915_s17 = inlined_call_operand.vmem [shape: f32[2,1,32], index: 17, kind: input, shape index: {}]   ;;  %s4916_s18 = inlined_call_operand.vmem [shape: f32[2,1,32], index: 18, kind: input, shape index: {}]   ;;  %s4917_s19 = inlined_call_operand.vmem [shape: bf16[32,32], index: 19, kind: input, shape index: {}]   ;;  %s4918_s20 = inlined_call_operand.vmem [shape: f32[1,32], index: 20, kind: input, shape index: {}]   ;;  %s4919_s21 = inlined_call_operand.vmem [shape: f32[1,32], index: 21, kind: input, shape index: {}]   ;;  %s4920_s22 = inlined_call_operand.vmem [shape: f32[1,32], index: 22, kind: input, shape index: {}]   ;;  %s4921_s23 = inlined_call_operand.vmem [shape: bf16[32,128], index: 23, kind: input, shape index: {}]   ;;  %s4922_s24 = inlined_call_operand.vmem [shape: f32[1,128], index: 24, kind: input, shape index: {}]   ;;  %s4923_s25 = inlined_call_operand.hbm [shape: f32[32,128], index: 25, kind: output, shape index: {0}]   ;;  %s4924_s26 = inlined_call_operand.hbm [shape: f32[1,1], index: 26, kind: output, shape index: {1}]  }
   0x1   :  { %4938 = sst [smem:[#allocation8_spill]] %s4898_s0 }
   0x2   :  { %4939 = sst [smem:[#allocation9_spill]] %s4899_s1 }
   0x3   :  { %4940 = sst [smem:[#allocation10_spill]] %s4900_s2 }
   0x4   :  { %4941 = sst [smem:[#allocation11_spill]] %s4901_s3 }
   0x5   :  { %4942 = sst [smem:[#allocation12_spill]] %s4902_s4 }
   0x6   :  { %4943 = sst [smem:[#allocation13_spill]] %s4903_s5 }
   0x7   :  { %4944 = sst [smem:[#allocation14_spill]] %s4904_s6 }
   0x8   :  { %4945 = sst [smem:[#allocation15_spill]] %s4905_s7 }
   0x9   :  { %4946 = sst [smem:[#allocation16_spill]] %s4906_s8 }
   0xa   :  { %4947 = sst [smem:[#allocation17_spill]] %s4907_s9 }
   0xb   :  { %4948 = sst [smem:[#allocation18_spill]] %s4908_s10 }
   0xc   :  { %4949 = sst [smem:[#allocation19_spill]] %s4923_s25 }
   0xd   :  { %4950 = sst [smem:[#allocation20_spill]] %s4924_s26 }
   0xe   :  { %32 = vsyncpa [#allocation3], 0  ;;  %s4951_s7 = sld [smem:[#allocation8_spill]]  ;;  %s4952_s0 = sld [smem:[#allocation11_spill]]  ;;  %vm150_vm0 = vcmask 261120   ;;  %v4050_v8 = vmov 0.0  }
   0xf   :  { %vm4051_vm1 = vmmov 0   ;;  %s4953_s3 = sld [smem:[#allocation14_spill]]  ;;  %v4052_v10 = vmov 0  }
  0x10   :  { %3802 = vset.pattern.permute.xlu1 %v4052_v10 }
  0x14   :  { %v4195_v0 = vld [vmem:[%s4951_s7] sm:$0xff]  ;;  %v4201_v1 = vld [vmem:[%s4951_s7 + $0x8] sm:$0xff]  ;;  %v4216_v5 = vld [vmem:[%s4951_s7 + $0x10] sm:$0xff] }
  0x15   :  { %93 = vxpose.xlu0.b32.start [1/4] (short) (narrow) %v4195_v0, 32  ;;  %v3804_v2 = vld [vmem:[%s4952_s0] sm:$0xff]   ;;  %v4208_v3 = vpack.c.bf16 %v4201_v1, %v4195_v0  ;;  %v3805_v4 = vld [vmem:[%s4952_s0 + $0x8] sm:$0xff]   ;;  %v4222_v6 = vld [vmem:[%s4951_s7 + $0x18] sm:$0xff] }
  0x16   :  { %3539 = vmatprep.subr.bf16.mxu1 %v3804_v2  ;;  %v4230_v7 = vpack.c.bf16 %v4222_v6, %v4216_v5  ;;  %v210_v9 = vld [vmem:[%s4953_s3] sm:$0xff]  ;;  %v211_v11 = vld [vmem:[%s4953_s3 + $0x8] sm:$0xff] }
  0x17   :  { %3540 = vmatpush3.bf16.msra.mxu1 %v3804_v2  ;;  %3543 = vmatprep.mubr.msk.bf16.mxu1 %vm150_vm0, %v4208_v3 }
  0x18   :  { %3541 = vmatprep.subr.bf16.mxu1 %v3805_v4  ;;  %3559 = vmatprep.mubr.msk.bf16.mxu0 %vm150_vm0, %v4208_v3 }
  0x19   :  { %94 = vxpose.xlu0.b32.cont [2/4] (short) (narrow) %v4201_v1, 32  ;;  %214 = vperm.xlu1 %3802, %v210_v9  }
  0x1b   :  { %3542 = vmatpush3.bf16.msra.mxu1 %v3805_v4 }
  0x1c   :  { %3547 = vmatprep.subr.bf16.mxu1 %v4050_v8 }
  0x1d   :  { %95 = vxpose.xlu0.b32.cont [3/4] (short) (narrow) %v4216_v5, 32  ;;  %219 = vperm.xlu1 %3802, %v211_v11  }
  0x1e   :  { %3544 = vmatmul.mubr.msk.bf16.vlgmr.msra.gmra.mrb[0].mxu1 %vm150_vm0, %v4230_v7 }
  0x1f   :  { %3551 = vmatprep.mubr.msk.bf16.mxu1 %vm4051_vm1, %v4050_v8 }
  0x21   :  { %96 = vxpose.xlu0.b32.end [4/4] (short) (narrow) %v4222_v6, 32 }
  0x22   :  { %33 = vsyncpa [#allocation5], 0  ;;  %s4954_s29 = sld [smem:[#allocation13_spill]]  ;;  %s4955_s2 = sld [smem:[#allocation12_spill]]  ;;  %vm346_vm2 = vcmask 130048  }
  0x23   :  { %s4956_s6 = sld [smem:[#allocation15_spill]]  ;;  %s4957_s8 = sld [smem:[#allocation9_spill]] }
  0x24   :  { %s4958_s28 = sld [smem:[#allocation16_spill]]  ;;  %s4959_s10 = sld [smem:[#allocation17_spill]] }
  0x25   :  { %s4960_s9 = sld [smem:[#allocation18_spill]] }
  0x26   :  { %s4961_s26 = sld [smem:[#allocation10_spill]] }
  0x28   :  { %v3806_v18 = vld [vmem:[%s4954_s29] sm:$0xff]  }
  0x29   :  { %v3214_v19 = vld [vmem:[%s4955_s2] ss:$0 sm:$0xff]  ;;  %v3808_v40 = vld [vmem:[%s4956_s6 + $0x8] sm:$0xff]   ;;  %v4284_v49 = vld [vmem:[%s4957_s8 + $0x10] sm:$0xff] }
  0x2a   :  { %v3807_v39 = vld [vmem:[%s4956_s6] sm:$0xff]   ;;  %v4279_v48 = vld [vmem:[%s4957_s8 + $0x8] sm:$0xff]  ;;  %v4293_v56 = vld [vmem:[%s4957_s8 + $0x18] sm:$0xff] }
  0x2b   :  { %3555 = vmatprep.subr.bf16.mxu0 %v3807_v39  ;;  %v4274_v43 = vld [vmem:[%s4957_s8] sm:$0xff] }
  0x2c   :  { %3556 = vmatpush3.bf16.msra.mxu0 %v3807_v39  ;;  %v3810_v39 = vld [vmem:[%s4952_s0 + $0x18] sm:$0xff]  }
  0x2d   :  { %3557 = vmatprep.subr.bf16.mxu0 %v3808_v40 }
  0x30   :  { %3558 = vmatpush3.bf16.msra.mxu0 %v3808_v40  ;;  %v3243_v40 = vld [vmem:[%s4953_s3 + $0x18] sm:$0xff] }
  0x33   :  { %3560 = vmatmul.mubr.msk.bf16.vlgmr.msra.gmra.mrb[0].mxu0 %vm150_vm0, %v4230_v7 }
  0x4a   :  { %3803 = vset.pattern.permute.xlu0 %v4052_v10 }
  0x95   :  { %v109_v12 = vpop.trf.xlu0 }
  0x98   :  { %v215_v30 = vpop.permute.xlu1 %214 }
  0x99   :  { %v110_v13 = vpop.trf.xlu0 }
  0x9a   :  { %v4245_v14 = vpack.c.bf16 %v110_v13, %v109_v12 }
  0x9c   :  { %3548 = vmatpush3.bf16.msra.mxu1 %v4245_v14  ;;  %v220_v33 = vpop.permute.xlu1 %219 }
  0x9d   :  { %v111_v15 = vpop.trf.xlu0  ;;  %3549 = vmatprep.subr.bf16.mxu1 %v4050_v8 }
  0xa1   :  { %v112_v16 = vpop.trf.xlu0 }
  0xa2   :  { %v4249_v17 = vpack.c.bf16 %v112_v16, %v111_v15 }
  0xa4   :  { %3550 = vmatpush3.bf16.msra.mxu1 %v4249_v17 }
  0xa7   :  { %3552 = vmatmul.mubr.msk.bf16.vlgmr.msra.gmra.mrb[4].mxu1 %vm150_vm0, %v3806_v18 }
  0xf1   :  { %v3545_v20 = vpop.f32.mrb[0].mxu1 }
  0xf2   :  { %v200_v21 = vadd.f32 %v3545_v20, %v3214_v19  ;;  %v191_v22 = vpop.f32.mrb[1].mxu1 }
  0xf3   :  { %v192_v23 = vadd.f32 %v3214_v19, %v191_v22  ;;  %v3546_v24 = vpop.f32.mrb[2].mxu1 }
  0xf4   :  { %v203_v25 = vadd.f32 %v3546_v24, %v3214_v19  ;;  %v194_v26 = vpop.f32.mrb[3].mxu1 }
  0xf5   :  { %v195_v27 = vadd.f32 %v3214_v19, %v194_v26 }
  0xf6   :  { %v344_v28 = vpack.c.bf16 %v203_v25, %v200_v21 }
  0xf7   :  { %v343_v29 = vpack.c.bf16 %v195_v27, %v192_v23  ;;  %v3221_v27 = vld [vmem:[%s4958_s28] ss:$0 sm:$0xff] }
  0xf9   :  { %3565 = vmatprep.mubr.msk.bf16.mxu1 %vm346_vm2, %v343_v29 }
 0x106   :  { %v3561_v61 = vpop.f32.mrb[0].mxu0 }
 0x107   :  { %v328_v29 = vpop.f32.mrb[1].mxu0 }
 0x17a   :  { %v264_v31 = vpop.f32.mrb[4].mxu1 }
 0x17b   :  { %v3553_v32 = vpop.f32.mrb[5].mxu1  ;;  %v265_v35 = vadd.f32 %v264_v31, %v215_v30  ;;  %v329_v30 = vadd.f32 %v3221_v27, %v328_v29  ;;  %v3562_v31 = vpop.f32.mrb[2].mxu0  ;;  %v3813_v29 = vld [vmem:[%s4956_s6 + $0x18] sm:$0xff]  }
 0x17c   :  { %v267_v34 = vpop.f32.mrb[6].mxu1  ;;  %v340_v32 = vadd.f32 %v3562_v31, %v3221_v27 }
 0x17d   :  { %v268_v36 = vadd.f32 %v267_v34, %v220_v33  ;;  %v3554_v37 = vpop.f32.mrb[7].mxu1  ;;  %v331_v33 = vpop.f32.mrb[3].mxu0 }
 0x17e   :  { %v332_v34 = vadd.f32 %v3221_v27, %v331_v33  ;;  %v3242_v37 = vld [vmem:[%s4953_s3 + $0x10] sm:$0xff] }
 0x17f   :  { %v345_v38 = vpack.c.bf16 %v268_v36, %v265_v35 }
 0x180   :  { %v456_v36 = vpack.c.bf16 %v332_v34, %v329_v30 }
 0x181   :  { %3563 = vmatprep.subr.bf16.mxu1 %v345_v38 }
 0x182   :  { %3564 = vmatpush3.bf16.msra.mxu1 %v345_v38  ;;  %3569 = vmatprep.subr.bf16.mxu0 %v456_v36  ;;  %v3809_v38 = vld [vmem:[%s4952_s0 + $0x10] sm:$0xff]  }
 0x183   :  { %3570 = vmatpush3.bf16.msra.mxu0 %v456_v36  ;;  %3577 = vmatprep.subr.bf16.mxu1 %v3809_v38 }
 0x185   :  { %3566 = vmatmul.mubr.msk.bf16.vlgmr.msra.gmra.mrb[8].mxu1 %vm346_vm2, %v344_v28  ;;  %v337_v28 = vadd.f32 %v3561_v61, %v3221_v27 }
 0x186   :  { %3581 = vmatprep.mubr.msk.bf16.mxu1 %vm150_vm0, %v4208_v3  ;;  %3578 = vmatpush3.bf16.msra.mxu1 %v3809_v38 }
 0x187   :  { %v457_v35 = vpack.c.bf16 %v340_v32, %v337_v28  ;;  %3579 = vmatprep.subr.bf16.mxu1 %v3810_v39  ;;  %v3812_v28 = vld [vmem:[%s4956_s6 + $0x10] sm:$0xff]  }
 0x189   :  { %3571 = vmatprep.subr.bf16.mxu0 %v457_v35 }
 0x18a   :  { %3572 = vmatpush3.bf16.msra.mxu0 %v457_v35  ;;  %3580 = vmatpush3.bf16.msra.mxu1 %v3810_v39 }
 0x18b   :  { %3585 = vmatprep.subr.bf16.mxu0 %v4050_v8  ;;  %3593 = vmatprep.subr.bf16.mxu1 %v3812_v28 }
 0x18d   :  { %3582 = vmatmul.mubr.msk.bf16.vlgmr.msra.gmra.mrb[12].mxu1 %vm150_vm0, %v4230_v7 }
 0x18e   :  { %3597 = vmatprep.mubr.msk.bf16.mxu1 %vm150_vm0, %v4208_v3  ;;  %3594 = vmatpush3.bf16.msra.mxu1 %v3812_v28 }
 0x18f   :  { %3595 = vmatprep.subr.bf16.mxu1 %v3813_v29 }
 0x192   :  { %3596 = vmatpush3.bf16.msra.mxu1 %v3813_v29 }
 0x195   :  { %3598 = vmatmul.mubr.msk.bf16.vlgmr.msra.gmra.mrb[16].mxu1 %vm150_vm0, %v4230_v7 }
 0x258   :  { %v3567_v41 = vpop.f32.mrb[8].mxu1 }
 0x259   :  { %v387_v42 = vpop.f32.mrb[9].mxu1  ;;  %v404_v44 = vmul.f32 0.25, %v3567_v41 }
 0x25a   :  { %v402_v45 = vmul.f32 0.25, %v387_v42  ;;  %v3568_v46 = vpop.f32.mrb[10].mxu1 }
 0x25b   :  { %v390_v47 = vpop.f32.mrb[11].mxu1  ;;  %v405_v52 = vmul.f32 0.25, %v3568_v46  ;;  %v408_v55 = vadd.f32 %v404_v44, %v4284_v49 }
 0x25c   :  { %v403_v50 = vmul.f32 0.25, %v390_v47  ;;  %v406_v51 = vadd.f32 %v402_v45, %v4274_v43 }
 0x25d   :  { %v416_v58 = vsel %vm150_vm0, %v408_v55, -inf  ;;  %v409_v59 = vadd.f32 %v405_v52, %v4293_v56 }
 0x25e   :  { %v410_v53 = vsel %vm150_vm0, %v406_v51, -inf  ;;  %v407_v54 = vadd.f32 %v403_v50, %v4279_v48 }
 0x25f   :  { %411 = vmax.xlane.f32.xlu1 %v410_v53  ;;  %v419_v60 = vsel %vm150_vm0, %v409_v59, -inf }
 0x260   :  { %v413_v57 = vsel %vm150_vm0, %v407_v54, -inf }
 0x261   :  { %414 = vmax.xlane.f32.xlu0 %v413_v57 }
 0x263   :  { %417 = vmax.xlane.f32.xlu1 %v416_v58  ;;  %v3811_v58 = vld [vmem:[%s4954_s29 + $0x8] sm:$0xff]  }
 0x267   :  { %420 = vmax.xlane.f32.xlu1 %v419_v60  ;;  %v3583_v60 = vpop.f32.mrb[12].mxu1 }
 0x2ec   :  { %v412_v62 = vpop.xlane.xlu1 %411 }
 0x2ed   :  { %v422_v63 = vsub.f32 %v406_v51, %v412_v62 }
 0x2ee   :  { %v415_v2 = vpop.xlane.xlu0 %414 }
 0x2ef   :  { %v426_v4 = vmul.f32 1.442695, %v422_v63  ;;  %v423_v9 = vsub.f32 %v407_v54, %v415_v2 }
 0x2f0   :  { %v418_v10 = vpop.xlane.xlu1 %417 }
 0x2f1   :  { %3852 = vpow2.f32 %v426_v4  ;;  %v428_v11 = vmul.f32 1.442695, %v423_v9  ;;  %v424_v12 = vsub.f32 %v408_v55, %v418_v10 }
 0x2f3   :  { %3854 = vpow2.f32 %v428_v11  ;;  %v430_v13 = vmul.f32 1.442695, %v424_v12 }
 0x2f4   :  { %v421_v15 = vpop.xlane.xlu1 %420 }
 0x2f5   :  { %v425_v16 = vsub.f32 %v409_v59, %v421_v15  ;;  %3856 = vpow2.f32 %v430_v13  ;;  %v3235_v59 = vld [vmem:[%s4955_s2 + $0x1] ss:$0 sm:$0xff] }
 0x2f6   :  { %v585_v61 = vadd.f32 %v3583_v60, %v3235_v59 }
 0x2f7   :  { %v432_v18 = vmul.f32 1.442695, %v425_v16 }
 0x2f9   :  { %3858 = vpow2.f32 %v432_v18 }
 0x2fb   :  { %v3853_v19 = vpop.eup %3852 }
 0x2fc   :  { %v434_v20 = vsel %vm150_vm0, %v3853_v19, 0.0 }
 0x2fd   :  { %v3855_v21 = vpop.eup %3854  ;;  %435 = vadd.xlane.f32.xlu1 %v434_v20 }
 0x2fe   :  { %v437_v22 = vsel %vm150_vm0, %v3855_v21, 0.0 }
 0x2ff   :  { %v3857_v23 = vpop.eup %3856 }
 0x300   :  { %v440_v26 = vsel %vm150_vm0, %v3857_v23, 0.0 }
 0x301   :  { %438 = vadd.xlane.f32.xlu1 %v437_v22 }
 0x303   :  { %v3859_v24 = vpop.eup %3858 }
 0x304   :  { %v443_v25 = vsel %vm150_vm0, %v3859_v24, 0.0 }
 0x305   :  { %444 = vadd.xlane.f32.xlu0 %v443_v25  ;;  %441 = vadd.xlane.f32.xlu1 %v440_v26 }
 0x316   :  { %599 = vperm.xlu1 %3802, %v3242_v37  }
 0x31b   :  { %604 = vperm.xlu0 %3803, %v3243_v40  }
 0x38a   :  { %v436_v41 = vpop.xlane.xlu1 %435 }
 0x38b   :  { %3860 = vrcp.f32 %v436_v41 }
 0x38e   :  { %v439_v42 = vpop.xlane.xlu1 %438 }
 0x38f   :  { %3862 = vrcp.f32 %v439_v42 }
 0x392   :  { %v442_v44 = vpop.xlane.xlu1 %441  ;;  %v445_v45 = vpop.xlane.xlu0 %444 }
 0x393   :  { %3864 = vrcp.f32 %v442_v44 }
 0x394   :  { %3866 = vrcp.f32 %v445_v45 }
 0x395   :  { %v3861_v46 = vpop.eup %3860 }
 0x396   :  { %v450_v50 = vmul.f32 %v3861_v46, %v3853_v19  ;;  %v600_v22 = vpop.permute.xlu1 %599 }
 0x399   :  { %v3863_v47 = vpop.eup %3862 }
 0x39a   :  { %v451_v51 = vmul.f32 %v3863_v47, %v3855_v21  ;;  %v605_v20 = vpop.permute.xlu0 %604 }
 0x39c   :  { %v454_v52 = vpack.c.bf16 %v451_v51, %v450_v50 }
 0x39d   :  { %v3865_v53 = vpop.eup %3864 }
 0x39e   :  { %v3867_v54 = vpop.eup %3866  ;;  %v452_v55 = vmul.f32 %v3865_v53, %v3857_v23  ;;  %3573 = vmatprep.mubr.msk.bf16.mxu0 %vm150_vm0, %v454_v52 }
 0x39f   :  { %v453_v3 = vmul.f32 %v3867_v54, %v3859_v24 }
 0x3a1   :  { %v455_v57 = vpack.c.bf16 %v453_v3, %v452_v55 }
 0x3a3   :  { %3574 = vmatmul.mubr.msk.bf16.vlgmr.msra.gmra.mrb[4].mxu0 %vm150_vm0, %v455_v57 }
 0x3a4   :  { %3586 = vmatpush3.bf16.msra.mxu0 %v4245_v14  ;;  %3589 = vmatprep.mubr.msk.bf16.mxu0 %vm4051_vm1, %v4050_v8  ;;  %v576_v14 = vpop.f32.mrb[13].mxu1 }
 0x3a5   :  { %3587 = vmatprep.subr.bf16.mxu0 %v4050_v8  ;;  %v577_v62 = vadd.f32 %v3235_v59, %v576_v14  ;;  %v3584_v63 = vpop.f32.mrb[14].mxu1 }
 0x3a6   :  { %v588_v2 = vadd.f32 %v3584_v63, %v3235_v59  ;;  %v579_v4 = vpop.f32.mrb[15].mxu1 }
 0x3a7   :  { %v580_v9 = vadd.f32 %v3235_v59, %v579_v4  ;;  %v3599_v63 = vpop.f32.mrb[16].mxu1 }
 0x3a8   :  { %3588 = vmatpush3.bf16.msra.mxu0 %v4249_v17  ;;  %v731_v10 = vpack.c.bf16 %v588_v2, %v585_v61  ;;  %v715_v2 = vpop.f32.mrb[17].mxu1 }
 0x3a9   :  { %v730_v11 = vpack.c.bf16 %v580_v9, %v577_v62  ;;  %v3600_v4 = vpop.f32.mrb[18].mxu1  ;;  %v3251_v9 = vld [vmem:[%s4958_s28 + $0x1] ss:$0 sm:$0xff] }
 0x3ab   :  { %3590 = vmatmul.mubr.msk.bf16.vlgmr.msra.gmra.mrb[8].mxu0 %vm150_vm0, %v3811_v58 }
 0x3ac   :  { %3603 = vmatprep.mubr.msk.bf16.mxu0 %vm346_vm2, %v730_v11  ;;  %v716_v11 = vadd.f32 %v3251_v9, %v715_v2 }
 0x476   :  { %v4338_v12 = vpop.f32.mrb[4].mxu0 }
 0x477   :  { %v4340_v17 = vpop.f32.mrb[5].mxu0 }
 0x478   :  { %v4342_v13 = vpop.f32.mrb[6].mxu0 }
 0x479   :  { %v516_v15 = vpack.c.bf16 %v4342_v13, %v4338_v12  ;;  %v4346_v16 = vpop.f32.mrb[7].mxu0 }
 0x47a   :  { %v515_v18 = vpack.c.bf16 %v4346_v16, %v4340_v17 }
 0x47e   :  { %v649_v19 = vpop.f32.mrb[8].mxu0 }
 0x47f   :  { %v3591_v21 = vpop.f32.mrb[9].mxu0  ;;  %v650_v24 = vadd.f32 %v649_v19, %v600_v22  ;;  %v727_v22 = vadd.f32 %v3600_v4, %v3251_v9 }
 0x480   :  { %v652_v23 = vpop.f32.mrb[10].mxu0  ;;  %v724_v21 = vadd.f32 %v3599_v63, %v3251_v9 }
 0x481   :  { %v653_v25 = vadd.f32 %v652_v23, %v605_v20  ;;  %v3592_v26 = vpop.f32.mrb[11].mxu0 }
 0x482   :  { %v843_v23 = vpack.c.bf16 %v727_v22, %v724_v21  ;;  %v3817_v21 = vld [vmem:[%s4911_s13 + $0x8] sm:$0xff]  }
 0x483   :  { %v732_v27 = vpack.c.bf16 %v653_v25, %v650_v24 }
 0x485   :  { %3601 = vmatprep.subr.bf16.mxu0 %v732_v27 }
 0x486   :  { %3602 = vmatpush3.bf16.msra.mxu0 %v732_v27 }
 0x489   :  { %3604 = vmatmul.mubr.msk.bf16.vlgmr.msra.gmra.mrb[12].mxu0 %vm346_vm2, %v731_v10  ;;  %v718_v10 = vpop.f32.mrb[19].mxu1 }
 0x48a   :  { %v719_v19 = vadd.f32 %v3251_v9, %v718_v10 }
 0x48c   :  { %v842_v20 = vpack.c.bf16 %v719_v19, %v716_v11 }
 0x48e   :  { %3607 = vmatprep.subr.bf16.mxu1 %v842_v20 }
 0x48f   :  { %3608 = vmatpush3.bf16.msra.mxu1 %v842_v20  ;;  %v3816_v20 = vld [vmem:[%s4911_s13] sm:$0xff]  }
 0x490   :  { %3609 = vmatprep.subr.bf16.mxu1 %v843_v23 }
 0x493   :  { %3610 = vmatpush3.bf16.msra.mxu1 %v843_v23 }
 0x494   :  { %3627 = vmatprep.subr.bf16.mxu1 %v3816_v20 }
 0x55c   :  { %v3605_v30 = vpop.f32.mrb[12].mxu0 }
 0x55d   :  { %v773_v31 = vpop.f32.mrb[13].mxu0  ;;  %v790_v32 = vmul.f32 0.25, %v3605_v30 }
 0x55e   :  { %v788_v33 = vmul.f32 0.25, %v773_v31  ;;  %v3606_v34 = vpop.f32.mrb[14].mxu0 }
 0x55f   :  { %v776_v35 = vpop.f32.mrb[15].mxu0  ;;  %v791_v38 = vmul.f32 0.25, %v3606_v34  ;;  %v794_v41 = vadd.f32 %v790_v32, %v4284_v49 }
 0x560   :  { %v789_v36 = vmul.f32 0.25, %v776_v35  ;;  %v792_v37 = vadd.f32 %v788_v33, %v4274_v43 }
 0x561   :  { %v802_v7 = vsel %vm150_vm0, %v794_v41, -inf  ;;  %v795_v44 = vadd.f32 %v791_v38, %v4293_v56  ;;  %v3814_v38 = vld [vmem:[%s4959_s10 + $0x8] sm:$0xff]  }
 0x562   :  { %v796_v39 = vsel %vm150_vm0, %v792_v37, -inf  ;;  %v793_v40 = vadd.f32 %v789_v36, %v4279_v48  ;;  %3615 = vmatprep.subr.bf16.mxu0 %v3814_v38 }
 0x563   :  { %797 = vmax.xlane.f32.xlu1 %v796_v39  ;;  %v805_v45 = vsel %vm150_vm0, %v795_v44, -inf  ;;  %3616 = vmatpush3.bf16.msra.mxu0 %v3814_v38  ;;  %v3815_v39 = vld [vmem:[%s4959_s10] sm:$0xff]  }
 0x564   :  { %v799_v42 = vsel %vm150_vm0, %v793_v40, -inf  ;;  %3621 = vmatprep.subr.bf16.mxu0 %v3815_v39 }
 0x565   :  { %800 = vmax.xlane.f32.xlu0 %v799_v42 }
 0x567   :  { %803 = vmax.xlane.f32.xlu1 %v802_v7 }
 0x56b   :  { %806 = vmax.xlane.f32.xlu1 %v805_v45 }
 0x5f0   :  { %v798_v43 = vpop.xlane.xlu1 %797 }
 0x5f1   :  { %v808_v46 = vsub.f32 %v792_v37, %v798_v43  ;;  %v3268_v43 = vld [vmem:[%s4960_s9] ss:$0 sm:$0xff] }
 0x5f2   :  { %v801_v47 = vpop.xlane.xlu0 %800 }
 0x5f3   :  { %v812_v48 = vmul.f32 1.442695, %v808_v46  ;;  %v809_v52 = vsub.f32 %v793_v40, %v801_v47 }
 0x5f4   :  { %v804_v50 = vpop.xlane.xlu1 %803 }
 0x5f5   :  { %v810_v51 = vsub.f32 %v794_v41, %v804_v50  ;;  %v814_v54 = vmul.f32 1.442695, %v809_v52 }
 0x5f7   :  { %v816_v49 = vmul.f32 1.442695, %v810_v51 }
 0x5f8   :  { %v807_v53 = vpop.xlane.xlu1 %806 }
 0x5f9   :  { %3868 = vpow2.f32 %v816_v49  ;;  %v811_v55 = vsub.f32 %v795_v44, %v807_v53 }
 0x5fa   :  { %3870 = vpow2.f32 %v812_v48 }
 0x5fb   :  { %3872 = vpow2.f32 %v814_v54  ;;  %v818_v3 = vmul.f32 1.442695, %v811_v55 }
 0x5fd   :  { %3874 = vpow2.f32 %v818_v3 }
 0x603   :  { %v3869_v56 = vpop.eup %3868 }
 0x604   :  { %v826_v57 = vsel %vm150_vm0, %v3869_v56, 0.0  ;;  %v3871_v58 = vpop.eup %3870 }
 0x605   :  { %827 = vadd.xlane.f32.xlu1 %v826_v57  ;;  %v820_v59 = vsel %vm150_vm0, %v3871_v58, 0.0  ;;  %v3873_v60 = vpop.eup %3872 }
 0x606   :  { %v823_v61 = vsel %vm150_vm0, %v3873_v60, 0.0 }
 0x607   :  { %v3875_v14 = vpop.eup %3874 }
 0x608   :  { %v829_v62 = vsel %vm150_vm0, %v3875_v14, 0.0 }
 0x609   :  { %821 = vadd.xlane.f32.xlu1 %v820_v59 }
 0x60d   :  { %824 = vadd.xlane.f32.xlu1 %v823_v61 }
 0x611   :  { %830 = vadd.xlane.f32.xlu1 %v829_v62 }
 0x692   :  { %v828_v24 = vpop.xlane.xlu1 %827 }
 0x696   :  { %v822_v25 = vpop.xlane.xlu1 %821 }
 0x697   :  { %3876 = vrcp.f32 %v822_v25 }
 0x69a   :  { %v825_v26 = vpop.xlane.xlu1 %824 }
 0x69b   :  { %3878 = vrcp.f32 %v825_v26 }
 0x69c   :  { %3880 = vrcp.f32 %v828_v24 }
 0x69e   :  { %v831_v27 = vpop.xlane.xlu1 %830 }
 0x69f   :  { %3882 = vrcp.f32 %v831_v27 }
 0x6a1   :  { %v3877_v28 = vpop.eup %3876 }
 0x6a2   :  { %v836_v30 = vmul.f32 %v3877_v28, %v3871_v58 }
 0x6a5   :  { %v3879_v29 = vpop.eup %3878 }
 0x6a6   :  { %v837_v31 = vmul.f32 %v3879_v29, %v3873_v60  ;;  %v3881_v32 = vpop.eup %3880 }
 0x6a7   :  { %v838_v35 = vmul.f32 %v3881_v32, %v3869_v56 }
 0x6a8   :  { %v840_v33 = vpack.c.bf16 %v837_v31, %v836_v30 }
 0x6a9   :  { %v3883_v34 = vpop.eup %3882 }
 0x6aa   :  { %v839_v36 = vmul.f32 %v3883_v34, %v3875_v14  ;;  %3611 = vmatprep.mubr.msk.bf16.mxu1 %vm150_vm0, %v840_v33 }
 0x6ac   :  { %v841_v37 = vpack.c.bf16 %v839_v36, %v838_v35  ;;  %v3269_v35 = vld [vmem:[%s4909_s11] ss:$0 sm:$0xff] }
 0x6ae   :  { %3612 = vmatmul.mubr.msk.bf16.vlgmr.msra.gmra.mrb[20].mxu1 %vm150_vm0, %v841_v37 }
 0x6af   :  { %3628 = vmatpush3.bf16.msra.mxu1 %v3816_v20 }
 0x6b0   :  { %3629 = vmatprep.subr.bf16.mxu1 %v3817_v21 }
 0x6b3   :  { %3630 = vmatpush3.bf16.msra.mxu1 %v3817_v21 }
 0x781   :  { %v3613_v40 = vpop.f32.mrb[20].mxu1 }
 0x782   :  { %v884_v41 = vpop.f32.mrb[21].mxu1 }
 0x783   :  { %v3614_v42 = vpop.f32.mrb[22].mxu1 }
 0x784   :  { %v903_v7 = vpack.c.bf16 %v3614_v42, %v3613_v40  ;;  %v887_v44 = vpop.f32.mrb[23].mxu1 }
 0x785   :  { %v902_v45 = vpack.c.bf16 %v887_v44, %v884_v41  ;;  %v3270_v41 = vld [vmem:[%s4910_s12] ss:$0 sm:$0xff] }
 0x787   :  { %3617 = vmatprep.mubr.msk.bf16.mxu0 %vm346_vm2, %v902_v45 }
 0x788   :  { %3618 = vmatmul.mubr.msk.bf16.vlgmr.msra.gmra.mrb[16].mxu0 %vm346_vm2, %v903_v7 }
 0x789   :  { %3623 = vmatprep.mubr.msk.bf16.mxu0 %vm346_vm2, %v515_v18  ;;  %3622 = vmatpush3.bf16.msra.mxu0 %v3815_v39 }
 0x794   :  { %3624 = vmatmul.mubr.msk.bf16.vlgmr.msra.gmra.mrb[16].mxu0 %vm346_vm2, %v516_v15 }
 0x867   :  { %v3625_v46 = vpop.f32.mrb[16].mxu0 }
 0x868   :  { %v1011_v47 = vpop.f32.mrb[17].mxu0  ;;  %v1035_v50 = vadd.f32 %v3625_v46, %v3268_v43 }
 0x869   :  { %v1033_v51 = vadd.f32 %v3268_v43, %v1011_v47  ;;  %v3626_v48 = vpop.f32.mrb[18].mxu0 }
 0x86a   :  { %v1014_v52 = vpop.f32.mrb[19].mxu0  ;;  %v1036_v49 = vadd.f32 %v3626_v48, %v3268_v43  ;;  %v1039_v13 = vadd.f32 %v1035_v50, %v4216_v5 }
 0x86b   :  { %v1034_v17 = vadd.f32 %v3268_v43, %v1014_v52  ;;  %v1037_v16 = vadd.f32 %v1033_v51, %v4195_v0 }
 0x86c   :  { %v1040_v53 = vadd.f32 %v1036_v49, %v4222_v6  ;;  %v1049_v54 = vsel %vm150_vm0, %v1039_v13, 0.0 }
 0x86d   :  { %v1043_v18 = vsel %vm150_vm0, %v1037_v16, 0.0  ;;  %v1038_v12 = vadd.f32 %v1034_v17, %v4201_v1  ;;  %v3818_v17 = vld [vmem:[%s4913_s15] sm:$0xff]  }
 0x86e   :  { %1044 = vadd.xlane.f32.xlu0 %v1043_v18  ;;  %v1052_v55 = vsel %vm150_vm0, %v1040_v53, 0.0  ;;  %3635 = vmatprep.subr.bf16.mxu1 %v3818_v17  ;;  %v3820_v18 = vld [vmem:[%s4913_s15 + $0x10] sm:$0xff]  }
 0x86f   :  { %v1046_v15 = vsel %vm150_vm0, %v1038_v12, 0.0 }
 0x870   :  { %1047 = vadd.xlane.f32.xlu1 %v1046_v15  ;;  %v3823_v15 = vld [vmem:[%s4913_s15 + $0x28] sm:$0xff]  }
 0x872   :  { %1050 = vadd.xlane.f32.xlu0 %v1049_v54  ;;  %v3825_v54 = vld [vmem:[%s4913_s15 + $0x38] sm:$0xff]  }
 0x874   :  { %1053 = vadd.xlane.f32.xlu1 %v1052_v55  ;;  %v3271_v55 = vld [vmem:[%s4912_s14] ss:$0 sm:$0xff] }
 0x8fb   :  { %v1045_v3 = vpop.xlane.xlu0 %1044 }
 0x8fc   :  { %v1056_v0 = vmul.f32 0.03125, %v1045_v3 }
 0x8fd   :  { %v1048_v56 = vpop.xlane.xlu1 %1047 }
 0x8fe   :  { %v1060_v57 = vsub.f32 %v1037_v16, %v1056_v0  ;;  %v1057_v58 = vmul.f32 0.03125, %v1048_v56  ;;  %v3819_v16 = vld [vmem:[%s4913_s15 + $0x8] sm:$0xff]  }
 0x8ff   :  { %v1051_v1 = vpop.xlane.xlu0 %1050 }
 0x900   :  { %v1061_v59 = vsub.f32 %v1038_v12, %v1057_v58  ;;  %v1058_v5 = vmul.f32 0.03125, %v1051_v1  ;;  %v1064_v60 = vmul.f32 %v1060_v57, %v1060_v57  ;;  %v3821_v12 = vld [vmem:[%s4913_s15 + $0x18] sm:$0xff]  }
 0x901   :  { %v1054_v61 = vpop.xlane.xlu1 %1053 }
 0x902   :  { %v1062_v14 = vsub.f32 %v1039_v13, %v1058_v5  ;;  %v1059_v62 = vmul.f32 0.03125, %v1054_v61  ;;  %v1068_v6 = vsel %vm150_vm0, %v1064_v60, 0.0  ;;  %v1065_v63 = vmul.f32 %v1061_v59, %v1061_v59  ;;  %v3822_v13 = vld [vmem:[%s4913_s15 + $0x20] sm:$0xff]  }
 0x903   :  { %1069 = vadd.xlane.f32.xlu0 %v1068_v6 }
 0x904   :  { %v1063_v2 = vsub.f32 %v1040_v53, %v1059_v62  ;;  %v1071_v4 = vsel %vm150_vm0, %v1065_v63, 0.0  ;;  %v1066_v9 = vmul.f32 %v1062_v14, %v1062_v14  ;;  %v3824_v53 = vld [vmem:[%s4913_s15 + $0x30] sm:$0xff]  }
 0x905   :  { %1072 = vadd.xlane.f32.xlu1 %v1071_v4 }
 0x906   :  { %v1074_v10 = vsel %vm150_vm0, %v1066_v9, 0.0  ;;  %v1067_v11 = vmul.f32 %v1063_v2, %v1063_v2 }
 0x907   :  { %1075 = vadd.xlane.f32.xlu0 %v1074_v10 }
 0x908   :  { %v1077_v19 = vsel %vm150_vm0, %v1067_v11, 0.0 }
 0x909   :  { %1078 = vadd.xlane.f32.xlu1 %v1077_v19 }
 0x990   :  { %v1070_v22 = vpop.xlane.xlu0 %1069 }
 0x991   :  { %v1080_v23 = vmul.f32 0.03125, %v1070_v22 }
 0x992   :  { %v1073_v24 = vpop.xlane.xlu1 %1072 }
 0x993   :  { %v1084_v25 = vadd.f32 1e-12, %v1080_v23  ;;  %v1081_v26 = vmul.f32 0.03125, %v1073_v24 }
 0x994   :  { %v1076_v27 = vpop.xlane.xlu0 %1075 }
 0x995   :  { %3884 = vrsqrt.f32 %v1084_v25  ;;  %v1085_v28 = vadd.f32 1e-12, %v1081_v26  ;;  %v1082_v29 = vmul.f32 0.03125, %v1076_v27 }
 0x996   :  { %v1079_v30 = vpop.xlane.xlu1 %1078 }
 0x997   :  { %3886 = vrsqrt.f32 %v1085_v28  ;;  %v1086_v31 = vadd.f32 1e-12, %v1082_v29  ;;  %v1083_v32 = vmul.f32 0.03125, %v1079_v30 }
 0x999   :  { %3888 = vrsqrt.f32 %v1086_v31  ;;  %v1087_v33 = vadd.f32 1e-12, %v1083_v32 }
 0x99b   :  { %3890 = vrsqrt.f32 %v1087_v33 }
 0x99f   :  { %v3885_v34 = vpop.eup %3884 }
 0x9a0   :  { %v1092_v36 = vmul.f32 %v3885_v34, %v1060_v57 }
 0x9a1   :  { %v3887_v37 = vpop.eup %3886 }
 0x9a2   :  { %v1093_v38 = vmul.f32 %v3887_v37, %v1061_v59  ;;  %v1102_v39 = vmul.f32 %v3269_v35, %v1092_v36 }
 0x9a3   :  { %v3889_v40 = vpop.eup %3888 }
 0x9a4   :  { %v1094_v42 = vmul.f32 %v3889_v40, %v1062_v14  ;;  %v1103_v7 = vmul.f32 %v3269_v35, %v1093_v38  ;;  %v4419_v46 = vadd.f32 %v3270_v41, %v1102_v39 }
 0x9a5   :  { %v3891_v44 = vpop.eup %3890 }
 0x9a6   :  { %v1104_v45 = vmul.f32 %v3269_v35, %v1094_v42  ;;  %v1095_v43 = vmul.f32 %v3891_v44, %v1063_v2  ;;  %v4421_v47 = vadd.f32 %v3270_v41, %v1103_v7 }
 0x9a8   :  { %v1105_v50 = vmul.f32 %v3269_v35, %v1095_v43  ;;  %v1120_v51 = vpack.c.bf16 %v4421_v47, %v4419_v46  ;;  %v4426_v48 = vadd.f32 %v3270_v41, %v1104_v45  ;;  %v3276_v43 = vld [vmem:[%s4914_s16] ss:$0 sm:$0xff] }
 0x9aa   :  { %3631 = vmatprep.mubr.msk.bf16.mxu1 %vm150_vm0, %v1120_v51  ;;  %v4428_v52 = vadd.f32 %v3270_v41, %v1105_v50 }
 0x9ac   :  { %v1121_v49 = vpack.c.bf16 %v4428_v52, %v4426_v48 }
 0x9ae   :  { %3632 = vmatmul.mubr.msk.bf16.vlgmr.msra.gmra.mrb[24].mxu1 %vm150_vm0, %v1121_v49 }
 0x9af   :  { %3636 = vmatpush3.bf16.msra.mxu1 %v3818_v17 }
 0x9b0   :  { %3637 = vmatprep.subr.bf16.mxu1 %v3819_v16 }
 0x9b3   :  { %3638 = vmatpush3.bf16.msra.mxu1 %v3819_v16 }
 0x9b4   :  { %3639 = vmatprep.subr.bf16.mxu1 %v3820_v18 }
 0x9b7   :  { %3640 = vmatpush3.bf16.msra.mxu1 %v3820_v18 }
 0x9b8   :  { %3641 = vmatprep.subr.bf16.mxu1 %v3821_v12 }
 0x9bb   :  { %3642 = vmatpush3.bf16.msra.mxu1 %v3821_v12 }
 0x9bc   :  { %3643 = vmatprep.subr.bf16.mxu1 %v3822_v13 }
 0x9bf   :  { %3644 = vmatpush3.bf16.msra.mxu1 %v3822_v13 }
 0x9c0   :  { %3645 = vmatprep.subr.bf16.mxu1 %v3823_v15 }
 0x9c3   :  { %3646 = vmatpush3.bf16.msra.mxu1 %v3823_v15 }
 0x9c4   :  { %3647 = vmatprep.subr.bf16.mxu1 %v3824_v53 }
 0x9c7   :  { %3648 = vmatpush3.bf16.msra.mxu1 %v3824_v53 }
 0x9c8   :  { %3649 = vmatprep.subr.bf16.mxu1 %v3825_v54 }
 0x9cb   :  { %3650 = vmatpush3.bf16.msra.mxu1 %v3825_v54 }
 0xa81   :  { %v3633_v3 = vpop.f32.mrb[24].mxu1 }
 0xa82   :  { %v1190_v0 = vadd.f32 %v3633_v3, %v3271_v55  ;;  %v1181_v56 = vpop.f32.mrb[25].mxu1 }
 0xa83   :  { %v1182_v57 = vadd.f32 %v3271_v55, %v1181_v56  ;;  %v3634_v58 = vpop.f32.mrb[26].mxu1 }
 0xa84   :  { %v1202_v1 = vmul.f32 0.044715, %v1190_v0  ;;  %v1193_v59 = vadd.f32 %v3634_v58, %v3271_v55  ;;  %v1184_v5 = vpop.f32.mrb[27].mxu1  ;;  %v1198_v34 = vmul.f32 0.5, %v1190_v0 }
 0xa85   :  { %v1200_v60 = vmul.f32 0.044715, %v1182_v57  ;;  %v1185_v61 = vadd.f32 %v3271_v55, %v1184_v5  ;;  %v1196_v37 = vmul.f32 0.5, %v1182_v57 }
 0xa86   :  { %v1206_v14 = vmul.f32 %v1202_v1, %v1190_v0  ;;  %v1203_v62 = vmul.f32 0.044715, %v1193_v59  ;;  %v1199_v35 = vmul.f32 0.5, %v1193_v59 }
 0xa87   :  { %v1204_v6 = vmul.f32 %v1200_v60, %v1182_v57  ;;  %v1201_v63 = vmul.f32 0.044715, %v1185_v61  ;;  %v1197_v38 = vmul.f32 0.5, %v1185_v61 }
 0xa88   :  { %v1210_v2 = vmul.f32 %v1206_v14, %v1190_v0  ;;  %v1207_v4 = vmul.f32 %v1203_v62, %v1193_v59 }
 0xa89   :  { %v1208_v9 = vmul.f32 %v1204_v6, %v1182_v57  ;;  %v1205_v10 = vmul.f32 %v1201_v63, %v1185_v61 }
 0xa8a   :  { %v1214_v11 = vadd.f32 %v1210_v2, %v1190_v0  ;;  %v1211_v19 = vmul.f32 %v1207_v4, %v1193_v59 }
 0xa8b   :  { %v1209_v20 = vmul.f32 %v1205_v10, %v1185_v61  ;;  %v1212_v21 = vadd.f32 %v1208_v9, %v1182_v57 }
 0xa8c   :  { %v1218_v22 = vmul.f32 0.7978846, %v1214_v11  ;;  %v1215_v23 = vadd.f32 %v1211_v19, %v1193_v59 }
 0xa8d   :  { %v1213_v24 = vadd.f32 %v1209_v20, %v1185_v61  ;;  %v1216_v25 = vmul.f32 0.7978846, %v1212_v21  ;;  %v3299_v20 = vld [vmem:[%s4953_s3 + $0x20] sm:$0xff]  ;;  %v3300_v21 = vld [vmem:[%s4953_s3 + $0x28] sm:$0xff] }
 0xa8e   :  { %3892 = vtanh.f32 %v1218_v22  ;;  %v1219_v26 = vmul.f32 0.7978846, %v1215_v23  ;;  %v3826_v22 = vld [vmem:[%s4952_s0 + $0x20] sm:$0xff]   ;;  %v3827_v23 = vld [vmem:[%s4952_s0 + $0x28] sm:$0xff]  }
 0xa8f   :  { %v1217_v27 = vmul.f32 0.7978846, %v1213_v24  ;;  %3894 = vtanh.f32 %v1216_v25  ;;  %3655 = vmatprep.subr.bf16.mxu0 %v3826_v22 }
 0xa90   :  { %3896 = vtanh.f32 %v1219_v26  ;;  %3656 = vmatpush3.bf16.msra.mxu0 %v3826_v22  ;;  %v3831_v22 = vld [vmem:[%s4952_s0 + $0x30] sm:$0xff]  }
 0xa91   :  { %3898 = vtanh.f32 %v1217_v27  ;;  %3657 = vmatprep.subr.bf16.mxu0 %v3827_v23 }
 0xa94   :  { %3658 = vmatpush3.bf16.msra.mxu0 %v3827_v23 }
 0xa95   :  { %3663 = vmatprep.subr.bf16.mxu0 %v4050_v8 }
 0xa98   :  { %v3893_v28 = vpop.eup %3892 }
 0xa99   :  { %v3895_v29 = vpop.eup %3894  ;;  %v1226_v30 = vadd.f32 1.0, %v3893_v28 }
 0xa9a   :  { %v3897_v31 = vpop.eup %3896  ;;  %v1224_v32 = vadd.f32 1.0, %v3895_v29 }
 0xa9b   :  { %v3899_v33 = vpop.eup %3898  ;;  %v1227_v36 = vadd.f32 1.0, %v3897_v31  ;;  %v1230_v40 = vmul.f32 %v1226_v30, %v1198_v34 }
 0xa9c   :  { %v1225_v39 = vadd.f32 1.0, %v3899_v33  ;;  %v1228_v42 = vmul.f32 %v1224_v32, %v1196_v37  ;;  %v3285_v37 = vld [vmem:[%s4915_s17] ss:$0 sm:$0xff] }
 0xa9d   :  { %v1231_v41 = vmul.f32 %v1227_v36, %v1199_v35 }
 0xa9e   :  { %v1229_v7 = vmul.f32 %v1225_v39, %v1197_v38 }
 0xa9f   :  { %v1249_v44 = vpack.c.bf16 %v1231_v41, %v1230_v40  ;;  %v3286_v40 = vld [vmem:[%s4916_s18] ss:$0 sm:$0xff] }
 0xaa0   :  { %v1248_v45 = vpack.c.bf16 %v1229_v7, %v1228_v42 }
 0xaa2   :  { %3651 = vmatprep.mubr.bf16.mxu1 %v1248_v45 }
 0xaa3   :  { %3652 = vmatmul.mubr.bf16.vlgmr.msra.gmra.mrb[28].mxu1 %v1249_v44 }
 0xb76   :  { %v3653_v50 = vpop.f32.mrb[28].mxu1 }
 0xb77   :  { %v1339_v51 = vpop.f32.mrb[29].mxu1  ;;  %v1348_v49 = vadd.f32 %v3653_v50, %v3276_v43 }
 0xb78   :  { %v1340_v17 = vadd.f32 %v3276_v43, %v1339_v51  ;;  %v3654_v16 = vpop.f32.mrb[30].mxu1 }
 0xb79   :  { %v1342_v18 = vpop.f32.mrb[31].mxu1  ;;  %v1351_v12 = vadd.f32 %v3654_v16, %v3276_v43  ;;  %v1356_v55 = vadd.f32 %v1348_v49, %v4426_v48 }
 0xb7a   :  { %v1343_v13 = vadd.f32 %v3276_v43, %v1342_v18  ;;  %v1354_v15 = vadd.f32 %v1340_v17, %v4419_v46 }
 0xb7b   :  { %v1357_v0 = vadd.f32 %v1351_v12, %v4428_v52  ;;  %v1366_v56 = vsel %vm150_vm0, %v1356_v55, 0.0 }
 0xb7c   :  { %v1360_v53 = vsel %vm150_vm0, %v1354_v15, 0.0  ;;  %v1355_v54 = vadd.f32 %v1343_v13, %v4421_v47 }
 0xb7d   :  { %1361 = vadd.xlane.f32.xlu0 %v1360_v53  ;;  %v1369_v57 = vsel %vm150_vm0, %v1357_v0, 0.0 }
 0xb7e   :  { %v1363_v3 = vsel %vm150_vm0, %v1355_v54, 0.0 }
 0xb7f   :  { %1364 = vadd.xlane.f32.xlu1 %v1363_v3 }
 0xb81   :  { %1367 = vadd.xlane.f32.xlu0 %v1366_v56  ;;  %v3829_v56 = vld [vmem:[%s4956_s6 + $0x20] sm:$0xff]  }
 0xb83   :  { %1370 = vadd.xlane.f32.xlu1 %v1369_v57 }
 0xc0a   :  { %v1362_v58 = vpop.xlane.xlu0 %1361 }
 0xc0b   :  { %v1372_v46 = vmul.f32 0.03125, %v1362_v58  ;;  %v3828_v58 = vld [vmem:[%s4954_s29 + $0x10] sm:$0xff]  }
 0xc0c   :  { %v1365_v1 = vpop.xlane.xlu1 %1364 }
 0xc0d   :  { %v1376_v59 = vsub.f32 %v1354_v15, %v1372_v46  ;;  %v1373_v5 = vmul.f32 0.03125, %v1365_v1  ;;  %v3830_v46 = vld [vmem:[%s4956_s6 + $0x28] sm:$0xff]   ;;  %v3292_v1 = vld [vmem:[%s4955_s2 + $0x2] ss:$0 sm:$0xff] }
 0xc0e   :  { %v1368_v47 = vpop.xlane.xlu0 %1367 }
 0xc0f   :  { %v1377_v60 = vsub.f32 %v1355_v54, %v1373_v5  ;;  %v1374_v48 = vmul.f32 0.03125, %v1368_v47  ;;  %v1380_v61 = vmul.f32 %v1376_v59, %v1376_v59 }
 0xc10   :  { %v1371_v14 = vpop.xlane.xlu1 %1370 }
 0xc11   :  { %v1378_v62 = vsub.f32 %v1356_v55, %v1374_v48  ;;  %v1375_v6 = vmul.f32 0.03125, %v1371_v14  ;;  %v1384_v52 = vsel %vm150_vm0, %v1380_v61, 0.0  ;;  %v1381_v63 = vmul.f32 %v1377_v60, %v1377_v60 }
 0xc12   :  { %1385 = vadd.xlane.f32.xlu0 %v1384_v52 }
 0xc13   :  { %v1379_v2 = vsub.f32 %v1357_v0, %v1375_v6  ;;  %v1387_v4 = vsel %vm150_vm0, %v1381_v63, 0.0  ;;  %v1382_v9 = vmul.f32 %v1378_v62, %v1378_v62 }
 0xc14   :  { %1388 = vadd.xlane.f32.xlu1 %v1387_v4 }
 0xc15   :  { %v1390_v10 = vsel %vm150_vm0, %v1382_v9, 0.0  ;;  %v1383_v11 = vmul.f32 %v1379_v2, %v1379_v2 }
 0xc16   :  { %1391 = vadd.xlane.f32.xlu0 %v1390_v10 }
 0xc17   :  { %v1393_v19 = vsel %vm150_vm0, %v1383_v11, 0.0 }
 0xc18   :  { %1394 = vadd.xlane.f32.xlu1 %v1393_v19 }
 0xc29   :  { %1556 = vperm.xlu1 %3802, %v3299_v20  }
 0xc2d   :  { %1561 = vperm.xlu1 %3802, %v3300_v21  }
 0xc9f   :  { %v1386_v24 = vpop.xlane.xlu0 %1385 }
 0xca0   :  { %v1396_v25 = vmul.f32 0.03125, %v1386_v24  ;;  %v3308_v24 = vld [vmem:[%s4958_s28 + $0x2] ss:$0 sm:$0xff] }
 0xca1   :  { %v1389_v26 = vpop.xlane.xlu1 %1388 }
 0xca2   :  { %v1400_v27 = vadd.f32 1e-12, %v1396_v25  ;;  %v1397_v28 = vmul.f32 0.03125, %v1389_v26  ;;  %v3832_v26 = vld [vmem:[%s4952_s0 + $0x38] sm:$0xff]  }
 0xca3   :  { %v1392_v29 = vpop.xlane.xlu0 %1391 }
 0xca4   :  { %3900 = vrsqrt.f32 %v1400_v27  ;;  %v1401_v30 = vadd.f32 1e-12, %v1397_v28  ;;  %v1398_v31 = vmul.f32 0.03125, %v1392_v29 }
 0xca5   :  { %v1395_v32 = vpop.xlane.xlu1 %1394 }
 0xca6   :  { %3902 = vrsqrt.f32 %v1401_v30  ;;  %v1402_v33 = vadd.f32 1e-12, %v1398_v31  ;;  %v1399_v34 = vmul.f32 0.03125, %v1395_v32 }
 0xca8   :  { %3904 = vrsqrt.f32 %v1402_v33  ;;  %v1403_v35 = vadd.f32 1e-12, %v1399_v34  ;;  %v3833_v34 = vld [vmem:[%s4956_s6 + $0x30] sm:$0xff]  }
 0xca9   :  { %v1557_v63 = vpop.permute.xlu1 %1556 }
 0xcaa   :  { %3906 = vrsqrt.f32 %v1403_v35 }
 0xcad   :  { %v1562_v9 = vpop.permute.xlu1 %1561 }
 0xcae   :  { %v3901_v36 = vpop.eup %3900 }
 0xcaf   :  { %v1408_v38 = vmul.f32 %v3901_v36, %v1376_v59  ;;  %v3834_v36 = vld [vmem:[%s4956_s6 + $0x38] sm:$0xff]  }
 0xcb0   :  { %v3903_v39 = vpop.eup %3902 }
 0xcb1   :  { %v1409_v41 = vmul.f32 %v3903_v39, %v1377_v60  ;;  %v1418_v42 = vmul.f32 %v3285_v37, %v1408_v38 }
 0xcb2   :  { %v3905_v7 = vpop.eup %3904 }
 0xcb3   :  { %v1410_v44 = vmul.f32 %v3905_v7, %v1378_v62  ;;  %v4494_v45 = vadd.f32 %v3286_v40, %v1418_v42  ;;  %v1419_v43 = vmul.f32 %v3285_v37, %v1409_v41 }
 0xcb4   :  { %v3907_v50 = vpop.eup %3906 }
 0xcb5   :  { %v1411_v51 = vmul.f32 %v3907_v50, %v1379_v2  ;;  %1432 = vxpose.xlu0.b32.start [1/4] (short) (narrow) %v4494_v45, 32  ;;  %v4497_v49 = vadd.f32 %v3286_v40, %v1419_v43  ;;  %v1420_v17 = vmul.f32 %v3285_v37, %v1410_v44  ;;  %v4573_v44 = vld [vmem:[%s4957_s8] sm:$0xff] }
 0xcb7   :  { %v1421_v16 = vmul.f32 %v3285_v37, %v1411_v51  ;;  %v4501_v18 = vpack.c.bf16 %v4497_v49, %v4494_v45  ;;  %v4508_v13 = vadd.f32 %v3286_v40, %v1420_v17  ;;  %v3324_v17 = vld [vmem:[%s4955_s2 + $0x3] ss:$0 sm:$0xff] }
 0xcb9   :  { %v4503_v12 = vadd.f32 %v3286_v40, %v1421_v16  ;;  %1433 = vxpose.xlu0.b32.cont [2/4] (short) (narrow) %v4497_v49, 32  ;;  %3659 = vmatprep.mubr.msk.bf16.mxu0 %vm150_vm0, %v4501_v18  ;;  %v4583_v16 = vld [vmem:[%s4957_s8 + $0x8] sm:$0xff] }
 0xcbb   :  { %v4512_v15 = vpack.c.bf16 %v4503_v12, %v4508_v13 }
 0xcbd   :  { %1434 = vxpose.xlu0.b32.cont [3/4] (short) (narrow) %v4508_v13, 32  ;;  %3660 = vmatmul.mubr.msk.bf16.vlgmr.msra.gmra.mrb[20].mxu0 %vm150_vm0, %v4512_v15 }
 0xcbe   :  { %3667 = vmatprep.mubr.msk.bf16.mxu0 %vm4051_vm1, %v4050_v8 }
 0xcc1   :  { %1435 = vxpose.xlu0.b32.end [4/4] (short) (narrow) %v4503_v12, 32 }
 0xd35   :  { %v1448_v53 = vpop.trf.xlu0 }
 0xd39   :  { %v1449_v54 = vpop.trf.xlu0 }
 0xd3a   :  { %v4520_v55 = vpack.c.bf16 %v1449_v54, %v1448_v53 }
 0xd3c   :  { %3664 = vmatpush3.bf16.msra.mxu0 %v4520_v55 }
 0xd3d   :  { %v1450_v3 = vpop.trf.xlu0  ;;  %3665 = vmatprep.subr.bf16.mxu0 %v4050_v8 }
 0xd41   :  { %v1451_v0 = vpop.trf.xlu0 }
 0xd42   :  { %v4527_v57 = vpack.c.bf16 %v1451_v0, %v1450_v3 }
 0xd44   :  { %3666 = vmatpush3.bf16.msra.mxu0 %v4527_v57 }
 0xd45   :  { %3671 = vmatprep.subr.bf16.mxu0 %v3829_v56 }
 0xd47   :  { %3668 = vmatmul.mubr.msk.bf16.vlgmr.msra.gmra.mrb[24].mxu0 %vm150_vm0, %v3828_v58 }
 0xd48   :  { %3672 = vmatpush3.bf16.msra.mxu0 %v3829_v56  ;;  %3675 = vmatprep.mubr.msk.bf16.mxu0 %vm150_vm0, %v4501_v18 }
 0xd49   :  { %3673 = vmatprep.subr.bf16.mxu0 %v3830_v46 }
 0xd4c   :  { %3674 = vmatpush3.bf16.msra.mxu0 %v3830_v46 }
 0xd4f   :  { %3676 = vmatmul.mubr.msk.bf16.vlgmr.msra.gmra.mrb[28].mxu0 %vm150_vm0, %v4512_v15 }
 0xd90   :  { %v3661_v59 = vpop.f32.mrb[20].mxu0 }
 0xd91   :  { %v1540_v5 = vadd.f32 %v3661_v59, %v3292_v1  ;;  %v1531_v47 = vpop.f32.mrb[21].mxu0 }
 0xd92   :  { %v3662_v60 = vpop.f32.mrb[22].mxu0  ;;  %v1532_v14 = vadd.f32 %v3292_v1, %v1531_v47 }
 0xd93   :  { %v1543_v48 = vadd.f32 %v3662_v60, %v3292_v1  ;;  %v1534_v61 = vpop.f32.mrb[23].mxu0 }
 0xd94   :  { %v1535_v62 = vadd.f32 %v3292_v1, %v1534_v61  ;;  %v4599_v1 = vld [vmem:[%s4957_s8 + $0x18] sm:$0xff] }
 0xd95   :  { %v1688_v6 = vpack.c.bf16 %v1543_v48, %v1540_v5 }
 0xd96   :  { %v1687_v52 = vpack.c.bf16 %v1535_v62, %v1532_v14 }
 0xd98   :  { %3681 = vmatprep.mubr.msk.bf16.mxu0 %vm346_vm2, %v1687_v52  ;;  %v3340_v52 = vld [vmem:[%s4958_s28 + $0x3] ss:$0 sm:$0xff] }
 0xe1a   :  { %v1606_v2 = vpop.f32.mrb[24].mxu0 }
 0xe1b   :  { %v3669_v4 = vpop.f32.mrb[25].mxu0  ;;  %v1607_v11 = vadd.f32 %v1606_v2, %v1557_v63 }
 0xe1c   :  { %v1609_v10 = vpop.f32.mrb[26].mxu0 }
 0xe1d   :  { %v1610_v19 = vadd.f32 %v1609_v10, %v1562_v9  ;;  %v3670_v20 = vpop.f32.mrb[27].mxu0 }
 0xe1f   :  { %v1689_v21 = vpack.c.bf16 %v1610_v19, %v1607_v11 }
 0xe21   :  { %3679 = vmatprep.subr.bf16.mxu0 %v1689_v21 }
 0xe22   :  { %v3677_v23 = vpop.f32.mrb[28].mxu0  ;;  %3680 = vmatpush3.bf16.msra.mxu0 %v1689_v21 }
 0xe23   :  { %v1672_v25 = vpop.f32.mrb[29].mxu0  ;;  %3693 = vmatprep.subr.bf16.mxu0 %v3831_v22  ;;  %v1681_v28 = vadd.f32 %v3677_v23, %v3308_v24 }
 0xe24   :  { %v3678_v27 = vpop.f32.mrb[30].mxu0  ;;  %v1673_v31 = vadd.f32 %v3308_v24, %v1672_v25 }
 0xe25   :  { %v1684_v29 = vadd.f32 %v3678_v27, %v3308_v24  ;;  %v1675_v30 = vpop.f32.mrb[31].mxu0  ;;  %3682 = vmatmul.mubr.msk.bf16.vlgmr.msra.gmra.mrb[32].mxu0 %vm346_vm2, %v1688_v6 }
 0xe26   :  { %v1676_v32 = vadd.f32 %v3308_v24, %v1675_v30  ;;  %3694 = vmatpush3.bf16.msra.mxu0 %v3831_v22  ;;  %3697 = vmatprep.mubr.msk.bf16.mxu0 %vm150_vm0, %v4501_v18 }
 0xe27   :  { %v1800_v33 = vpack.c.bf16 %v1684_v29, %v1681_v28  ;;  %3695 = vmatprep.subr.bf16.mxu0 %v3832_v26 }
 0xe28   :  { %v1799_v35 = vpack.c.bf16 %v1676_v32, %v1673_v31 }
 0xe2a   :  { %3685 = vmatprep.subr.bf16.mxu1 %v1799_v35  ;;  %3696 = vmatpush3.bf16.msra.mxu0 %v3832_v26 }
 0xe2b   :  { %3686 = vmatpush3.bf16.msra.mxu1 %v1799_v35  ;;  %3709 = vmatprep.subr.bf16.mxu0 %v3833_v34 }
 0xe2c   :  { %3687 = vmatprep.subr.bf16.mxu1 %v1800_v33 }
 0xe2d   :  { %3698 = vmatmul.mubr.msk.bf16.vlgmr.msra.gmra.mrb[36].mxu0 %vm150_vm0, %v4512_v15 }
 0xe2e   :  { %3710 = vmatpush3.bf16.msra.mxu0 %v3833_v34  ;;  %3713 = vmatprep.mubr.msk.bf16.mxu0 %vm150_vm0, %v4501_v18 }
 0xe2f   :  { %3688 = vmatpush3.bf16.msra.mxu1 %v1800_v33  ;;  %3711 = vmatprep.subr.bf16.mxu0 %v3834_v36 }
 0xe30   :  { %3701 = vmatprep.subr.bf16.mxu1 %v4050_v8 }
 0xe32   :  { %3712 = vmatpush3.bf16.msra.mxu0 %v3834_v36 }
 0xe35   :  { %3714 = vmatmul.mubr.msk.bf16.vlgmr.msra.gmra.mrb[40].mxu0 %vm150_vm0, %v4512_v15  ;;  %v4589_v15 = vld [vmem:[%s4957_s8 + $0x10] sm:$0xff] }
 0xef8   :  { %v3683_v37 = vpop.f32.mrb[32].mxu0 }
 0xef9   :  { %v1730_v38 = vpop.f32.mrb[33].mxu0  ;;  %v1747_v39 = vmul.f32 0.25, %v3683_v37 }
 0xefa   :  { %v1745_v40 = vmul.f32 0.25, %v1730_v38  ;;  %v3684_v41 = vpop.f32.mrb[34].mxu0 }
 0xefb   :  { %v1733_v42 = vpop.f32.mrb[35].mxu0  ;;  %v1748_v50 = vmul.f32 0.25, %v3684_v41  ;;  %v1751_v53 = vadd.f32 %v4589_v15, %v1747_v39 }
 0xefc   :  { %v1746_v7 = vmul.f32 0.25, %v1733_v42  ;;  %v1749_v43 = vadd.f32 %v4573_v44, %v1745_v40  ;;  %v3331_v42 = vld [vmem:[%s4953_s3 + $0x30] sm:$0xff] }
 0xefd   :  { %v1759_v46 = vsel %vm150_vm0, %v1751_v53, -inf  ;;  %v1752_v59 = vadd.f32 %v4599_v1, %v1748_v50 }
 0xefe   :  { %v1753_v51 = vsel %vm150_vm0, %v1749_v43, -inf  ;;  %v1750_v18 = vadd.f32 %v4583_v16, %v1746_v7  ;;  %v3332_v7 = vld [vmem:[%s4953_s3 + $0x38] sm:$0xff] }
 0xeff   :  { %1754 = vmax.xlane.f32.xlu1 %v1753_v51  ;;  %v1762_v62 = vsel %vm150_vm0, %v1752_v59, -inf }
 0xf00   :  { %v3699_v54 = vpop.f32.mrb[36].mxu0  ;;  %v1756_v3 = vsel %vm150_vm0, %v1750_v18, -inf }
 0xf01   :  { %v4593_v0 = vadd.f32 %v3699_v54, %v3324_v17  ;;  %v1920_v56 = vpop.f32.mrb[37].mxu0  ;;  %1757 = vmax.xlane.f32.xlu0 %v1756_v3 }
 0xf02   :  { %v3700_v58 = vpop.f32.mrb[38].mxu0  ;;  %v4604_v60 = vadd.f32 %v3324_v17, %v1920_v56 }
 0xf03   :  { %v4602_v5 = vadd.f32 %v3700_v58, %v3324_v17  ;;  %1760 = vmax.xlane.f32.xlu1 %v1759_v46  ;;  %v1923_v47 = vpop.f32.mrb[39].mxu0 }
 0xf04   :  { %v4606_v48 = vadd.f32 %v3324_v17, %v1923_v47 }
 0xf05   :  { %v2075_v61 = vpack.c.bf16 %v4602_v5, %v4593_v0 }
 0xf06   :  { %v2074_v14 = vpack.c.bf16 %v4606_v48, %v4604_v60 }
 0xf07   :  { %1763 = vmax.xlane.f32.xlu1 %v1762_v62 }
 0xf08   :  { %v3715_v6 = vpop.f32.mrb[40].mxu0 }
 0xf09   :  { %v2059_v63 = vpop.f32.mrb[41].mxu0  ;;  %v2068_v4 = vadd.f32 %v3715_v6, %v3340_v52  ;;  %v3835_v6 = vld [vmem:[%s4954_s29 + $0x18] sm:$0xff]  }
 0xf0a   :  { %v3716_v2 = vpop.f32.mrb[42].mxu0  ;;  %v2060_v11 = vadd.f32 %v3340_v52, %v2059_v63 }
 0xf0b   :  { %v2071_v9 = vadd.f32 %v3716_v2, %v3340_v52  ;;  %v2062_v10 = vpop.f32.mrb[43].mxu0 }
 0xf0c   :  { %v2063_v19 = vadd.f32 %v3340_v52, %v2062_v10 }
 0xf0d   :  { %v2187_v20 = vpack.c.bf16 %v2071_v9, %v2068_v4 }
 0xf0e   :  { %v2186_v21 = vpack.c.bf16 %v2063_v19, %v2060_v11 }
 0xf10   :  { %3723 = vmatprep.subr.bf16.mxu0 %v2186_v21 }
 0xf11   :  { %3724 = vmatpush3.bf16.msra.mxu0 %v2186_v21 }
 0xf12   :  { %3725 = vmatprep.subr.bf16.mxu0 %v2187_v20 }
 0xf15   :  { %3726 = vmatpush3.bf16.msra.mxu0 %v2187_v20 }
 0xf8c   :  { %v1755_v22 = vpop.xlane.xlu1 %1754 }
 0xf8d   :  { %v1765_v23 = vsub.f32 %v1749_v43, %v1755_v22 }
 0xf8e   :  { %v1758_v24 = vpop.xlane.xlu0 %1757 }
 0xf8f   :  { %v1769_v27 = vmul.f32 1.442695, %v1765_v23  ;;  %v1766_v28 = vsub.f32 %v1750_v18, %v1758_v24 }
 0xf90   :  { %v1761_v25 = vpop.xlane.xlu1 %1760 }
 0xf91   :  { %v1767_v26 = vsub.f32 %v1751_v53, %v1761_v25  ;;  %v1771_v31 = vmul.f32 1.442695, %v1766_v28 }
 0xf93   :  { %v1773_v29 = vmul.f32 1.442695, %v1767_v26 }
 0xf94   :  { %v1764_v30 = vpop.xlane.xlu1 %1763 }
 0xf95   :  { %3908 = vpow2.f32 %v1773_v29  ;;  %v1768_v32 = vsub.f32 %v1752_v59, %v1764_v30 }
 0xf96   :  { %3910 = vpow2.f32 %v1769_v27 }
 0xf97   :  { %3912 = vpow2.f32 %v1771_v31  ;;  %v1775_v33 = vmul.f32 1.442695, %v1768_v32 }
 0xf99   :  { %3914 = vpow2.f32 %v1775_v33 }
 0xf9f   :  { %v3909_v34 = vpop.eup %3908 }
 0xfa0   :  { %v1783_v35 = vsel %vm150_vm0, %v3909_v34, 0.0  ;;  %v3911_v36 = vpop.eup %3910 }
 0xfa1   :  { %1784 = vadd.xlane.f32.xlu1 %v1783_v35  ;;  %v1777_v37 = vsel %vm150_vm0, %v3911_v36, 0.0  ;;  %v3913_v38 = vpop.eup %3912 }
 0xfa2   :  { %v1780_v39 = vsel %vm150_vm0, %v3913_v38, 0.0 }
 0xfa3   :  { %v3915_v40 = vpop.eup %3914 }
 0xfa4   :  { %v1786_v41 = vsel %vm150_vm0, %v3915_v40, 0.0 }
 0xfa5   :  { %1778 = vadd.xlane.f32.xlu1 %v1777_v37 }
 0xfa9   :  { %1781 = vadd.xlane.f32.xlu1 %v1780_v39 }
 0xfad   :  { %1787 = vadd.xlane.f32.xlu1 %v1786_v41 }
 0xfbe   :  { %1943 = vperm.xlu1 %3802, %v3331_v42  }
 0xfc2   :  { %1948 = vperm.xlu1 %3802, %v3332_v7  }
0x102e   :  { %v1785_v43 = vpop.xlane.xlu1 %1784 }
0x1032   :  { %v1779_v50 = vpop.xlane.xlu1 %1778 }
0x1033   :  { %3916 = vrcp.f32 %v1779_v50 }
0x1036   :  { %v1782_v51 = vpop.xlane.xlu1 %1781 }
0x1037   :  { %3918 = vrcp.f32 %v1782_v51 }
0x1038   :  { %3920 = vrcp.f32 %v1785_v43 }
0x103a   :  { %v1788_v17 = vpop.xlane.xlu1 %1787 }
0x103b   :  { %3922 = vrcp.f32 %v1788_v17 }
0x103d   :  { %v3917_v18 = vpop.eup %3916 }
0x103e   :  { %v1793_v54 = vmul.f32 %v3917_v18, %v3911_v36  ;;  %v1944_v9 = vpop.permute.xlu1 %1943 }
0x1041   :  { %v3919_v53 = vpop.eup %3918 }
0x1042   :  { %v1794_v3 = vmul.f32 %v3919_v53, %v3913_v38  ;;  %v3921_v56 = vpop.eup %3920  ;;  %v1949_v60 = vpop.permute.xlu1 %1948 }
0x1043   :  { %v1795_v59 = vmul.f32 %v3921_v56, %v3909_v34 }
0x1044   :  { %v1797_v58 = vpack.c.bf16 %v1794_v3, %v1793_v54 }
0x1045   :  { %v3923_v46 = vpop.eup %3922 }
0x1046   :  { %v1796_v47 = vmul.f32 %v3923_v46, %v3915_v40  ;;  %3689 = vmatprep.mubr.msk.bf16.mxu1 %vm150_vm0, %v1797_v58 }
0x1048   :  { %v1798_v62 = vpack.c.bf16 %v1796_v47, %v1795_v59 }
0x104a   :  { %3690 = vmatmul.mubr.msk.bf16.vlgmr.msra.gmra.mrb[32].mxu1 %vm150_vm0, %v1798_v62 }
0x104b   :  { %3702 = vmatpush3.bf16.msra.mxu1 %v4520_v55  ;;  %3705 = vmatprep.mubr.msk.bf16.mxu1 %vm4051_vm1, %v4050_v8 }
0x104c   :  { %3703 = vmatprep.subr.bf16.mxu1 %v4050_v8 }
0x104f   :  { %3704 = vmatpush3.bf16.msra.mxu1 %v4527_v57 }
0x1052   :  { %3706 = vmatmul.mubr.msk.bf16.vlgmr.msra.gmra.mrb[36].mxu1 %vm150_vm0, %v3835_v6 }
0x1053   :  { %3719 = vmatprep.mubr.msk.bf16.mxu1 %vm346_vm2, %v2074_v14 }
0x111d   :  { %v4641_v52 = vpop.f32.mrb[32].mxu1 }
0x111e   :  { %v4643_v55 = vpop.f32.mrb[33].mxu1 }
0x111f   :  { %v4645_v63 = vpop.f32.mrb[34].mxu1 }
0x1120   :  { %v1860_v2 = vpack.c.bf16 %v4645_v63, %v4641_v52  ;;  %v4649_v4 = vpop.f32.mrb[35].mxu1 }
0x1121   :  { %v1859_v57 = vpack.c.bf16 %v4649_v4, %v4643_v55 }
0x1125   :  { %v1993_v10 = vpop.f32.mrb[36].mxu1 }
0x1126   :  { %v3707_v11 = vpop.f32.mrb[37].mxu1  ;;  %v1994_v14 = vadd.f32 %v1993_v10, %v1944_v9 }
0x1127   :  { %v1996_v48 = vpop.f32.mrb[38].mxu1 }
0x1128   :  { %v1997_v19 = vadd.f32 %v1996_v48, %v1949_v60  ;;  %v3708_v20 = vpop.f32.mrb[39].mxu1 }
0x1129   :  { %v3837_v20 = vld [vmem:[%s4959_s10 + $0x10] sm:$0xff]  }
0x112a   :  { %v2076_v21 = vpack.c.bf16 %v1997_v19, %v1994_v14  ;;  %v3836_v19 = vld [vmem:[%s4959_s10 + $0x18] sm:$0xff]  }
0x112c   :  { %3717 = vmatprep.subr.bf16.mxu1 %v2076_v21 }
0x112d   :  { %3718 = vmatpush3.bf16.msra.mxu1 %v2076_v21 }
0x112e   :  { %3731 = vmatprep.subr.bf16.mxu1 %v3836_v19 }
0x1130   :  { %3720 = vmatmul.mubr.msk.bf16.vlgmr.msra.gmra.mrb[40].mxu1 %vm346_vm2, %v2075_v61 }
0x1131   :  { %3732 = vmatpush3.bf16.msra.mxu1 %v3836_v19 }
0x1132   :  { %3737 = vmatprep.subr.bf16.mxu1 %v3837_v20 }
0x1203   :  { %v3721_v22 = vpop.f32.mrb[40].mxu1 }
0x1204   :  { %v2117_v23 = vpop.f32.mrb[41].mxu1  ;;  %v2134_v24 = vmul.f32 0.25, %v3721_v22 }
0x1205   :  { %v2132_v25 = vmul.f32 0.25, %v2117_v23  ;;  %v3722_v26 = vpop.f32.mrb[42].mxu1 }
0x1206   :  { %v2120_v27 = vpop.f32.mrb[43].mxu1  ;;  %v2135_v30 = vmul.f32 0.25, %v3722_v26  ;;  %v2138_v33 = vadd.f32 %v4589_v15, %v2134_v24 }
0x1207   :  { %v2133_v28 = vmul.f32 0.25, %v2120_v27  ;;  %v2136_v29 = vadd.f32 %v4573_v44, %v2132_v25  ;;  %v3358_v27 = vld [vmem:[%s4960_s9 + $0x1] ss:$0 sm:$0xff] }
0x1208   :  { %v2146_v5 = vsel %vm150_vm0, %v2138_v33, -inf  ;;  %v2139_v61 = vadd.f32 %v4599_v1, %v2135_v30 }
0x1209   :  { %v2140_v31 = vsel %vm150_vm0, %v2136_v29, -inf  ;;  %v2137_v32 = vadd.f32 %v4583_v16, %v2133_v28 }
0x120a   :  { %2141 = vmax.xlane.f32.xlu0 %v2140_v31  ;;  %v2149_v34 = vsel %vm150_vm0, %v2139_v61, -inf }
0x120b   :  { %v2143_v0 = vsel %vm150_vm0, %v2137_v32, -inf }
0x120c   :  { %2144 = vmax.xlane.f32.xlu1 %v2143_v0 }
0x120e   :  { %2147 = vmax.xlane.f32.xlu0 %v2146_v5 }
0x1212   :  { %2150 = vmax.xlane.f32.xlu0 %v2149_v34 }
0x1297   :  { %v2142_v44 = vpop.xlane.xlu0 %2141 }
0x1298   :  { %v2152_v35 = vsub.f32 %v2136_v29, %v2142_v44 }
0x1299   :  { %v2145_v36 = vpop.xlane.xlu1 %2144 }
0x129a   :  { %v2156_v16 = vmul.f32 1.442695, %v2152_v35  ;;  %v2153_v39 = vsub.f32 %v2137_v32, %v2145_v36 }
0x129b   :  { %v2148_v37 = vpop.xlane.xlu0 %2147 }
0x129c   :  { %v2154_v38 = vsub.f32 %v2138_v33, %v2148_v37  ;;  %v2158_v41 = vmul.f32 1.442695, %v2153_v39 }
0x129e   :  { %v2160_v15 = vmul.f32 1.442695, %v2154_v38 }
0x129f   :  { %v2151_v40 = vpop.xlane.xlu0 %2150 }
0x12a0   :  { %3924 = vpow2.f32 %v2160_v15  ;;  %v2155_v42 = vsub.f32 %v2139_v61, %v2151_v40 }
0x12a1   :  { %3926 = vpow2.f32 %v2156_v16 }
0x12a2   :  { %3928 = vpow2.f32 %v2158_v41  ;;  %v2162_v7 = vmul.f32 1.442695, %v2155_v42 }
0x12a4   :  { %3930 = vpow2.f32 %v2162_v7 }
0x12aa   :  { %v3925_v1 = vpop.eup %3924 }
0x12ab   :  { %v2170_v43 = vsel %vm150_vm0, %v3925_v1, 0.0  ;;  %v3927_v50 = vpop.eup %3926 }
0x12ac   :  { %2171 = vadd.xlane.f32.xlu0 %v2170_v43  ;;  %v2164_v51 = vsel %vm150_vm0, %v3927_v50, 0.0  ;;  %v3929_v17 = vpop.eup %3928 }
0x12ad   :  { %v2167_v18 = vsel %vm150_vm0, %v3929_v17, 0.0 }
0x12ae   :  { %v3931_v53 = vpop.eup %3930 }
0x12af   :  { %v2173_v54 = vsel %vm150_vm0, %v3931_v53, 0.0 }
0x12b0   :  { %2165 = vadd.xlane.f32.xlu0 %v2164_v51 }
0x12b4   :  { %2168 = vadd.xlane.f32.xlu0 %v2167_v18  ;;  %v3839_v18 = vld [vmem:[%s4911_s13 + $0x18] sm:$0xff]  }
0x12b8   :  { %2174 = vadd.xlane.f32.xlu0 %v2173_v54 }
0x1339   :  { %v2172_v3 = vpop.xlane.xlu0 %2171 }
0x133d   :  { %v2166_v56 = vpop.xlane.xlu0 %2165 }
0x133e   :  { %3932 = vrcp.f32 %v2166_v56 }
0x1341   :  { %v2169_v58 = vpop.xlane.xlu0 %2168 }
0x1342   :  { %3934 = vrcp.f32 %v2169_v58 }
0x1343   :  { %3936 = vrcp.f32 %v2172_v3 }
0x1345   :  { %v2175_v46 = vpop.xlane.xlu0 %2174 }
0x1346   :  { %3938 = vrcp.f32 %v2175_v46 }
0x1348   :  { %v3933_v59 = vpop.eup %3932 }
0x1349   :  { %v2180_v62 = vmul.f32 %v3933_v59, %v3927_v50 }
0x134c   :  { %v3935_v47 = vpop.eup %3934 }
0x134d   :  { %v2181_v6 = vmul.f32 %v3935_v47, %v3929_v17  ;;  %v3937_v9 = vpop.eup %3936  ;;  %v3838_v17 = vld [vmem:[%s4911_s13 + $0x10] sm:$0xff]  }
0x134e   :  { %v2182_v60 = vmul.f32 %v3937_v9, %v3925_v1  ;;  %3743 = vmatprep.subr.bf16.mxu0 %v3838_v17 }
0x134f   :  { %v2184_v10 = vpack.c.bf16 %v2181_v6, %v2180_v62 }
0x1350   :  { %v3939_v11 = vpop.eup %3938 }
0x1351   :  { %v2183_v48 = vmul.f32 %v3939_v11, %v3931_v53  ;;  %3727 = vmatprep.mubr.msk.bf16.mxu0 %vm150_vm0, %v2184_v10 }
0x1353   :  { %v2185_v14 = vpack.c.bf16 %v2183_v48, %v2182_v60  ;;  %v3361_v48 = vld [vmem:[%s4909_s11 + $0x1] ss:$0 sm:$0xff] }
0x1355   :  { %3728 = vmatmul.mubr.msk.bf16.vlgmr.msra.gmra.mrb[44].mxu0 %vm150_vm0, %v2185_v14 }
0x1356   :  { %3744 = vmatpush3.bf16.msra.mxu0 %v3838_v17 }
0x1357   :  { %3745 = vmatprep.subr.bf16.mxu0 %v3839_v18 }
0x135a   :  { %3746 = vmatpush3.bf16.msra.mxu0 %v3839_v18 }
0x1428   :  { %v3729_v21 = vpop.f32.mrb[44].mxu0 }
0x1429   :  { %v2228_v22 = vpop.f32.mrb[45].mxu0 }
0x142a   :  { %v3730_v23 = vpop.f32.mrb[46].mxu0 }
0x142b   :  { %v2247_v24 = vpack.c.bf16 %v3730_v23, %v3729_v21  ;;  %v2231_v25 = vpop.f32.mrb[47].mxu0  ;;  %v3362_v21 = vld [vmem:[%s4910_s12 + $0x1] ss:$0 sm:$0xff] }
0x142c   :  { %v2246_v26 = vpack.c.bf16 %v2231_v25, %v2228_v22 }
0x142e   :  { %3733 = vmatprep.mubr.msk.bf16.mxu1 %vm346_vm2, %v2246_v26 }
0x142f   :  { %3734 = vmatmul.mubr.msk.bf16.vlgmr.msra.gmra.mrb[44].mxu1 %vm346_vm2, %v2247_v24 }
0x1430   :  { %3739 = vmatprep.mubr.msk.bf16.mxu1 %vm346_vm2, %v1859_v57  ;;  %3738 = vmatpush3.bf16.msra.mxu1 %v3837_v20 }
0x143b   :  { %3740 = vmatmul.mubr.msk.bf16.vlgmr.msra.gmra.mrb[44].mxu1 %vm346_vm2, %v1860_v2 }
0x150e   :  { %v3741_v28 = vpop.f32.mrb[44].mxu1 }
0x150f   :  { %v2355_v29 = vpop.f32.mrb[45].mxu1  ;;  %v2380_v57 = vadd.f32 %v3741_v28, %v3358_v27 }
0x1510   :  { %v2378_v30 = vadd.f32 %v3358_v27, %v2355_v29  ;;  %v3742_v31 = vpop.f32.mrb[46].mxu1 }
0x1511   :  { %v2381_v32 = vadd.f32 %v3742_v31, %v3358_v27  ;;  %v2358_v33 = vpop.f32.mrb[47].mxu1  ;;  %v2384_v61 = vadd.f32 %v2380_v57, %v4508_v13  ;;  %v3842_v57 = vld [vmem:[%s4913_s15 + $0x50] sm:$0xff]  }
0x1512   :  { %v2379_v0 = vadd.f32 %v3358_v27, %v2358_v33  ;;  %v2382_v55 = vadd.f32 %v2378_v30, %v4494_v45 }
0x1513   :  { %v2385_v4 = vadd.f32 %v2381_v32, %v4503_v12  ;;  %v2396_v34 = vsel %vm150_vm0, %v2384_v61, 0.0 }
0x1514   :  { %v2390_v52 = vsel %vm150_vm0, %v2382_v55, 0.0  ;;  %v2383_v63 = vadd.f32 %v2379_v0, %v4497_v49 }
0x1515   :  { %2391 = vadd.xlane.f32.xlu0 %v2390_v52  ;;  %v2399_v2 = vsel %vm150_vm0, %v2385_v4, 0.0  ;;  %v3843_v52 = vld [vmem:[%s4913_s15 + $0x58] sm:$0xff]  }
0x1516   :  { %2400 = vadd.xlane.f32.xlu1 %v2399_v2  ;;  %v2393_v5 = vsel %vm150_vm0, %v2383_v63, 0.0  ;;  %v3845_v2 = vld [vmem:[%s4913_s15 + $0x68] sm:$0xff]  }
0x1519   :  { %2394 = vadd.xlane.f32.xlu0 %v2393_v5  ;;  %v3846_v5 = vld [vmem:[%s4913_s15 + $0x70] sm:$0xff]  }
0x151d   :  { %2397 = vadd.xlane.f32.xlu0 %v2396_v34  ;;  %v3368_v34 = vld [vmem:[%s4912_s14 + $0x1] ss:$0 sm:$0xff]  ;;  %s4053_s14 = smov [#allocation2]  }
0x15a2   :  { %v2392_v45 = vpop.xlane.xlu0 %2391 }
0x15a3   :  { %v2402_v44 = vmul.f32 0.03125, %v2392_v45  ;;  %v2401_v12 = vpop.xlane.xlu1 %2400 }
0x15a4   :  { %v2405_v36 = vmul.f32 0.03125, %v2401_v12 }
0x15a5   :  { %v2406_v35 = vsub.f32 %v2382_v55, %v2402_v44  ;;  %v3840_v55 = vld [vmem:[%s4913_s15 + $0x40] sm:$0xff]  }
0x15a6   :  { %v2395_v37 = vpop.xlane.xlu0 %2394  ;;  %v2409_v16 = vsub.f32 %v2385_v4, %v2405_v36  ;;  %3751 = vmatprep.subr.bf16.mxu0 %v3840_v55  ;;  %v3841_v4 = vld [vmem:[%s4913_s15 + $0x48] sm:$0xff]  }
0x15a7   :  { %v2403_v38 = vmul.f32 0.03125, %v2395_v37  ;;  %v2410_v49 = vmul.f32 %v2406_v35, %v2406_v35 }
0x15a8   :  { %v2413_v1 = vmul.f32 %v2409_v16, %v2409_v16 }
0x15a9   :  { %v2407_v39 = vsub.f32 %v2383_v63, %v2403_v38  ;;  %v2414_v15 = vsel %vm150_vm0, %v2410_v49, 0.0  ;;  %v3844_v63 = vld [vmem:[%s4913_s15 + $0x60] sm:$0xff]  }
0x15aa   :  { %2415 = vadd.xlane.f32.xlu0 %v2414_v15  ;;  %v2398_v40 = vpop.xlane.xlu0 %2397  ;;  %v2423_v50 = vsel %vm150_vm0, %v2413_v1, 0.0 }
0x15ab   :  { %v2404_v41 = vmul.f32 0.03125, %v2398_v40  ;;  %v2411_v13 = vmul.f32 %v2407_v39, %v2407_v39 }
0x15ad   :  { %v2408_v42 = vsub.f32 %v2384_v61, %v2404_v41  ;;  %v2417_v7 = vsel %vm150_vm0, %v2411_v13, 0.0  ;;  %v3847_v61 = vld [vmem:[%s4913_s15 + $0x78] sm:$0xff]   ;;  %s3189_s15 = sshll.u32 %s4053_s14, 4  ;;  %s3190_s15 = int_to_ptr.vmem [resolvable:$true] %s3189_s15 }
0x15ae   :  { %2418 = vadd.xlane.f32.xlu1 %v2417_v7  ;;  %p4007_p1 = scmp.lt.s32.totalorder %s3190_s15, %s3190_s15 }
0x15af   :  { %v2412_v43 = vmul.f32 %v2408_v42, %v2408_v42 }
0x15b1   :  { %v2420_v51 = vsel %vm150_vm0, %v2412_v43, 0.0 }
0x15b2   :  { %2424 = vadd.xlane.f32.xlu1 %v2423_v50  ;;  %2421 = vadd.xlane.f32.xlu0 %v2420_v51 }
0x1637   :  { %v2416_v53 = vpop.xlane.xlu0 %2415 }
0x1638   :  { %v2426_v54 = vmul.f32 0.03125, %v2416_v53 }
0x163a   :  { %v2430_v3 = vadd.f32 1e-12, %v2426_v54 }
0x163b   :  { %v2419_v56 = vpop.xlane.xlu1 %2418 }
0x163c   :  { %3940 = vrsqrt.f32 %v2430_v3  ;;  %v2427_v58 = vmul.f32 0.03125, %v2419_v56 }
0x163e   :  { %v2431_v46 = vadd.f32 1e-12, %v2427_v58 }
0x163f   :  { %v2425_v59 = vpop.xlane.xlu1 %2424  ;;  %v2422_v47 = vpop.xlane.xlu0 %2421 }
0x1640   :  { %3942 = vrsqrt.f32 %v2431_v46  ;;  %v2429_v62 = vmul.f32 0.03125, %v2425_v59  ;;  %v2428_v6 = vmul.f32 0.03125, %v2422_v47 }
0x1642   :  { %v2433_v9 = vadd.f32 1e-12, %v2429_v62  ;;  %v2432_v10 = vadd.f32 1e-12, %v2428_v6 }
0x1644   :  { %3944 = vrsqrt.f32 %v2433_v9 }
0x1645   :  { %3946 = vrsqrt.f32 %v2432_v10 }
0x1646   :  { %v3941_v11 = vpop.eup %3940 }
0x1647   :  { %v2438_v60 = vmul.f32 %v3941_v11, %v2406_v35 }
0x1649   :  { %v2448_v20 = vmul.f32 %v3361_v48, %v2438_v60 }
0x164a   :  { %v3943_v14 = vpop.eup %3942 }
0x164b   :  { %v2439_v19 = vmul.f32 %v3943_v14, %v2407_v39  ;;  %v4714_v26 = vadd.f32 %v3362_v21, %v2448_v20 }
0x164d   :  { %v2449_v22 = vmul.f32 %v3361_v48, %v2439_v19 }
0x164e   :  { %v3945_v23 = vpop.eup %3944 }
0x164f   :  { %v3947_v24 = vpop.eup %3946  ;;  %v2441_v25 = vmul.f32 %v3945_v23, %v2409_v16  ;;  %v4716_v27 = vadd.f32 %v3362_v21, %v2449_v22 }
0x1650   :  { %v2440_v28 = vmul.f32 %v3947_v24, %v2408_v42 }
0x1651   :  { %v2451_v29 = vmul.f32 %v3361_v48, %v2441_v25  ;;  %v2467_v30 = vpack.c.bf16 %v4716_v27, %v4714_v26 }
0x1652   :  { %v2450_v31 = vmul.f32 %v3361_v48, %v2440_v28 }
0x1653   :  { %3747 = vmatprep.mubr.msk.bf16.mxu0 %vm150_vm0, %v2467_v30  ;;  %v4721_v32 = vadd.f32 %v3362_v21, %v2451_v29  ;;  %v3390_v29 = vld [vmem:[%s4914_s16 + $0x1] ss:$0 sm:$0xff]  ;;  %s4002_s16 = scalar_lea.vmem %s3190_s15, 512 }
0x1654   :  { %v4723_v33 = vadd.f32 %v3362_v21, %v2450_v31  ;;  %p4003_p0 = scmp.ne.s32.totalorder %s3190_s15, %s4002_s16  ;;  %p4008_p2 = scmp.lt.s32.totalorder %s4002_s16, %s4002_s16 }
0x1656   :  { %v2468_v0 = vpack.c.bf16 %v4721_v32, %v4723_v33  ;;  %p4009_p3 = por %p4008_p2, %p4007_p1 }
0x1658   :  { %3748 = vmatmul.mubr.msk.bf16.vlgmr.msra.gmra.mrb[48].mxu0 %vm150_vm0, %v2468_v0  ;;  %p4010_p4 = pnand %p4009_p3, %p4003_p0 }
0x1659   :  { %3752 = vmatpush3.bf16.msra.mxu0 %v3840_v55 }
0x165a   :  { %3753 = vmatprep.subr.bf16.mxu0 %v3841_v4 }
0x165d   :  { %3754 = vmatpush3.bf16.msra.mxu0 %v3841_v4 }
0x165e   :  { %3755 = vmatprep.subr.bf16.mxu0 %v3842_v57 }
0x1661   :  { %3756 = vmatpush3.bf16.msra.mxu0 %v3842_v57 }
0x1662   :  { %3757 = vmatprep.subr.bf16.mxu0 %v3843_v52 }
0x1665   :  { %3758 = vmatpush3.bf16.msra.mxu0 %v3843_v52 }
0x1666   :  { %3759 = vmatprep.subr.bf16.mxu0 %v3844_v63 }
0x1669   :  { %3760 = vmatpush3.bf16.msra.mxu0 %v3844_v63 }
0x166a   :  { %3761 = vmatprep.subr.bf16.mxu0 %v3845_v2 }
0x166d   :  { %3762 = vmatpush3.bf16.msra.mxu0 %v3845_v2 }
0x166e   :  { %3763 = vmatprep.subr.bf16.mxu0 %v3846_v5 }
0x1671   :  { %3764 = vmatpush3.bf16.msra.mxu0 %v3846_v5 }
0x1672   :  { %3765 = vmatprep.subr.bf16.mxu0 %v3847_v61 }
0x1675   :  { %3766 = vmatpush3.bf16.msra.mxu0 %v3847_v61 }
0x172b   :  { %v3749_v45 = vpop.f32.mrb[48].mxu0 }
0x172c   :  { %v2538_v44 = vadd.f32 %v3749_v45, %v3368_v34  ;;  %v2529_v12 = vpop.f32.mrb[49].mxu0 }
0x172d   :  { %v2530_v35 = vadd.f32 %v3368_v34, %v2529_v12  ;;  %v3750_v36 = vpop.f32.mrb[50].mxu0 }
0x172e   :  { %v2550_v37 = vmul.f32 0.044715, %v2538_v44  ;;  %v2541_v38 = vadd.f32 %v3750_v36, %v3368_v34  ;;  %v2532_v49 = vpop.f32.mrb[51].mxu0  ;;  %v2546_v11 = vmul.f32 0.5, %v2538_v44 }
0x172f   :  { %v2548_v16 = vmul.f32 0.044715, %v2530_v35  ;;  %v2533_v39 = vadd.f32 %v3368_v34, %v2532_v49  ;;  %v2544_v14 = vmul.f32 0.5, %v2530_v35 }
0x1730   :  { %v2554_v15 = vmul.f32 %v2550_v37, %v2538_v44  ;;  %v2551_v40 = vmul.f32 0.044715, %v2541_v38  ;;  %v2547_v60 = vmul.f32 0.5, %v2541_v38 }
0x1731   :  { %v2552_v41 = vmul.f32 %v2548_v16, %v2530_v35  ;;  %v2549_v13 = vmul.f32 0.044715, %v2533_v39  ;;  %v2545_v19 = vmul.f32 0.5, %v2533_v39 }
0x1732   :  { %v2558_v42 = vmul.f32 %v2554_v15, %v2538_v44  ;;  %v2555_v7 = vmul.f32 %v2551_v40, %v2541_v38 }
0x1733   :  { %v2556_v1 = vmul.f32 %v2552_v41, %v2530_v35  ;;  %v2553_v43 = vmul.f32 %v2549_v13, %v2533_v39 }
0x1734   :  { %v2562_v50 = vadd.f32 %v2558_v42, %v2538_v44  ;;  %v2559_v51 = vmul.f32 %v2555_v7, %v2541_v38 }
0x1735   :  { %v2557_v17 = vmul.f32 %v2553_v43, %v2533_v39  ;;  %v2560_v18 = vadd.f32 %v2556_v1, %v2530_v35 }
0x1736   :  { %v2566_v53 = vmul.f32 0.7978846, %v2562_v50  ;;  %v2563_v54 = vadd.f32 %v2559_v51, %v2541_v38 }
0x1737   :  { %v2561_v3 = vadd.f32 %v2557_v17, %v2533_v39  ;;  %v2564_v56 = vmul.f32 0.7978846, %v2560_v18  ;;  %v3848_v17 = vld [vmem:[%s4917_s19] sm:$0xff]   ;;  %v3849_v18 = vld [vmem:[%s4917_s19 + $0x8] sm:$0xff]  }
0x1738   :  { %3948 = vtanh.f32 %v2566_v53  ;;  %v2567_v58 = vmul.f32 0.7978846, %v2563_v54  ;;  %3771 = vmatprep.subr.bf16.mxu1 %v3848_v17 }
0x1739   :  { %v2565_v46 = vmul.f32 0.7978846, %v2561_v3  ;;  %3950 = vtanh.f32 %v2564_v56  ;;  %3772 = vmatpush3.bf16.msra.mxu1 %v3848_v17 }
0x173a   :  { %3952 = vtanh.f32 %v2567_v58  ;;  %3773 = vmatprep.subr.bf16.mxu1 %v3849_v18 }
0x173b   :  { %3954 = vtanh.f32 %v2565_v46 }
0x173d   :  { %3774 = vmatpush3.bf16.msra.mxu1 %v3849_v18 }
0x1742   :  { %v3949_v59 = vpop.eup %3948 }
0x1743   :  { %v3951_v47 = vpop.eup %3950  ;;  %v2574_v62 = vadd.f32 1.0, %v3949_v59 }
0x1744   :  { %v3953_v6 = vpop.eup %3952  ;;  %v2572_v9 = vadd.f32 1.0, %v3951_v47 }
0x1745   :  { %v3955_v10 = vpop.eup %3954  ;;  %v2575_v48 = vadd.f32 1.0, %v3953_v6  ;;  %v2578_v21 = vmul.f32 %v2574_v62, %v2546_v11 }
0x1746   :  { %v2573_v20 = vadd.f32 1.0, %v3955_v10  ;;  %v2576_v23 = vmul.f32 %v2572_v9, %v2544_v14 }
0x1747   :  { %v2579_v22 = vmul.f32 %v2575_v48, %v2547_v60  ;;  %v3401_v60 = vld [vmem:[%s4915_s17 + $0x1] ss:$0 sm:$0xff] }
0x1748   :  { %v2577_v24 = vmul.f32 %v2573_v20, %v2545_v19 }
0x1749   :  { %v2598_v25 = vpack.c.bf16 %v2579_v22, %v2578_v21  ;;  %v3402_v22 = vld [vmem:[%s4916_s18 + $0x1] ss:$0 sm:$0xff] }
0x174a   :  { %v2597_v28 = vpack.c.bf16 %v2577_v24, %v2576_v23 }
0x174c   :  { %3767 = vmatprep.mubr.bf16.mxu0 %v2597_v28 }
0x174d   :  { %3768 = vmatmul.mubr.bf16.vlgmr.msra.gmra.mrb[52].mxu0 %v2598_v25 }
0x1820   :  { %v3769_v30 = vpop.f32.mrb[52].mxu0 }
0x1821   :  { %v2689_v31 = vpop.f32.mrb[53].mxu0  ;;  %v2698_v0 = vadd.f32 %v3769_v30, %v3390_v29 }
0x1822   :  { %v2690_v55 = vadd.f32 %v3390_v29, %v2689_v31  ;;  %v3770_v4 = vpop.f32.mrb[54].mxu0 }
0x1823   :  { %v2692_v57 = vpop.f32.mrb[55].mxu0  ;;  %v2701_v52 = vadd.f32 %v3770_v4, %v3390_v29  ;;  %v2706_v34 = vadd.f32 %v2698_v0, %v4723_v33 }
0x1824   :  { %v2693_v63 = vadd.f32 %v3390_v29, %v2692_v57  ;;  %v2704_v2 = vadd.f32 %v2690_v55, %v4714_v26 }
0x1825   :  { %v2707_v44 = vadd.f32 %v2701_v52, %v4721_v32  ;;  %v2718_v12 = vsel %vm150_vm0, %v2706_v34, 0.0 }
0x1826   :  { %v2712_v5 = vsel %vm150_vm0, %v2704_v2, 0.0  ;;  %v2705_v61 = vadd.f32 %v2693_v63, %v4716_v27  ;;  %v3403_v63 = vld [vmem:[%s4918_s20] ss:$0 sm:$0xff] }
0x1827   :  { %2713 = vadd.xlane.f32.xlu0 %v2712_v5  ;;  %v2721_v35 = vsel %vm150_vm0, %v2707_v44, 0.0 }
0x1828   :  { %v2715_v45 = vsel %vm150_vm0, %v2705_v61, 0.0 }
0x1829   :  { %2716 = vadd.xlane.f32.xlu1 %v2715_v45 }
0x182b   :  { %2719 = vadd.xlane.f32.xlu0 %v2718_v12 }
0x182d   :  { %2722 = vadd.xlane.f32.xlu1 %v2721_v35 }
0x18b4   :  { %v2714_v36 = vpop.xlane.xlu0 %2713 }
0x18b5   :  { %v2724_v26 = vmul.f32 0.03125, %v2714_v36 }
0x18b6   :  { %v2717_v37 = vpop.xlane.xlu1 %2716 }
0x18b7   :  { %v2728_v38 = vsub.f32 %v2704_v2, %v2724_v26  ;;  %v2725_v49 = vmul.f32 0.03125, %v2717_v37 }
0x18b8   :  { %v2720_v27 = vpop.xlane.xlu0 %2719 }
0x18b9   :  { %v2729_v16 = vsub.f32 %v2705_v61, %v2725_v49  ;;  %v2726_v33 = vmul.f32 0.03125, %v2720_v27  ;;  %v2732_v39 = vmul.f32 %v2728_v38, %v2728_v38 }
0x18ba   :  { %v2723_v15 = vpop.xlane.xlu1 %2722 }
0x18bb   :  { %v2730_v40 = vsub.f32 %v2706_v34, %v2726_v33  ;;  %v2727_v41 = vmul.f32 0.03125, %v2723_v15  ;;  %v2736_v32 = vsel %vm150_vm0, %v2732_v39, 0.0  ;;  %v2733_v13 = vmul.f32 %v2729_v16, %v2729_v16 }
0x18bc   :  { %2737 = vadd.xlane.f32.xlu0 %v2736_v32 }
0x18bd   :  { %v2731_v42 = vsub.f32 %v2707_v44, %v2727_v41  ;;  %v2739_v7 = vsel %vm150_vm0, %v2733_v13, 0.0  ;;  %v2734_v1 = vmul.f32 %v2730_v40, %v2730_v40 }
0x18be   :  { %2740 = vadd.xlane.f32.xlu1 %v2739_v7 }
0x18bf   :  { %v2742_v43 = vsel %vm150_vm0, %v2734_v1, 0.0  ;;  %v2735_v50 = vmul.f32 %v2731_v42, %v2731_v42 }
0x18c0   :  { %2743 = vadd.xlane.f32.xlu0 %v2742_v43 }
0x18c1   :  { %v2745_v51 = vsel %vm150_vm0, %v2735_v50, 0.0 }
0x18c2   :  { %2746 = vadd.xlane.f32.xlu1 %v2745_v51 }
0x1949   :  { %v2738_v53 = vpop.xlane.xlu0 %2737 }
0x194a   :  { %v2748_v54 = vmul.f32 0.03125, %v2738_v53 }
0x194b   :  { %v2741_v3 = vpop.xlane.xlu1 %2740 }
0x194c   :  { %v2752_v56 = vadd.f32 1e-12, %v2748_v54  ;;  %v2749_v58 = vmul.f32 0.03125, %v2741_v3 }
0x194d   :  { %v2744_v46 = vpop.xlane.xlu0 %2743 }
0x194e   :  { %3956 = vrsqrt.f32 %v2752_v56  ;;  %v2753_v59 = vadd.f32 1e-12, %v2749_v58  ;;  %v2750_v47 = vmul.f32 0.03125, %v2744_v46 }
0x194f   :  { %v2747_v62 = vpop.xlane.xlu1 %2746 }
0x1950   :  { %3958 = vrsqrt.f32 %v2753_v59  ;;  %v2754_v6 = vadd.f32 1e-12, %v2750_v47  ;;  %v2751_v9 = vmul.f32 0.03125, %v2747_v62 }
0x1952   :  { %3960 = vrsqrt.f32 %v2754_v6  ;;  %v2755_v10 = vadd.f32 1e-12, %v2751_v9 }
0x1954   :  { %3962 = vrsqrt.f32 %v2755_v10 }
0x1958   :  { %v3957_v11 = vpop.eup %3956 }
0x1959   :  { %v2760_v48 = vmul.f32 %v3957_v11, %v2728_v38 }
0x195a   :  { %v3959_v14 = vpop.eup %3958 }
0x195b   :  { %v2761_v19 = vmul.f32 %v3959_v14, %v2729_v16  ;;  %v2770_v20 = vmul.f32 %v3401_v60, %v2760_v48 }
0x195c   :  { %v3961_v21 = vpop.eup %3960 }
0x195d   :  { %v2762_v23 = vmul.f32 %v3961_v21, %v2730_v40  ;;  %v2771_v24 = vmul.f32 %v3401_v60, %v2761_v19  ;;  %v2780_v30 = vadd.f32 %v3402_v22, %v2770_v20 }
0x195e   :  { %v3963_v25 = vpop.eup %3962 }
0x195f   :  { %v2772_v28 = vmul.f32 %v3401_v60, %v2762_v23  ;;  %v2763_v29 = vmul.f32 %v3963_v25, %v2731_v42  ;;  %v2781_v31 = vadd.f32 %v3402_v22, %v2771_v24 }
0x1961   :  { %v2773_v0 = vmul.f32 %v3401_v60, %v2763_v29  ;;  %v2792_v55 = vpack.c.bf16 %v2781_v31, %v2780_v30  ;;  %v2782_v4 = vadd.f32 %v3402_v22, %v2772_v28 }
0x1963   :  { %3775 = vmatprep.mubr.msk.bf16.mxu1 %vm150_vm0, %v2792_v55  ;;  %v2783_v57 = vadd.f32 %v3402_v22, %v2773_v0 }
0x1965   :  { %v2793_v52 = vpack.c.bf16 %v2783_v57, %v2782_v4 }
0x1967   :  { %3776 = vmatmul.mubr.msk.bf16.vlgmr.msra.gmra.mrb[48].mxu1 %vm150_vm0, %v2793_v52 }
0x1a3a   :  { %v3777_v2 = vpop.f32.mrb[48].mxu1 }
0x1a3b   :  { %v2862_v5 = vadd.f32 %v3777_v2, %v3403_v63  ;;  %v2853_v61 = vpop.f32.mrb[49].mxu1 }
0x1a3c   :  { %v2854_v34 = vadd.f32 %v3403_v63, %v2853_v61  ;;  %v3778_v45 = vpop.f32.mrb[50].mxu1 }
0x1a3d   :  { %v2874_v44 = vmul.f32 0.044715, %v2862_v5  ;;  %v2865_v12 = vadd.f32 %v3778_v45, %v3403_v63  ;;  %v2856_v35 = vpop.f32.mrb[51].mxu1  ;;  %v2870_v46 = vmul.f32 0.5, %v2862_v5 }
0x1a3e   :  { %v2872_v36 = vmul.f32 0.044715, %v2854_v34  ;;  %v2857_v26 = vadd.f32 %v3403_v63, %v2856_v35  ;;  %v2868_v54 = vmul.f32 0.5, %v2854_v34 }
0x1a3f   :  { %v2875_v37 = vmul.f32 0.044715, %v2865_v12  ;;  %v2878_v38 = vmul.f32 %v2874_v44, %v2862_v5  ;;  %v2871_v60 = vmul.f32 0.5, %v2865_v12  ;;  %v3850_v44 = vld [vmem:[%s4921_s23] sm:$0xff]  }
0x1a40   :  { %v2873_v49 = vmul.f32 0.044715, %v2857_v26  ;;  %v2876_v27 = vmul.f32 %v2872_v36, %v2854_v34  ;;  %v2869_v47 = vmul.f32 0.5, %v2857_v26  ;;  %3779 = vmatprep.subr.bf16.mxu1 %v3850_v44 }
0x1a41   :  { %v2882_v16 = vmul.f32 %v2878_v38, %v2862_v5  ;;  %v2879_v33 = vmul.f32 %v2875_v37, %v2865_v12  ;;  %3780 = vmatpush3.bf16.msra.mxu1 %v3850_v44 }
0x1a42   :  { %v2880_v39 = vmul.f32 %v2876_v27, %v2854_v34  ;;  %v2877_v15 = vmul.f32 %v2873_v49, %v2857_v26 }
0x1a43   :  { %v2886_v40 = vadd.f32 %v2882_v16, %v2862_v5  ;;  %v2883_v41 = vmul.f32 %v2879_v33, %v2865_v12 }
0x1a44   :  { %v2884_v32 = vadd.f32 %v2880_v39, %v2854_v34  ;;  %v2881_v13 = vmul.f32 %v2877_v15, %v2857_v26 }
0x1a45   :  { %v2890_v42 = vmul.f32 0.7978846, %v2886_v40  ;;  %v2887_v7 = vadd.f32 %v2883_v41, %v2865_v12  ;;  %v3851_v12 = vld [vmem:[%s4921_s23 + $0x8] sm:$0xff]  }
0x1a46   :  { %v2888_v1 = vmul.f32 0.7978846, %v2884_v32  ;;  %v2885_v43 = vadd.f32 %v2881_v13, %v2857_v26  ;;  %3781 = vmatprep.subr.bf16.mxu1 %v3851_v12  ;;  %v3408_v32 = vld [vmem:[%s4919_s21] ss:$0 sm:$0xff] }
0x1a47   :  { %3964 = vtanh.f32 %v2890_v42  ;;  %v2891_v50 = vmul.f32 0.7978846, %v2887_v7  ;;  %3782 = vmatpush3.bf16.msra.mxu1 %v3851_v12 }
0x1a48   :  { %3966 = vtanh.f32 %v2888_v1  ;;  %v2889_v51 = vmul.f32 0.7978846, %v2885_v43 }
0x1a49   :  { %3968 = vtanh.f32 %v2891_v50  ;;  %v3409_v50 = vld [vmem:[%s4920_s22] ss:$0 sm:$0xff] }
0x1a4a   :  { %3970 = vtanh.f32 %v2889_v51 }
0x1a51   :  { %v3965_v17 = vpop.eup %3964 }
0x1a52   :  { %v3967_v18 = vpop.eup %3966  ;;  %v2898_v56 = vadd.f32 1.0, %v3965_v17 }
0x1a53   :  { %v3969_v53 = vpop.eup %3968  ;;  %v2896_v3 = vadd.f32 1.0, %v3967_v18 }
0x1a54   :  { %v3971_v58 = vpop.eup %3970  ;;  %v2899_v6 = vadd.f32 1.0, %v3969_v53  ;;  %v2902_v11 = vmul.f32 %v2898_v56, %v2870_v46 }
0x1a55   :  { %v2900_v59 = vmul.f32 %v2896_v3, %v2868_v54  ;;  %v2897_v62 = vadd.f32 1.0, %v3971_v58 }
0x1a56   :  { %v2903_v14 = vmul.f32 %v2899_v6, %v2871_v60  ;;  %v2912_v19 = vsel %vm150_vm0, %v2902_v11, 0.0  ;;  %v3410_v6 = vld [vmem:[%s4922_s24] ss:$0 sm:$0xff] }
0x1a57   :  { %v2906_v9 = vsel %vm150_vm0, %v2900_v59, 0.0  ;;  %v2901_v10 = vmul.f32 %v2897_v62, %v2869_v47 }
0x1a58   :  { %2907 = vadd.xlane.f32.xlu0 %v2906_v9  ;;  %v2915_v20 = vsel %vm150_vm0, %v2903_v14, 0.0 }
0x1a59   :  { %v2909_v48 = vsel %vm150_vm0, %v2901_v10, 0.0 }
0x1a5a   :  { %2910 = vadd.xlane.f32.xlu1 %v2909_v48 }
0x1a5c   :  { %2913 = vadd.xlane.f32.xlu0 %v2912_v19 }
0x1a5e   :  { %2916 = vadd.xlane.f32.xlu1 %v2915_v20 }
0x1ae5   :  { %v2908_v21 = vpop.xlane.xlu0 %2907 }
0x1ae6   :  { %v2918_v22 = vmul.f32 0.03125, %v2908_v21  ;;  %v4819_v21 = vld [vmem:[%s4961_s26 + $0x8] sm:$0xff] }
0x1ae7   :  { %v2911_v23 = vpop.xlane.xlu1 %2910 }
0x1ae8   :  { %v2922_v24 = vsub.f32 %v2900_v59, %v2918_v22  ;;  %v2919_v25 = vmul.f32 0.03125, %v2911_v23  ;;  %v4825_v22 = vld [vmem:[%s4961_s26 + $0x10] sm:$0xff]  ;;  %v4830_v23 = vld [vmem:[%s4961_s26] sm:$0xff] }
0x1ae9   :  { %v2914_v28 = vpop.xlane.xlu0 %2913 }
0x1aea   :  { %v2923_v29 = vsub.f32 %v2901_v10, %v2919_v25  ;;  %v2920_v30 = vmul.f32 0.03125, %v2914_v28  ;;  %v2926_v31 = vmul.f32 %v2922_v24, %v2922_v24 }
0x1aeb   :  { %v2917_v0 = vpop.xlane.xlu1 %2916 }
0x1aec   :  { %v2924_v55 = vsub.f32 %v2902_v11, %v2920_v30  ;;  %v2921_v4 = vmul.f32 0.03125, %v2917_v0  ;;  %v2930_v57 = vsel %vm150_vm0, %v2926_v31, 0.0  ;;  %v2927_v52 = vmul.f32 %v2923_v29, %v2923_v29 }
0x1aed   :  { %2931 = vadd.xlane.f32.xlu0 %v2930_v57 }
0x1aee   :  { %v2925_v63 = vsub.f32 %v2903_v14, %v2921_v4  ;;  %v2933_v2 = vsel %vm150_vm0, %v2927_v52, 0.0  ;;  %v2928_v5 = vmul.f32 %v2924_v55, %v2924_v55 }
0x1aef   :  { %2934 = vadd.xlane.f32.xlu1 %v2933_v2 }
0x1af0   :  { %v2936_v61 = vsel %vm150_vm0, %v2928_v5, 0.0  ;;  %v2929_v34 = vmul.f32 %v2925_v63, %v2925_v63  ;;  %v3058_v5 = vlaneseq }
0x1af1   :  { %2937 = vadd.xlane.f32.xlu0 %v2936_v61 }
0x1af2   :  { %v2939_v45 = vsel %vm150_vm0, %v2929_v34, 0.0 }
0x1af3   :  { %2940 = vadd.xlane.f32.xlu1 %v2939_v45  ;;  %v3059_v45 = vand.u32 127, %v3058_v5 }
0x1b7a   :  { %v2932_v35 = vpop.xlane.xlu0 %2931 }
0x1b7b   :  { %v2942_v36 = vmul.f32 0.03125, %v2932_v35 }
0x1b7c   :  { %v2935_v26 = vpop.xlane.xlu1 %2934 }
0x1b7d   :  { %v2946_v37 = vadd.f32 1e-12, %v2942_v36  ;;  %v2943_v38 = vmul.f32 0.03125, %v2935_v26 }
0x1b7e   :  { %v2938_v49 = vpop.xlane.xlu0 %2937 }
0x1b7f   :  { %3972 = vrsqrt.f32 %v2946_v37  ;;  %v2947_v27 = vadd.f32 1e-12, %v2943_v38  ;;  %v2944_v16 = vmul.f32 0.03125, %v2938_v49 }
0x1b80   :  { %v2941_v33 = vpop.xlane.xlu1 %2940 }
0x1b81   :  { %3974 = vrsqrt.f32 %v2947_v27  ;;  %v2948_v39 = vadd.f32 1e-12, %v2944_v16  ;;  %v2945_v15 = vmul.f32 0.03125, %v2941_v33 }
0x1b83   :  { %3976 = vrsqrt.f32 %v2948_v39  ;;  %v2949_v40 = vadd.f32 1e-12, %v2945_v15 }
0x1b85   :  { %3978 = vrsqrt.f32 %v2949_v40 }
0x1b89   :  { %v3973_v41 = vpop.eup %3972 }
0x1b8a   :  { %v2954_v13 = vmul.f32 %v3973_v41, %v2922_v24  ;;  %v4837_v24 = vld [vmem:[%s4961_s26 + $0x18] sm:$0xff] }
0x1b8b   :  { %v3975_v42 = vpop.eup %3974 }
0x1b8c   :  { %v2955_v7 = vmul.f32 %v3975_v42, %v2923_v29  ;;  %v2964_v1 = vmul.f32 %v3408_v32, %v2954_v13 }
0x1b8d   :  { %v3977_v43 = vpop.eup %3976 }
0x1b8e   :  { %v2956_v51 = vmul.f32 %v3977_v43, %v2924_v55  ;;  %v2965_v17 = vmul.f32 %v3408_v32, %v2955_v7  ;;  %v2974_v3 = vadd.f32 %v3409_v50, %v2964_v1 }
0x1b8f   :  { %v3979_v18 = vpop.eup %3978 }
0x1b90   :  { %v2966_v53 = vmul.f32 %v3408_v32, %v2956_v51  ;;  %v2957_v54 = vmul.f32 %v3979_v18, %v2925_v63  ;;  %v2975_v56 = vadd.f32 %v3409_v50, %v2965_v17 }
0x1b92   :  { %v2967_v58 = vmul.f32 %v3408_v32, %v2957_v54  ;;  %v2982_v46 = vpack.c.bf16 %v2975_v56, %v2974_v3  ;;  %v2976_v59 = vadd.f32 %v3409_v50, %v2966_v53 }
0x1b94   :  { %3783 = vmatprep.mubr.msk.bf16.mxu1 %vm150_vm0, %v2982_v46  ;;  %v2977_v47 = vadd.f32 %v3409_v50, %v2967_v58 }
0x1b96   :  { %v2983_v62 = vpack.c.bf16 %v2977_v47, %v2976_v59 }
0x1b98   :  { %3784 = vmatmul.mubr.msk.bf16.vlgmr.msra.gmra.mrb[52].mxu1 %vm150_vm0, %v2983_v62 }
0x1c6b   :  { %v3785_v9 = vpop.f32.mrb[52].mxu1 }
0x1c6c   :  { %v4812_v10 = vadd.f32 %v3785_v9, %v3410_v6  ;;  %v3043_v11 = vpop.f32.mrb[53].mxu1 }
0x1c6d   :  { %v3044_v60 = vadd.f32 %v3410_v6, %v3043_v11  ;;  %v3786_v48 = vpop.f32.mrb[54].mxu1 }
0x1c6e   :  { %3180 = vst [vmem:[#allocation2 + $0x10] sm:$0xff] %v4812_v10  ;;  %v3055_v14 = vadd.f32 %v3786_v48, %v3410_v6  ;;  %v3046_v19 = vpop.f32.mrb[55].mxu1 }
0x1c6f   :  { %3178 = vst [vmem:[#allocation2] sm:$0xff] %v3044_v60  ;;  %v3047_v20 = vadd.f32 %v3410_v6, %v3046_v19  ;;  %3088 = vmax.xlane.f32.xlu0 %v3044_v60 }
0x1c70   :  { %3181 = vst [vmem:[#allocation2 + $0x18] sm:$0xff] %v3055_v14  ;;  %3094 = vmax.xlane.f32.xlu1 %v3055_v14 }
0x1c71   :  { %3179 = vst [vmem:[#allocation2 + $0x8] sm:$0xff] %v3047_v20 }
0x1c73   :  { %3092 = vmax.xlane.f32.xlu0 %v4812_v10 }
0x1c74   :  { %3090 = vmax.xlane.f32.xlu1 %v3047_v20 }
0x1c85   :  { %3064 = vperm.xlu1 %3802, %v4819_v21  }
0x1c89   :  { %3067 = vperm.xlu1 %3802, %v4825_v22   ;;  %3061 = vperm.xlu0 %3803, %v4830_v23  }
0x1c8d   :  { %3070 = vperm.xlu0 %3803, %v4837_v24  }
0x1cfc   :  { %v4840_v25 = vpop.xlane.xlu0 %3088 }
0x1cfd   :  { %v3096_v28 = vsub.f32 %v3044_v60, %v4840_v25  ;;  %v4843_v29 = vpop.xlane.xlu1 %3094 }
0x1cfe   :  { %v3099_v30 = vsub.f32 %v3055_v14, %v4843_v29 }
0x1cff   :  { %v3100_v31 = vmul.f32 1.442695, %v3096_v28 }
0x1d00   :  { %v4846_v0 = vpop.xlane.xlu0 %3092  ;;  %v3106_v55 = vmul.f32 1.442695, %v3099_v30 }
0x1d01   :  { %3980 = vpow2.f32 %v3100_v31  ;;  %v4848_v4 = vpop.xlane.xlu1 %3090  ;;  %v3098_v57 = vsub.f32 %v4812_v10, %v4846_v0 }
0x1d02   :  { %v3097_v52 = vsub.f32 %v3047_v20, %v4848_v4  ;;  %3982 = vpow2.f32 %v3106_v55 }
0x1d03   :  { %v3104_v2 = vmul.f32 1.442695, %v3098_v57 }
0x1d04   :  { %v3102_v63 = vmul.f32 1.442695, %v3097_v52 }
0x1d05   :  { %v3065_v44 = vpop.permute.xlu1 %3064 }
0x1d06   :  { %3984 = vpow2.f32 %v3102_v63  ;;  %vm3073_vm3 = vcmp.eq.s32.totalorder %v3059_v45, %v3065_v44 }
0x1d07   :  { %3986 = vpow2.f32 %v3104_v2  ;;  %v3077_v26 = vsel %vm3073_vm3, %v3047_v20, 0.0 }
0x1d08   :  { %v3062_v34 = vpop.permute.xlu0 %3061 }
0x1d09   :  { %vm3072_vm5 = vcmp.eq.s32.totalorder %v3059_v45, %v3062_v34  ;;  %v3068_v38 = vpop.permute.xlu1 %3067 }
0x1d0a   :  { %v3076_v27 = vsel %vm3072_vm5, %v3044_v60, 0.0  ;;  %vm3074_vm6 = vcmp.eq.s32.totalorder %v3059_v45, %v3068_v38 }
0x1d0b   :  { %v3981_v61 = vpop.eup %3980  ;;  %v3078_v16 = vsel %vm3074_vm6, %v4812_v10, 0.0 }
0x1d0c   :  { %3108 = vadd.xlane.f32.xlu1 %v3981_v61  ;;  %v3983_v12 = vpop.eup %3982  ;;  %v3071_v36 = vpop.permute.xlu0 %3070 }
0x1d0d   :  { %vm3075_vm4 = vcmp.eq.s32.totalorder %v3059_v45, %v3071_v36 }
0x1d0e   :  { %v3079_v49 = vsel %vm3075_vm4, %v3055_v14, 0.0 }
0x1d10   :  { %v3985_v35 = vpop.eup %3984  ;;  %3114 = vadd.xlane.f32.xlu1 %v3983_v12 }
0x1d11   :  { %3110 = vadd.xlane.f32.xlu0 %v3985_v35  ;;  %v3987_v37 = vpop.eup %3986 }
0x1d14   :  { %3082 = vadd.xlane.f32.xlu1 %v3077_v26 }
0x1d15   :  { %3112 = vadd.xlane.f32.xlu0 %v3987_v37 }
0x1d18   :  { %3086 = vadd.xlane.f32.xlu1 %v3079_v49 }
0x1d19   :  { %3080 = vadd.xlane.f32.xlu0 %v3076_v27 }
0x1d1d   :  { %3084 = vadd.xlane.f32.xlu0 %v3078_v16 }
0x1d1e   :  { %4013 = shalt.err (!%p4010_p4)
}
0x1d1f   :  { %s4962_s11 = sld [smem:[#allocation19_spill]] }
0x1d25   :  { %s4014_s19 = scalar_lea.hbm %s4962_s11, 512 }
0x1d26   :  { %p4015_p5 = scmp.ne.s32.totalorder %s4962_s11, %s4014_s19  ;;  %p4018_p6 = scmp.lt.u32.totalorder %s4014_s19, %s4962_s11 }
0x1d28   :  { %p4020_p7 = pnand %p4018_p6, %p4015_p5 }
0x1d2a   :  { %4023 = shalt.err (!%p4020_p7)
}
0x1d2b   :  { %s4054_s3 = smov 128   ;;  %s4055_s18 = smov 8   ;;  %vm3132_vm7 = vcmp.ne.s32.totalorder %v4830_v23, 4294967196  ;;  %vm3133_vm8 = vcmp.ne.s32.totalorder %v4819_v21, 4294967196  ;;  %vm3148_vm9 = vcmask 7168   ;;  %vm3134_vm10 = vcmp.ne.s32.totalorder %v4825_v22, 4294967196 }
0x1d2c   :  { %3195 = dma.vmem_to_hbm [thread:$0]  %s3190_s15, 512, %s4962_s11, [#allocation3], %s4054_s3, %s4054_s3, %s4055_s18   ;;  %v3416_v33 = vsel %vm3133_vm8, 1.0, %v4050_v8  ;;  %v3415_v39 = vsel %vm3132_vm7, 1.0, %v4050_v8  ;;  %v3417_v41 = vsel %vm3134_vm10, 1.0, %v4050_v8  ;;  %vm3135_vm11 = vcmp.ne.s32.totalorder %v4837_v24, 4294967196 }
0x1d2d   :  { %v3163_v15 = vsel %vm3148_vm9, %v3416_v33, 0.0  ;;  %v3162_v40 = vsel %vm3148_vm9, %v3415_v39, 0.0  ;;  %v3165_v13 = vsel %vm3148_vm9, %v3417_v41, 0.0  ;;  %v3418_v42 = vsel %vm3135_vm11, 1.0, %v4050_v8  ;;  %s4056_s29 = smov [#allocation4]  }
0x1d2e   :  { %v3164_v32 = vadd.f32 %v3163_v15, %v3162_v40  ;;  %v3167_v1 = vsel %vm3148_vm9, %v3418_v42, 0.0  ;;  %s3202_s23 = sshll.u32 %s4056_s29, 4  ;;  %vm3182_vm12 = vcmask 0   ;;  %s3203_s23 = int_to_ptr.vmem [resolvable:$true] %s3202_s23 }
0x1d2f   :  { %s4024_s30 = scalar_lea.vmem %s3203_s23, 16  ;;  %s4028_s5 = scalar_lea.vmem %s3203_s23, 32 }
0x1d30   :  { %v3166_v7 = vadd.f32 %v3165_v13, %v3164_v32  ;;  %p4025_p8 = scmp.ne.s32.totalorder %s3203_s23, %s4024_s30  ;;  %p4029_p9 = scmp.lt.s32.totalorder %s3203_s23, %s3203_s23 }
0x1d31   :  { %p4030_p10 = scmp.lt.s32.totalorder %s4028_s5, %s4024_s30 }
0x1d32   :  { %v3168_v50 = vadd.f32 %v3167_v1, %v3166_v7 }
0x1d33   :  { %p4031_p11 = por %p4030_p10, %p4029_p9 }
0x1d34   :  { %v3169_v18 = vrot.slane %v3168_v50, 4 }
0x1d35   :  { %p4032_p12 = pnand %p4031_p11, %p4025_p8 }
0x1d36   :  { %v3170_v54 = vadd.f32 %v3169_v18, %v3168_v50 }
0x1d38   :  { %v3171_v58 = vrot.slane %v3170_v54, 2 }
0x1d3a   :  { %v3172_v9 = vadd.f32 %v3171_v58, %v3170_v54 }
0x1d3c   :  { %v3173_v21 = vrot.slane %v3172_v9, 1 }
0x1d3e   :  { %v3174_v55 = vadd.f32 %v3173_v21, %v3172_v9 }
0x1d40   :  { %v3175_v2 = vmax.f32 %v3174_v55, 1.0 }
0x1d99   :  { %v3109_v43 = vpop.xlane.xlu1 %3108 }
0x1d9a   :  { %3988 = vlog2.f32 %v3109_v43 }
0x1d9d   :  { %v3115_v51 = vpop.xlane.xlu1 %3114 }
0x1d9e   :  { %3990 = vlog2.f32 %v3115_v51  ;;  %v3111_v17 = vpop.xlane.xlu0 %3110 }
0x1d9f   :  { %3992 = vlog2.f32 %v3111_v17 }
0x1da1   :  { %v3083_v62 = vpop.xlane.xlu1 %3082 }
0x1da2   :  { %v3113_v53 = vpop.xlane.xlu0 %3112 }
0x1da3   :  { %3994 = vlog2.f32 %v3113_v53 }
0x1da4   :  { %v3989_v3 = vpop.eup %3988  ;;  %3996 = vrcp.f32 %v3175_v2 }
0x1da5   :  { %v3117_v56 = vmul.f32 0.6931472, %v3989_v3  ;;  %v3087_v22 = vpop.xlane.xlu1 %3086 }
0x1da6   :  { %v3081_v10 = vpop.xlane.xlu0 %3080 }
0x1da7   :  { %v3124_v8 = vadd.f32 %v3117_v56, %v4840_v25 }
0x1da8   :  { %v3991_v46 = vpop.eup %3990 }
0x1da9   :  { %v3993_v59 = vpop.eup %3992  ;;  %v3123_v47 = vmul.f32 0.6931472, %v3991_v46  ;;  %v3128_v48 = vsub.f32 %v3124_v8, %v3081_v10 }
0x1daa   :  { %v3119_v6 = vmul.f32 0.6931472, %v3993_v59  ;;  %v3085_v30 = vpop.xlane.xlu0 %3084 }
0x1dab   :  { %v3127_v60 = vadd.f32 %v3123_v47, %v4843_v29  ;;  %v3144_v28 = vmul.f32 %v3415_v39, %v3128_v48 }
0x1dac   :  { %v3125_v11 = vadd.f32 %v3119_v6, %v4848_v4 }
0x1dad   :  { %v3995_v14 = vpop.eup %3994  ;;  %v3131_v24 = vsub.f32 %v3127_v60, %v3087_v22  ;;  %v3149_v4 = vsel %vm3148_vm9, %v3144_v28, 0.0 }
0x1dae   :  { %v3129_v19 = vsub.f32 %v3125_v11, %v3083_v62  ;;  %v3121_v20 = vmul.f32 0.6931472, %v3995_v14  ;;  %v3997_v26 = vpop.eup %3996 }
0x1daf   :  { %v3147_v52 = vmul.f32 %v3418_v42, %v3131_v24 }
0x1db0   :  { %v3145_v23 = vmul.f32 %v3416_v33, %v3129_v19  ;;  %v3126_v25 = vadd.f32 %v3121_v20, %v4846_v0 }
0x1db1   :  { %v3154_v34 = vsel %vm3148_vm9, %v3147_v52, 0.0 }
0x1db2   :  { %v3150_v31 = vsel %vm3148_vm9, %v3145_v23, 0.0  ;;  %v3130_v57 = vsub.f32 %v3126_v25, %v3085_v30 }
0x1db3   :  { %v3151_v63 = vadd.f32 %v3150_v31, %v3149_v4 }
0x1db4   :  { %v3146_v29 = vmul.f32 %v3417_v41, %v3130_v57 }
0x1db6   :  { %v3152_v5 = vsel %vm3148_vm9, %v3146_v29, 0.0 }
0x1db7   :  { %v3153_v61 = vadd.f32 %v3152_v5, %v3151_v63 }
0x1db9   :  { %v3155_v45 = vadd.f32 %v3154_v34, %v3153_v61 }
0x1dbb   :  { %v3156_v44 = vrot.slane %v3155_v45, 4 }
0x1dbd   :  { %v3157_v0 = vadd.f32 %v3156_v44, %v3155_v45 }
0x1dbf   :  { %v3158_v12 = vrot.slane %v3157_v0, 2 }
0x1dc1   :  { %v3159_v35 = vadd.f32 %v3158_v12, %v3157_v0 }
0x1dc3   :  { %v3160_v36 = vrot.slane %v3159_v35, 1 }
0x1dc5   :  { %v3161_v37 = vadd.f32 %v3160_v36, %v3159_v35 }
0x1dc7   :  { %v3177_v38 = vmul.f32 %v3997_v26, %v3161_v37 }
0x1dc9   :  { %3183 = vst.msk [vmem:[#allocation4] sm:$0x1] %vm3182_vm12, %v3177_v38 }
0x1dca   :  { %4035 = shalt.err (!%p4032_p12)
}
0x1dcb   :  { %s4963_s10 = sld [smem:[#allocation20_spill]] }
0x1dd1   :  { %s4036_s22 = scalar_lea.hbm %s4963_s10, 16 }
0x1dd2   :  { %p4037_p13 = scmp.ne.s32.totalorder %s4963_s10, %s4036_s22  ;;  %p4040_p0 = scmp.lt.u32.totalorder %s4036_s22, %s4963_s10 }
0x1dd4   :  { %p4042_p1 = pnand %p4040_p0, %p4037_p13 }
0x1dd6   :  { %4045 = shalt.err (!%p4042_p1)
}
0x1dd7   :  { %3205 = dma.vmem_to_hbm [thread:$0]  %s3203_s23, 16, %s4963_s10, [#allocation5]  }
0x1dd8   :  { %4046 = dma.done.wait [#allocation3], 512  }
0x1dd9   :  { %4047 = vsyncadd [#allocation3], 4294966784 }
0x1dda   :  { %4048 = dma.done.wait [#allocation5], 16  }
0x1ddb   :  { %4049 = vsyncadd [#allocation5], 4294967280 }
0x1ddc   :  { %3212 = vsyncpa [#allocation3], 1 }
0x1ddd   :  { %3213 = vsyncpa [#allocation5], 1 }

// kernel: condenser_forward.3
= control target key start
LH: loop header
LB: loop body
LE: loop exit
PB: predicated region body
PF: predicated region fallthrough
CT: control target
= control target key end

     0   :  { %s5975_s6 = smov 1   ;;  %s5976_s10 = smov 2   ;;  %s6923_s0 = inlined_call_operand.smem [shape: u32[31], index: -1, kind: input, shape index: {}] }
   0x1   :  { %s6020_s5 = sld [smem:[%s6923_s0]]   ;;  %s5977_s14 = smov 3  }
   0x2   :  { %s6025_s9 = sld [smem:[%s6923_s0 + %s5975_s6]]   ;;  %s5978_s18 = smov 4  }
   0x3   :  { %s6030_s13 = sld [smem:[%s6923_s0 + %s5976_s10]]   ;;  %s5979_s22 = smov 5  }
   0x4   :  { %s6035_s17 = sld [smem:[%s6923_s0 + %s5977_s14]]   ;;  %s5980_s26 = smov 6  }
   0x5   :  { %s6040_s21 = sld [smem:[%s6923_s0 + %s5978_s18]]   ;;  %s5981_s30 = smov 7  }
   0x6   :  { %s6045_s25 = sld [smem:[%s6923_s0 + %s5979_s22]]   ;;  %s5982_s4 = smov 8  }
   0x7   :  { %s6050_s29 = sld [smem:[%s6923_s0 + %s5980_s26]]   ;;  %s5983_s10 = smov 9  }
   0x8   :  { %s6055_s3 = sld [smem:[%s6923_s0 + %s5981_s30]]   ;;  %s5984_s15 = smov 10  }
   0x9   :  { %6933 = sst [smem:[#allocation8_spill]] %s6030_s13  ;;  %s5985_s20 = smov 11  }
   0xa   :  { %s6060_s8 = sld [smem:[%s6923_s0 + %s5982_s4]]   ;;  %s5986_s26 = smov 12  }
   0xb   :  { %s6065_s14 = sld [smem:[%s6923_s0 + %s5983_s10]]   ;;  %s5987_s1 = smov 13  }
   0xc   :  { %s6070_s19 = sld [smem:[%s6923_s0 + %s5984_s15]]   ;;  %s5988_s7 = smov 14  }
   0xd   :  { %s6075_s24 = sld [smem:[%s6923_s0 + %s5985_s20]]   ;;  %s5989_s15 = smov 15  }
   0xe   :  { %s6080_s30 = sld [smem:[%s6923_s0 + %s5986_s26]]   ;;  %s5990_s22 = smov 16  }
   0xf   :  { %s6085_s6 = sld [smem:[%s6923_s0 + %s5987_s1]]   ;;  %s5991_s28 = smov 17  }
  0x10   :  { %s6090_s12 = sld [smem:[%s6923_s0 + %s5988_s7]]   ;;  %s5992_s7 = smov 18  }
  0x11   :  { %s6095_s20 = sld [smem:[%s6923_s0 + %s5989_s15]]   ;;  %s5993_s15 = smov 19  }
  0x12   :  { %s6100_s27 = sld [smem:[%s6923_s0 + %s5990_s22]]   ;;  %s5994_s22 = smov 20  }
  0x13   :  { %s6105_s4 = sld [smem:[%s6923_s0 + %s5991_s28]]   ;;  %s5995_s28 = smov 21  }
  0x14   :  { %s6110_s13 = sld [smem:[%s6923_s0 + %s5992_s7]]   ;;  %s5996_s7 = smov 22  }
  0x16   :  { %6934 = sst [smem:[#allocation9_spill]] %s6090_s12 }
  0x17   :  { %s6115_s12 = sld [smem:[%s6923_s0 + %s5993_s15]]   ;;  %s5997_s15 = smov 23  }
  0x18   :  { %6935 = sst [smem:[#allocation10_spill]] %s6100_s27 }
  0x19   :  { %6936 = sst [smem:[#allocation11_spill]] %s6105_s4 }
  0x1a   :  { %6937 = sst [smem:[#allocation12_spill]] %s6110_s13 }
  0x1b   :  { %s6120_s27 = sld [smem:[%s6923_s0 + %s5994_s22]]   ;;  %s5998_s22 = smov 24  }
  0x1c   :  { %s6125_s4 = sld [smem:[%s6923_s0 + %s5995_s28]]   ;;  %s5999_s28 = smov 25  }
  0x1d   :  { %6938 = sst [smem:[#allocation13_spill]] %s6115_s12 }
  0x1e   :  { %s6130_s13 = sld [smem:[%s6923_s0 + %s5996_s7]]   ;;  %s6000_s7 = smov 26  }
  0x1f   :  { %s6135_s12 = sld [smem:[%s6923_s0 + %s5997_s15]]   ;;  %s6001_s15 = smov 27  }
  0x21   :  { %6939 = sst [smem:[#allocation14_spill]] %s6120_s27 }
  0x22   :  { %6940 = sst [smem:[#allocation15_spill]] %s6125_s4 }
  0x23   :  { %s6140_s27 = sld [smem:[%s6923_s0 + %s5998_s22]]   ;;  %s6002_s22 = smov 28  }
  0x24   :  { %6941 = sst [smem:[#allocation16_spill]] %s6130_s13 }
  0x25   :  { %6942 = sst [smem:[#allocation17_spill]] %s6135_s12 }
  0x26   :  { %s6145_s4 = sld [smem:[%s6923_s0 + %s5999_s28]]   ;;  %s6003_s28 = smov 29  }
  0x27   :  { %s6150_s13 = sld [smem:[%s6923_s0 + %s6000_s7]]   ;;  %s6004_s7 = smov 30  }
  0x28   :  { %s6155_s12 = sld [smem:[%s6923_s0 + %s6001_s15]]  }
  0x29   :  { %6943 = sst [smem:[#allocation18_spill]] %s6140_s27 }
  0x2a   :  { %s6160_s27 = sld [smem:[%s6923_s0 + %s6002_s22]]  }
  0x2c   :  { %6944 = sst [smem:[#allocation19_spill]] %s6145_s4 }
  0x2d   :  { %6945 = sst [smem:[#allocation20_spill]] %s6150_s13 }
  0x2e   :  { %s6165_s4 = sld [smem:[%s6923_s0 + %s6003_s28]]  }
  0x2f   :  { %s6170_s13 = sld [smem:[%s6923_s0 + %s6004_s7]]  }
  0x30   :  { %67 = vsyncpa [#allocation3], 0  ;;  %v124_v0 = vld [vmem:[%s6020_s5] sm:$0xff]  ;;  %vm130_vm0 = vcmask 261120   ;;  %v126_v1 = vld [vmem:[%s6020_s5 + $0x10] sm:$0xff] }
  0x31   :  { %v125_v2 = vld [vmem:[%s6020_s5 + $0x8] sm:$0xff]  ;;  %v131_v3 = vsel %vm130_vm0, %v124_v0, 0.0  ;;  %v137_v4 = vsel %vm130_vm0, %v126_v1, 0.0  ;;  %v127_v5 = vld [vmem:[%s6020_s5 + $0x18] sm:$0xff] }
  0x32   :  { %132 = vadd.xlane.f32.xlu0 %v131_v3  ;;  %138 = vadd.xlane.f32.xlu1 %v137_v4  ;;  %v134_v6 = vsel %vm130_vm0, %v125_v2, 0.0  ;;  %v140_v7 = vsel %vm130_vm0, %v127_v5, 0.0 }
  0x36   :  { %135 = vadd.xlane.f32.xlu0 %v134_v6  ;;  %141 = vadd.xlane.f32.xlu1 %v140_v7 }
  0x37   :  { %68 = vsyncpa [#allocation5], 0  ;;  %v5639_v28 = vld [vmem:[%s6045_s25] sm:$0xff]   ;;  %v5640_v29 = vld [vmem:[%s6045_s25 + $0x8] sm:$0xff]   ;;  %v6005_v60 = vmov 0.0   ;;  %vm6006_vm1 = vmmov 0  }
  0x38   :  { %5224 = vmatprep.subr.bf16.mxu0 %v5639_v28  ;;  %v5641_v30 = vld [vmem:[%s6065_s14] sm:$0xff]   ;;  %5232 = vmatprep.subr.bf16.mxu1 %v6005_v60  ;;  %v325_v3 = vld [vmem:[%s6060_s8 + $0x8] sm:$0xff]  ;;  %vm460_vm2 = vcmask 130048   ;;  %s6946_s0 = sld [smem:[#allocation9_spill]]  ;;  %s6947_s5 = sld [smem:[#allocation11_spill]] }
  0x39   :  { %5225 = vmatpush3.bf16.msra.mxu0 %v5639_v28  ;;  %v4725_v44 = vld [vmem:[%s6035_s17] ss:$0 sm:$0xff]  ;;  %5236 = vmatprep.mubr.msk.bf16.mxu1 %vm6006_vm1, %v6005_v60  ;;  %s6948_s17 = sld [smem:[#allocation10_spill]]  ;;  %s6950_s15 = sld [smem:[#allocation13_spill]] }
  0x3a   :  { %5226 = vmatprep.subr.bf16.mxu0 %v5640_v29  ;;  %v4726_v46 = vld [vmem:[%s6040_s21] ss:$0 sm:$0xff]  ;;  %s6949_s21 = sld [smem:[#allocation12_spill]]  ;;  %s6951_s16 = sld [smem:[#allocation14_spill]] }
  0x3d   :  { %5227 = vmatpush3.bf16.msra.mxu0 %v5640_v29 }
  0x3e   :  { %5240 = vmatprep.subr.bf16.mxu0 %v5641_v30 }
  0xbf   :  { %v133_v8 = vpop.xlane.xlu0 %132  ;;  %v139_v9 = vpop.xlane.xlu1 %138 }
  0xc0   :  { %v144_v10 = vmul.f32 0.03125, %v133_v8  ;;  %v146_v11 = vmul.f32 0.03125, %v139_v9 }
  0xc2   :  { %v148_v12 = vsub.f32 %v124_v0, %v144_v10  ;;  %v150_v13 = vsub.f32 %v126_v1, %v146_v11  ;;  %v5642_v0 = vld [vmem:[%s6065_s14 + $0x8] sm:$0xff]   ;;  %v6007_v1 = vmov 0   ;;  %v5643_v10 = vld [vmem:[%s6055_s3] sm:$0xff]  }
  0xc3   :  { %v136_v14 = vpop.xlane.xlu0 %135  ;;  %v142_v15 = vpop.xlane.xlu1 %141  ;;  %5637 = vset.pattern.permute.xlu1 %v6007_v1  ;;  %v4727_v11 = vld [vmem:[%s6050_s29] ss:$0 sm:$0xff] }
  0xc4   :  { %v145_v16 = vmul.f32 0.03125, %v136_v14  ;;  %v147_v17 = vmul.f32 0.03125, %v142_v15  ;;  %v152_v18 = vmul.f32 %v148_v12, %v148_v12  ;;  %v154_v19 = vmul.f32 %v150_v13, %v150_v13 }
  0xc6   :  { %v149_v20 = vsub.f32 %v125_v2, %v145_v16  ;;  %v151_v21 = vsub.f32 %v127_v5, %v147_v17  ;;  %v156_v22 = vsel %vm130_vm0, %v152_v18, 0.0  ;;  %v162_v23 = vsel %vm130_vm0, %v154_v19, 0.0  ;;  %v324_v2 = vld [vmem:[%s6060_s8] sm:$0xff] }
  0xc7   :  { %157 = vadd.xlane.f32.xlu0 %v156_v22 }
  0xc8   :  { %v153_v24 = vmul.f32 %v149_v20, %v149_v20  ;;  %v155_v25 = vmul.f32 %v151_v21, %v151_v21 }
  0xca   :  { %v159_v26 = vsel %vm130_vm0, %v153_v24, 0.0  ;;  %v165_v27 = vsel %vm130_vm0, %v155_v25, 0.0 }
  0xcb   :  { %163 = vadd.xlane.f32.xlu0 %v162_v23  ;;  %160 = vadd.xlane.f32.xlu1 %v159_v26  ;;  %v4734_v23 = vld [vmem:[%s6070_s19] ss:$0 sm:$0xff] }
  0xcf   :  { %166 = vadd.xlane.f32.xlu1 %v165_v27 }
  0xe0   :  { %328 = vperm.xlu1 %5637, %v324_v2  }
  0xe4   :  { %333 = vperm.xlu1 %5637, %v325_v3  }
 0x154   :  { %v158_v31 = vpop.xlane.xlu0 %157 }
 0x155   :  { %v168_v32 = vmul.f32 0.03125, %v158_v31 }
 0x157   :  { %v172_v33 = vadd.f32 1e-12, %v168_v32 }
 0x158   :  { %v161_v34 = vpop.xlane.xlu1 %160  ;;  %v164_v35 = vpop.xlane.xlu0 %163 }
 0x159   :  { %5709 = vrsqrt.f32 %v172_v33  ;;  %v169_v36 = vmul.f32 0.03125, %v161_v34  ;;  %v170_v37 = vmul.f32 0.03125, %v164_v35 }
 0x15b   :  { %v173_v38 = vadd.f32 1e-12, %v169_v36  ;;  %v174_v39 = vadd.f32 1e-12, %v170_v37 }
 0x15c   :  { %v167_v40 = vpop.xlane.xlu1 %166 }
 0x15d   :  { %5711 = vrsqrt.f32 %v173_v38  ;;  %v171_v41 = vmul.f32 0.03125, %v167_v40 }
 0x15e   :  { %5713 = vrsqrt.f32 %v174_v39 }
 0x15f   :  { %v175_v42 = vadd.f32 1e-12, %v171_v41 }
 0x160   :  { %v329_v33 = vpop.permute.xlu1 %328 }
 0x161   :  { %5715 = vrsqrt.f32 %v175_v42  ;;  %v5644_v42 = vld [vmem:[%s6045_s25 + $0x10] sm:$0xff]  }
 0x163   :  { %v5710_v43 = vpop.eup %5709 }
 0x164   :  { %v180_v45 = vmul.f32 %v5710_v43, %v148_v12  ;;  %v334_v36 = vpop.permute.xlu1 %333  ;;  %v5645_v43 = vld [vmem:[%s6045_s25 + $0x18] sm:$0xff]  }
 0x166   :  { %v190_v47 = vmul.f32 %v4725_v44, %v180_v45  ;;  %v5647_v45 = vld [vmem:[%s6065_s14 + $0x18] sm:$0xff]  }
 0x167   :  { %v5712_v48 = vpop.eup %5711 }
 0x168   :  { %v5714_v49 = vpop.eup %5713  ;;  %v6189_v50 = vadd.f32 %v4726_v46, %v190_v47  ;;  %v181_v51 = vmul.f32 %v5712_v48, %v149_v20  ;;  %v6251_v48 = vld [vmem:[%s6025_s9] sm:$0xff] }
 0x169   :  { %v182_v52 = vmul.f32 %v5714_v49, %v150_v13 }
 0x16a   :  { %208 = vxpose.xlu0.b32.start [1/4] (short) (narrow) %v6189_v50, 32  ;;  %v191_v53 = vmul.f32 %v4725_v44, %v181_v51 }
 0x16b   :  { %v5716_v54 = vpop.eup %5715  ;;  %v192_v57 = vmul.f32 %v4725_v44, %v182_v52 }
 0x16c   :  { %v183_v55 = vmul.f32 %v5716_v54, %v151_v21  ;;  %v6192_v56 = vadd.f32 %v4726_v46, %v191_v53  ;;  %v6254_v54 = vld [vmem:[%s6025_s9 + $0x8] sm:$0xff] }
 0x16d   :  { %v6202_v61 = vadd.f32 %v4726_v46, %v192_v57 }
 0x16e   :  { %209 = vxpose.xlu0.b32.cont [2/4] (short) (narrow) %v6192_v56, 32  ;;  %v6197_v58 = vpack.c.bf16 %v6192_v56, %v6189_v50  ;;  %v193_v59 = vmul.f32 %v4725_v44, %v183_v55  ;;  %v5646_v44 = vld [vmem:[%s6065_s14 + $0x10] sm:$0xff]  }
 0x16f   :  { %v6257_v55 = vld [vmem:[%s6025_s9 + $0x10] sm:$0xff] }
 0x170   :  { %5228 = vmatprep.mubr.msk.bf16.mxu0 %vm130_vm0, %v6197_v58  ;;  %v6204_v62 = vadd.f32 %v4726_v46, %v193_v59 }
 0x172   :  { %210 = vxpose.xlu0.b32.cont [3/4] (short) (narrow) %v6202_v61, 32  ;;  %v6209_v63 = vpack.c.bf16 %v6204_v62, %v6202_v61 }
 0x174   :  { %5229 = vmatmul.mubr.msk.bf16.vlgmr.msra.gmra.mrb[0].mxu0 %vm130_vm0, %v6209_v63 }
 0x175   :  { %5241 = vmatpush3.bf16.msra.mxu0 %v5641_v30  ;;  %5244 = vmatprep.mubr.msk.bf16.mxu0 %vm130_vm0, %v6197_v58 }
 0x176   :  { %211 = vxpose.xlu0.b32.end [4/4] (short) (narrow) %v6204_v62, 32  ;;  %5242 = vmatprep.subr.bf16.mxu0 %v5642_v0 }
 0x179   :  { %5243 = vmatpush3.bf16.msra.mxu0 %v5642_v0 }
 0x17c   :  { %5245 = vmatmul.mubr.msk.bf16.vlgmr.msra.gmra.mrb[4].mxu0 %vm130_vm0, %v6209_v63 }
 0x1ea   :  { %v224_v4 = vpop.trf.xlu0 }
 0x1ee   :  { %v225_v5 = vpop.trf.xlu0 }
 0x1ef   :  { %v6224_v6 = vpack.c.bf16 %v225_v5, %v224_v4  ;;  %v6265_v4 = vld [vmem:[%s6025_s9 + $0x18] sm:$0xff] }
 0x1f1   :  { %5233 = vmatpush3.bf16.msra.mxu1 %v6224_v6 }
 0x1f2   :  { %v226_v7 = vpop.trf.xlu0  ;;  %5234 = vmatprep.subr.bf16.mxu1 %v6005_v60 }
 0x1f6   :  { %v227_v8 = vpop.trf.xlu0 }
 0x1f7   :  { %v6228_v9 = vpack.c.bf16 %v227_v8, %v226_v7 }
 0x1f9   :  { %5235 = vmatpush3.bf16.msra.mxu1 %v6228_v9 }
 0x1fc   :  { %5237 = vmatmul.mubr.msk.bf16.vlgmr.msra.gmra.mrb[0].mxu1 %vm130_vm0, %v5643_v10 }
 0x247   :  { %v5230_v12 = vpop.f32.mrb[0].mxu0 }
 0x248   :  { %v314_v13 = vadd.f32 %v5230_v12, %v4727_v11  ;;  %v305_v14 = vpop.f32.mrb[1].mxu0 }
 0x249   :  { %v5231_v15 = vpop.f32.mrb[2].mxu0  ;;  %v306_v18 = vadd.f32 %v4727_v11, %v305_v14 }
 0x24a   :  { %v317_v16 = vadd.f32 %v5231_v15, %v4727_v11  ;;  %v308_v17 = vpop.f32.mrb[3].mxu0 }
 0x24b   :  { %v309_v19 = vadd.f32 %v4727_v11, %v308_v17 }
 0x24c   :  { %v458_v20 = vpack.c.bf16 %v317_v16, %v314_v13 }
 0x24d   :  { %v457_v21 = vpack.c.bf16 %v309_v19, %v306_v18 }
 0x24f   :  { %v5246_v22 = vpop.f32.mrb[4].mxu0  ;;  %5250 = vmatprep.mubr.msk.bf16.mxu1 %vm460_vm2, %v457_v21 }
 0x250   :  { %v442_v24 = vpop.f32.mrb[5].mxu0  ;;  %v451_v26 = vadd.f32 %v5246_v22, %v4734_v23  ;;  %v4764_v22 = vld [vmem:[%s6070_s19 + $0x1] ss:$0 sm:$0xff] }
 0x251   :  { %v5247_v25 = vpop.f32.mrb[6].mxu0  ;;  %v443_v29 = vadd.f32 %v4734_v23, %v442_v24 }
 0x252   :  { %v454_v27 = vadd.f32 %v5247_v25, %v4734_v23  ;;  %v445_v28 = vpop.f32.mrb[7].mxu0 }
 0x253   :  { %v446_v30 = vadd.f32 %v4734_v23, %v445_v28 }
 0x254   :  { %v571_v31 = vpack.c.bf16 %v454_v27, %v451_v26 }
 0x255   :  { %v570_v32 = vpack.c.bf16 %v446_v30, %v443_v29 }
 0x257   :  { %5254 = vmatprep.subr.bf16.mxu0 %v570_v32 }
 0x258   :  { %5255 = vmatpush3.bf16.msra.mxu0 %v570_v32 }
 0x259   :  { %5256 = vmatprep.subr.bf16.mxu0 %v571_v31 }
 0x25c   :  { %5257 = vmatpush3.bf16.msra.mxu0 %v571_v31 }
 0x25d   :  { %5270 = vmatprep.subr.bf16.mxu0 %v6005_v60 }
 0x2cf   :  { %v378_v34 = vpop.f32.mrb[0].mxu1 }
 0x2d0   :  { %v5238_v35 = vpop.f32.mrb[1].mxu1  ;;  %v379_v38 = vadd.f32 %v378_v34, %v329_v33 }
 0x2d1   :  { %v381_v37 = vpop.f32.mrb[2].mxu1 }
 0x2d2   :  { %v382_v39 = vadd.f32 %v381_v37, %v334_v36  ;;  %v5239_v40 = vpop.f32.mrb[3].mxu1 }
 0x2d4   :  { %v459_v41 = vpack.c.bf16 %v382_v39, %v379_v38 }
 0x2d6   :  { %5248 = vmatprep.subr.bf16.mxu1 %v459_v41 }
 0x2d7   :  { %5249 = vmatpush3.bf16.msra.mxu1 %v459_v41 }
 0x2d8   :  { %5262 = vmatprep.subr.bf16.mxu1 %v5644_v42 }
 0x2da   :  { %5251 = vmatmul.mubr.msk.bf16.vlgmr.msra.gmra.mrb[4].mxu1 %vm460_vm2, %v458_v20 }
 0x2db   :  { %5263 = vmatpush3.bf16.msra.mxu1 %v5644_v42  ;;  %5266 = vmatprep.mubr.msk.bf16.mxu1 %vm130_vm0, %v6197_v58 }
 0x2dc   :  { %5264 = vmatprep.subr.bf16.mxu1 %v5645_v43 }
 0x2df   :  { %5265 = vmatpush3.bf16.msra.mxu1 %v5645_v43 }
 0x2e0   :  { %5278 = vmatprep.subr.bf16.mxu1 %v5646_v44 }
 0x2e2   :  { %5267 = vmatmul.mubr.msk.bf16.vlgmr.msra.gmra.mrb[8].mxu1 %vm130_vm0, %v6209_v63 }
 0x2e3   :  { %5279 = vmatpush3.bf16.msra.mxu1 %v5646_v44  ;;  %5282 = vmatprep.mubr.msk.bf16.mxu1 %vm130_vm0, %v6197_v58 }
 0x2e4   :  { %5280 = vmatprep.subr.bf16.mxu1 %v5647_v45 }
 0x2e7   :  { %5281 = vmatpush3.bf16.msra.mxu1 %v5647_v45 }
 0x2ea   :  { %5283 = vmatmul.mubr.msk.bf16.vlgmr.msra.gmra.mrb[12].mxu1 %vm130_vm0, %v6209_v63  ;;  %v4748_v63 = vld [vmem:[%s6050_s29 + $0x1] ss:$0 sm:$0xff] }
 0x3ad   :  { %v5252_v46 = vpop.f32.mrb[4].mxu1 }
 0x3ae   :  { %v501_v47 = vpop.f32.mrb[5].mxu1  ;;  %v518_v49 = vmul.f32 0.25, %v5252_v46 }
 0x3af   :  { %v516_v51 = vmul.f32 0.25, %v501_v47  ;;  %v5253_v52 = vpop.f32.mrb[6].mxu1 }
 0x3b0   :  { %v504_v53 = vpop.f32.mrb[7].mxu1  ;;  %v519_v59 = vmul.f32 0.25, %v5253_v52  ;;  %v522_v3 = vadd.f32 %v518_v49, %v6257_v55 }
 0x3b1   :  { %v517_v57 = vmul.f32 0.25, %v504_v53  ;;  %v520_v58 = vadd.f32 %v516_v51, %v6251_v48 }
 0x3b2   :  { %v530_v12 = vsel %vm130_vm0, %v522_v3, -inf  ;;  %v523_v13 = vadd.f32 %v519_v59, %v6265_v4 }
 0x3b3   :  { %v524_v0 = vsel %vm130_vm0, %v520_v58, -inf  ;;  %v521_v2 = vadd.f32 %v517_v57, %v6254_v54  ;;  %v4755_v57 = vld [vmem:[%s6060_s8 + $0x10] sm:$0xff] }
 0x3b4   :  { %525 = vmax.xlane.f32.xlu1 %v524_v0  ;;  %v533_v20 = vsel %vm130_vm0, %v523_v13, -inf }
 0x3b5   :  { %v5268_v5 = vpop.f32.mrb[8].mxu1  ;;  %v527_v7 = vsel %vm130_vm0, %v521_v2, -inf }
 0x3b6   :  { %v6268_v8 = vadd.f32 %v5268_v5, %v4748_v63  ;;  %v690_v10 = vpop.f32.mrb[9].mxu1  ;;  %528 = vmax.xlane.f32.xlu0 %v527_v7 }
 0x3b7   :  { %v5269_v11 = vpop.f32.mrb[10].mxu1  ;;  %v6274_v16 = vadd.f32 %v4748_v63, %v690_v10 }
 0x3b8   :  { %v6272_v14 = vadd.f32 %v5269_v11, %v4748_v63  ;;  %531 = vmax.xlane.f32.xlu1 %v530_v12  ;;  %v693_v15 = vpop.f32.mrb[11].mxu1 }
 0x3b9   :  { %v6276_v17 = vadd.f32 %v4748_v63, %v693_v15 }
 0x3ba   :  { %v845_v18 = vpack.c.bf16 %v6272_v14, %v6268_v8 }
 0x3bb   :  { %v844_v19 = vpack.c.bf16 %v6276_v17, %v6274_v16 }
 0x3bc   :  { %534 = vmax.xlane.f32.xlu1 %v533_v20 }
 0x3bd   :  { %v5284_v21 = vpop.f32.mrb[12].mxu1 }
 0x3be   :  { %v829_v23 = vpop.f32.mrb[13].mxu1  ;;  %v838_v25 = vadd.f32 %v5284_v21, %v4764_v22 }
 0x3bf   :  { %v5285_v24 = vpop.f32.mrb[14].mxu1  ;;  %v830_v28 = vadd.f32 %v4764_v22, %v829_v23 }
 0x3c0   :  { %v841_v26 = vadd.f32 %v5285_v24, %v4764_v22  ;;  %v832_v27 = vpop.f32.mrb[15].mxu1 }
 0x3c1   :  { %v833_v29 = vadd.f32 %v4764_v22, %v832_v27  ;;  %v5648_v22 = vld [vmem:[%s6055_s3 + $0x8] sm:$0xff]  }
 0x3c2   :  { %v957_v30 = vpack.c.bf16 %v841_v26, %v838_v25 }
 0x3c3   :  { %v956_v31 = vpack.c.bf16 %v833_v29, %v830_v28 }
 0x3c5   :  { %5292 = vmatprep.subr.bf16.mxu1 %v956_v31 }
 0x3c6   :  { %5293 = vmatpush3.bf16.msra.mxu1 %v956_v31 }
 0x3c7   :  { %5294 = vmatprep.subr.bf16.mxu1 %v957_v30 }
 0x3ca   :  { %5295 = vmatpush3.bf16.msra.mxu1 %v957_v30 }
 0x441   :  { %v526_v32 = vpop.xlane.xlu1 %525 }
 0x442   :  { %v536_v33 = vsub.f32 %v520_v58, %v526_v32  ;;  %v4756_v58 = vld [vmem:[%s6060_s8 + $0x18] sm:$0xff] }
 0x443   :  { %v529_v34 = vpop.xlane.xlu0 %528 }
 0x444   :  { %v540_v37 = vmul.f32 1.442695, %v536_v33  ;;  %v537_v38 = vsub.f32 %v521_v2, %v529_v34 }
 0x445   :  { %v532_v35 = vpop.xlane.xlu1 %531 }
 0x446   :  { %v538_v36 = vsub.f32 %v522_v3, %v532_v35  ;;  %v542_v41 = vmul.f32 1.442695, %v537_v38 }
 0x448   :  { %v544_v39 = vmul.f32 1.442695, %v538_v36 }
 0x449   :  { %v535_v40 = vpop.xlane.xlu1 %534 }
 0x44a   :  { %5717 = vpow2.f32 %v544_v39  ;;  %v539_v42 = vsub.f32 %v523_v13, %v535_v40 }
 0x44b   :  { %5719 = vpow2.f32 %v540_v37 }
 0x44c   :  { %5721 = vpow2.f32 %v542_v41  ;;  %v546_v43 = vmul.f32 1.442695, %v539_v42 }
 0x44e   :  { %5723 = vpow2.f32 %v546_v43 }
 0x454   :  { %v5718_v44 = vpop.eup %5717 }
 0x455   :  { %v554_v45 = vsel %vm130_vm0, %v5718_v44, 0.0  ;;  %v5720_v46 = vpop.eup %5719 }
 0x456   :  { %555 = vadd.xlane.f32.xlu1 %v554_v45  ;;  %v548_v47 = vsel %vm130_vm0, %v5720_v46, 0.0  ;;  %v5722_v49 = vpop.eup %5721 }
 0x457   :  { %v551_v51 = vsel %vm130_vm0, %v5722_v49, 0.0 }
 0x458   :  { %v5724_v52 = vpop.eup %5723 }
 0x459   :  { %v557_v53 = vsel %vm130_vm0, %v5724_v52, 0.0 }
 0x45a   :  { %549 = vadd.xlane.f32.xlu1 %v548_v47 }
 0x45e   :  { %552 = vadd.xlane.f32.xlu1 %v551_v51 }
 0x462   :  { %558 = vadd.xlane.f32.xlu1 %v557_v53 }
 0x473   :  { %713 = vperm.xlu1 %5637, %v4755_v57  }
 0x477   :  { %718 = vperm.xlu1 %5637, %v4756_v58  }
 0x4e3   :  { %v556_v59 = vpop.xlane.xlu1 %555 }
 0x4e7   :  { %v550_v0 = vpop.xlane.xlu1 %549 }
 0x4e8   :  { %5725 = vrcp.f32 %v550_v0 }
 0x4eb   :  { %v553_v63 = vpop.xlane.xlu1 %552 }
 0x4ec   :  { %5727 = vrcp.f32 %v553_v63 }
 0x4ed   :  { %5729 = vrcp.f32 %v556_v59 }
 0x4ef   :  { %v559_v2 = vpop.xlane.xlu1 %558 }
 0x4f0   :  { %5731 = vrcp.f32 %v559_v2 }
 0x4f2   :  { %v5726_v3 = vpop.eup %5725 }
 0x4f3   :  { %v564_v7 = vmul.f32 %v5726_v3, %v5720_v46  ;;  %v714_v27 = vpop.permute.xlu1 %713 }
 0x4f6   :  { %v5728_v5 = vpop.eup %5727 }
 0x4f7   :  { %v565_v10 = vmul.f32 %v5728_v5, %v5722_v49  ;;  %v5730_v11 = vpop.eup %5729  ;;  %v719_v16 = vpop.permute.xlu1 %718 }
 0x4f8   :  { %v566_v15 = vmul.f32 %v5730_v11, %v5718_v44 }
 0x4f9   :  { %v568_v12 = vpack.c.bf16 %v565_v10, %v564_v7 }
 0x4fa   :  { %v5732_v13 = vpop.eup %5731 }
 0x4fb   :  { %v567_v20 = vmul.f32 %v5732_v13, %v5724_v52  ;;  %5258 = vmatprep.mubr.msk.bf16.mxu0 %vm130_vm0, %v568_v12 }
 0x4fd   :  { %v569_v21 = vpack.c.bf16 %v567_v20, %v566_v15 }
 0x4ff   :  { %5259 = vmatmul.mubr.msk.bf16.vlgmr.msra.gmra.mrb[8].mxu0 %vm130_vm0, %v569_v21 }
 0x500   :  { %5271 = vmatpush3.bf16.msra.mxu0 %v6224_v6  ;;  %5274 = vmatprep.mubr.msk.bf16.mxu0 %vm6006_vm1, %v6005_v60 }
 0x501   :  { %5272 = vmatprep.subr.bf16.mxu0 %v6005_v60 }
 0x504   :  { %5273 = vmatpush3.bf16.msra.mxu0 %v6228_v9 }
 0x507   :  { %5275 = vmatmul.mubr.msk.bf16.vlgmr.msra.gmra.mrb[12].mxu0 %vm130_vm0, %v5648_v22 }
 0x508   :  { %5288 = vmatprep.mubr.msk.bf16.mxu0 %vm460_vm2, %v844_v19 }
 0x5d2   :  { %v6303_v23 = vpop.f32.mrb[8].mxu0 }
 0x5d3   :  { %v6305_v24 = vpop.f32.mrb[9].mxu0 }
 0x5d4   :  { %v6307_v6 = vpop.f32.mrb[10].mxu0 }
 0x5d5   :  { %v630_v25 = vpack.c.bf16 %v6307_v6, %v6303_v23  ;;  %v6311_v26 = vpop.f32.mrb[11].mxu0 }
 0x5d6   :  { %v629_v9 = vpack.c.bf16 %v6311_v26, %v6305_v24 }
 0x5da   :  { %v763_v28 = vpop.f32.mrb[12].mxu0 }
 0x5db   :  { %v5276_v29 = vpop.f32.mrb[13].mxu0  ;;  %v764_v19 = vadd.f32 %v763_v28, %v714_v27 }
 0x5dc   :  { %v766_v17 = vpop.f32.mrb[14].mxu0 }
 0x5dd   :  { %v767_v30 = vadd.f32 %v766_v17, %v719_v16  ;;  %v5277_v31 = vpop.f32.mrb[15].mxu0 }
 0x5de   :  { %v5649_v31 = vld [vmem:[%s6075_s24 + $0x8] sm:$0xff]  }
 0x5df   :  { %v846_v32 = vpack.c.bf16 %v767_v30, %v764_v19 }
 0x5e1   :  { %5286 = vmatprep.subr.bf16.mxu0 %v846_v32 }
 0x5e2   :  { %5287 = vmatpush3.bf16.msra.mxu0 %v846_v32  ;;  %v5650_v32 = vld [vmem:[%s6075_s24] sm:$0xff]  }
 0x5e3   :  { %5300 = vmatprep.subr.bf16.mxu0 %v5649_v31 }
 0x5e5   :  { %5289 = vmatmul.mubr.msk.bf16.vlgmr.msra.gmra.mrb[16].mxu0 %vm460_vm2, %v845_v18 }
 0x5e6   :  { %5301 = vmatpush3.bf16.msra.mxu0 %v5649_v31 }
 0x5e7   :  { %5306 = vmatprep.subr.bf16.mxu0 %v5650_v32 }
 0x6b8   :  { %v5290_v33 = vpop.f32.mrb[16].mxu0 }
 0x6b9   :  { %v887_v34 = vpop.f32.mrb[17].mxu0  ;;  %v904_v35 = vmul.f32 0.25, %v5290_v33 }
 0x6ba   :  { %v902_v36 = vmul.f32 0.25, %v887_v34  ;;  %v5291_v37 = vpop.f32.mrb[18].mxu0 }
 0x6bb   :  { %v890_v38 = vpop.f32.mrb[19].mxu0  ;;  %v905_v41 = vmul.f32 0.25, %v5291_v37  ;;  %v908_v44 = vadd.f32 %v904_v35, %v6257_v55 }
 0x6bc   :  { %v903_v39 = vmul.f32 0.25, %v890_v38  ;;  %v906_v40 = vadd.f32 %v902_v36, %v6251_v48 }
 0x6bd   :  { %v916_v14 = vsel %vm130_vm0, %v908_v44, -inf  ;;  %v909_v18 = vadd.f32 %v905_v41, %v6265_v4 }
 0x6be   :  { %v910_v42 = vsel %vm130_vm0, %v906_v40, -inf  ;;  %v907_v43 = vadd.f32 %v903_v39, %v6254_v54  ;;  %v4781_v39 = vld [vmem:[%s6080_s30] ss:$0 sm:$0xff] }
 0x6bf   :  { %911 = vmax.xlane.f32.xlu0 %v910_v42  ;;  %v919_v45 = vsel %vm130_vm0, %v909_v18, -inf }
 0x6c0   :  { %v913_v8 = vsel %vm130_vm0, %v907_v43, -inf }
 0x6c1   :  { %914 = vmax.xlane.f32.xlu1 %v913_v8 }
 0x6c3   :  { %917 = vmax.xlane.f32.xlu0 %v916_v14 }
 0x6c7   :  { %920 = vmax.xlane.f32.xlu0 %v919_v45 }
 0x74c   :  { %v912_v48 = vpop.xlane.xlu0 %911 }
 0x74d   :  { %v922_v46 = vsub.f32 %v906_v40, %v912_v48 }
 0x74e   :  { %v915_v47 = vpop.xlane.xlu1 %914 }
 0x74f   :  { %v926_v54 = vmul.f32 1.442695, %v922_v46  ;;  %v923_v52 = vsub.f32 %v907_v43, %v915_v47 }
 0x750   :  { %v918_v49 = vpop.xlane.xlu0 %917 }
 0x751   :  { %v924_v51 = vsub.f32 %v908_v44, %v918_v49  ;;  %v928_v57 = vmul.f32 1.442695, %v923_v52 }
 0x753   :  { %v930_v55 = vmul.f32 1.442695, %v924_v51 }
 0x754   :  { %v921_v53 = vpop.xlane.xlu0 %920 }
 0x755   :  { %5733 = vpow2.f32 %v930_v55  ;;  %v925_v58 = vsub.f32 %v909_v18, %v921_v53 }
 0x756   :  { %5735 = vpow2.f32 %v926_v54 }
 0x757   :  { %5737 = vpow2.f32 %v928_v57  ;;  %v932_v59 = vmul.f32 1.442695, %v925_v58 }
 0x759   :  { %5739 = vpow2.f32 %v932_v59 }
 0x75f   :  { %v5734_v4 = vpop.eup %5733 }
 0x760   :  { %v940_v0 = vsel %vm130_vm0, %v5734_v4, 0.0  ;;  %v5736_v63 = vpop.eup %5735 }
 0x761   :  { %941 = vadd.xlane.f32.xlu0 %v940_v0  ;;  %v934_v2 = vsel %vm130_vm0, %v5736_v63, 0.0  ;;  %v5738_v3 = vpop.eup %5737 }
 0x762   :  { %v937_v5 = vsel %vm130_vm0, %v5738_v3, 0.0 }
 0x763   :  { %v5740_v7 = vpop.eup %5739 }
 0x764   :  { %v943_v10 = vsel %vm130_vm0, %v5740_v7, 0.0 }
 0x765   :  { %935 = vadd.xlane.f32.xlu0 %v934_v2 }
 0x769   :  { %938 = vadd.xlane.f32.xlu0 %v937_v5  ;;  %v5651_v5 = vld [vmem:[%s6095_s20] sm:$0xff]  }
 0x76a   :  { %5312 = vmatprep.subr.bf16.mxu1 %v5651_v5 }
 0x76d   :  { %944 = vadd.xlane.f32.xlu0 %v943_v10 }
 0x7ee   :  { %v942_v11 = vpop.xlane.xlu0 %941 }
 0x7f2   :  { %v936_v12 = vpop.xlane.xlu0 %935 }
 0x7f3   :  { %5741 = vrcp.f32 %v936_v12 }
 0x7f6   :  { %v939_v13 = vpop.xlane.xlu0 %938 }
 0x7f7   :  { %5743 = vrcp.f32 %v939_v13 }
 0x7f8   :  { %5745 = vrcp.f32 %v942_v11 }
 0x7fa   :  { %v945_v15 = vpop.xlane.xlu0 %944 }
 0x7fb   :  { %5747 = vrcp.f32 %v945_v15 }
 0x7fd   :  { %v5742_v20 = vpop.eup %5741 }
 0x7fe   :  { %v950_v22 = vmul.f32 %v5742_v20, %v5736_v63 }
 0x801   :  { %v5744_v21 = vpop.eup %5743 }
 0x802   :  { %v951_v27 = vmul.f32 %v5744_v21, %v5738_v3  ;;  %v5746_v28 = vpop.eup %5745 }
 0x803   :  { %v952_v17 = vmul.f32 %v5746_v28, %v5734_v4 }
 0x804   :  { %v954_v29 = vpack.c.bf16 %v951_v27, %v950_v22 }
 0x805   :  { %v5748_v16 = vpop.eup %5747 }
 0x806   :  { %v953_v19 = vmul.f32 %v5748_v16, %v5740_v7  ;;  %5296 = vmatprep.mubr.msk.bf16.mxu1 %vm130_vm0, %v954_v29  ;;  %v5652_v7 = vld [vmem:[%s6095_s20 + $0x8] sm:$0xff]  }
 0x808   :  { %v955_v30 = vpack.c.bf16 %v953_v19, %v952_v17 }
 0x80a   :  { %5297 = vmatmul.mubr.msk.bf16.vlgmr.msra.gmra.mrb[16].mxu1 %vm130_vm0, %v955_v30  ;;  %v4782_v30 = vld [vmem:[%s6085_s6] ss:$0 sm:$0xff] }
 0x80b   :  { %5313 = vmatpush3.bf16.msra.mxu1 %v5651_v5 }
 0x80c   :  { %5314 = vmatprep.subr.bf16.mxu1 %v5652_v7 }
 0x80f   :  { %5315 = vmatpush3.bf16.msra.mxu1 %v5652_v7 }
 0x8dd   :  { %v5298_v33 = vpop.f32.mrb[16].mxu1 }
 0x8de   :  { %v998_v34 = vpop.f32.mrb[17].mxu1 }
 0x8df   :  { %v5299_v35 = vpop.f32.mrb[18].mxu1 }
 0x8e0   :  { %v1017_v36 = vpack.c.bf16 %v5299_v35, %v5298_v33  ;;  %v1001_v37 = vpop.f32.mrb[19].mxu1 }
 0x8e1   :  { %v1016_v38 = vpack.c.bf16 %v1001_v37, %v998_v34  ;;  %v4783_v34 = vld [vmem:[%s6946_s0] ss:$0 sm:$0xff] }
 0x8e3   :  { %5302 = vmatprep.mubr.msk.bf16.mxu0 %vm460_vm2, %v1016_v38 }
 0x8e4   :  { %5303 = vmatmul.mubr.msk.bf16.vlgmr.msra.gmra.mrb[20].mxu0 %vm460_vm2, %v1017_v36 }
 0x8e5   :  { %5308 = vmatprep.mubr.msk.bf16.mxu0 %vm460_vm2, %v629_v9  ;;  %5307 = vmatpush3.bf16.msra.mxu0 %v5650_v32 }
 0x8f0   :  { %5309 = vmatmul.mubr.msk.bf16.vlgmr.msra.gmra.mrb[20].mxu0 %vm460_vm2, %v630_v25 }
 0x9c3   :  { %v5310_v40 = vpop.f32.mrb[20].mxu0 }
 0x9c4   :  { %v1125_v41 = vpop.f32.mrb[21].mxu0  ;;  %v1149_v26 = vadd.f32 %v5310_v40, %v4781_v39 }
 0x9c5   :  { %v1147_v42 = vadd.f32 %v4781_v39, %v1125_v41  ;;  %v5311_v43 = vpop.f32.mrb[22].mxu0 }
 0x9c6   :  { %v1150_v44 = vadd.f32 %v5311_v43, %v4781_v39  ;;  %v1128_v8 = vpop.f32.mrb[23].mxu0  ;;  %v1153_v25 = vadd.f32 %v1149_v26, %v6202_v61  ;;  %v5654_v26 = vld [vmem:[%s6947_s5 + $0x8] sm:$0xff]  }
 0x9c7   :  { %v1148_v14 = vadd.f32 %v4781_v39, %v1128_v8  ;;  %v1151_v18 = vadd.f32 %v1147_v42, %v6189_v50 }
 0x9c8   :  { %v1154_v24 = vadd.f32 %v1150_v44, %v6204_v62  ;;  %v1163_v48 = vsel %vm130_vm0, %v1153_v25, 0.0 }
 0x9c9   :  { %v1157_v9 = vsel %vm130_vm0, %v1151_v18, 0.0  ;;  %v1152_v45 = vadd.f32 %v1148_v14, %v6192_v56 }
 0x9ca   :  { %1158 = vadd.xlane.f32.xlu0 %v1157_v9  ;;  %v1166_v23 = vsel %vm130_vm0, %v1154_v24, 0.0  ;;  %v5655_v9 = vld [vmem:[%s6947_s5 + $0x10] sm:$0xff]  }
 0x9cb   :  { %1167 = vadd.xlane.f32.xlu1 %v1166_v23  ;;  %v1160_v6 = vsel %vm130_vm0, %v1152_v45, 0.0  ;;  %v5657_v23 = vld [vmem:[%s6947_s5 + $0x20] sm:$0xff]  }
 0x9ce   :  { %1161 = vadd.xlane.f32.xlu0 %v1160_v6  ;;  %v5658_v6 = vld [vmem:[%s6947_s5 + $0x28] sm:$0xff]  }
 0x9d2   :  { %1164 = vadd.xlane.f32.xlu0 %v1163_v48  ;;  %v5660_v48 = vld [vmem:[%s6947_s5 + $0x38] sm:$0xff]  }
 0xa57   :  { %v1159_v50 = vpop.xlane.xlu0 %1158 }
 0xa58   :  { %v1169_v46 = vmul.f32 0.03125, %v1159_v50  ;;  %v1168_v62 = vpop.xlane.xlu1 %1167  ;;  %v4784_v50 = vld [vmem:[%s6948_s17] ss:$0 sm:$0xff] }
 0xa59   :  { %v1172_v49 = vmul.f32 0.03125, %v1168_v62 }
 0xa5a   :  { %v1173_v47 = vsub.f32 %v1151_v18, %v1169_v46 }
 0xa5b   :  { %v1162_v51 = vpop.xlane.xlu0 %1161  ;;  %v1176_v52 = vsub.f32 %v1154_v24, %v1172_v49  ;;  %v5653_v24 = vld [vmem:[%s6947_s5] sm:$0xff]  }
 0xa5c   :  { %v1170_v54 = vmul.f32 0.03125, %v1162_v51  ;;  %v1177_v56 = vmul.f32 %v1173_v47, %v1173_v47  ;;  %5320 = vmatprep.subr.bf16.mxu1 %v5653_v24 }
 0xa5d   :  { %v1180_v0 = vmul.f32 %v1176_v52, %v1176_v52 }
 0xa5e   :  { %v1174_v55 = vsub.f32 %v1152_v45, %v1170_v54  ;;  %v1181_v53 = vsel %vm130_vm0, %v1177_v56, 0.0  ;;  %v5656_v45 = vld [vmem:[%s6947_s5 + $0x18] sm:$0xff]  }
 0xa5f   :  { %1182 = vadd.xlane.f32.xlu0 %v1181_v53  ;;  %v1165_v61 = vpop.xlane.xlu0 %1164  ;;  %v1190_v2 = vsel %vm130_vm0, %v1180_v0, 0.0 }
 0xa60   :  { %v1171_v57 = vmul.f32 0.03125, %v1165_v61  ;;  %v1178_v58 = vmul.f32 %v1174_v55, %v1174_v55 }
 0xa62   :  { %v1175_v59 = vsub.f32 %v1153_v25, %v1171_v57  ;;  %v1184_v4 = vsel %vm130_vm0, %v1178_v58, 0.0  ;;  %v5659_v25 = vld [vmem:[%s6947_s5 + $0x30] sm:$0xff]  }
 0xa63   :  { %1185 = vadd.xlane.f32.xlu1 %v1184_v4 }
 0xa64   :  { %v1179_v63 = vmul.f32 %v1175_v59, %v1175_v59 }
 0xa66   :  { %v1187_v3 = vsel %vm130_vm0, %v1179_v63, 0.0 }
 0xa67   :  { %1191 = vadd.xlane.f32.xlu1 %v1190_v2  ;;  %1188 = vadd.xlane.f32.xlu0 %v1187_v3 }
 0xaec   :  { %v1183_v10 = vpop.xlane.xlu0 %1182 }
 0xaed   :  { %v1193_v11 = vmul.f32 0.03125, %v1183_v10 }
 0xaef   :  { %v1197_v12 = vadd.f32 1e-12, %v1193_v11 }
 0xaf0   :  { %v1186_v13 = vpop.xlane.xlu1 %1185 }
 0xaf1   :  { %5749 = vrsqrt.f32 %v1197_v12  ;;  %v1194_v15 = vmul.f32 0.03125, %v1186_v13 }
 0xaf3   :  { %v1198_v20 = vadd.f32 1e-12, %v1194_v15 }
 0xaf4   :  { %v1192_v21 = vpop.xlane.xlu1 %1191  ;;  %v1189_v22 = vpop.xlane.xlu0 %1188 }
 0xaf5   :  { %5751 = vrsqrt.f32 %v1198_v20  ;;  %v1196_v27 = vmul.f32 0.03125, %v1192_v21  ;;  %v1195_v28 = vmul.f32 0.03125, %v1189_v22 }
 0xaf7   :  { %v1200_v29 = vadd.f32 1e-12, %v1196_v27  ;;  %v1199_v16 = vadd.f32 1e-12, %v1195_v28 }
 0xaf9   :  { %5753 = vrsqrt.f32 %v1200_v29 }
 0xafa   :  { %5755 = vrsqrt.f32 %v1199_v16 }
 0xafb   :  { %v5750_v17 = vpop.eup %5749 }
 0xafc   :  { %v1205_v19 = vmul.f32 %v5750_v17, %v1173_v47 }
 0xafe   :  { %v1215_v33 = vmul.f32 %v4782_v30, %v1205_v19 }
 0xaff   :  { %v5752_v31 = vpop.eup %5751 }
 0xb00   :  { %v1206_v32 = vmul.f32 %v5752_v31, %v1174_v55  ;;  %v6362_v39 = vadd.f32 %v4783_v34, %v1215_v33 }
 0xb02   :  { %v1216_v35 = vmul.f32 %v4782_v30, %v1206_v32 }
 0xb03   :  { %v5754_v36 = vpop.eup %5753 }
 0xb04   :  { %v5756_v37 = vpop.eup %5755  ;;  %v1208_v38 = vmul.f32 %v5754_v36, %v1176_v52  ;;  %v6364_v40 = vadd.f32 %v4783_v34, %v1216_v35 }
 0xb05   :  { %v1207_v41 = vmul.f32 %v5756_v37, %v1175_v59 }
 0xb06   :  { %v1233_v42 = vpack.c.bf16 %v6364_v40, %v6362_v39  ;;  %v1218_v43 = vmul.f32 %v4782_v30, %v1208_v38 }
 0xb07   :  { %v1217_v44 = vmul.f32 %v4782_v30, %v1207_v41 }
 0xb08   :  { %5316 = vmatprep.mubr.msk.bf16.mxu1 %vm130_vm0, %v1233_v42  ;;  %v6369_v8 = vadd.f32 %v4783_v34, %v1218_v43  ;;  %v4789_v43 = vld [vmem:[%s6949_s21] ss:$0 sm:$0xff] }
 0xb09   :  { %v6371_v14 = vadd.f32 %v4783_v34, %v1217_v44 }
 0xb0b   :  { %v1234_v18 = vpack.c.bf16 %v6369_v8, %v6371_v14 }
 0xb0d   :  { %5317 = vmatmul.mubr.msk.bf16.vlgmr.msra.gmra.mrb[20].mxu1 %vm130_vm0, %v1234_v18 }
 0xb0e   :  { %5321 = vmatpush3.bf16.msra.mxu1 %v5653_v24 }
 0xb0f   :  { %5322 = vmatprep.subr.bf16.mxu1 %v5654_v26 }
 0xb12   :  { %5323 = vmatpush3.bf16.msra.mxu1 %v5654_v26 }
 0xb13   :  { %5324 = vmatprep.subr.bf16.mxu1 %v5655_v9 }
 0xb16   :  { %5325 = vmatpush3.bf16.msra.mxu1 %v5655_v9 }
 0xb17   :  { %5326 = vmatprep.subr.bf16.mxu1 %v5656_v45 }
 0xb1a   :  { %5327 = vmatpush3.bf16.msra.mxu1 %v5656_v45 }
 0xb1b   :  { %5328 = vmatprep.subr.bf16.mxu1 %v5657_v23 }
 0xb1e   :  { %5329 = vmatpush3.bf16.msra.mxu1 %v5657_v23 }
 0xb1f   :  { %5330 = vmatprep.subr.bf16.mxu1 %v5658_v6 }
 0xb22   :  { %5331 = vmatpush3.bf16.msra.mxu1 %v5658_v6 }
 0xb23   :  { %5332 = vmatprep.subr.bf16.mxu1 %v5659_v25 }
 0xb26   :  { %5333 = vmatpush3.bf16.msra.mxu1 %v5659_v25 }
 0xb27   :  { %5334 = vmatprep.subr.bf16.mxu1 %v5660_v48 }
 0xb2a   :  { %5335 = vmatpush3.bf16.msra.mxu1 %v5660_v48 }
 0xbe0   :  { %v5318_v46 = vpop.f32.mrb[20].mxu1 }
 0xbe1   :  { %v1303_v62 = vadd.f32 %v5318_v46, %v4784_v50  ;;  %v1294_v47 = vpop.f32.mrb[21].mxu1 }
 0xbe2   :  { %v1295_v49 = vadd.f32 %v4784_v50, %v1294_v47  ;;  %v5319_v51 = vpop.f32.mrb[22].mxu1 }
 0xbe3   :  { %v1315_v54 = vmul.f32 0.044715, %v1303_v62  ;;  %v1306_v56 = vadd.f32 %v5319_v51, %v4784_v50  ;;  %v1297_v52 = vpop.f32.mrb[23].mxu1  ;;  %v1311_v19 = vmul.f32 0.5, %v1303_v62 }
 0xbe4   :  { %v1313_v55 = vmul.f32 0.044715, %v1295_v49  ;;  %v1298_v53 = vadd.f32 %v4784_v50, %v1297_v52  ;;  %v1309_v32 = vmul.f32 0.5, %v1295_v49 }
 0xbe5   :  { %v1319_v61 = vmul.f32 %v1315_v54, %v1303_v62  ;;  %v1316_v57 = vmul.f32 0.044715, %v1306_v56  ;;  %v1312_v30 = vmul.f32 0.5, %v1306_v56 }
 0xbe6   :  { %v1317_v58 = vmul.f32 %v1313_v55, %v1295_v49  ;;  %v1314_v59 = vmul.f32 0.044715, %v1298_v53  ;;  %v1310_v33 = vmul.f32 0.5, %v1298_v53 }
 0xbe7   :  { %v1323_v4 = vmul.f32 %v1319_v61, %v1303_v62  ;;  %v1320_v0 = vmul.f32 %v1316_v57, %v1306_v56 }
 0xbe8   :  { %v1321_v63 = vmul.f32 %v1317_v58, %v1295_v49  ;;  %v1318_v2 = vmul.f32 %v1314_v59, %v1298_v53 }
 0xbe9   :  { %v1327_v3 = vadd.f32 %v1323_v4, %v1303_v62  ;;  %v1324_v5 = vmul.f32 %v1320_v0, %v1306_v56 }
 0xbea   :  { %v1322_v7 = vmul.f32 %v1318_v2, %v1298_v53  ;;  %v1325_v10 = vadd.f32 %v1321_v63, %v1295_v49 }
 0xbeb   :  { %v1331_v11 = vmul.f32 0.7978846, %v1327_v3  ;;  %v1328_v12 = vadd.f32 %v1324_v5, %v1306_v56 }
 0xbec   :  { %v1326_v13 = vadd.f32 %v1322_v7, %v1298_v53  ;;  %v1329_v15 = vmul.f32 0.7978846, %v1325_v10  ;;  %v4812_v10 = vld [vmem:[%s6060_s8 + $0x20] sm:$0xff] }
 0xbed   :  { %5757 = vtanh.f32 %v1331_v11  ;;  %v1332_v20 = vmul.f32 0.7978846, %v1328_v12  ;;  %v4813_v11 = vld [vmem:[%s6060_s8 + $0x28] sm:$0xff]  ;;  %v5661_v12 = vld [vmem:[%s6045_s25 + $0x20] sm:$0xff]  }
 0xbee   :  { %v1330_v21 = vmul.f32 0.7978846, %v1326_v13  ;;  %5759 = vtanh.f32 %v1329_v15  ;;  %5340 = vmatprep.subr.bf16.mxu0 %v5661_v12  ;;  %v5662_v13 = vld [vmem:[%s6045_s25 + $0x28] sm:$0xff]  }
 0xbef   :  { %5761 = vtanh.f32 %v1332_v20  ;;  %5341 = vmatpush3.bf16.msra.mxu0 %v5661_v12 }
 0xbf0   :  { %5763 = vtanh.f32 %v1330_v21  ;;  %5342 = vmatprep.subr.bf16.mxu0 %v5662_v13 }
 0xbf3   :  { %5343 = vmatpush3.bf16.msra.mxu0 %v5662_v13  ;;  %v5666_v13 = vld [vmem:[%s6045_s25 + $0x30] sm:$0xff]  }
 0xbf4   :  { %5348 = vmatprep.subr.bf16.mxu0 %v6005_v60 }
 0xbf7   :  { %v5758_v22 = vpop.eup %5757 }
 0xbf8   :  { %v5760_v27 = vpop.eup %5759  ;;  %v1339_v28 = vadd.f32 1.0, %v5758_v22 }
 0xbf9   :  { %v5762_v29 = vpop.eup %5761  ;;  %v1337_v16 = vadd.f32 1.0, %v5760_v27 }
 0xbfa   :  { %v5764_v17 = vpop.eup %5763  ;;  %v1340_v31 = vadd.f32 1.0, %v5762_v29  ;;  %v1343_v35 = vmul.f32 %v1339_v28, %v1311_v19 }
 0xbfb   :  { %v1338_v34 = vadd.f32 1.0, %v5764_v17  ;;  %v1341_v37 = vmul.f32 %v1337_v16, %v1309_v32 }
 0xbfc   :  { %v1344_v36 = vmul.f32 %v1340_v31, %v1312_v30 }
 0xbfd   :  { %v1342_v38 = vmul.f32 %v1338_v34, %v1310_v33  ;;  %v4798_v33 = vld [vmem:[%s6950_s15] ss:$0 sm:$0xff] }
 0xbfe   :  { %v1362_v41 = vpack.c.bf16 %v1344_v36, %v1343_v35  ;;  %v4799_v36 = vld [vmem:[%s6951_s16] ss:$0 sm:$0xff] }
 0xbff   :  { %v1361_v42 = vpack.c.bf16 %v1342_v38, %v1341_v37 }
 0xc01   :  { %5336 = vmatprep.mubr.bf16.mxu1 %v1361_v42 }
 0xc02   :  { %5337 = vmatmul.mubr.bf16.vlgmr.msra.gmra.mrb[24].mxu1 %v1362_v41 }
 0xcd5   :  { %v5338_v44 = vpop.f32.mrb[24].mxu1 }
 0xcd6   :  { %v1452_v18 = vpop.f32.mrb[25].mxu1  ;;  %v1461_v24 = vadd.f32 %v5338_v44, %v4789_v43 }
 0xcd7   :  { %v1453_v26 = vadd.f32 %v4789_v43, %v1452_v18  ;;  %v5339_v9 = vpop.f32.mrb[26].mxu1 }
 0xcd8   :  { %v1455_v45 = vpop.f32.mrb[27].mxu1  ;;  %v1464_v23 = vadd.f32 %v5339_v9, %v4789_v43  ;;  %v1469_v46 = vadd.f32 %v1461_v24, %v6371_v14 }
 0xcd9   :  { %v1456_v6 = vadd.f32 %v4789_v43, %v1455_v45  ;;  %v1467_v25 = vadd.f32 %v1453_v26, %v6362_v39 }
 0xcda   :  { %v1470_v47 = vadd.f32 %v1464_v23, %v6369_v8  ;;  %v1479_v49 = vsel %vm130_vm0, %v1469_v46, 0.0 }
 0xcdb   :  { %v1473_v48 = vsel %vm130_vm0, %v1467_v25, 0.0  ;;  %v1468_v50 = vadd.f32 %v1456_v6, %v6364_v40 }
 0xcdc   :  { %1474 = vadd.xlane.f32.xlu0 %v1473_v48  ;;  %v1482_v51 = vsel %vm130_vm0, %v1470_v47, 0.0 }
 0xcdd   :  { %v1476_v62 = vsel %vm130_vm0, %v1468_v50, 0.0 }
 0xcde   :  { %1477 = vadd.xlane.f32.xlu1 %v1476_v62 }
 0xce0   :  { %1480 = vadd.xlane.f32.xlu0 %v1479_v49 }
 0xce2   :  { %1483 = vadd.xlane.f32.xlu1 %v1482_v51  ;;  %v5664_v51 = vld [vmem:[%s6065_s14 + $0x20] sm:$0xff]  }
 0xd69   :  { %v1475_v54 = vpop.xlane.xlu0 %1474 }
 0xd6a   :  { %v1485_v39 = vmul.f32 0.03125, %v1475_v54 }
 0xd6b   :  { %v1478_v56 = vpop.xlane.xlu1 %1477 }
 0xd6c   :  { %v1489_v52 = vsub.f32 %v1467_v25, %v1485_v39  ;;  %v1486_v55 = vmul.f32 0.03125, %v1478_v56  ;;  %v5663_v39 = vld [vmem:[%s6055_s3 + $0x10] sm:$0xff]   ;;  %v5665_v56 = vld [vmem:[%s6065_s14 + $0x28] sm:$0xff]  }
 0xd6d   :  { %v1481_v40 = vpop.xlane.xlu0 %1480 }
 0xd6e   :  { %v1490_v53 = vsub.f32 %v1468_v50, %v1486_v55  ;;  %v1487_v14 = vmul.f32 0.03125, %v1481_v40  ;;  %v1493_v61 = vmul.f32 %v1489_v52, %v1489_v52 }
 0xd6f   :  { %v1484_v57 = vpop.xlane.xlu1 %1483 }
 0xd70   :  { %v1491_v58 = vsub.f32 %v1469_v46, %v1487_v14  ;;  %v1488_v8 = vmul.f32 0.03125, %v1484_v57  ;;  %v1497_v59 = vsel %vm130_vm0, %v1493_v61, 0.0  ;;  %v1494_v4 = vmul.f32 %v1490_v53, %v1490_v53 }
 0xd71   :  { %1498 = vadd.xlane.f32.xlu0 %v1497_v59 }
 0xd72   :  { %v1492_v0 = vsub.f32 %v1470_v47, %v1488_v8  ;;  %v1500_v63 = vsel %vm130_vm0, %v1494_v4, 0.0  ;;  %v1495_v2 = vmul.f32 %v1491_v58, %v1491_v58 }
 0xd73   :  { %1501 = vadd.xlane.f32.xlu1 %v1500_v63 }
 0xd74   :  { %v1503_v3 = vsel %vm130_vm0, %v1495_v2, 0.0  ;;  %v1496_v5 = vmul.f32 %v1492_v0, %v1492_v0 }
 0xd75   :  { %1504 = vadd.xlane.f32.xlu0 %v1503_v3 }
 0xd76   :  { %v1506_v7 = vsel %vm130_vm0, %v1496_v5, 0.0 }
 0xd77   :  { %1507 = vadd.xlane.f32.xlu1 %v1506_v7 }
 0xd88   :  { %1669 = vperm.xlu1 %5637, %v4812_v10  }
 0xd8c   :  { %1674 = vperm.xlu1 %5637, %v4813_v11  }
 0xdfe   :  { %v1499_v15 = vpop.xlane.xlu0 %1498 }
 0xdff   :  { %v1509_v20 = vmul.f32 0.03125, %v1499_v15 }
 0xe00   :  { %v1502_v21 = vpop.xlane.xlu1 %1501 }
 0xe01   :  { %v1513_v22 = vadd.f32 1e-12, %v1509_v20  ;;  %v1510_v27 = vmul.f32 0.03125, %v1502_v21  ;;  %v4821_v20 = vld [vmem:[%s6070_s19 + $0x2] ss:$0 sm:$0xff] }
 0xe02   :  { %v1505_v28 = vpop.xlane.xlu0 %1504 }
 0xe03   :  { %5765 = vrsqrt.f32 %v1513_v22  ;;  %v1514_v29 = vadd.f32 1e-12, %v1510_v27  ;;  %v1511_v16 = vmul.f32 0.03125, %v1505_v28  ;;  %v5667_v22 = vld [vmem:[%s6045_s25 + $0x38] sm:$0xff]  }
 0xe04   :  { %v1508_v17 = vpop.xlane.xlu1 %1507 }
 0xe05   :  { %5767 = vrsqrt.f32 %v1514_v29  ;;  %v1515_v19 = vadd.f32 1e-12, %v1511_v16  ;;  %v1512_v30 = vmul.f32 0.03125, %v1508_v17 }
 0xe07   :  { %5769 = vrsqrt.f32 %v1515_v19  ;;  %v1516_v31 = vadd.f32 1e-12, %v1512_v30 }
 0xe09   :  { %5771 = vrsqrt.f32 %v1516_v31  ;;  %v5668_v31 = vld [vmem:[%s6065_s14 + $0x30] sm:$0xff]  }
 0xe0d   :  { %v5766_v32 = vpop.eup %5765 }
 0xe0e   :  { %v1521_v34 = vmul.f32 %v5766_v32, %v1489_v52  ;;  %v4805_v52 = vld [vmem:[%s6050_s29 + $0x2] ss:$0 sm:$0xff] }
 0xe0f   :  { %v5768_v35 = vpop.eup %5767 }
 0xe10   :  { %v1531_v37 = vmul.f32 %v4798_v33, %v1521_v34  ;;  %v1522_v38 = vmul.f32 %v5768_v35, %v1490_v53 }
 0xe11   :  { %v5770_v41 = vpop.eup %5769 }
 0xe12   :  { %v6405_v42 = vadd.f32 %v4799_v36, %v1531_v37  ;;  %v1532_v43 = vmul.f32 %v4798_v33, %v1522_v38  ;;  %v1523_v44 = vmul.f32 %v5770_v41, %v1491_v58 }
 0xe13   :  { %v5772_v18 = vpop.eup %5771 }
 0xe14   :  { %v1524_v24 = vmul.f32 %v5772_v18, %v1492_v0  ;;  %1545 = vxpose.xlu0.b32.start [1/4] (short) (narrow) %v6405_v42, 32  ;;  %v6408_v26 = vadd.f32 %v4799_v36, %v1532_v43  ;;  %v1533_v9 = vmul.f32 %v4798_v33, %v1523_v44  ;;  %v1670_v0 = vpop.permute.xlu1 %1669  ;;  %v6464_v44 = vld [vmem:[%s6025_s9] sm:$0xff] }
 0xe16   :  { %v1534_v45 = vmul.f32 %v4798_v33, %v1524_v24  ;;  %v6412_v23 = vpack.c.bf16 %v6408_v26, %v6405_v42  ;;  %v6419_v25 = vadd.f32 %v4799_v36, %v1533_v9  ;;  %v5669_v33 = vld [vmem:[%s6065_s14 + $0x38] sm:$0xff]  }
 0xe18   :  { %v6414_v6 = vadd.f32 %v4799_v36, %v1534_v45  ;;  %1546 = vxpose.xlu0.b32.cont [2/4] (short) (narrow) %v6408_v26, 32  ;;  %5344 = vmatprep.mubr.msk.bf16.mxu0 %vm130_vm0, %v6412_v23  ;;  %v1675_v3 = vpop.permute.xlu1 %1674  ;;  %v4837_v45 = vld [vmem:[%s6050_s29 + $0x3] ss:$0 sm:$0xff] }
 0xe1a   :  { %v6423_v48 = vpack.c.bf16 %v6414_v6, %v6419_v25 }
 0xe1c   :  { %1547 = vxpose.xlu0.b32.cont [3/4] (short) (narrow) %v6419_v25, 32  ;;  %5345 = vmatmul.mubr.msk.bf16.vlgmr.msra.gmra.mrb[24].mxu0 %vm130_vm0, %v6423_v48 }
 0xe1d   :  { %5352 = vmatprep.mubr.msk.bf16.mxu0 %vm6006_vm1, %v6005_v60 }
 0xe20   :  { %1548 = vxpose.xlu0.b32.end [4/4] (short) (narrow) %v6414_v6, 32 }
 0xe94   :  { %v1561_v50 = vpop.trf.xlu0 }
 0xe98   :  { %v1562_v46 = vpop.trf.xlu0 }
 0xe99   :  { %v6431_v62 = vpack.c.bf16 %v1562_v46, %v1561_v50  ;;  %v6474_v50 = vld [vmem:[%s6025_s9 + $0x10] sm:$0xff] }
 0xe9b   :  { %5349 = vmatpush3.bf16.msra.mxu0 %v6431_v62 }
 0xe9c   :  { %v1563_v47 = vpop.trf.xlu0  ;;  %5350 = vmatprep.subr.bf16.mxu0 %v6005_v60 }
 0xea0   :  { %v1564_v49 = vpop.trf.xlu0 }
 0xea1   :  { %v6436_v54 = vpack.c.bf16 %v1564_v49, %v1563_v47 }
 0xea3   :  { %5351 = vmatpush3.bf16.msra.mxu0 %v6436_v54 }
 0xea4   :  { %5356 = vmatprep.subr.bf16.mxu0 %v5664_v51 }
 0xea6   :  { %5353 = vmatmul.mubr.msk.bf16.vlgmr.msra.gmra.mrb[28].mxu0 %vm130_vm0, %v5663_v39 }
 0xea7   :  { %5357 = vmatpush3.bf16.msra.mxu0 %v5664_v51  ;;  %5360 = vmatprep.mubr.msk.bf16.mxu0 %vm130_vm0, %v6412_v23 }
 0xea8   :  { %5358 = vmatprep.subr.bf16.mxu0 %v5665_v56 }
 0xeab   :  { %5359 = vmatpush3.bf16.msra.mxu0 %v5665_v56 }
 0xeae   :  { %5361 = vmatmul.mubr.msk.bf16.vlgmr.msra.gmra.mrb[32].mxu0 %vm130_vm0, %v6423_v48 }
 0xeef   :  { %v5346_v55 = vpop.f32.mrb[24].mxu0 }
 0xef0   :  { %v1653_v40 = vadd.f32 %v5346_v55, %v4805_v52  ;;  %v1644_v53 = vpop.f32.mrb[25].mxu0  ;;  %v6482_v55 = vld [vmem:[%s6025_s9 + $0x18] sm:$0xff] }
 0xef1   :  { %v5347_v14 = vpop.f32.mrb[26].mxu0  ;;  %v1645_v58 = vadd.f32 %v4805_v52, %v1644_v53 }
 0xef2   :  { %v1656_v61 = vadd.f32 %v5347_v14, %v4805_v52  ;;  %v1647_v57 = vpop.f32.mrb[27].mxu0 }
 0xef3   :  { %v1648_v8 = vadd.f32 %v4805_v52, %v1647_v57 }
 0xef4   :  { %v1801_v59 = vpack.c.bf16 %v1656_v61, %v1653_v40 }
 0xef5   :  { %v1800_v4 = vpack.c.bf16 %v1648_v8, %v1645_v58 }
 0xef7   :  { %5366 = vmatprep.mubr.msk.bf16.mxu0 %vm460_vm2, %v1800_v4 }
 0xf79   :  { %v1719_v63 = vpop.f32.mrb[28].mxu0 }
 0xf7a   :  { %v5354_v2 = vpop.f32.mrb[29].mxu0  ;;  %v1720_v7 = vadd.f32 %v1719_v63, %v1670_v0  ;;  %v4853_v0 = vld [vmem:[%s6070_s19 + $0x3] ss:$0 sm:$0xff] }
 0xf7b   :  { %v1722_v5 = vpop.f32.mrb[30].mxu0 }
 0xf7c   :  { %v1723_v10 = vadd.f32 %v1722_v5, %v1675_v3  ;;  %v5355_v11 = vpop.f32.mrb[31].mxu0 }
 0xf7e   :  { %v1802_v12 = vpack.c.bf16 %v1723_v10, %v1720_v7 }
 0xf80   :  { %5364 = vmatprep.subr.bf16.mxu0 %v1802_v12 }
 0xf81   :  { %v5362_v15 = vpop.f32.mrb[32].mxu0  ;;  %5365 = vmatpush3.bf16.msra.mxu0 %v1802_v12 }
 0xf82   :  { %v1785_v21 = vpop.f32.mrb[33].mxu0  ;;  %5378 = vmatprep.subr.bf16.mxu0 %v5666_v13  ;;  %v1794_v28 = vadd.f32 %v5362_v15, %v4821_v20 }
 0xf83   :  { %v5363_v27 = vpop.f32.mrb[34].mxu0  ;;  %v1786_v17 = vadd.f32 %v4821_v20, %v1785_v21 }
 0xf84   :  { %v1797_v29 = vadd.f32 %v5363_v27, %v4821_v20  ;;  %v1788_v16 = vpop.f32.mrb[35].mxu0  ;;  %5367 = vmatmul.mubr.msk.bf16.vlgmr.msra.gmra.mrb[36].mxu0 %vm460_vm2, %v1801_v59 }
 0xf85   :  { %v1789_v19 = vadd.f32 %v4821_v20, %v1788_v16  ;;  %5379 = vmatpush3.bf16.msra.mxu0 %v5666_v13  ;;  %5382 = vmatprep.mubr.msk.bf16.mxu0 %vm130_vm0, %v6412_v23 }
 0xf86   :  { %v1913_v30 = vpack.c.bf16 %v1797_v29, %v1794_v28  ;;  %5380 = vmatprep.subr.bf16.mxu0 %v5667_v22 }
 0xf87   :  { %v1912_v32 = vpack.c.bf16 %v1789_v19, %v1786_v17 }
 0xf89   :  { %5370 = vmatprep.subr.bf16.mxu1 %v1912_v32  ;;  %5381 = vmatpush3.bf16.msra.mxu0 %v5667_v22 }
 0xf8a   :  { %5371 = vmatpush3.bf16.msra.mxu1 %v1912_v32  ;;  %5394 = vmatprep.subr.bf16.mxu0 %v5668_v31 }
 0xf8b   :  { %5372 = vmatprep.subr.bf16.mxu1 %v1913_v30 }
 0xf8c   :  { %5383 = vmatmul.mubr.msk.bf16.vlgmr.msra.gmra.mrb[40].mxu0 %vm130_vm0, %v6423_v48 }
 0xf8d   :  { %5395 = vmatpush3.bf16.msra.mxu0 %v5668_v31  ;;  %5398 = vmatprep.mubr.msk.bf16.mxu0 %vm130_vm0, %v6412_v23  ;;  %v6470_v23 = vld [vmem:[%s6025_s9 + $0x8] sm:$0xff] }
 0xf8e   :  { %5373 = vmatpush3.bf16.msra.mxu1 %v1913_v30  ;;  %5396 = vmatprep.subr.bf16.mxu0 %v5669_v33 }
 0xf8f   :  { %5386 = vmatprep.subr.bf16.mxu1 %v6005_v60 }
 0xf91   :  { %5397 = vmatpush3.bf16.msra.mxu0 %v5669_v33 }
 0xf94   :  { %5399 = vmatmul.mubr.msk.bf16.vlgmr.msra.gmra.mrb[44].mxu0 %vm130_vm0, %v6423_v48 }
0x1057   :  { %v5368_v34 = vpop.f32.mrb[36].mxu0 }
0x1058   :  { %v1843_v35 = vpop.f32.mrb[37].mxu0  ;;  %v1860_v36 = vmul.f32 0.25, %v5368_v34 }
0x1059   :  { %v1858_v37 = vmul.f32 0.25, %v1843_v35  ;;  %v5369_v38 = vpop.f32.mrb[38].mxu0 }
0x105a   :  { %v1846_v41 = vpop.f32.mrb[39].mxu0  ;;  %v1861_v24 = vmul.f32 0.25, %v5369_v38  ;;  %v1864_v46 = vadd.f32 %v6474_v50, %v1860_v36 }
0x105b   :  { %v1859_v43 = vmul.f32 0.25, %v1846_v41  ;;  %v1862_v18 = vadd.f32 %v6464_v44, %v1858_v37 }
0x105c   :  { %v1872_v52 = vsel %vm130_vm0, %v1864_v46, -inf  ;;  %v1865_v40 = vadd.f32 %v6482_v55, %v1861_v24 }
0x105d   :  { %v1866_v9 = vsel %vm130_vm0, %v1862_v18, -inf  ;;  %v1863_v48 = vadd.f32 %v6470_v23, %v1859_v43  ;;  %v4844_v43 = vld [vmem:[%s6060_s8 + $0x30] sm:$0xff] }
0x105e   :  { %1867 = vmax.xlane.f32.xlu1 %v1866_v9  ;;  %v1875_v59 = vsel %vm130_vm0, %v1865_v40, -inf }
0x105f   :  { %v5384_v47 = vpop.f32.mrb[40].mxu0  ;;  %v1869_v49 = vsel %vm130_vm0, %v1863_v48, -inf }
0x1060   :  { %v6478_v51 = vadd.f32 %v5384_v47, %v4837_v45  ;;  %v2033_v39 = vpop.f32.mrb[41].mxu0  ;;  %1870 = vmax.xlane.f32.xlu0 %v1869_v49 }
0x1061   :  { %v5385_v56 = vpop.f32.mrb[42].mxu0  ;;  %v6487_v61 = vadd.f32 %v4837_v45, %v2033_v39 }
0x1062   :  { %v6485_v53 = vadd.f32 %v5385_v56, %v4837_v45  ;;  %1873 = vmax.xlane.f32.xlu1 %v1872_v52  ;;  %v2036_v14 = vpop.f32.mrb[43].mxu0 }
0x1063   :  { %v6489_v57 = vadd.f32 %v4837_v45, %v2036_v14 }
0x1064   :  { %v2188_v58 = vpack.c.bf16 %v6485_v53, %v6478_v51 }
0x1065   :  { %v2187_v8 = vpack.c.bf16 %v6489_v57, %v6487_v61 }
0x1066   :  { %1876 = vmax.xlane.f32.xlu1 %v1875_v59 }
0x1067   :  { %v5400_v4 = vpop.f32.mrb[44].mxu0 }
0x1068   :  { %v2172_v63 = vpop.f32.mrb[45].mxu0  ;;  %v2181_v3 = vadd.f32 %v5400_v4, %v4853_v0 }
0x1069   :  { %v5401_v2 = vpop.f32.mrb[46].mxu0  ;;  %v2173_v10 = vadd.f32 %v4853_v0, %v2172_v63 }
0x106a   :  { %v2184_v5 = vadd.f32 %v5401_v2, %v4853_v0  ;;  %v2175_v7 = vpop.f32.mrb[47].mxu0 }
0x106b   :  { %v2176_v11 = vadd.f32 %v4853_v0, %v2175_v7  ;;  %v5670_v0 = vld [vmem:[%s6055_s3 + $0x18] sm:$0xff]  }
0x106c   :  { %v2300_v12 = vpack.c.bf16 %v2184_v5, %v2181_v3 }
0x106d   :  { %v2299_v13 = vpack.c.bf16 %v2176_v11, %v2173_v10 }
0x106f   :  { %5408 = vmatprep.subr.bf16.mxu0 %v2299_v13 }
0x1070   :  { %5409 = vmatpush3.bf16.msra.mxu0 %v2299_v13 }
0x1071   :  { %5410 = vmatprep.subr.bf16.mxu0 %v2300_v12 }
0x1074   :  { %5411 = vmatpush3.bf16.msra.mxu0 %v2300_v12 }
0x10eb   :  { %v1868_v15 = vpop.xlane.xlu1 %1867 }
0x10ec   :  { %v1878_v20 = vsub.f32 %v1862_v18, %v1868_v15  ;;  %v4845_v18 = vld [vmem:[%s6060_s8 + $0x38] sm:$0xff] }
0x10ed   :  { %v1871_v21 = vpop.xlane.xlu0 %1870 }
0x10ee   :  { %v1882_v28 = vmul.f32 1.442695, %v1878_v20  ;;  %v1879_v29 = vsub.f32 %v1863_v48, %v1871_v21 }
0x10ef   :  { %v1874_v22 = vpop.xlane.xlu1 %1873 }
0x10f0   :  { %v1880_v27 = vsub.f32 %v1864_v46, %v1874_v22  ;;  %v1884_v19 = vmul.f32 1.442695, %v1879_v29 }
0x10f2   :  { %v1886_v16 = vmul.f32 1.442695, %v1880_v27 }
0x10f3   :  { %v1877_v17 = vpop.xlane.xlu1 %1876 }
0x10f4   :  { %5773 = vpow2.f32 %v1886_v16  ;;  %v1881_v30 = vsub.f32 %v1865_v40, %v1877_v17 }
0x10f5   :  { %5775 = vpow2.f32 %v1882_v28 }
0x10f6   :  { %5777 = vpow2.f32 %v1884_v19  ;;  %v1888_v31 = vmul.f32 1.442695, %v1881_v30 }
0x10f8   :  { %5779 = vpow2.f32 %v1888_v31 }
0x10fe   :  { %v5774_v32 = vpop.eup %5773 }
0x10ff   :  { %v1896_v33 = vsel %vm130_vm0, %v5774_v32, 0.0  ;;  %v5776_v34 = vpop.eup %5775 }
0x1100   :  { %1897 = vadd.xlane.f32.xlu1 %v1896_v33  ;;  %v1890_v35 = vsel %vm130_vm0, %v5776_v34, 0.0  ;;  %v5778_v36 = vpop.eup %5777 }
0x1101   :  { %v1893_v37 = vsel %vm130_vm0, %v5778_v36, 0.0 }
0x1102   :  { %v5780_v38 = vpop.eup %5779 }
0x1103   :  { %v1899_v41 = vsel %vm130_vm0, %v5780_v38, 0.0 }
0x1104   :  { %1891 = vadd.xlane.f32.xlu1 %v1890_v35 }
0x1108   :  { %1894 = vadd.xlane.f32.xlu1 %v1893_v37 }
0x110c   :  { %1900 = vadd.xlane.f32.xlu1 %v1899_v41 }
0x111d   :  { %2056 = vperm.xlu1 %5637, %v4844_v43  }
0x1121   :  { %2061 = vperm.xlu1 %5637, %v4845_v18  }
0x118d   :  { %v1898_v24 = vpop.xlane.xlu1 %1897 }
0x1191   :  { %v1892_v9 = vpop.xlane.xlu1 %1891 }
0x1192   :  { %5781 = vrcp.f32 %v1892_v9 }
0x1195   :  { %v1895_v45 = vpop.xlane.xlu1 %1894 }
0x1196   :  { %5783 = vrcp.f32 %v1895_v45 }
0x1197   :  { %5785 = vrcp.f32 %v1898_v24 }
0x1199   :  { %v1901_v48 = vpop.xlane.xlu1 %1900 }
0x119a   :  { %5787 = vrcp.f32 %v1901_v48 }
0x119c   :  { %v5782_v46 = vpop.eup %5781 }
0x119d   :  { %v1906_v49 = vmul.f32 %v5782_v46, %v5776_v34  ;;  %v2057_v7 = vpop.permute.xlu1 %2056 }
0x11a0   :  { %v5784_v47 = vpop.eup %5783 }
0x11a1   :  { %v1907_v39 = vmul.f32 %v5784_v47, %v5778_v36  ;;  %v5786_v56 = vpop.eup %5785  ;;  %v2062_v61 = vpop.permute.xlu1 %2061 }
0x11a2   :  { %v1908_v14 = vmul.f32 %v5786_v56, %v5774_v32 }
0x11a3   :  { %v1910_v52 = vpack.c.bf16 %v1907_v39, %v1906_v49 }
0x11a4   :  { %v5788_v40 = vpop.eup %5787 }
0x11a5   :  { %v1909_v59 = vmul.f32 %v5788_v40, %v5780_v38  ;;  %5374 = vmatprep.mubr.msk.bf16.mxu1 %vm130_vm0, %v1910_v52 }
0x11a7   :  { %v1911_v4 = vpack.c.bf16 %v1909_v59, %v1908_v14 }
0x11a9   :  { %5375 = vmatmul.mubr.msk.bf16.vlgmr.msra.gmra.mrb[28].mxu1 %vm130_vm0, %v1911_v4 }
0x11aa   :  { %5387 = vmatpush3.bf16.msra.mxu1 %v6431_v62  ;;  %5390 = vmatprep.mubr.msk.bf16.mxu1 %vm6006_vm1, %v6005_v60 }
0x11ab   :  { %5388 = vmatprep.subr.bf16.mxu1 %v6005_v60 }
0x11ae   :  { %5389 = vmatpush3.bf16.msra.mxu1 %v6436_v54 }
0x11b1   :  { %5391 = vmatmul.mubr.msk.bf16.vlgmr.msra.gmra.mrb[32].mxu1 %vm130_vm0, %v5670_v0 }
0x11b2   :  { %5404 = vmatprep.mubr.msk.bf16.mxu1 %vm460_vm2, %v2187_v8 }
0x127c   :  { %v6516_v63 = vpop.f32.mrb[28].mxu1 }
0x127d   :  { %v6518_v2 = vpop.f32.mrb[29].mxu1 }
0x127e   :  { %v6520_v62 = vpop.f32.mrb[30].mxu1 }
0x127f   :  { %v1973_v3 = vpack.c.bf16 %v6520_v62, %v6516_v63  ;;  %v6524_v5 = vpop.f32.mrb[31].mxu1 }
0x1280   :  { %v1972_v54 = vpack.c.bf16 %v6524_v5, %v6518_v2 }
0x1284   :  { %v2106_v10 = vpop.f32.mrb[32].mxu1 }
0x1285   :  { %v5392_v11 = vpop.f32.mrb[33].mxu1  ;;  %v2107_v8 = vadd.f32 %v2106_v10, %v2057_v7 }
0x1286   :  { %v2109_v57 = vpop.f32.mrb[34].mxu1 }
0x1287   :  { %v2110_v12 = vadd.f32 %v2109_v57, %v2062_v61  ;;  %v5393_v13 = vpop.f32.mrb[35].mxu1 }
0x1288   :  { %v5671_v13 = vld [vmem:[%s6075_s24 + $0x18] sm:$0xff]  }
0x1289   :  { %v2189_v15 = vpack.c.bf16 %v2110_v12, %v2107_v8 }
0x128b   :  { %5402 = vmatprep.subr.bf16.mxu1 %v2189_v15 }
0x128c   :  { %5403 = vmatpush3.bf16.msra.mxu1 %v2189_v15  ;;  %v5672_v15 = vld [vmem:[%s6075_s24 + $0x10] sm:$0xff]  }
0x128d   :  { %5416 = vmatprep.subr.bf16.mxu1 %v5671_v13 }
0x128f   :  { %5405 = vmatmul.mubr.msk.bf16.vlgmr.msra.gmra.mrb[36].mxu1 %vm460_vm2, %v2188_v58 }
0x1290   :  { %5417 = vmatpush3.bf16.msra.mxu1 %v5671_v13 }
0x1291   :  { %5422 = vmatprep.subr.bf16.mxu1 %v5672_v15 }
0x1362   :  { %v5406_v20 = vpop.f32.mrb[36].mxu1 }
0x1363   :  { %v2230_v21 = vpop.f32.mrb[37].mxu1  ;;  %v2247_v22 = vmul.f32 0.25, %v5406_v20 }
0x1364   :  { %v2245_v27 = vmul.f32 0.25, %v2230_v21  ;;  %v5407_v28 = vpop.f32.mrb[38].mxu1 }
0x1365   :  { %v2233_v29 = vpop.f32.mrb[39].mxu1  ;;  %v2248_v19 = vmul.f32 0.25, %v5407_v28  ;;  %v2251_v32 = vadd.f32 %v6474_v50, %v2247_v22 }
0x1366   :  { %v2246_v16 = vmul.f32 0.25, %v2233_v29  ;;  %v2249_v17 = vadd.f32 %v6464_v44, %v2245_v27 }
0x1367   :  { %v2259_v53 = vsel %vm130_vm0, %v2251_v32, -inf  ;;  %v2252_v58 = vadd.f32 %v6482_v55, %v2248_v19 }
0x1368   :  { %v2253_v30 = vsel %vm130_vm0, %v2249_v17, -inf  ;;  %v2250_v31 = vadd.f32 %v6470_v23, %v2246_v16  ;;  %v4871_v16 = vld [vmem:[%s6080_s30 + $0x1] ss:$0 sm:$0xff] }
0x1369   :  { %2254 = vmax.xlane.f32.xlu0 %v2253_v30  ;;  %v2262_v33 = vsel %vm130_vm0, %v2252_v58, -inf }
0x136a   :  { %v2256_v51 = vsel %vm130_vm0, %v2250_v31, -inf }
0x136b   :  { %2257 = vmax.xlane.f32.xlu1 %v2256_v51 }
0x136d   :  { %2260 = vmax.xlane.f32.xlu0 %v2259_v53 }
0x1371   :  { %2263 = vmax.xlane.f32.xlu0 %v2262_v33 }
0x13f6   :  { %v2255_v44 = vpop.xlane.xlu0 %2254 }
0x13f7   :  { %v2265_v34 = vsub.f32 %v2249_v17, %v2255_v44 }
0x13f8   :  { %v2258_v35 = vpop.xlane.xlu1 %2257 }
0x13f9   :  { %v2269_v23 = vmul.f32 1.442695, %v2265_v34  ;;  %v2266_v38 = vsub.f32 %v2250_v31, %v2258_v35 }
0x13fa   :  { %v2261_v36 = vpop.xlane.xlu0 %2260 }
0x13fb   :  { %v2267_v37 = vsub.f32 %v2251_v32, %v2261_v36  ;;  %v2271_v43 = vmul.f32 1.442695, %v2266_v38 }
0x13fd   :  { %v2273_v50 = vmul.f32 1.442695, %v2267_v37 }
0x13fe   :  { %v2264_v41 = vpop.xlane.xlu0 %2263 }
0x13ff   :  { %5789 = vpow2.f32 %v2273_v50  ;;  %v2268_v18 = vsub.f32 %v2252_v58, %v2264_v41 }
0x1400   :  { %5791 = vpow2.f32 %v2269_v23 }
0x1401   :  { %5793 = vpow2.f32 %v2271_v43  ;;  %v2275_v24 = vmul.f32 1.442695, %v2268_v18 }
0x1403   :  { %5795 = vpow2.f32 %v2275_v24 }
0x1409   :  { %v5790_v55 = vpop.eup %5789 }
0x140a   :  { %v2283_v9 = vsel %vm130_vm0, %v5790_v55, 0.0  ;;  %v5792_v45 = vpop.eup %5791 }
0x140b   :  { %2284 = vadd.xlane.f32.xlu0 %v2283_v9  ;;  %v2277_v48 = vsel %vm130_vm0, %v5792_v45, 0.0  ;;  %v5794_v46 = vpop.eup %5793 }
0x140c   :  { %v2280_v47 = vsel %vm130_vm0, %v5794_v46, 0.0 }
0x140d   :  { %v5796_v49 = vpop.eup %5795 }
0x140e   :  { %v2286_v39 = vsel %vm130_vm0, %v5796_v49, 0.0 }
0x140f   :  { %2278 = vadd.xlane.f32.xlu0 %v2277_v48 }
0x1413   :  { %2281 = vadd.xlane.f32.xlu0 %v2280_v47  ;;  %v5673_v47 = vld [vmem:[%s6095_s20 + $0x10] sm:$0xff]  }
0x1414   :  { %5428 = vmatprep.subr.bf16.mxu0 %v5673_v47 }
0x1417   :  { %2287 = vadd.xlane.f32.xlu0 %v2286_v39 }
0x1498   :  { %v2285_v56 = vpop.xlane.xlu0 %2284 }
0x149c   :  { %v2279_v52 = vpop.xlane.xlu0 %2278 }
0x149d   :  { %5797 = vrcp.f32 %v2279_v52 }
0x14a0   :  { %v2282_v40 = vpop.xlane.xlu0 %2281 }
0x14a1   :  { %5799 = vrcp.f32 %v2282_v40 }
0x14a2   :  { %5801 = vrcp.f32 %v2285_v56 }
0x14a4   :  { %v2288_v14 = vpop.xlane.xlu0 %2287 }
0x14a5   :  { %5803 = vrcp.f32 %v2288_v14 }
0x14a7   :  { %v5798_v59 = vpop.eup %5797 }
0x14a8   :  { %v2293_v0 = vmul.f32 %v5798_v59, %v5792_v45 }
0x14ab   :  { %v5800_v4 = vpop.eup %5799 }
0x14ac   :  { %v2294_v7 = vmul.f32 %v5800_v4, %v5794_v46  ;;  %v5802_v10 = vpop.eup %5801 }
0x14ad   :  { %v2295_v57 = vmul.f32 %v5802_v10, %v5790_v55 }
0x14ae   :  { %v2297_v11 = vpack.c.bf16 %v2294_v7, %v2293_v0 }
0x14af   :  { %v5804_v61 = vpop.eup %5803 }
0x14b0   :  { %v2296_v8 = vmul.f32 %v5804_v61, %v5796_v49  ;;  %5412 = vmatprep.mubr.msk.bf16.mxu0 %vm130_vm0, %v2297_v11  ;;  %v5674_v49 = vld [vmem:[%s6095_s20 + $0x18] sm:$0xff]  }
0x14b2   :  { %v2298_v12 = vpack.c.bf16 %v2296_v8, %v2295_v57 }
0x14b4   :  { %5413 = vmatmul.mubr.msk.bf16.vlgmr.msra.gmra.mrb[48].mxu0 %vm130_vm0, %v2298_v12  ;;  %v4874_v12 = vld [vmem:[%s6085_s6 + $0x1] ss:$0 sm:$0xff] }
0x14b5   :  { %5429 = vmatpush3.bf16.msra.mxu0 %v5673_v47 }
0x14b6   :  { %5430 = vmatprep.subr.bf16.mxu0 %v5674_v49 }
0x14b9   :  { %5431 = vmatpush3.bf16.msra.mxu0 %v5674_v49 }
0x1587   :  { %v5414_v20 = vpop.f32.mrb[48].mxu0 }
0x1588   :  { %v2341_v21 = vpop.f32.mrb[49].mxu0 }
0x1589   :  { %v5415_v22 = vpop.f32.mrb[50].mxu0 }
0x158a   :  { %v2360_v27 = vpack.c.bf16 %v5415_v22, %v5414_v20  ;;  %v2344_v28 = vpop.f32.mrb[51].mxu0 }
0x158b   :  { %v2359_v29 = vpack.c.bf16 %v2344_v28, %v2341_v21  ;;  %v4875_v21 = vld [vmem:[%s6946_s0 + $0x1] ss:$0 sm:$0xff] }
0x158d   :  { %5418 = vmatprep.mubr.msk.bf16.mxu1 %vm460_vm2, %v2359_v29 }
0x158e   :  { %5419 = vmatmul.mubr.msk.bf16.vlgmr.msra.gmra.mrb[40].mxu1 %vm460_vm2, %v2360_v27 }
0x158f   :  { %5424 = vmatprep.mubr.msk.bf16.mxu1 %vm460_vm2, %v1972_v54  ;;  %5423 = vmatpush3.bf16.msra.mxu1 %v5672_v15 }
0x159a   :  { %5425 = vmatmul.mubr.msk.bf16.vlgmr.msra.gmra.mrb[40].mxu1 %vm460_vm2, %v1973_v3 }
0x166d   :  { %v5426_v17 = vpop.f32.mrb[40].mxu1 }
0x166e   :  { %v2468_v19 = vpop.f32.mrb[41].mxu1  ;;  %v2493_v5 = vadd.f32 %v5426_v17, %v4871_v16 }
0x166f   :  { %v2491_v30 = vadd.f32 %v4871_v16, %v2468_v19  ;;  %v5427_v31 = vpop.f32.mrb[42].mxu1 }
0x1670   :  { %v2494_v32 = vadd.f32 %v5427_v31, %v4871_v16  ;;  %v2471_v51 = vpop.f32.mrb[43].mxu1  ;;  %v2497_v3 = vadd.f32 %v2493_v5, %v6419_v25  ;;  %v5676_v5 = vld [vmem:[%s6947_s5 + $0x48] sm:$0xff]  }
0x1671   :  { %v2492_v53 = vadd.f32 %v4871_v16, %v2471_v51  ;;  %v2495_v58 = vadd.f32 %v2491_v30, %v6405_v42 }
0x1672   :  { %v2498_v2 = vadd.f32 %v2494_v32, %v6414_v6  ;;  %v2509_v44 = vsel %vm130_vm0, %v2497_v3, 0.0 }
0x1673   :  { %v2503_v54 = vsel %vm130_vm0, %v2495_v58, 0.0  ;;  %v2496_v33 = vadd.f32 %v2492_v53, %v6408_v26 }
0x1674   :  { %2504 = vadd.xlane.f32.xlu0 %v2503_v54  ;;  %v2512_v63 = vsel %vm130_vm0, %v2498_v2, 0.0  ;;  %v5677_v54 = vld [vmem:[%s6947_s5 + $0x50] sm:$0xff]  }
0x1675   :  { %2513 = vadd.xlane.f32.xlu1 %v2512_v63  ;;  %v2506_v62 = vsel %vm130_vm0, %v2496_v33, 0.0  ;;  %v5679_v63 = vld [vmem:[%s6947_s5 + $0x60] sm:$0xff]  }
0x1678   :  { %2507 = vadd.xlane.f32.xlu0 %v2506_v62  ;;  %v5680_v62 = vld [vmem:[%s6947_s5 + $0x68] sm:$0xff]  }
0x167c   :  { %2510 = vadd.xlane.f32.xlu0 %v2509_v44  ;;  %v5682_v44 = vld [vmem:[%s6947_s5 + $0x78] sm:$0xff]  }
0x1701   :  { %v2505_v42 = vpop.xlane.xlu0 %2504 }
0x1702   :  { %v2515_v34 = vmul.f32 0.03125, %v2505_v42  ;;  %v2514_v6 = vpop.xlane.xlu1 %2513  ;;  %v4881_v42 = vld [vmem:[%s6948_s17 + $0x1] ss:$0 sm:$0xff] }
0x1703   :  { %v2518_v36 = vmul.f32 0.03125, %v2514_v6 }
0x1704   :  { %v2519_v35 = vsub.f32 %v2495_v58, %v2515_v34 }
0x1705   :  { %v2508_v37 = vpop.xlane.xlu0 %2507  ;;  %v2522_v38 = vsub.f32 %v2498_v2, %v2518_v36  ;;  %v5675_v2 = vld [vmem:[%s6947_s5 + $0x40] sm:$0xff]  }
0x1706   :  { %v2516_v23 = vmul.f32 0.03125, %v2508_v37  ;;  %v2523_v26 = vmul.f32 %v2519_v35, %v2519_v35  ;;  %5436 = vmatprep.subr.bf16.mxu0 %v5675_v2 }
0x1707   :  { %v2526_v9 = vmul.f32 %v2522_v38, %v2522_v38 }
0x1708   :  { %v2520_v50 = vsub.f32 %v2496_v33, %v2516_v23  ;;  %v2527_v41 = vsel %vm130_vm0, %v2523_v26, 0.0  ;;  %v5678_v33 = vld [vmem:[%s6947_s5 + $0x58] sm:$0xff]  }
0x1709   :  { %2528 = vadd.xlane.f32.xlu0 %v2527_v41  ;;  %v2511_v25 = vpop.xlane.xlu0 %2510  ;;  %v2536_v48 = vsel %vm130_vm0, %v2526_v9, 0.0 }
0x170a   :  { %v2517_v43 = vmul.f32 0.03125, %v2511_v25  ;;  %v2524_v18 = vmul.f32 %v2520_v50, %v2520_v50 }
0x170c   :  { %v2521_v24 = vsub.f32 %v2497_v3, %v2517_v43  ;;  %v2530_v55 = vsel %vm130_vm0, %v2524_v18, 0.0  ;;  %v5681_v3 = vld [vmem:[%s6947_s5 + $0x70] sm:$0xff]  }
0x170d   :  { %2531 = vadd.xlane.f32.xlu1 %v2530_v55 }
0x170e   :  { %v2525_v45 = vmul.f32 %v2521_v24, %v2521_v24 }
0x1710   :  { %v2533_v46 = vsel %vm130_vm0, %v2525_v45, 0.0 }
0x1711   :  { %2537 = vadd.xlane.f32.xlu1 %v2536_v48  ;;  %2534 = vadd.xlane.f32.xlu0 %v2533_v46 }
0x1796   :  { %v2529_v39 = vpop.xlane.xlu0 %2528 }
0x1797   :  { %v2539_v56 = vmul.f32 0.03125, %v2529_v39 }
0x1799   :  { %v2543_v52 = vadd.f32 1e-12, %v2539_v56 }
0x179a   :  { %v2532_v40 = vpop.xlane.xlu1 %2531 }
0x179b   :  { %5805 = vrsqrt.f32 %v2543_v52  ;;  %v2540_v14 = vmul.f32 0.03125, %v2532_v40 }
0x179d   :  { %v2544_v59 = vadd.f32 1e-12, %v2540_v14 }
0x179e   :  { %v2538_v4 = vpop.xlane.xlu1 %2537  ;;  %v2535_v0 = vpop.xlane.xlu0 %2534 }
0x179f   :  { %5807 = vrsqrt.f32 %v2544_v59  ;;  %v2542_v7 = vmul.f32 0.03125, %v2538_v4  ;;  %v2541_v10 = vmul.f32 0.03125, %v2535_v0 }
0x17a1   :  { %v2546_v11 = vadd.f32 1e-12, %v2542_v7  ;;  %v2545_v61 = vadd.f32 1e-12, %v2541_v10 }
0x17a3   :  { %5809 = vrsqrt.f32 %v2546_v11 }
0x17a4   :  { %5811 = vrsqrt.f32 %v2545_v61 }
0x17a5   :  { %v5806_v57 = vpop.eup %5805 }
0x17a6   :  { %v2551_v8 = vmul.f32 %v5806_v57, %v2519_v35 }
0x17a8   :  { %v2561_v20 = vmul.f32 %v4874_v12, %v2551_v8 }
0x17a9   :  { %v5808_v13 = vpop.eup %5807 }
0x17aa   :  { %v2552_v15 = vmul.f32 %v5808_v13, %v2520_v50  ;;  %v6575_v16 = vadd.f32 %v4875_v21, %v2561_v20 }
0x17ac   :  { %v2562_v22 = vmul.f32 %v4874_v12, %v2552_v15 }
0x17ad   :  { %v5810_v27 = vpop.eup %5809 }
0x17ae   :  { %v5812_v28 = vpop.eup %5811  ;;  %v2554_v29 = vmul.f32 %v5810_v27, %v2522_v38  ;;  %v6577_v17 = vadd.f32 %v4875_v21, %v2562_v22 }
0x17af   :  { %v2553_v19 = vmul.f32 %v5812_v28, %v2521_v24 }
0x17b0   :  { %v2564_v30 = vmul.f32 %v4874_v12, %v2554_v29  ;;  %v2580_v31 = vpack.c.bf16 %v6577_v17, %v6575_v16 }
0x17b1   :  { %v2563_v32 = vmul.f32 %v4874_v12, %v2553_v19 }
0x17b2   :  { %5432 = vmatprep.mubr.msk.bf16.mxu0 %vm130_vm0, %v2580_v31  ;;  %v6582_v51 = vadd.f32 %v4875_v21, %v2564_v30  ;;  %v4903_v31 = vld [vmem:[%s6949_s21 + $0x1] ss:$0 sm:$0xff] }
0x17b3   :  { %v6584_v53 = vadd.f32 %v4875_v21, %v2563_v32 }
0x17b5   :  { %v2581_v58 = vpack.c.bf16 %v6582_v51, %v6584_v53 }
0x17b7   :  { %5433 = vmatmul.mubr.msk.bf16.vlgmr.msra.gmra.mrb[52].mxu0 %vm130_vm0, %v2581_v58 }
0x17b8   :  { %5437 = vmatpush3.bf16.msra.mxu0 %v5675_v2 }
0x17b9   :  { %5438 = vmatprep.subr.bf16.mxu0 %v5676_v5 }
0x17bc   :  { %5439 = vmatpush3.bf16.msra.mxu0 %v5676_v5 }
0x17bd   :  { %5440 = vmatprep.subr.bf16.mxu0 %v5677_v54 }
0x17c0   :  { %5441 = vmatpush3.bf16.msra.mxu0 %v5677_v54 }
0x17c1   :  { %5442 = vmatprep.subr.bf16.mxu0 %v5678_v33 }
0x17c4   :  { %5443 = vmatpush3.bf16.msra.mxu0 %v5678_v33 }
0x17c5   :  { %5444 = vmatprep.subr.bf16.mxu0 %v5679_v63 }
0x17c8   :  { %5445 = vmatpush3.bf16.msra.mxu0 %v5679_v63 }
0x17c9   :  { %5446 = vmatprep.subr.bf16.mxu0 %v5680_v62 }
0x17cc   :  { %5447 = vmatpush3.bf16.msra.mxu0 %v5680_v62 }
0x17cd   :  { %5448 = vmatprep.subr.bf16.mxu0 %v5681_v3 }
0x17d0   :  { %5449 = vmatpush3.bf16.msra.mxu0 %v5681_v3 }
0x17d1   :  { %5450 = vmatprep.subr.bf16.mxu0 %v5682_v44 }
0x17d4   :  { %5451 = vmatpush3.bf16.msra.mxu0 %v5682_v44 }
0x188a   :  { %v5434_v34 = vpop.f32.mrb[52].mxu0 }
0x188b   :  { %v2651_v6 = vadd.f32 %v5434_v34, %v4881_v42  ;;  %v2642_v35 = vpop.f32.mrb[53].mxu0 }
0x188c   :  { %v2643_v36 = vadd.f32 %v4881_v42, %v2642_v35  ;;  %v5435_v37 = vpop.f32.mrb[54].mxu0 }
0x188d   :  { %v2663_v23 = vmul.f32 0.044715, %v2651_v6  ;;  %v2654_v26 = vadd.f32 %v5435_v37, %v4881_v42  ;;  %v2645_v38 = vpop.f32.mrb[55].mxu0  ;;  %v2659_v8 = vmul.f32 0.5, %v2651_v6 }
0x188e   :  { %v2661_v50 = vmul.f32 0.044715, %v2643_v36  ;;  %v2646_v41 = vadd.f32 %v4881_v42, %v2645_v38  ;;  %v2657_v15 = vmul.f32 0.5, %v2643_v36 }
0x188f   :  { %v2667_v25 = vmul.f32 %v2663_v23, %v2651_v6  ;;  %v2664_v43 = vmul.f32 0.044715, %v2654_v26  ;;  %v2660_v12 = vmul.f32 0.5, %v2654_v26 }
0x1890   :  { %v2665_v18 = vmul.f32 %v2661_v50, %v2643_v36  ;;  %v2662_v24 = vmul.f32 0.044715, %v2646_v41  ;;  %v2658_v20 = vmul.f32 0.5, %v2646_v41 }
0x1891   :  { %v2671_v55 = vmul.f32 %v2667_v25, %v2651_v6  ;;  %v2668_v9 = vmul.f32 %v2664_v43, %v2654_v26 }
0x1892   :  { %v2669_v45 = vmul.f32 %v2665_v18, %v2643_v36  ;;  %v2666_v48 = vmul.f32 %v2662_v24, %v2646_v41 }
0x1893   :  { %v2675_v46 = vadd.f32 %v2671_v55, %v2651_v6  ;;  %v2672_v47 = vmul.f32 %v2668_v9, %v2654_v26 }
0x1894   :  { %v2670_v49 = vmul.f32 %v2666_v48, %v2646_v41  ;;  %v2673_v39 = vadd.f32 %v2669_v45, %v2643_v36 }
0x1895   :  { %v2679_v56 = vmul.f32 0.7978846, %v2675_v46  ;;  %v2676_v52 = vadd.f32 %v2672_v47, %v2654_v26 }
0x1896   :  { %v2674_v40 = vadd.f32 %v2670_v49, %v2646_v41  ;;  %v2677_v14 = vmul.f32 0.7978846, %v2673_v39  ;;  %v4928_v39 = vld [vmem:[%s6060_s8 + $0x40] sm:$0xff] }
0x1897   :  { %5813 = vtanh.f32 %v2679_v56  ;;  %v2680_v59 = vmul.f32 0.7978846, %v2676_v52  ;;  %v4929_v56 = vld [vmem:[%s6060_s8 + $0x48] sm:$0xff]  ;;  %v5683_v52 = vld [vmem:[%s6045_s25 + $0x40] sm:$0xff]  }
0x1898   :  { %v2678_v4 = vmul.f32 0.7978846, %v2674_v40  ;;  %5815 = vtanh.f32 %v2677_v14  ;;  %5456 = vmatprep.subr.bf16.mxu1 %v5683_v52  ;;  %v5684_v40 = vld [vmem:[%s6045_s25 + $0x48] sm:$0xff]  }
0x1899   :  { %5817 = vtanh.f32 %v2680_v59  ;;  %5457 = vmatpush3.bf16.msra.mxu1 %v5683_v52  ;;  %v5688_v52 = vld [vmem:[%s6045_s25 + $0x50] sm:$0xff]  }
0x189a   :  { %5819 = vtanh.f32 %v2678_v4  ;;  %5458 = vmatprep.subr.bf16.mxu1 %v5684_v40 }
0x189d   :  { %5459 = vmatpush3.bf16.msra.mxu1 %v5684_v40 }
0x189e   :  { %5464 = vmatprep.subr.bf16.mxu1 %v6005_v60 }
0x18a1   :  { %v5814_v0 = vpop.eup %5813 }
0x18a2   :  { %v5816_v7 = vpop.eup %5815  ;;  %v2687_v10 = vadd.f32 1.0, %v5814_v0 }
0x18a3   :  { %v5818_v11 = vpop.eup %5817  ;;  %v2685_v61 = vadd.f32 1.0, %v5816_v7 }
0x18a4   :  { %v5820_v57 = vpop.eup %5819  ;;  %v2688_v13 = vadd.f32 1.0, %v5818_v11  ;;  %v2691_v22 = vmul.f32 %v2687_v10, %v2659_v8 }
0x18a5   :  { %v2686_v21 = vadd.f32 1.0, %v5820_v57  ;;  %v2689_v28 = vmul.f32 %v2685_v61, %v2657_v15 }
0x18a6   :  { %v2692_v27 = vmul.f32 %v2688_v13, %v2660_v12 }
0x18a7   :  { %v2690_v29 = vmul.f32 %v2686_v21, %v2658_v20  ;;  %v4914_v20 = vld [vmem:[%s6950_s15 + $0x1] ss:$0 sm:$0xff] }
0x18a8   :  { %v2711_v19 = vpack.c.bf16 %v2692_v27, %v2691_v22  ;;  %v4915_v27 = vld [vmem:[%s6951_s16 + $0x1] ss:$0 sm:$0xff] }
0x18a9   :  { %v2710_v30 = vpack.c.bf16 %v2690_v29, %v2689_v28 }
0x18ab   :  { %5452 = vmatprep.mubr.bf16.mxu0 %v2710_v30 }
0x18ac   :  { %5453 = vmatmul.mubr.bf16.vlgmr.msra.gmra.mrb[56].mxu0 %v2711_v19 }
0x197f   :  { %v5454_v32 = vpop.f32.mrb[56].mxu0 }
0x1980   :  { %v2802_v58 = vpop.f32.mrb[57].mxu0  ;;  %v2811_v2 = vadd.f32 %v5454_v32, %v4903_v31 }
0x1981   :  { %v2803_v5 = vadd.f32 %v4903_v31, %v2802_v58  ;;  %v5455_v54 = vpop.f32.mrb[58].mxu0 }
0x1982   :  { %v2805_v33 = vpop.f32.mrb[59].mxu0  ;;  %v2814_v63 = vadd.f32 %v5455_v54, %v4903_v31  ;;  %v2819_v34 = vadd.f32 %v2811_v2, %v6584_v53 }
0x1983   :  { %v2806_v62 = vadd.f32 %v4903_v31, %v2805_v33  ;;  %v2817_v3 = vadd.f32 %v2803_v5, %v6575_v16 }
0x1984   :  { %v2820_v35 = vadd.f32 %v2814_v63, %v6582_v51  ;;  %v2831_v36 = vsel %vm130_vm0, %v2819_v34, 0.0 }
0x1985   :  { %v2825_v44 = vsel %vm130_vm0, %v2817_v3, 0.0  ;;  %v2818_v42 = vadd.f32 %v2806_v62, %v6577_v17 }
0x1986   :  { %2826 = vadd.xlane.f32.xlu0 %v2825_v44  ;;  %v2834_v37 = vsel %vm130_vm0, %v2820_v35, 0.0 }
0x1987   :  { %v2828_v6 = vsel %vm130_vm0, %v2818_v42, 0.0 }
0x1988   :  { %2829 = vadd.xlane.f32.xlu1 %v2828_v6 }
0x198a   :  { %2832 = vadd.xlane.f32.xlu0 %v2831_v36 }
0x198c   :  { %2835 = vadd.xlane.f32.xlu1 %v2834_v37  ;;  %v5686_v37 = vld [vmem:[%s6065_s14 + $0x40] sm:$0xff]  }
0x1a13   :  { %v2827_v23 = vpop.xlane.xlu0 %2826 }
0x1a14   :  { %v2837_v16 = vmul.f32 0.03125, %v2827_v23 }
0x1a15   :  { %v2830_v26 = vpop.xlane.xlu1 %2829 }
0x1a16   :  { %v2841_v38 = vsub.f32 %v2817_v3, %v2837_v16  ;;  %v2838_v50 = vmul.f32 0.03125, %v2830_v26  ;;  %v5685_v16 = vld [vmem:[%s6055_s3 + $0x20] sm:$0xff]   ;;  %v5687_v26 = vld [vmem:[%s6065_s14 + $0x48] sm:$0xff]  }
0x1a17   :  { %v2833_v17 = vpop.xlane.xlu0 %2832 }
0x1a18   :  { %v2842_v41 = vsub.f32 %v2818_v42, %v2838_v50  ;;  %v2839_v53 = vmul.f32 0.03125, %v2833_v17  ;;  %v2845_v25 = vmul.f32 %v2841_v38, %v2841_v38 }
0x1a19   :  { %v2836_v43 = vpop.xlane.xlu1 %2835 }
0x1a1a   :  { %v2843_v18 = vsub.f32 %v2819_v34, %v2839_v53  ;;  %v2840_v51 = vmul.f32 0.03125, %v2836_v43  ;;  %v2849_v24 = vsel %vm130_vm0, %v2845_v25, 0.0  ;;  %v2846_v55 = vmul.f32 %v2842_v41, %v2842_v41 }
0x1a1b   :  { %2850 = vadd.xlane.f32.xlu0 %v2849_v24 }
0x1a1c   :  { %v2844_v9 = vsub.f32 %v2820_v35, %v2840_v51  ;;  %v2852_v45 = vsel %vm130_vm0, %v2846_v55, 0.0  ;;  %v2847_v48 = vmul.f32 %v2843_v18, %v2843_v18 }
0x1a1d   :  { %2853 = vadd.xlane.f32.xlu1 %v2852_v45 }
0x1a1e   :  { %v2855_v46 = vsel %vm130_vm0, %v2847_v48, 0.0  ;;  %v2848_v47 = vmul.f32 %v2844_v9, %v2844_v9 }
0x1a1f   :  { %2856 = vadd.xlane.f32.xlu0 %v2855_v46 }
0x1a20   :  { %v2858_v49 = vsel %vm130_vm0, %v2848_v47, 0.0 }
0x1a21   :  { %2859 = vadd.xlane.f32.xlu1 %v2858_v49 }
0x1a32   :  { %3021 = vperm.xlu1 %5637, %v4928_v39  }
0x1a36   :  { %3026 = vperm.xlu1 %5637, %v4929_v56  }
0x1aa8   :  { %v2851_v14 = vpop.xlane.xlu0 %2850 }
0x1aa9   :  { %v2861_v59 = vmul.f32 0.03125, %v2851_v14  ;;  %v4937_v14 = vld [vmem:[%s6070_s19 + $0x4] ss:$0 sm:$0xff] }
0x1aaa   :  { %v2854_v4 = vpop.xlane.xlu1 %2853 }
0x1aab   :  { %v2865_v0 = vadd.f32 1e-12, %v2861_v59  ;;  %v2862_v7 = vmul.f32 0.03125, %v2854_v4  ;;  %v5689_v4 = vld [vmem:[%s6045_s25 + $0x58] sm:$0xff]   ;;  %s6953_s25 = sld [smem:[#allocation16_spill]] }
0x1aac   :  { %v2857_v10 = vpop.xlane.xlu0 %2856 }
0x1aad   :  { %5821 = vrsqrt.f32 %v2865_v0  ;;  %v2866_v11 = vadd.f32 1e-12, %v2862_v7  ;;  %v2863_v61 = vmul.f32 0.03125, %v2857_v10 }
0x1aae   :  { %v2860_v57 = vpop.xlane.xlu1 %2859 }
0x1aaf   :  { %5823 = vrsqrt.f32 %v2866_v11  ;;  %v2867_v8 = vadd.f32 1e-12, %v2863_v61  ;;  %v2864_v12 = vmul.f32 0.03125, %v2860_v57 }
0x1ab1   :  { %5825 = vrsqrt.f32 %v2867_v8  ;;  %v2868_v13 = vadd.f32 1e-12, %v2864_v12  ;;  %v5690_v12 = vld [vmem:[%s6065_s14 + $0x50] sm:$0xff]  }
0x1ab2   :  { %v3022_v55 = vpop.permute.xlu1 %3021 }
0x1ab3   :  { %5827 = vrsqrt.f32 %v2868_v13 }
0x1ab6   :  { %v3027_v48 = vpop.permute.xlu1 %3026 }
0x1ab7   :  { %v5822_v15 = vpop.eup %5821 }
0x1ab8   :  { %v2873_v21 = vmul.f32 %v5822_v15, %v2841_v38  ;;  %v5691_v15 = vld [vmem:[%s6065_s14 + $0x58] sm:$0xff]   ;;  %s6957_s14 = sld [smem:[#allocation18_spill]] }
0x1ab9   :  { %v5824_v22 = vpop.eup %5823 }
0x1aba   :  { %v2883_v28 = vmul.f32 %v4914_v20, %v2873_v21  ;;  %v2874_v29 = vmul.f32 %v5824_v22, %v2842_v41 }
0x1abb   :  { %v5826_v19 = vpop.eup %5825 }
0x1abc   :  { %v6618_v30 = vadd.f32 %v4915_v27, %v2883_v28  ;;  %v2884_v31 = vmul.f32 %v4914_v20, %v2874_v29  ;;  %v2875_v32 = vmul.f32 %v5826_v19, %v2843_v18 }
0x1abd   :  { %v5828_v58 = vpop.eup %5827 }
0x1abe   :  { %v2876_v2 = vmul.f32 %v5828_v58, %v2844_v9  ;;  %2897 = vxpose.xlu0.b32.start [1/4] (short) (narrow) %v6618_v30, 32  ;;  %4253 = vst.msk [vmem:[%s6160_s27] sm:$0xff] %vm130_vm0, %v6618_v30  ;;  %v6624_v5 = vadd.f32 %v4915_v27, %v2884_v31  ;;  %v2885_v54 = vmul.f32 %v4914_v20, %v2875_v32  ;;  %v6690_v31 = vld [vmem:[%s6025_s9] sm:$0xff] }
0x1ac0   :  { %v2886_v33 = vmul.f32 %v4914_v20, %v2876_v2  ;;  %4254 = vst.msk [vmem:[%s6160_s27 + $0x8] sm:$0xff] %vm130_vm0, %v6624_v5  ;;  %v6631_v63 = vpack.c.bf16 %v6624_v5, %v6618_v30  ;;  %v6633_v62 = vadd.f32 %v4915_v27, %v2885_v54  ;;  %v6694_v2 = vld [vmem:[%s6025_s9 + $0x8] sm:$0xff] }
0x1ac2   :  { %v6635_v3 = vadd.f32 %v4915_v27, %v2886_v33  ;;  %2898 = vxpose.xlu0.b32.cont [2/4] (short) (narrow) %v6624_v5, 32  ;;  %5460 = vmatprep.mubr.msk.bf16.mxu1 %vm130_vm0, %v6631_v63  ;;  %4255 = vst.msk [vmem:[%s6160_s27 + $0x10] sm:$0xff] %vm130_vm0, %v6633_v62 }
0x1ac4   :  { %4256 = vst.msk [vmem:[%s6160_s27 + $0x18] sm:$0xff] %vm130_vm0, %v6635_v3  ;;  %v6648_v44 = vpack.c.bf16 %v6635_v3, %v6633_v62 }
0x1ac6   :  { %2899 = vxpose.xlu0.b32.cont [3/4] (short) (narrow) %v6633_v62, 32  ;;  %5461 = vmatmul.mubr.msk.bf16.vlgmr.msra.gmra.mrb[44].mxu1 %vm130_vm0, %v6648_v44 }
0x1ac7   :  { %5468 = vmatprep.mubr.msk.bf16.mxu1 %vm6006_vm1, %v6005_v60 }
0x1aca   :  { %2900 = vxpose.xlu0.b32.end [4/4] (short) (narrow) %v6635_v3, 32 }
0x1af3   :  { %5638 = vset.pattern.permute.xlu0 %v6007_v1  ;;  %v4921_v1 = vld [vmem:[%s6050_s29 + $0x4] ss:$0 sm:$0xff] }
0x1b3e   :  { %v2913_v42 = vpop.trf.xlu0 }
0x1b42   :  { %v2914_v34 = vpop.trf.xlu0 }
0x1b43   :  { %v6657_v6 = vpack.c.bf16 %v2914_v34, %v2913_v42 }
0x1b45   :  { %5465 = vmatpush3.bf16.msra.mxu1 %v6657_v6 }
0x1b46   :  { %v2915_v35 = vpop.trf.xlu0  ;;  %5466 = vmatprep.subr.bf16.mxu1 %v6005_v60 }
0x1b4a   :  { %v2916_v36 = vpop.trf.xlu0 }
0x1b4b   :  { %v6662_v23 = vpack.c.bf16 %v2916_v36, %v2915_v35 }
0x1b4d   :  { %5467 = vmatpush3.bf16.msra.mxu1 %v6662_v23 }
0x1b4e   :  { %5472 = vmatprep.subr.bf16.mxu1 %v5686_v37 }
0x1b50   :  { %5469 = vmatmul.mubr.msk.bf16.vlgmr.msra.gmra.mrb[48].mxu1 %vm130_vm0, %v5685_v16 }
0x1b51   :  { %5473 = vmatpush3.bf16.msra.mxu1 %v5686_v37  ;;  %5476 = vmatprep.mubr.msk.bf16.mxu1 %vm130_vm0, %v6631_v63 }
0x1b52   :  { %5474 = vmatprep.subr.bf16.mxu1 %v5687_v26 }
0x1b55   :  { %5475 = vmatpush3.bf16.msra.mxu1 %v5687_v26 }
0x1b58   :  { %5477 = vmatmul.mubr.msk.bf16.vlgmr.msra.gmra.mrb[52].mxu1 %vm130_vm0, %v6648_v44 }
0x1b99   :  { %v5462_v38 = vpop.f32.mrb[44].mxu1 }
0x1b9a   :  { %v3005_v50 = vadd.f32 %v5462_v38, %v4921_v1  ;;  %v2996_v17 = vpop.f32.mrb[45].mxu1 }
0x1b9b   :  { %v5463_v41 = vpop.f32.mrb[46].mxu1  ;;  %v2997_v43 = vadd.f32 %v4921_v1, %v2996_v17 }
0x1b9c   :  { %v3008_v53 = vadd.f32 %v5463_v41, %v4921_v1  ;;  %v2999_v25 = vpop.f32.mrb[47].mxu1 }
0x1b9d   :  { %v3000_v18 = vadd.f32 %v4921_v1, %v2999_v25  ;;  %v6708_v1 = vld [vmem:[%s6025_s9 + $0x18] sm:$0xff] }
0x1b9e   :  { %v3153_v51 = vpack.c.bf16 %v3008_v53, %v3005_v50 }
0x1b9f   :  { %v3152_v24 = vpack.c.bf16 %v3000_v18, %v2997_v43 }
0x1ba1   :  { %5482 = vmatprep.mubr.msk.bf16.mxu1 %vm460_vm2, %v3152_v24  ;;  %v4969_v24 = vld [vmem:[%s6070_s19 + $0x5] ss:$0 sm:$0xff]  ;;  %s6958_s19 = sld [smem:[#allocation20_spill]] }
0x1c23   :  { %v3071_v9 = vpop.f32.mrb[48].mxu1 }
0x1c24   :  { %v5470_v45 = vpop.f32.mrb[49].mxu1  ;;  %v3072_v47 = vadd.f32 %v3071_v9, %v3022_v55 }
0x1c25   :  { %v3074_v46 = vpop.f32.mrb[50].mxu1 }
0x1c26   :  { %v3075_v49 = vadd.f32 %v3074_v46, %v3027_v48  ;;  %v5471_v39 = vpop.f32.mrb[51].mxu1 }
0x1c28   :  { %v3154_v56 = vpack.c.bf16 %v3075_v49, %v3072_v47 }
0x1c2a   :  { %5480 = vmatprep.subr.bf16.mxu1 %v3154_v56 }
0x1c2b   :  { %v5478_v40 = vpop.f32.mrb[52].mxu1  ;;  %5481 = vmatpush3.bf16.msra.mxu1 %v3154_v56 }
0x1c2c   :  { %v3137_v59 = vpop.f32.mrb[53].mxu1  ;;  %5494 = vmatprep.subr.bf16.mxu1 %v5688_v52  ;;  %v3146_v7 = vadd.f32 %v5478_v40, %v4937_v14 }
0x1c2d   :  { %v5479_v0 = vpop.f32.mrb[54].mxu1  ;;  %v3138_v61 = vadd.f32 %v4937_v14, %v3137_v59 }
0x1c2e   :  { %v3149_v10 = vadd.f32 %v5479_v0, %v4937_v14  ;;  %v3140_v11 = vpop.f32.mrb[55].mxu1  ;;  %5483 = vmatmul.mubr.msk.bf16.vlgmr.msra.gmra.mrb[56].mxu1 %vm460_vm2, %v3153_v51 }
0x1c2f   :  { %v3141_v57 = vadd.f32 %v4937_v14, %v3140_v11  ;;  %5495 = vmatpush3.bf16.msra.mxu1 %v5688_v52  ;;  %5498 = vmatprep.mubr.msk.bf16.mxu1 %vm130_vm0, %v6631_v63 }
0x1c30   :  { %v3265_v8 = vpack.c.bf16 %v3149_v10, %v3146_v7  ;;  %5496 = vmatprep.subr.bf16.mxu1 %v5689_v4 }
0x1c31   :  { %v3264_v13 = vpack.c.bf16 %v3141_v57, %v3138_v61 }
0x1c33   :  { %5486 = vmatprep.subr.bf16.mxu0 %v3264_v13  ;;  %5497 = vmatpush3.bf16.msra.mxu1 %v5689_v4 }
0x1c34   :  { %5487 = vmatpush3.bf16.msra.mxu0 %v3264_v13  ;;  %5510 = vmatprep.subr.bf16.mxu1 %v5690_v12 }
0x1c35   :  { %5488 = vmatprep.subr.bf16.mxu0 %v3265_v8 }
0x1c36   :  { %5499 = vmatmul.mubr.msk.bf16.vlgmr.msra.gmra.mrb[60].mxu1 %vm130_vm0, %v6648_v44 }
0x1c37   :  { %5511 = vmatpush3.bf16.msra.mxu1 %v5690_v12  ;;  %5514 = vmatprep.mubr.msk.bf16.mxu1 %vm130_vm0, %v6631_v63  ;;  %v4953_v63 = vld [vmem:[%s6050_s29 + $0x5] ss:$0 sm:$0xff]  ;;  %s6954_s29 = sld [smem:[#allocation8_spill]] }
0x1c38   :  { %5489 = vmatpush3.bf16.msra.mxu0 %v3265_v8  ;;  %5512 = vmatprep.subr.bf16.mxu1 %v5691_v15 }
0x1c39   :  { %5502 = vmatprep.subr.bf16.mxu0 %v6005_v60 }
0x1c3b   :  { %5513 = vmatpush3.bf16.msra.mxu1 %v5691_v15 }
0x1c3e   :  { %5515 = vmatmul.mubr.msk.bf16.vlgmr.msra.gmra.mrb[64].mxu1 %vm130_vm0, %v6648_v44  ;;  %v6700_v44 = vld [vmem:[%s6025_s9 + $0x10] sm:$0xff]  ;;  %s6952_s9 = sld [smem:[#allocation15_spill]] }
0x1d01   :  { %v5484_v20 = vpop.f32.mrb[56].mxu1 }
0x1d02   :  { %v3195_v21 = vpop.f32.mrb[57].mxu1  ;;  %v3212_v22 = vmul.f32 0.25, %v5484_v20 }
0x1d03   :  { %v3210_v27 = vmul.f32 0.25, %v3195_v21  ;;  %v5485_v28 = vpop.f32.mrb[58].mxu1 }
0x1d04   :  { %v3198_v29 = vpop.f32.mrb[59].mxu1  ;;  %v3213_v58 = vmul.f32 0.25, %v5485_v28  ;;  %v3216_v42 = vadd.f32 %v6700_v44, %v3212_v22 }
0x1d05   :  { %v3211_v19 = vmul.f32 0.25, %v3198_v29  ;;  %v3214_v32 = vadd.f32 %v6690_v31, %v3210_v27  ;;  %v4960_v29 = vld [vmem:[%s6060_s8 + $0x50] sm:$0xff] }
0x1d06   :  { %v3224_v26 = vsel %vm130_vm0, %v3216_v42, -inf  ;;  %v3217_v38 = vadd.f32 %v6708_v1, %v3213_v58 }
0x1d07   :  { %v3215_v54 = vadd.f32 %v6694_v2, %v3211_v19  ;;  %v3218_v33 = vsel %vm130_vm0, %v3214_v32, -inf  ;;  %v4961_v19 = vld [vmem:[%s6060_s8 + $0x58] sm:$0xff]  ;;  %s6956_s8 = sld [smem:[#allocation17_spill]] }
0x1d08   :  { %3219 = vmax.xlane.f32.xlu1 %v3218_v33  ;;  %v3227_v18 = vsel %vm130_vm0, %v3217_v38, -inf }
0x1d09   :  { %v5500_v34 = vpop.f32.mrb[60].mxu1  ;;  %v3221_v35 = vsel %vm130_vm0, %v3215_v54, -inf }
0x1d0a   :  { %v6704_v36 = vadd.f32 %v5500_v34, %v4953_v63  ;;  %v3385_v37 = vpop.f32.mrb[61].mxu1  ;;  %3222 = vmax.xlane.f32.xlu0 %v3221_v35 }
0x1d0b   :  { %v5501_v16 = vpop.f32.mrb[62].mxu1  ;;  %v6713_v41 = vadd.f32 %v4953_v63, %v3385_v37 }
0x1d0c   :  { %v6711_v50 = vadd.f32 %v5501_v16, %v4953_v63  ;;  %3225 = vmax.xlane.f32.xlu1 %v3224_v26  ;;  %v3388_v17 = vpop.f32.mrb[63].mxu1 }
0x1d0d   :  { %v6715_v53 = vadd.f32 %v4953_v63, %v3388_v17 }
0x1d0e   :  { %v3540_v25 = vpack.c.bf16 %v6711_v50, %v6704_v36 }
0x1d0f   :  { %v3539_v43 = vpack.c.bf16 %v6715_v53, %v6713_v41 }
0x1d10   :  { %3228 = vmax.xlane.f32.xlu1 %v3227_v18 }
0x1d11   :  { %v5516_v51 = vpop.f32.mrb[64].mxu1 }
0x1d12   :  { %v3524_v55 = vpop.f32.mrb[65].mxu1  ;;  %v3533_v45 = vadd.f32 %v5516_v51, %v4969_v24  ;;  %v5692_v51 = vld [vmem:[%s6055_s3 + $0x28] sm:$0xff]   ;;  %s6955_s3 = sld [smem:[#allocation19_spill]] }
0x1d13   :  { %v5517_v9 = vpop.f32.mrb[66].mxu1  ;;  %v3525_v47 = vadd.f32 %v4969_v24, %v3524_v55 }
0x1d14   :  { %v3536_v48 = vadd.f32 %v5517_v9, %v4969_v24  ;;  %v3527_v46 = vpop.f32.mrb[67].mxu1 }
0x1d15   :  { %v3528_v49 = vadd.f32 %v4969_v24, %v3527_v46 }
0x1d16   :  { %v3652_v39 = vpack.c.bf16 %v3536_v48, %v3533_v45 }
0x1d17   :  { %v3651_v56 = vpack.c.bf16 %v3528_v49, %v3525_v47 }
0x1d19   :  { %5524 = vmatprep.subr.bf16.mxu1 %v3651_v56 }
0x1d1a   :  { %5525 = vmatpush3.bf16.msra.mxu1 %v3651_v56 }
0x1d1b   :  { %5526 = vmatprep.subr.bf16.mxu1 %v3652_v39 }
0x1d1e   :  { %5527 = vmatpush3.bf16.msra.mxu1 %v3652_v39 }
0x1d95   :  { %v3220_v52 = vpop.xlane.xlu1 %3219 }
0x1d96   :  { %v3230_v40 = vsub.f32 %v3214_v32, %v3220_v52 }
0x1d97   :  { %v3223_v14 = vpop.xlane.xlu0 %3222 }
0x1d98   :  { %v3234_v0 = vmul.f32 1.442695, %v3230_v40  ;;  %v3231_v7 = vsub.f32 %v3215_v54, %v3223_v14 }
0x1d99   :  { %v3226_v59 = vpop.xlane.xlu1 %3225 }
0x1d9a   :  { %v3232_v4 = vsub.f32 %v3216_v42, %v3226_v59  ;;  %v3236_v61 = vmul.f32 1.442695, %v3231_v7 }
0x1d9c   :  { %v3238_v10 = vmul.f32 1.442695, %v3232_v4 }
0x1d9d   :  { %v3229_v11 = vpop.xlane.xlu1 %3228 }
0x1d9e   :  { %5829 = vpow2.f32 %v3238_v10  ;;  %v3233_v57 = vsub.f32 %v3217_v38, %v3229_v11 }
0x1d9f   :  { %5831 = vpow2.f32 %v3234_v0 }
0x1da0   :  { %5833 = vpow2.f32 %v3236_v61  ;;  %v3240_v8 = vmul.f32 1.442695, %v3233_v57 }
0x1da2   :  { %5835 = vpow2.f32 %v3240_v8 }
0x1da8   :  { %v5830_v12 = vpop.eup %5829 }
0x1da9   :  { %v3248_v13 = vsel %vm130_vm0, %v5830_v12, 0.0  ;;  %v5832_v15 = vpop.eup %5831 }
0x1daa   :  { %3249 = vadd.xlane.f32.xlu1 %v3248_v13  ;;  %v3242_v20 = vsel %vm130_vm0, %v5832_v15, 0.0  ;;  %v5834_v21 = vpop.eup %5833 }
0x1dab   :  { %v3245_v22 = vsel %vm130_vm0, %v5834_v21, 0.0 }
0x1dac   :  { %v5836_v27 = vpop.eup %5835 }
0x1dad   :  { %v3251_v28 = vsel %vm130_vm0, %v5836_v27, 0.0 }
0x1dae   :  { %3243 = vadd.xlane.f32.xlu1 %v3242_v20 }
0x1db2   :  { %3246 = vadd.xlane.f32.xlu1 %v3245_v22 }
0x1db6   :  { %3252 = vadd.xlane.f32.xlu1 %v3251_v28 }
0x1dc7   :  { %3408 = vperm.xlu1 %5637, %v4960_v29  }
0x1dcb   :  { %3413 = vperm.xlu1 %5637, %v4961_v19  }
0x1e37   :  { %v3250_v32 = vpop.xlane.xlu1 %3249 }
0x1e3b   :  { %v3244_v58 = vpop.xlane.xlu1 %3243 }
0x1e3c   :  { %5837 = vrcp.f32 %v3244_v58 }
0x1e3f   :  { %v3247_v54 = vpop.xlane.xlu1 %3246 }
0x1e40   :  { %5839 = vrcp.f32 %v3247_v54 }
0x1e41   :  { %5841 = vrcp.f32 %v3250_v32 }
0x1e43   :  { %v3253_v33 = vpop.xlane.xlu1 %3252 }
0x1e44   :  { %5843 = vrcp.f32 %v3253_v33 }
0x1e46   :  { %v5838_v63 = vpop.eup %5837 }
0x1e47   :  { %v3258_v34 = vmul.f32 %v5838_v63, %v5832_v15  ;;  %v3409_v48 = vpop.permute.xlu1 %3408 }
0x1e4a   :  { %v5840_v42 = vpop.eup %5839 }
0x1e4b   :  { %v3259_v35 = vmul.f32 %v5840_v42, %v5834_v21  ;;  %v5842_v37 = vpop.eup %5841  ;;  %v3414_v41 = vpop.permute.xlu1 %3413 }
0x1e4c   :  { %v3260_v38 = vmul.f32 %v5842_v37, %v5830_v12 }
0x1e4d   :  { %v3262_v16 = vpack.c.bf16 %v3259_v35, %v3258_v34 }
0x1e4e   :  { %v5844_v26 = vpop.eup %5843 }
0x1e4f   :  { %v3261_v17 = vmul.f32 %v5844_v26, %v5836_v27  ;;  %5490 = vmatprep.mubr.msk.bf16.mxu0 %vm130_vm0, %v3262_v16 }
0x1e51   :  { %v3263_v18 = vpack.c.bf16 %v3261_v17, %v3260_v38 }
0x1e53   :  { %5491 = vmatmul.mubr.msk.bf16.vlgmr.msra.gmra.mrb[60].mxu0 %vm130_vm0, %v3263_v18 }
0x1e54   :  { %5503 = vmatpush3.bf16.msra.mxu0 %v6657_v6  ;;  %5506 = vmatprep.mubr.msk.bf16.mxu0 %vm6006_vm1, %v6005_v60 }
0x1e55   :  { %5504 = vmatprep.subr.bf16.mxu0 %v6005_v60 }
0x1e58   :  { %5505 = vmatpush3.bf16.msra.mxu0 %v6662_v23 }
0x1e5b   :  { %5507 = vmatmul.mubr.msk.bf16.vlgmr.msra.gmra.mrb[64].mxu0 %vm130_vm0, %v5692_v51 }
0x1e5c   :  { %5520 = vmatprep.mubr.msk.bf16.mxu0 %vm460_vm2, %v3539_v43 }
0x1f26   :  { %v6742_v24 = vpop.f32.mrb[60].mxu0 }
0x1f27   :  { %v6744_v55 = vpop.f32.mrb[61].mxu0 }
0x1f28   :  { %v6746_v6 = vpop.f32.mrb[62].mxu0 }
0x1f29   :  { %v3325_v9 = vpack.c.bf16 %v6746_v6, %v6742_v24  ;;  %v6750_v45 = vpop.f32.mrb[63].mxu0 }
0x1f2a   :  { %v3324_v23 = vpack.c.bf16 %v6750_v45, %v6744_v55 }
0x1f2e   :  { %v3458_v46 = vpop.f32.mrb[64].mxu0 }
0x1f2f   :  { %v5508_v47 = vpop.f32.mrb[65].mxu0  ;;  %v3459_v43 = vadd.f32 %v3458_v46, %v3409_v48 }
0x1f30   :  { %v3461_v53 = vpop.f32.mrb[66].mxu0 }
0x1f31   :  { %v3462_v49 = vadd.f32 %v3461_v53, %v3414_v41  ;;  %v5509_v39 = vpop.f32.mrb[67].mxu0 }
0x1f32   :  { %v5694_v39 = vld [vmem:[%s6075_s24 + $0x20] sm:$0xff]  }
0x1f33   :  { %v3541_v56 = vpack.c.bf16 %v3462_v49, %v3459_v43  ;;  %v5693_v49 = vld [vmem:[%s6075_s24 + $0x28] sm:$0xff]   ;;  %s6008_s24 = smov [#allocation2]  }
0x1f35   :  { %5518 = vmatprep.subr.bf16.mxu0 %v3541_v56 }
0x1f36   :  { %5519 = vmatpush3.bf16.msra.mxu0 %v3541_v56 }
0x1f37   :  { %5532 = vmatprep.subr.bf16.mxu0 %v5693_v49 }
0x1f39   :  { %5521 = vmatmul.mubr.msk.bf16.vlgmr.msra.gmra.mrb[68].mxu0 %vm460_vm2, %v3540_v25 }
0x1f3a   :  { %5533 = vmatpush3.bf16.msra.mxu0 %v5693_v49 }
0x1f3b   :  { %5538 = vmatprep.subr.bf16.mxu0 %v5694_v39 }
0x200c   :  { %v5522_v52 = vpop.f32.mrb[68].mxu0 }
0x200d   :  { %v3582_v40 = vpop.f32.mrb[69].mxu0  ;;  %v3599_v14 = vmul.f32 0.25, %v5522_v52 }
0x200e   :  { %v3597_v59 = vmul.f32 0.25, %v3582_v40  ;;  %v5523_v4 = vpop.f32.mrb[70].mxu0 }
0x200f   :  { %v3585_v0 = vpop.f32.mrb[71].mxu0  ;;  %v3603_v11 = vadd.f32 %v6700_v44, %v3599_v14  ;;  %v3600_v61 = vmul.f32 0.25, %v5523_v4 }
0x2010   :  { %v3601_v7 = vadd.f32 %v6690_v31, %v3597_v59  ;;  %v3598_v10 = vmul.f32 0.25, %v3585_v0  ;;  %v4987_v0 = vld [vmem:[%s6080_s30 + $0x2] ss:$0 sm:$0xff]  ;;  %s4666_s30 = sshll.u32 %s6008_s24, 4  ;;  %s4667_s30 = int_to_ptr.vmem [resolvable:$true] %s4666_s30 }
0x2011   :  { %v3604_v50 = vadd.f32 %v6708_v1, %v3600_v61  ;;  %v3611_v25 = vsel %vm130_vm0, %v3603_v11, -inf  ;;  %p5932_p1 = scmp.lt.s32.totalorder %s4667_s30, %s4667_s30 }
0x2012   :  { %v3602_v57 = vadd.f32 %v6694_v2, %v3598_v10  ;;  %v3605_v8 = vsel %vm130_vm0, %v3601_v7, -inf }
0x2013   :  { %3606 = vmax.xlane.f32.xlu0 %v3605_v8  ;;  %v3614_v12 = vsel %vm130_vm0, %v3604_v50, -inf }
0x2014   :  { %v3608_v36 = vsel %vm130_vm0, %v3602_v57, -inf }
0x2015   :  { %3609 = vmax.xlane.f32.xlu1 %v3608_v36 }
0x2017   :  { %3612 = vmax.xlane.f32.xlu0 %v3611_v25 }
0x201b   :  { %3615 = vmax.xlane.f32.xlu0 %v3614_v12 }
0x20a0   :  { %v3607_v31 = vpop.xlane.xlu0 %3606 }
0x20a1   :  { %v3617_v13 = vsub.f32 %v3601_v7, %v3607_v31 }
0x20a2   :  { %v3610_v44 = vpop.xlane.xlu1 %3609 }
0x20a3   :  { %v3621_v2 = vmul.f32 1.442695, %v3617_v13  ;;  %v3618_v21 = vsub.f32 %v3602_v57, %v3610_v44 }
0x20a4   :  { %v3613_v15 = vpop.xlane.xlu0 %3612 }
0x20a5   :  { %v3619_v20 = vsub.f32 %v3603_v11, %v3613_v15  ;;  %v3623_v28 = vmul.f32 1.442695, %v3618_v21 }
0x20a7   :  { %v3625_v22 = vmul.f32 1.442695, %v3619_v20 }
0x20a8   :  { %v3616_v27 = vpop.xlane.xlu0 %3615 }
0x20a9   :  { %5845 = vpow2.f32 %v3625_v22  ;;  %v3620_v29 = vsub.f32 %v3604_v50, %v3616_v27 }
0x20aa   :  { %5847 = vpow2.f32 %v3621_v2 }
0x20ab   :  { %5849 = vpow2.f32 %v3623_v28  ;;  %v3627_v1 = vmul.f32 1.442695, %v3620_v29 }
0x20ad   :  { %5851 = vpow2.f32 %v3627_v1 }
0x20b3   :  { %v5846_v19 = vpop.eup %5845 }
0x20b4   :  { %v3635_v32 = vsel %vm130_vm0, %v5846_v19, 0.0  ;;  %v5848_v58 = vpop.eup %5847 }
0x20b5   :  { %3636 = vadd.xlane.f32.xlu0 %v3635_v32  ;;  %v3629_v54 = vsel %vm130_vm0, %v5848_v58, 0.0  ;;  %v5850_v33 = vpop.eup %5849 }
0x20b6   :  { %v3632_v63 = vsel %vm130_vm0, %v5850_v33, 0.0 }
0x20b7   :  { %v5852_v42 = vpop.eup %5851 }
0x20b8   :  { %v3638_v34 = vsel %vm130_vm0, %v5852_v42, 0.0 }
0x20b9   :  { %3630 = vadd.xlane.f32.xlu0 %v3629_v54 }
0x20bd   :  { %3633 = vadd.xlane.f32.xlu0 %v3632_v63  ;;  %v5696_v63 = vld [vmem:[%s6095_s20 + $0x28] sm:$0xff]  }
0x20c1   :  { %3639 = vadd.xlane.f32.xlu0 %v3638_v34 }
0x2142   :  { %v3637_v35 = vpop.xlane.xlu0 %3636 }
0x2146   :  { %v3631_v37 = vpop.xlane.xlu0 %3630 }
0x2147   :  { %5853 = vrcp.f32 %v3631_v37 }
0x214a   :  { %v3634_v16 = vpop.xlane.xlu0 %3633 }
0x214b   :  { %5855 = vrcp.f32 %v3634_v16 }
0x214c   :  { %5857 = vrcp.f32 %v3637_v35 }
0x214e   :  { %v3640_v26 = vpop.xlane.xlu0 %3639 }
0x214f   :  { %5859 = vrcp.f32 %v3640_v26 }
0x2151   :  { %v5854_v38 = vpop.eup %5853 }
0x2152   :  { %v3645_v18 = vmul.f32 %v5854_v38, %v5848_v58 }
0x2155   :  { %v5856_v17 = vpop.eup %5855 }
0x2156   :  { %v3646_v51 = vmul.f32 %v5856_v17, %v5850_v33  ;;  %v5858_v48 = vpop.eup %5857  ;;  %v5695_v33 = vld [vmem:[%s6095_s20 + $0x20] sm:$0xff]  }
0x2157   :  { %v3647_v41 = vmul.f32 %v5858_v48, %v5846_v19  ;;  %5544 = vmatprep.subr.bf16.mxu1 %v5695_v33 }
0x2158   :  { %v3649_v46 = vpack.c.bf16 %v3646_v51, %v3645_v18 }
0x2159   :  { %v5860_v47 = vpop.eup %5859 }
0x215a   :  { %v3648_v53 = vmul.f32 %v5860_v47, %v5852_v42  ;;  %5528 = vmatprep.mubr.msk.bf16.mxu1 %vm130_vm0, %v3649_v46 }
0x215c   :  { %v3650_v43 = vpack.c.bf16 %v3648_v53, %v3647_v41  ;;  %v4990_v53 = vld [vmem:[%s6085_s6 + $0x2] ss:$0 sm:$0xff]  ;;  %s5927_s6 = scalar_lea.vmem %s4667_s30, 512 }
0x215d   :  { %p5928_p0 = scmp.ne.s32.totalorder %s4667_s30, %s5927_s6  ;;  %p5933_p2 = scmp.lt.s32.totalorder %s5927_s6, %s5927_s6 }
0x215e   :  { %5529 = vmatmul.mubr.msk.bf16.vlgmr.msra.gmra.mrb[68].mxu1 %vm130_vm0, %v3650_v43 }
0x215f   :  { %5545 = vmatpush3.bf16.msra.mxu1 %v5695_v33  ;;  %p5934_p3 = por %p5933_p2, %p5932_p1 }
0x2160   :  { %5546 = vmatprep.subr.bf16.mxu1 %v5696_v63 }
0x2161   :  { %p5935_p4 = pnand %p5934_p3, %p5928_p0 }
0x2163   :  { %5547 = vmatpush3.bf16.msra.mxu1 %v5696_v63 }
0x2231   :  { %v5530_v56 = vpop.f32.mrb[68].mxu1 }
0x2232   :  { %v3693_v52 = vpop.f32.mrb[69].mxu1 }
0x2233   :  { %v5531_v40 = vpop.f32.mrb[70].mxu1 }
0x2234   :  { %v3712_v14 = vpack.c.bf16 %v5531_v40, %v5530_v56  ;;  %v3696_v59 = vpop.f32.mrb[71].mxu1  ;;  %v4991_v56 = vld [vmem:[%s6946_s0 + $0x2] ss:$0 sm:$0xff] }
0x2235   :  { %v3711_v4 = vpack.c.bf16 %v3696_v59, %v3693_v52 }
0x2237   :  { %5534 = vmatprep.mubr.msk.bf16.mxu0 %vm460_vm2, %v3711_v4 }
0x2238   :  { %5535 = vmatmul.mubr.msk.bf16.vlgmr.msra.gmra.mrb[72].mxu0 %vm460_vm2, %v3712_v14 }
0x2239   :  { %5540 = vmatprep.mubr.msk.bf16.mxu0 %vm460_vm2, %v3324_v23  ;;  %5539 = vmatpush3.bf16.msra.mxu0 %v5694_v39 }
0x2244   :  { %5541 = vmatmul.mubr.msk.bf16.vlgmr.msra.gmra.mrb[72].mxu0 %vm460_vm2, %v3325_v9 }
0x2317   :  { %v5542_v7 = vpop.f32.mrb[72].mxu0 }
0x2318   :  { %v3820_v10 = vpop.f32.mrb[73].mxu0  ;;  %v3845_v45 = vadd.f32 %v5542_v7, %v4987_v0 }
0x2319   :  { %v3843_v11 = vadd.f32 %v4987_v0, %v3820_v10  ;;  %v5543_v61 = vpop.f32.mrb[74].mxu0 }
0x231a   :  { %v3846_v57 = vadd.f32 %v5543_v61, %v4987_v0  ;;  %v3823_v8 = vpop.f32.mrb[75].mxu0  ;;  %v3849_v6 = vadd.f32 %v3845_v45, %v6633_v62  ;;  %v5699_v45 = vld [vmem:[%s6947_s5 + $0x90] sm:$0xff]  }
0x231b   :  { %v3847_v36 = vadd.f32 %v3843_v11, %v6618_v30  ;;  %v3844_v50 = vadd.f32 %v4987_v0, %v3823_v8 }
0x231c   :  { %v3850_v55 = vadd.f32 %v3846_v57, %v6635_v3  ;;  %v3861_v12 = vsel %vm130_vm0, %v3849_v6, 0.0 }
0x231d   :  { %v3848_v23 = vadd.f32 %v3844_v50, %v6624_v5  ;;  %v3855_v25 = vsel %vm130_vm0, %v3847_v36, 0.0  ;;  %v5697_v50 = vld [vmem:[%s6947_s5 + $0x80] sm:$0xff]  }
0x231e   :  { %3856 = vadd.xlane.f32.xlu0 %v3855_v25  ;;  %v3864_v24 = vsel %vm130_vm0, %v3850_v55, 0.0  ;;  %5552 = vmatprep.subr.bf16.mxu1 %v5697_v50  ;;  %v5701_v25 = vld [vmem:[%s6947_s5 + $0xa0] sm:$0xff]  }
0x231f   :  { %3865 = vadd.xlane.f32.xlu1 %v3864_v24  ;;  %v3858_v9 = vsel %vm130_vm0, %v3848_v23, 0.0  ;;  %v5702_v24 = vld [vmem:[%s6947_s5 + $0xa8] sm:$0xff]  }
0x2322   :  { %3859 = vadd.xlane.f32.xlu0 %v3858_v9  ;;  %v5704_v9 = vld [vmem:[%s6947_s5 + $0xb8] sm:$0xff]  }
0x2326   :  { %3862 = vadd.xlane.f32.xlu0 %v3861_v12  ;;  %v4997_v12 = vld [vmem:[%s6948_s17 + $0x2] ss:$0 sm:$0xff] }
0x23ab   :  { %v3857_v30 = vpop.xlane.xlu0 %3856 }
0x23ac   :  { %v3867_v31 = vmul.f32 0.03125, %v3857_v30  ;;  %v3866_v3 = vpop.xlane.xlu1 %3865 }
0x23ad   :  { %v3870_v44 = vmul.f32 0.03125, %v3866_v3 }
0x23ae   :  { %v3871_v13 = vsub.f32 %v3847_v36, %v3867_v31 }
0x23af   :  { %v3860_v5 = vpop.xlane.xlu0 %3859  ;;  %v3874_v2 = vsub.f32 %v3850_v55, %v3870_v44  ;;  %v5698_v55 = vld [vmem:[%s6947_s5 + $0x88] sm:$0xff]  }
0x23b0   :  { %v3868_v15 = vmul.f32 0.03125, %v3860_v5  ;;  %v3875_v20 = vmul.f32 %v3871_v13, %v3871_v13 }
0x23b1   :  { %v3878_v19 = vmul.f32 %v3874_v2, %v3874_v2 }
0x23b2   :  { %v3872_v21 = vsub.f32 %v3848_v23, %v3868_v15  ;;  %v3879_v22 = vsel %vm130_vm0, %v3875_v20, 0.0  ;;  %v5700_v23 = vld [vmem:[%s6947_s5 + $0x98] sm:$0xff]  }
0x23b3   :  { %3880 = vadd.xlane.f32.xlu0 %v3879_v22  ;;  %v3863_v62 = vpop.xlane.xlu0 %3862  ;;  %v3888_v58 = vsel %vm130_vm0, %v3878_v19, 0.0 }
0x23b4   :  { %v3869_v27 = vmul.f32 0.03125, %v3863_v62  ;;  %v3876_v28 = vmul.f32 %v3872_v21, %v3872_v21 }
0x23b6   :  { %v3873_v29 = vsub.f32 %v3849_v6, %v3869_v27  ;;  %v3882_v1 = vsel %vm130_vm0, %v3876_v28, 0.0  ;;  %v5703_v6 = vld [vmem:[%s6947_s5 + $0xb0] sm:$0xff]  }
0x23b7   :  { %3883 = vadd.xlane.f32.xlu1 %v3882_v1 }
0x23b8   :  { %v3877_v32 = vmul.f32 %v3873_v29, %v3873_v29 }
0x23ba   :  { %v3885_v54 = vsel %vm130_vm0, %v3877_v32, 0.0 }
0x23bb   :  { %3889 = vadd.xlane.f32.xlu1 %v3888_v58  ;;  %3886 = vadd.xlane.f32.xlu0 %v3885_v54 }
0x2440   :  { %v3881_v42 = vpop.xlane.xlu0 %3880 }
0x2441   :  { %v3891_v34 = vmul.f32 0.03125, %v3881_v42 }
0x2443   :  { %v3895_v35 = vadd.f32 1e-12, %v3891_v34 }
0x2444   :  { %v3884_v37 = vpop.xlane.xlu1 %3883 }
0x2445   :  { %5861 = vrsqrt.f32 %v3895_v35  ;;  %v3892_v16 = vmul.f32 0.03125, %v3884_v37 }
0x2447   :  { %v3896_v26 = vadd.f32 1e-12, %v3892_v16 }
0x2448   :  { %v3890_v38 = vpop.xlane.xlu1 %3889  ;;  %v3887_v17 = vpop.xlane.xlu0 %3886 }
0x2449   :  { %5863 = vrsqrt.f32 %v3896_v26  ;;  %v3894_v18 = vmul.f32 0.03125, %v3890_v38  ;;  %v3893_v51 = vmul.f32 0.03125, %v3887_v17 }
0x244b   :  { %v3898_v48 = vadd.f32 1e-12, %v3894_v18  ;;  %v3897_v46 = vadd.f32 1e-12, %v3893_v51 }
0x244d   :  { %5865 = vrsqrt.f32 %v3898_v48 }
0x244e   :  { %5867 = vrsqrt.f32 %v3897_v46 }
0x244f   :  { %v5862_v47 = vpop.eup %5861 }
0x2450   :  { %v3903_v41 = vmul.f32 %v5862_v47, %v3871_v13 }
0x2452   :  { %v3913_v39 = vmul.f32 %v4990_v53, %v3903_v41 }
0x2453   :  { %v5864_v43 = vpop.eup %5863 }
0x2454   :  { %v3904_v49 = vmul.f32 %v5864_v43, %v3872_v21  ;;  %v6801_v4 = vadd.f32 %v4991_v56, %v3913_v39 }
0x2456   :  { %v3914_v52 = vmul.f32 %v4990_v53, %v3904_v49 }
0x2457   :  { %v5866_v40 = vpop.eup %5865 }
0x2458   :  { %v5868_v14 = vpop.eup %5867  ;;  %v3906_v59 = vmul.f32 %v5866_v40, %v3874_v2  ;;  %v6803_v0 = vadd.f32 %v4991_v56, %v3914_v52 }
0x2459   :  { %v3905_v7 = vmul.f32 %v5868_v14, %v3873_v29 }
0x245a   :  { %v3916_v10 = vmul.f32 %v4990_v53, %v3906_v59  ;;  %v3932_v11 = vpack.c.bf16 %v6803_v0, %v6801_v4 }
0x245b   :  { %v3915_v61 = vmul.f32 %v4990_v53, %v3905_v7 }
0x245c   :  { %5548 = vmatprep.mubr.msk.bf16.mxu1 %vm130_vm0, %v3932_v11  ;;  %v6808_v57 = vadd.f32 %v4991_v56, %v3916_v10  ;;  %v5019_v10 = vld [vmem:[%s6949_s21 + $0x2] ss:$0 sm:$0xff] }
0x245d   :  { %v6810_v8 = vadd.f32 %v4991_v56, %v3915_v61 }
0x245f   :  { %v3933_v36 = vpack.c.bf16 %v6808_v57, %v6810_v8 }
0x2461   :  { %5549 = vmatmul.mubr.msk.bf16.vlgmr.msra.gmra.mrb[72].mxu1 %vm130_vm0, %v3933_v36 }
0x2462   :  { %5553 = vmatpush3.bf16.msra.mxu1 %v5697_v50 }
0x2463   :  { %5554 = vmatprep.subr.bf16.mxu1 %v5698_v55 }
0x2466   :  { %5555 = vmatpush3.bf16.msra.mxu1 %v5698_v55 }
0x2467   :  { %5556 = vmatprep.subr.bf16.mxu1 %v5699_v45 }
0x246a   :  { %5557 = vmatpush3.bf16.msra.mxu1 %v5699_v45 }
0x246b   :  { %5558 = vmatprep.subr.bf16.mxu1 %v5700_v23 }
0x246e   :  { %5559 = vmatpush3.bf16.msra.mxu1 %v5700_v23 }
0x246f   :  { %5560 = vmatprep.subr.bf16.mxu1 %v5701_v25 }
0x2472   :  { %5561 = vmatpush3.bf16.msra.mxu1 %v5701_v25 }
0x2473   :  { %5562 = vmatprep.subr.bf16.mxu1 %v5702_v24 }
0x2476   :  { %5563 = vmatpush3.bf16.msra.mxu1 %v5702_v24 }
0x2477   :  { %5564 = vmatprep.subr.bf16.mxu1 %v5703_v6 }
0x247a   :  { %5565 = vmatpush3.bf16.msra.mxu1 %v5703_v6 }
0x247b   :  { %5566 = vmatprep.subr.bf16.mxu1 %v5704_v9 }
0x247e   :  { %5567 = vmatpush3.bf16.msra.mxu1 %v5704_v9 }
0x2534   :  { %v5550_v30 = vpop.f32.mrb[72].mxu1 }
0x2535   :  { %v4003_v31 = vadd.f32 %v5550_v30, %v4997_v12  ;;  %v3994_v3 = vpop.f32.mrb[73].mxu1 }
0x2536   :  { %v3995_v13 = vadd.f32 %v4997_v12, %v3994_v3  ;;  %v5551_v44 = vpop.f32.mrb[74].mxu1 }
0x2537   :  { %v4015_v5 = vmul.f32 0.044715, %v4003_v31  ;;  %v4006_v15 = vadd.f32 %v5551_v44, %v4997_v12  ;;  %v3997_v20 = vpop.f32.mrb[75].mxu1  ;;  %v4011_v47 = vmul.f32 0.5, %v4003_v31 }
0x2538   :  { %v4013_v2 = vmul.f32 0.044715, %v3995_v13  ;;  %v3998_v21 = vadd.f32 %v4997_v12, %v3997_v20  ;;  %v4009_v43 = vmul.f32 0.5, %v3995_v13 }
0x2539   :  { %v4019_v22 = vmul.f32 %v4015_v5, %v4003_v31  ;;  %v4016_v62 = vmul.f32 0.044715, %v4006_v15  ;;  %v4012_v41 = vmul.f32 0.5, %v4006_v15 }
0x253a   :  { %v4017_v27 = vmul.f32 %v4013_v2, %v3995_v13  ;;  %v4014_v28 = vmul.f32 0.044715, %v3998_v21  ;;  %v4010_v49 = vmul.f32 0.5, %v3998_v21 }
0x253b   :  { %v4023_v29 = vmul.f32 %v4019_v22, %v4003_v31  ;;  %v4020_v1 = vmul.f32 %v4016_v62, %v4006_v15 }
0x253c   :  { %v4021_v19 = vmul.f32 %v4017_v27, %v3995_v13  ;;  %v4018_v32 = vmul.f32 %v4014_v28, %v3998_v21 }
0x253d   :  { %v4027_v58 = vadd.f32 %v4023_v29, %v4003_v31  ;;  %v4024_v54 = vmul.f32 %v4020_v1, %v4006_v15 }
0x253e   :  { %v4022_v33 = vmul.f32 %v4018_v32, %v3998_v21  ;;  %v4025_v63 = vadd.f32 %v4021_v19, %v3995_v13 }
0x253f   :  { %v4031_v42 = vmul.f32 0.7978846, %v4027_v58  ;;  %v4028_v34 = vadd.f32 %v4024_v54, %v4006_v15 }
0x2540   :  { %v4026_v35 = vadd.f32 %v4022_v33, %v3998_v21  ;;  %v4029_v37 = vmul.f32 0.7978846, %v4025_v63  ;;  %v5705_v33 = vld [vmem:[%s6952_s9] sm:$0xff]   ;;  %v5706_v63 = vld [vmem:[%s6952_s9 + $0x8] sm:$0xff]  }
0x2541   :  { %5869 = vtanh.f32 %v4031_v42  ;;  %v4032_v16 = vmul.f32 0.7978846, %v4028_v34  ;;  %5572 = vmatprep.subr.bf16.mxu0 %v5705_v33 }
0x2542   :  { %v4030_v26 = vmul.f32 0.7978846, %v4026_v35  ;;  %5871 = vtanh.f32 %v4029_v37  ;;  %5573 = vmatpush3.bf16.msra.mxu0 %v5705_v33 }
0x2543   :  { %5873 = vtanh.f32 %v4032_v16  ;;  %5574 = vmatprep.subr.bf16.mxu0 %v5706_v63 }
0x2544   :  { %5875 = vtanh.f32 %v4030_v26 }
0x2546   :  { %5575 = vmatpush3.bf16.msra.mxu0 %v5706_v63 }
0x254b   :  { %v5870_v38 = vpop.eup %5869 }
0x254c   :  { %v5872_v17 = vpop.eup %5871  ;;  %v4039_v18 = vadd.f32 1.0, %v5870_v38 }
0x254d   :  { %v5874_v51 = vpop.eup %5873  ;;  %v4037_v48 = vadd.f32 1.0, %v5872_v17 }
0x254e   :  { %v5876_v46 = vpop.eup %5875  ;;  %v4040_v53 = vadd.f32 1.0, %v5874_v51  ;;  %v4043_v56 = vmul.f32 %v4039_v18, %v4011_v47 }
0x254f   :  { %v4038_v39 = vadd.f32 1.0, %v5876_v46  ;;  %v4041_v40 = vmul.f32 %v4037_v48, %v4009_v43 }
0x2550   :  { %v4044_v52 = vmul.f32 %v4040_v53, %v4012_v41  ;;  %v5030_v41 = vld [vmem:[%s6950_s15 + $0x2] ss:$0 sm:$0xff] }
0x2551   :  { %v4042_v14 = vmul.f32 %v4038_v39, %v4010_v49  ;;  %v5031_v49 = vld [vmem:[%s6951_s16 + $0x2] ss:$0 sm:$0xff] }
0x2552   :  { %v4063_v59 = vpack.c.bf16 %v4044_v52, %v4043_v56 }
0x2553   :  { %v4062_v7 = vpack.c.bf16 %v4042_v14, %v4041_v40 }
0x2555   :  { %5568 = vmatprep.mubr.bf16.mxu1 %v4062_v7 }
0x2556   :  { %5569 = vmatmul.mubr.bf16.vlgmr.msra.gmra.mrb[76].mxu1 %v4063_v59 }
0x2629   :  { %v5570_v11 = vpop.f32.mrb[76].mxu1 }
0x262a   :  { %v4154_v61 = vpop.f32.mrb[77].mxu1  ;;  %v4163_v36 = vadd.f32 %v5570_v11, %v5019_v10 }
0x262b   :  { %v4155_v50 = vadd.f32 %v5019_v10, %v4154_v61  ;;  %v5571_v55 = vpop.f32.mrb[78].mxu1 }
0x262c   :  { %v4157_v45 = vpop.f32.mrb[79].mxu1  ;;  %v4166_v25 = vadd.f32 %v5571_v55, %v5019_v10  ;;  %v4171_v6 = vadd.f32 %v4163_v36, %v6810_v8 }
0x262d   :  { %v4169_v23 = vadd.f32 %v4155_v50, %v6801_v4  ;;  %v4158_v24 = vadd.f32 %v5019_v10, %v4157_v45 }
0x262e   :  { %v4172_v30 = vadd.f32 %v4166_v25, %v6808_v57  ;;  %v4183_v3 = vsel %vm130_vm0, %v4171_v6, 0.0  ;;  %v5032_v25 = vld [vmem:[%s6953_s25] ss:$0 sm:$0xff] }
0x262f   :  { %v4170_v9 = vadd.f32 %v4158_v24, %v6803_v0  ;;  %v4177_v12 = vsel %vm130_vm0, %v4169_v23, 0.0 }
0x2630   :  { %4178 = vadd.xlane.f32.xlu0 %v4177_v12  ;;  %v4186_v13 = vsel %vm130_vm0, %v4172_v30, 0.0 }
0x2631   :  { %v4180_v31 = vsel %vm130_vm0, %v4170_v9, 0.0 }
0x2632   :  { %4181 = vadd.xlane.f32.xlu1 %v4180_v31 }
0x2634   :  { %4184 = vadd.xlane.f32.xlu0 %v4183_v3 }
0x2636   :  { %4187 = vadd.xlane.f32.xlu1 %v4186_v13 }
0x26bd   :  { %v4179_v4 = vpop.xlane.xlu0 %4178 }
0x26be   :  { %v4189_v44 = vmul.f32 0.03125, %v4179_v4 }
0x26bf   :  { %v4182_v5 = vpop.xlane.xlu1 %4181 }
0x26c0   :  { %v4193_v8 = vsub.f32 %v4169_v23, %v4189_v44  ;;  %v4190_v15 = vmul.f32 0.03125, %v4182_v5 }
0x26c1   :  { %v4185_v0 = vpop.xlane.xlu0 %4184 }
0x26c2   :  { %v4194_v20 = vsub.f32 %v4170_v9, %v4190_v15  ;;  %v4191_v2 = vmul.f32 0.03125, %v4185_v0  ;;  %v4197_v21 = vmul.f32 %v4193_v8, %v4193_v8 }
0x26c3   :  { %v4188_v57 = vpop.xlane.xlu1 %4187 }
0x26c4   :  { %v4195_v22 = vsub.f32 %v4171_v6, %v4191_v2  ;;  %v4192_v62 = vmul.f32 0.03125, %v4188_v57  ;;  %v4201_v27 = vsel %vm130_vm0, %v4197_v21, 0.0  ;;  %v4198_v28 = vmul.f32 %v4194_v20, %v4194_v20 }
0x26c5   :  { %4202 = vadd.xlane.f32.xlu0 %v4201_v27 }
0x26c6   :  { %v4196_v29 = vsub.f32 %v4172_v30, %v4192_v62  ;;  %v4204_v1 = vsel %vm130_vm0, %v4198_v28, 0.0  ;;  %v4199_v19 = vmul.f32 %v4195_v22, %v4195_v22 }
0x26c7   :  { %4205 = vadd.xlane.f32.xlu1 %v4204_v1 }
0x26c8   :  { %v4207_v32 = vsel %vm130_vm0, %v4199_v19, 0.0  ;;  %v4200_v58 = vmul.f32 %v4196_v29, %v4196_v29 }
0x26c9   :  { %4208 = vadd.xlane.f32.xlu0 %v4207_v32 }
0x26ca   :  { %v4210_v54 = vsel %vm130_vm0, %v4200_v58, 0.0 }
0x26cb   :  { %4211 = vadd.xlane.f32.xlu1 %v4210_v54 }
0x2752   :  { %v4203_v42 = vpop.xlane.xlu0 %4202 }
0x2753   :  { %v4213_v34 = vmul.f32 0.03125, %v4203_v42 }
0x2754   :  { %v4206_v35 = vpop.xlane.xlu1 %4205 }
0x2755   :  { %v4217_v37 = vadd.f32 1e-12, %v4213_v34  ;;  %v4214_v16 = vmul.f32 0.03125, %v4206_v35 }
0x2756   :  { %v4209_v26 = vpop.xlane.xlu0 %4208 }
0x2757   :  { %5877 = vrsqrt.f32 %v4217_v37  ;;  %v4218_v38 = vadd.f32 1e-12, %v4214_v16  ;;  %v4215_v17 = vmul.f32 0.03125, %v4209_v26 }
0x2758   :  { %v4212_v18 = vpop.xlane.xlu1 %4211 }
0x2759   :  { %5879 = vrsqrt.f32 %v4218_v38  ;;  %v4219_v51 = vadd.f32 1e-12, %v4215_v17  ;;  %v4216_v48 = vmul.f32 0.03125, %v4212_v18 }
0x275b   :  { %5881 = vrsqrt.f32 %v4219_v51  ;;  %v4220_v46 = vadd.f32 1e-12, %v4216_v48 }
0x275d   :  { %5883 = vrsqrt.f32 %v4220_v46 }
0x2761   :  { %v5878_v47 = vpop.eup %5877 }
0x2762   :  { %v4225_v53 = vmul.f32 %v5878_v47, %v4193_v8 }
0x2763   :  { %v5880_v43 = vpop.eup %5879 }
0x2764   :  { %v4226_v39 = vmul.f32 %v5880_v43, %v4194_v20  ;;  %v4235_v56 = vmul.f32 %v5030_v41, %v4225_v53 }
0x2765   :  { %v5882_v52 = vpop.eup %5881 }
0x2766   :  { %v4227_v40 = vmul.f32 %v5882_v52, %v4195_v22  ;;  %v4236_v14 = vmul.f32 %v5030_v41, %v4226_v39  ;;  %v4245_v59 = vadd.f32 %v5031_v49, %v4235_v56 }
0x2767   :  { %v5884_v7 = vpop.eup %5883 }
0x2768   :  { %v4237_v10 = vmul.f32 %v5030_v41, %v4227_v40  ;;  %v4228_v11 = vmul.f32 %v5884_v7, %v4196_v29  ;;  %v4246_v61 = vadd.f32 %v5031_v49, %v4236_v14  ;;  %4249 = vst.msk [vmem:[%s6155_s12] sm:$0xff] %vm130_vm0, %v4245_v59 }
0x276a   :  { %v4238_v36 = vmul.f32 %v5030_v41, %v4228_v11  ;;  %4250 = vst.msk [vmem:[%s6155_s12 + $0x8] sm:$0xff] %vm130_vm0, %v4246_v61  ;;  %v4265_v50 = vpack.c.bf16 %v4246_v61, %v4245_v59  ;;  %v4247_v55 = vadd.f32 %v5031_v49, %v4237_v10 }
0x276c   :  { %5576 = vmatprep.mubr.msk.bf16.mxu0 %vm130_vm0, %v4265_v50  ;;  %v4248_v45 = vadd.f32 %v5031_v49, %v4238_v36  ;;  %4251 = vst.msk [vmem:[%s6155_s12 + $0x10] sm:$0xff] %vm130_vm0, %v4247_v55 }
0x276e   :  { %4252 = vst.msk [vmem:[%s6155_s12 + $0x18] sm:$0xff] %vm130_vm0, %v4248_v45  ;;  %v4266_v23 = vpack.c.bf16 %v4248_v45, %v4247_v55 }
0x2770   :  { %5577 = vmatmul.mubr.msk.bf16.vlgmr.msra.gmra.mrb[76].mxu0 %vm130_vm0, %v4266_v23 }
0x2843   :  { %v5578_v24 = vpop.f32.mrb[76].mxu0 }
0x2844   :  { %v4335_v6 = vadd.f32 %v5578_v24, %v5032_v25  ;;  %v4326_v9 = vpop.f32.mrb[77].mxu0 }
0x2845   :  { %v4327_v12 = vadd.f32 %v5032_v25, %v4326_v9  ;;  %v5579_v30 = vpop.f32.mrb[78].mxu0 }
0x2846   :  { %v4347_v31 = vmul.f32 0.044715, %v4335_v6  ;;  %v4338_v3 = vadd.f32 %v5579_v30, %v5032_v25  ;;  %v4329_v13 = vpop.f32.mrb[79].mxu0  ;;  %v4343_v26 = vmul.f32 0.5, %v4335_v6 }
0x2847   :  { %v4345_v4 = vmul.f32 0.044715, %v4327_v12  ;;  %v4330_v44 = vadd.f32 %v5032_v25, %v4329_v13  ;;  %v4341_v34 = vmul.f32 0.5, %v4327_v12  ;;  %v5708_v13 = vld [vmem:[%s6955_s3 + $0x8] sm:$0xff]  }
0x2848   :  { %v4351_v5 = vmul.f32 %v4347_v31, %v4335_v6  ;;  %v4348_v8 = vmul.f32 0.044715, %v4338_v3  ;;  %v4344_v41 = vmul.f32 0.5, %v4338_v3  ;;  %v6861_v31 = vld [vmem:[%s6954_s29 + $0x8] sm:$0xff] }
0x2849   :  { %v4349_v15 = vmul.f32 %v4345_v4, %v4327_v12  ;;  %v4346_v0 = vmul.f32 0.044715, %v4330_v44  ;;  %v4342_v17 = vmul.f32 0.5, %v4330_v44 }
0x284a   :  { %v4352_v20 = vmul.f32 %v4348_v8, %v4338_v3  ;;  %v4355_v2 = vmul.f32 %v4351_v5, %v4335_v6 }
0x284b   :  { %v4350_v21 = vmul.f32 %v4346_v0, %v4330_v44  ;;  %v4353_v57 = vmul.f32 %v4349_v15, %v4327_v12 }
0x284c   :  { %v4359_v22 = vadd.f32 %v4355_v2, %v4335_v6  ;;  %v4356_v62 = vmul.f32 %v4352_v20, %v4338_v3 }
0x284d   :  { %v4357_v27 = vadd.f32 %v4353_v57, %v4327_v12  ;;  %v4354_v28 = vmul.f32 %v4350_v21, %v4330_v44 }
0x284e   :  { %v4363_v29 = vmul.f32 0.7978846, %v4359_v22  ;;  %v4360_v1 = vadd.f32 %v4356_v62, %v4338_v3  ;;  %v5707_v3 = vld [vmem:[%s6955_s3] sm:$0xff]  }
0x284f   :  { %v4361_v19 = vmul.f32 0.7978846, %v4357_v27  ;;  %v4358_v32 = vadd.f32 %v4354_v28, %v4330_v44  ;;  %5580 = vmatprep.subr.bf16.mxu0 %v5707_v3  ;;  %v5037_v28 = vld [vmem:[%s6956_s8] ss:$0 sm:$0xff] }
0x2850   :  { %5885 = vtanh.f32 %v4363_v29  ;;  %v4364_v58 = vmul.f32 0.7978846, %v4360_v1  ;;  %5581 = vmatpush3.bf16.msra.mxu0 %v5707_v3 }
0x2851   :  { %5887 = vtanh.f32 %v4361_v19  ;;  %v4362_v54 = vmul.f32 0.7978846, %v4358_v32  ;;  %5582 = vmatprep.subr.bf16.mxu0 %v5708_v13 }
0x2852   :  { %5889 = vtanh.f32 %v4364_v58 }
0x2853   :  { %5891 = vtanh.f32 %v4362_v54  ;;  %v5038_v54 = vld [vmem:[%s6957_s14] ss:$0 sm:$0xff] }
0x2854   :  { %5583 = vmatpush3.bf16.msra.mxu0 %v5708_v13 }
0x285a   :  { %v5886_v33 = vpop.eup %5885 }
0x285b   :  { %v5888_v63 = vpop.eup %5887  ;;  %v4371_v37 = vadd.f32 1.0, %v5886_v33 }
0x285c   :  { %v5890_v42 = vpop.eup %5889  ;;  %v4369_v35 = vadd.f32 1.0, %v5888_v63 }
0x285d   :  { %v5892_v16 = vpop.eup %5891  ;;  %v4372_v51 = vadd.f32 1.0, %v5890_v42  ;;  %v4375_v47 = vmul.f32 %v4371_v37, %v4343_v26 }
0x285e   :  { %v4373_v38 = vmul.f32 %v4369_v35, %v4341_v34  ;;  %v4370_v18 = vadd.f32 1.0, %v5892_v16 }
0x285f   :  { %v4376_v43 = vmul.f32 %v4372_v51, %v4344_v41  ;;  %v4385_v49 = vsel %vm130_vm0, %v4375_v47, 0.0 }
0x2860   :  { %v4379_v48 = vsel %vm130_vm0, %v4373_v38, 0.0  ;;  %v4374_v46 = vmul.f32 %v4370_v18, %v4342_v17 }
0x2861   :  { %4380 = vadd.xlane.f32.xlu0 %v4379_v48  ;;  %v4388_v39 = vsel %vm130_vm0, %v4376_v43, 0.0  ;;  %v5039_v48 = vld [vmem:[%s6958_s19] ss:$0 sm:$0xff] }
0x2862   :  { %v4382_v53 = vsel %vm130_vm0, %v4374_v46, 0.0 }
0x2863   :  { %4383 = vadd.xlane.f32.xlu1 %v4382_v53 }
0x2865   :  { %4386 = vadd.xlane.f32.xlu0 %v4385_v49 }
0x2867   :  { %4389 = vadd.xlane.f32.xlu1 %v4388_v39 }
0x28ee   :  { %v4381_v56 = vpop.xlane.xlu0 %4380 }
0x28ef   :  { %v4391_v52 = vmul.f32 0.03125, %v4381_v56 }
0x28f0   :  { %v4384_v40 = vpop.xlane.xlu1 %4383 }
0x28f1   :  { %v4395_v14 = vsub.f32 %v4373_v38, %v4391_v52  ;;  %v4392_v59 = vmul.f32 0.03125, %v4384_v40  ;;  %v6872_v52 = vld [vmem:[%s6954_s29 + $0x10] sm:$0xff]  ;;  %v6876_v40 = vld [vmem:[%s6954_s29 + $0x18] sm:$0xff] }
0x28f2   :  { %v4387_v7 = vpop.xlane.xlu0 %4386 }
0x28f3   :  { %v4396_v10 = vsub.f32 %v4374_v46, %v4392_v59  ;;  %v4393_v11 = vmul.f32 0.03125, %v4387_v7  ;;  %v4399_v61 = vmul.f32 %v4395_v14, %v4395_v14 }
0x28f4   :  { %v4390_v36 = vpop.xlane.xlu1 %4389 }
0x28f5   :  { %v4397_v50 = vsub.f32 %v4375_v47, %v4393_v11  ;;  %v4394_v55 = vmul.f32 0.03125, %v4390_v36  ;;  %v4403_v45 = vsel %vm130_vm0, %v4399_v61, 0.0  ;;  %v4400_v23 = vmul.f32 %v4396_v10, %v4396_v10 }
0x28f6   :  { %4404 = vadd.xlane.f32.xlu0 %v4403_v45 }
0x28f7   :  { %v4398_v25 = vsub.f32 %v4376_v43, %v4394_v55  ;;  %v4406_v24 = vsel %vm130_vm0, %v4400_v23, 0.0  ;;  %v4401_v6 = vmul.f32 %v4397_v50, %v4397_v50 }
0x28f8   :  { %4407 = vadd.xlane.f32.xlu1 %v4406_v24 }
0x28f9   :  { %v4409_v9 = vsel %vm130_vm0, %v4401_v6, 0.0  ;;  %v4402_v12 = vmul.f32 %v4398_v25, %v4398_v25 }
0x28fa   :  { %4410 = vadd.xlane.f32.xlu0 %v4409_v9 }
0x28fb   :  { %v4412_v30 = vsel %vm130_vm0, %v4402_v12, 0.0  ;;  %v4531_v12 = vlaneseq }
0x28fc   :  { %4413 = vadd.xlane.f32.xlu1 %v4412_v30 }
0x28fd   :  { %v4532_v13 = vand.u32 127, %v4531_v12 }
0x290d   :  { %4537 = vperm.xlu1 %5637, %v6861_v31  }
0x2983   :  { %v4405_v4 = vpop.xlane.xlu0 %4404 }
0x2984   :  { %v4415_v44 = vmul.f32 0.03125, %v4405_v4 }
0x2985   :  { %v4408_v5 = vpop.xlane.xlu1 %4407 }
0x2986   :  { %v4419_v8 = vadd.f32 1e-12, %v4415_v44  ;;  %v4416_v15 = vmul.f32 0.03125, %v4408_v5 }
0x2987   :  { %v4411_v0 = vpop.xlane.xlu0 %4410 }
0x2988   :  { %5893 = vrsqrt.f32 %v4419_v8  ;;  %v4420_v20 = vadd.f32 1e-12, %v4416_v15  ;;  %v4417_v2 = vmul.f32 0.03125, %v4411_v0 }
0x2989   :  { %v4414_v21 = vpop.xlane.xlu1 %4413 }
0x298a   :  { %5895 = vrsqrt.f32 %v4420_v20  ;;  %v4421_v57 = vadd.f32 1e-12, %v4417_v2  ;;  %v4418_v22 = vmul.f32 0.03125, %v4414_v21 }
0x298c   :  { %5897 = vrsqrt.f32 %v4421_v57  ;;  %v4422_v62 = vadd.f32 1e-12, %v4418_v22 }
0x298d   :  { %v4538_v59 = vpop.permute.xlu1 %4537 }
0x298e   :  { %5899 = vrsqrt.f32 %v4422_v62  ;;  %vm4546_vm5 = vcmp.eq.s32.totalorder %v4532_v13, %v4538_v59 }
0x2992   :  { %v5894_v27 = vpop.eup %5893 }
0x2993   :  { %v4427_v29 = vmul.f32 %v5894_v27, %v4395_v14  ;;  %v6879_v14 = vld [vmem:[%s6954_s29] sm:$0xff] }
0x2994   :  { %v5896_v1 = vpop.eup %5895 }
0x2995   :  { %v4428_v19 = vmul.f32 %v5896_v1, %v4396_v10  ;;  %v4437_v32 = vmul.f32 %v5037_v28, %v4427_v29 }
0x2996   :  { %v5898_v58 = vpop.eup %5897 }
0x2997   :  { %v4429_v33 = vmul.f32 %v5898_v58, %v4397_v50  ;;  %v4438_v63 = vmul.f32 %v5037_v28, %v4428_v19  ;;  %v4447_v37 = vadd.f32 %v5038_v54, %v4437_v32 }
0x2998   :  { %v5900_v42 = vpop.eup %5899 }
0x2999   :  { %v4439_v34 = vmul.f32 %v5037_v28, %v4429_v33  ;;  %v4430_v35 = vmul.f32 %v5900_v42, %v4398_v25  ;;  %v4448_v16 = vadd.f32 %v5038_v54, %v4438_v63 }
0x299b   :  { %v4440_v26 = vmul.f32 %v5037_v28, %v4430_v35  ;;  %v4455_v38 = vpack.c.bf16 %v4448_v16, %v4447_v37  ;;  %v4449_v17 = vadd.f32 %v5038_v54, %v4439_v34 }
0x299d   :  { %5584 = vmatprep.mubr.msk.bf16.mxu0 %vm130_vm0, %v4455_v38  ;;  %v4450_v18 = vadd.f32 %v5038_v54, %v4440_v26 }
0x299f   :  { %v4456_v51 = vpack.c.bf16 %v4450_v18, %v4449_v17 }
0x29a1   :  { %5585 = vmatmul.mubr.msk.bf16.vlgmr.msra.gmra.mrb[80].mxu0 %vm130_vm0, %v4456_v51 }
0x2a74   :  { %v5586_v46 = vpop.f32.mrb[80].mxu0 }
0x2a75   :  { %v4525_v47 = vadd.f32 %v5586_v46, %v5039_v48  ;;  %v4516_v41 = vpop.f32.mrb[81].mxu0 }
0x2a76   :  { %v4517_v53 = vadd.f32 %v5039_v48, %v4516_v41  ;;  %v5587_v43 = vpop.f32.mrb[82].mxu0 }
0x2a77   :  { %4653 = vst [vmem:[#allocation2 + $0x10] sm:$0xff] %v4525_v47  ;;  %v4528_v49 = vadd.f32 %v5587_v43, %v5039_v48  ;;  %v4519_v39 = vpop.f32.mrb[83].mxu0 }
0x2a78   :  { %4651 = vst [vmem:[#allocation2] sm:$0xff] %v4517_v53  ;;  %v4520_v56 = vadd.f32 %v5039_v48, %v4519_v39  ;;  %4561 = vmax.xlane.f32.xlu0 %v4517_v53 }
0x2a79   :  { %4654 = vst [vmem:[#allocation2 + $0x18] sm:$0xff] %v4528_v49  ;;  %4567 = vmax.xlane.f32.xlu1 %v4528_v49 }
0x2a7a   :  { %4652 = vst [vmem:[#allocation2 + $0x8] sm:$0xff] %v4520_v56  ;;  %v4550_v20 = vsel %vm4546_vm5, %v4520_v56, 0.0 }
0x2a7c   :  { %4565 = vmax.xlane.f32.xlu0 %v4525_v47 }
0x2a7d   :  { %4563 = vmax.xlane.f32.xlu1 %v4520_v56 }
0x2a8e   :  { %4540 = vperm.xlu1 %5637, %v6872_v52  }
0x2a92   :  { %4543 = vperm.xlu1 %5637, %v6876_v40   ;;  %4534 = vperm.xlu0 %5638, %v6879_v14  }
0x2b05   :  { %v6883_v7 = vpop.xlane.xlu0 %4561 }
0x2b06   :  { %v4569_v10 = vsub.f32 %v4517_v53, %v6883_v7  ;;  %v6886_v11 = vpop.xlane.xlu1 %4567 }
0x2b07   :  { %v4572_v50 = vsub.f32 %v4528_v49, %v6886_v11 }
0x2b08   :  { %v4573_v61 = vmul.f32 1.442695, %v4569_v10 }
0x2b09   :  { %v6888_v36 = vpop.xlane.xlu0 %4565  ;;  %v4579_v6 = vmul.f32 1.442695, %v4572_v50 }
0x2b0a   :  { %5901 = vpow2.f32 %v4573_v61  ;;  %v4571_v55 = vsub.f32 %v4525_v47, %v6888_v36  ;;  %v6892_v45 = vpop.xlane.xlu1 %4563 }
0x2b0b   :  { %v4570_v23 = vsub.f32 %v4520_v56, %v6892_v45 }
0x2b0c   :  { %v4577_v25 = vmul.f32 1.442695, %v4571_v55 }
0x2b0d   :  { %v4575_v24 = vmul.f32 1.442695, %v4570_v23 }
0x2b0e   :  { %5903 = vpow2.f32 %v4577_v25  ;;  %v4541_v30 = vpop.permute.xlu1 %4540 }
0x2b0f   :  { %5905 = vpow2.f32 %v4575_v24  ;;  %vm4547_vm3 = vcmp.eq.s32.totalorder %v4532_v13, %v4541_v30 }
0x2b10   :  { %5907 = vpow2.f32 %v4579_v6  ;;  %v4551_v8 = vsel %vm4547_vm3, %v4525_v47, 0.0 }
0x2b11   :  { %v4535_v44 = vpop.permute.xlu0 %4534 }
0x2b12   :  { %vm4545_vm4 = vcmp.eq.s32.totalorder %v4532_v13, %v4535_v44  ;;  %v4544_v0 = vpop.permute.xlu1 %4543 }
0x2b13   :  { %v4549_v15 = vsel %vm4545_vm4, %v4517_v53, 0.0  ;;  %vm4548_vm6 = vcmp.eq.s32.totalorder %v4532_v13, %v4544_v0 }
0x2b14   :  { %v5902_v9 = vpop.eup %5901  ;;  %v4552_v2 = vsel %vm4548_vm6, %v4528_v49, 0.0 }
0x2b15   :  { %4581 = vadd.xlane.f32.xlu1 %v5902_v9 }
0x2b18   :  { %v5904_v3 = vpop.eup %5903 }
0x2b19   :  { %v5906_v4 = vpop.eup %5905  ;;  %4585 = vadd.xlane.f32.xlu1 %v5904_v3 }
0x2b1a   :  { %4583 = vadd.xlane.f32.xlu0 %v5906_v4  ;;  %v5908_v5 = vpop.eup %5907 }
0x2b1d   :  { %4587 = vadd.xlane.f32.xlu1 %v5908_v5 }
0x2b1e   :  { %4557 = vadd.xlane.f32.xlu0 %v4551_v8 }
0x2b21   :  { %4553 = vadd.xlane.f32.xlu1 %v4549_v15 }
0x2b25   :  { %4555 = vadd.xlane.f32.xlu1 %v4550_v20 }
0x2b29   :  { %4559 = vadd.xlane.f32.xlu1 %v4552_v2 }
0x2b2a   :  { %5938 = shalt.err (!%p5935_p4)
}
0x2b2b   :  { %s5939_s12 = scalar_lea.hbm %s6165_s4, 512 }
0x2b2c   :  { %p5940_p5 = scmp.ne.s32.totalorder %s6165_s4, %s5939_s12  ;;  %p5943_p6 = scmp.lt.u32.totalorder %s5939_s12, %s6165_s4 }
0x2b2e   :  { %p5945_p7 = pnand %p5943_p6, %p5940_p5 }
0x2b30   :  { %5948 = shalt.err (!%p5945_p7)
}
0x2b31   :  { %s6009_s20 = smov 128   ;;  %s6010_s27 = smov 8   ;;  %vm4605_vm7 = vcmp.ne.s32.totalorder %v6879_v14, 4294967196  ;;  %vm4606_vm8 = vcmp.ne.s32.totalorder %v6861_v31, 4294967196  ;;  %vm4621_vm9 = vcmask 7168   ;;  %vm4607_vm10 = vcmp.ne.s32.totalorder %v6872_v52, 4294967196 }
0x2b32   :  { %4672 = dma.vmem_to_hbm [thread:$0]  %s4667_s30, 512, %s6165_s4, [#allocation3], %s6009_s20, %s6009_s20, %s6010_s27   ;;  %v5044_v21 = vsel %vm4605_vm7, 1.0, %v6005_v60  ;;  %v5045_v57 = vsel %vm4606_vm8, 1.0, %v6005_v60  ;;  %v5046_v27 = vsel %vm4607_vm10, 1.0, %v6005_v60  ;;  %vm4608_vm11 = vcmp.ne.s32.totalorder %v6876_v40, 4294967196 }
0x2b33   :  { %v4635_v22 = vsel %vm4621_vm9, %v5044_v21, 0.0  ;;  %v4636_v62 = vsel %vm4621_vm9, %v5045_v57, 0.0  ;;  %v4638_v29 = vsel %vm4621_vm9, %v5046_v27, 0.0  ;;  %v5047_v31 = vsel %vm4608_vm11, 1.0, %v6005_v60  ;;  %s6011_s4 = smov [#allocation4]  }
0x2b34   :  { %v4637_v28 = vadd.f32 %v4636_v62, %v4635_v22  ;;  %v4640_v19 = vsel %vm4621_vm9, %v5047_v31, 0.0  ;;  %s4679_s18 = sshll.u32 %s6011_s4, 4  ;;  %vm4655_vm12 = vcmask 0   ;;  %s4680_s18 = int_to_ptr.vmem [resolvable:$true] %s4679_s18 }
0x2b35   :  { %s5949_s22 = scalar_lea.vmem %s4680_s18, 16  ;;  %s5953_s23 = scalar_lea.vmem %s4680_s18, 32 }
0x2b36   :  { %v4639_v1 = vadd.f32 %v4638_v29, %v4637_v28  ;;  %p5950_p8 = scmp.ne.s32.totalorder %s4680_s18, %s5949_s22  ;;  %p5954_p9 = scmp.lt.s32.totalorder %s4680_s18, %s4680_s18 }
0x2b37   :  { %p5955_p10 = scmp.lt.s32.totalorder %s5953_s23, %s5949_s22 }
0x2b38   :  { %v4641_v32 = vadd.f32 %v4640_v19, %v4639_v1 }
0x2b39   :  { %p5956_p11 = por %p5955_p10, %p5954_p9 }
0x2b3a   :  { %v4642_v54 = vrot.slane %v4641_v32, 4 }
0x2b3b   :  { %p5957_p12 = pnand %p5956_p11, %p5950_p8 }
0x2b3c   :  { %v4643_v42 = vadd.f32 %v4642_v54, %v4641_v32 }
0x2b3e   :  { %v4644_v37 = vrot.slane %v4643_v42, 2 }
0x2b40   :  { %v4645_v17 = vadd.f32 %v4644_v37, %v4643_v42 }
0x2b42   :  { %v4646_v39 = vrot.slane %v4645_v17, 1 }
0x2b44   :  { %v4647_v61 = vadd.f32 %v4646_v39, %v4645_v17 }
0x2b46   :  { %v4648_v6 = vmax.f32 %v4647_v61, 1.0 }
0x2ba2   :  { %v4582_v58 = vpop.xlane.xlu1 %4581 }
0x2ba3   :  { %5909 = vlog2.f32 %v4582_v58 }
0x2ba6   :  { %v4586_v33 = vpop.xlane.xlu1 %4585 }
0x2ba7   :  { %5911 = vlog2.f32 %v4586_v33  ;;  %v4584_v63 = vpop.xlane.xlu0 %4583 }
0x2ba8   :  { %5913 = vlog2.f32 %v4584_v63 }
0x2baa   :  { %v4588_v34 = vpop.xlane.xlu1 %4587 }
0x2bab   :  { %5915 = vlog2.f32 %v4588_v34  ;;  %v4558_v43 = vpop.xlane.xlu0 %4557 }
0x2bac   :  { %5917 = vrcp.f32 %v4648_v6 }
0x2bad   :  { %v5910_v35 = vpop.eup %5909 }
0x2bae   :  { %v4590_v16 = vmul.f32 0.6931472, %v5910_v35  ;;  %v4554_v26 = vpop.xlane.xlu1 %4553 }
0x2bb0   :  { %v4597_v60 = vadd.f32 %v4590_v16, %v6883_v7 }
0x2bb1   :  { %v5912_v38 = vpop.eup %5911 }
0x2bb2   :  { %v5914_v18 = vpop.eup %5913  ;;  %v4594_v51 = vmul.f32 0.6931472, %v5912_v38  ;;  %v4601_v46 = vsub.f32 %v4597_v60, %v4554_v26  ;;  %v4556_v47 = vpop.xlane.xlu1 %4555 }
0x2bb3   :  { %v4592_v48 = vmul.f32 0.6931472, %v5914_v18 }
0x2bb4   :  { %v4599_v41 = vadd.f32 %v4594_v51, %v6888_v36  ;;  %v4617_v40 = vmul.f32 %v5044_v21, %v4601_v46 }
0x2bb5   :  { %v5916_v53 = vpop.eup %5915  ;;  %v4598_v49 = vadd.f32 %v4592_v48, %v6892_v45 }
0x2bb6   :  { %v4596_v56 = vmul.f32 0.6931472, %v5916_v53  ;;  %v4603_v52 = vsub.f32 %v4599_v41, %v4558_v43  ;;  %v4560_v50 = vpop.xlane.xlu1 %4559  ;;  %v4622_v23 = vsel %vm4621_vm9, %v4617_v40, 0.0  ;;  %v5918_v5 = vpop.eup %5917 }
0x2bb7   :  { %v4602_v14 = vsub.f32 %v4598_v49, %v4556_v47 }
0x2bb8   :  { %v4600_v59 = vadd.f32 %v4596_v56, %v6886_v11  ;;  %v4619_v7 = vmul.f32 %v5046_v27, %v4603_v52 }
0x2bb9   :  { %v4618_v10 = vmul.f32 %v5045_v57, %v4602_v14 }
0x2bba   :  { %v4604_v55 = vsub.f32 %v4600_v59, %v4560_v50  ;;  %v4625_v45 = vsel %vm4621_vm9, %v4619_v7, 0.0 }
0x2bbb   :  { %v4623_v36 = vsel %vm4621_vm9, %v4618_v10, 0.0 }
0x2bbc   :  { %v4624_v25 = vadd.f32 %v4623_v36, %v4622_v23  ;;  %v4620_v24 = vmul.f32 %v5047_v31, %v4604_v55 }
0x2bbe   :  { %v4626_v9 = vadd.f32 %v4625_v45, %v4624_v25  ;;  %v4627_v12 = vsel %vm4621_vm9, %v4620_v24, 0.0 }
0x2bc0   :  { %v4628_v30 = vadd.f32 %v4627_v12, %v4626_v9 }
0x2bc2   :  { %v4629_v11 = vrot.slane %v4628_v30, 4 }
0x2bc4   :  { %v4630_v3 = vadd.f32 %v4629_v11, %v4628_v30 }
0x2bc6   :  { %v4631_v13 = vrot.slane %v4630_v3, 2 }
0x2bc8   :  { %v4632_v4 = vadd.f32 %v4631_v13, %v4630_v3 }
0x2bca   :  { %v4633_v44 = vrot.slane %v4632_v4, 1 }
0x2bcc   :  { %v4634_v8 = vadd.f32 %v4633_v44, %v4632_v4 }
0x2bce   :  { %v4650_v15 = vmul.f32 %v5918_v5, %v4634_v8 }
0x2bd0   :  { %4656 = vst.msk [vmem:[#allocation4] sm:$0x1] %vm4655_vm12, %v4650_v15 }
0x2bd1   :  { %5960 = shalt.err (!%p5957_p12)
}
0x2bd2   :  { %s5961_s26 = scalar_lea.hbm %s6170_s13, 16 }
0x2bd3   :  { %p5962_p13 = scmp.ne.s32.totalorder %s6170_s13, %s5961_s26  ;;  %p5965_p0 = scmp.lt.u32.totalorder %s5961_s26, %s6170_s13 }
0x2bd5   :  { %p5967_p1 = pnand %p5965_p0, %p5962_p13 }
0x2bd7   :  { %5970 = shalt.err (!%p5967_p1)
}
0x2bd8   :  { %4682 = dma.vmem_to_hbm [thread:$0]  %s4680_s18, 16, %s6170_s13, [#allocation5]  }
0x2bd9   :  { %5971 = dma.done.wait [#allocation3], 512  }
0x2bda   :  { %5972 = vsyncadd [#allocation3], 4294966784 }
0x2bdb   :  { %5973 = dma.done.wait [#allocation5], 16  }
0x2bdc   :  { %5974 = vsyncadd [#allocation5], 4294967280 }
0x2bdd   :  { %4693 = vsyncpa [#allocation3], 1 }
0x2bde   :  { %4694 = vsyncpa [#allocation5], 1 }

</bundles_post_ra>
